<compile_context>
chip_gen: v5e
topology: v5e:2x2
jax: 0.10.0
libtpu: 0.0.40
codegen_flags: <defaults>
</compile_context>

<pallas_src>
import functools

import jax
import jax.numpy as jnp
from jax import lax
from jax.experimental import pallas as pl
from jax.experimental.pallas import tpu as pltpu

EPS = 1e-5  # PyTorch BatchNorm default eps


def _round_up(x, m):
    return (x + m - 1) // m * m


# ----------------------------------------------------------------------------
# Kernel 1: M-tiled  maybe_relu(x @ w + b)   (used for the three convs)
# x, w are bf16 (f32 accumulation); bias is f32; output dtype selectable.
# Weights/bias stay resident in VMEM across the (tiny) M grid; K and Nout keep
# their true narrow widths ("block == full array dim" exemption).
# ----------------------------------------------------------------------------
def _mm_bias_kernel(x_ref, w_ref, b_ref, o_ref, *, apply_relu):
    y = jnp.dot(x_ref[...], w_ref[...], preferred_element_type=jnp.float32)
    y = y + b_ref[...]
    if apply_relu:
        y = jnp.maximum(y, 0.0)
    o_ref[...] = y.astype(o_ref.dtype)


def tiled_matmul_bias(x, w, b, *, apply_relu, out_dtype=jnp.bfloat16,
                      n_blocks=2):
    """maybe_relu(x @ w + b); M split into n_blocks parallel blocks."""
    M, K = x.shape
    Kw, Nout = w.shape
    assert K == Kw
    Mp = _round_up(M, 16 * n_blocks)          # bf16 sublane tile = 16
    if Mp != M:
        x = jnp.pad(x, ((0, Mp - M), (0, 0)))  # only M is padded (small)
    TM = Mp // n_blocks
    out = pl.pallas_call(
        functools.partial(_mm_bias_kernel, apply_relu=apply_relu),
        out_shape=jax.ShapeDtypeStruct((Mp, Nout), out_dtype),
        grid=(n_blocks,),
        in_specs=[
            pl.BlockSpec((TM, K), lambda i: (i, 0)),      # activations: tiled M
            pl.BlockSpec((K, Nout), lambda i: (0, 0)),    # weight: resident
            pl.BlockSpec((1, Nout), lambda i: (0, 0)),    # bias:   resident
        ],
        out_specs=pl.BlockSpec((TM, Nout), lambda i: (i, 0)),
        compiler_params=pltpu.CompilerParams(
            dimension_semantics=("parallel",),            # 2 TCs on v7x
            vmem_limit_bytes=32 * 1024 * 1024,            # explicit for v5e
        ),
    )(x, w, b)
    return out[:M] if Mp != M else out


# ----------------------------------------------------------------------------
# Kernel 2: whole linear stack (Linear+BN+ReLU x5, Linear) in one pallas_call.
# All weights (~1.6 MB bf16) live in VMEM; activations never touch HBM between
# layers; accumulation and bias/ReLU in f32, re-cast to bf16 per layer.
# ----------------------------------------------------------------------------
def _mlp_kernel(*refs):
    x_ref = refs[0]
    o_ref = refs[-1]
    wb = refs[1:-1]                       # (w1, b1, w2, b2, ..., wL, bL)
    n_layers = len(wb) // 2
    h = x_ref[...]                        # bf16
    for i in range(n_layers):
        w = wb[2 * i][...]                # bf16
        b = wb[2 * i + 1][...]            # f32
        y = jnp.dot(h, w, preferred_element_type=jnp.float32) + b
        if i < n_layers - 1:              # final Linear: no BN / no ReLU
            h = jnp.maximum(y, 0.0).astype(jnp.bfloat16)
        else:
            h = y                         # keep final output in f32
    o_ref[...] = h


def fused_mlp(x, weights, biases):
    M, K = x.shape
    Mp = _round_up(M, 16)
    if Mp != M:
        x = jnp.pad(x, ((0, Mp - M), (0, 0)))
    Nout = weights[-1].shape[1]

    in_specs = [pl.BlockSpec((Mp, K), lambda i: (0, 0))]
    args = [x]
    for w, b in zip(weights, biases):
        in_specs.append(pl.BlockSpec(w.shape, lambda i: (0, 0)))
        in_specs.append(pl.BlockSpec(b.shape, lambda i: (0, 0)))
        args.append(w)
        args.append(b)

    out = pl.pallas_call(
        _mlp_kernel,
        out_shape=jax.ShapeDtypeStruct((Mp, Nout), jnp.float32),
        grid=(1,),
        in_specs=in_specs,
        out_specs=pl.BlockSpec((Mp, Nout), lambda i: (0, 0)),
        compiler_params=pltpu.CompilerParams(
            dimension_semantics=("arbitrary",),
            vmem_limit_bytes=32 * 1024 * 1024,
        ),
    )(*args)
    return out[:M]


# ----------------------------------------------------------------------------
# Conv2d(k=3, stride=2, pad=0) + BatchNorm2d(eval) + ReLU  via im2col + kernel1
# (im2col is jit-fused XLA glue; bf16 end to end)
# ----------------------------------------------------------------------------
def conv_bn_relu(x_nhwc, wmat, bias):
    """wmat: (Cin*9, Cout) bf16 with BN scale pre-folded; bias: (1, Cout) f32."""
    N, H, W, C = x_nhwc.shape
    Cout = wmat.shape[1]
    Ho = (H - 3) // 2 + 1
    Wo = (W - 3) // 2 + 1
    # im2col; feature ordering (cin, ky, kx) matches reshaped OIHW weights.
    slabs = [x_nhwc[:, ky::2, kx::2, :][:, :Ho, :Wo, :]
             for ky in range(3) for kx in range(3)]
    patches = jnp.stack(slabs, axis=-1)            # (N, Ho, Wo, Cin, 9)
    patches = patches.reshape(N * Ho * Wo, C * 9)  # cin-major, (ky,kx)-minor
    y = tiled_matmul_bias(patches, wmat, bias, apply_relu=True,
                          out_dtype=jnp.bfloat16)
    return y.reshape(N, Ho, Wo, Cout)


# ----------------------------------------------------------------------------
# Deterministic parameter construction (shapes from Encoder.__init__)
# ----------------------------------------------------------------------------
def init_params(key, encoded_space_dim=16, fc_layer_size=128):
    params = {"conv": [], "lin": []}
    for cin, cout in [(1, 8), (8, 16), (16, 32)]:
        key, k1, k2, k3, k4, k5, k6 = jax.random.split(key, 7)
        params["conv"].append(dict(
            w=0.1 * jax.random.normal(k1, (cout, cin, 3, 3), jnp.float32),
            b=0.1 * jax.random.normal(k2, (cout,), jnp.float32),
            gamma=1.0 + 0.1 * jax.random.normal(k3, (cout,), jnp.float32),
            beta=0.1 * jax.random.normal(k4, (cout,), jnp.float32),
            mean=0.1 * jax.random.normal(k5, (cout,), jnp.float32),
            var=1.0 + 0.1 * jax.random.uniform(k6, (cout,), jnp.float32),
        ))
    lin_dims = ([(32 * 16 * 11, fc_layer_size)]
                + [(fc_layer_size, fc_layer_size)] * 4
                + [(fc_layer_size, encoded_space_dim)])
    for i, (din, dout) in enumerate(lin_dims):
        key, k1, k2, k3, k4, k5, k6 = jax.random.split(key, 7)
        sc = 1.0 / jnp.sqrt(jnp.float32(din))
        d = dict(
            w=sc * jax.random.normal(k1, (dout, din), jnp.float32),  # (out, in)
            b=sc * jax.random.normal(k2, (dout,), jnp.float32),
        )
        if i < len(lin_dims) - 1:  # final Linear has no BatchNorm/ReLU
            d.update(
                gamma=1.0 + 0.1 * jax.random.normal(k3, (dout,), jnp.float32),
                beta=0.1 * jax.random.normal(k4, (dout,), jnp.float32),
                mean=0.1 * jax.random.normal(k5, (dout,), jnp.float32),
                var=1.0 + 0.1 * jax.random.uniform(k6, (dout,), jnp.float32),
            )
        params["lin"].append(d)
    return params


def prepare_params(params, conv_out_hw=(16, 11)):
    """Fold eval-mode BatchNorm into weights/bias, pre-transpose, cast to bf16.

    The first MLP weight's rows are additionally permuted from PyTorch's
    flatten order (c, h, w) to the kernel's NHWC flatten order (h, w, c), so
    no transpose is needed between conv3 and the MLP.  Done once, outside jit.
    NOTE: this assumes eval-mode (running-stats) BatchNorm, matching
    `model.eval()` in PyTorch; training-mode batch statistics are not modeled.
    """
    prepared = {"conv": [], "lin_w": [], "lin_b": []}
    for p in params["conv"]:
        s = p["gamma"] / jnp.sqrt(p["var"] + EPS)            # (Cout,)
        cout = p["w"].shape[0]
        wmat = (p["w"] * s[:, None, None, None]).reshape(cout, -1).T
        b = (p["beta"] + (p["b"] - p["mean"]) * s)[None, :]
        prepared["conv"].append((wmat.astype(jnp.bfloat16),
                                 b.astype(jnp.float32)))
    n_lin = len(params["lin"])
    Hc, Wc = conv_out_hw
    for i, p in enumerate(params["lin"]):
        if i < n_lin - 1:
            s = p["gamma"] / jnp.sqrt(p["var"] + EPS)
            w = p["w"].T * s[None, :]                        # (in, out)
            b = (p["beta"] + (p["b"] - p["mean"]) * s)[None, :]
        else:
            w = p["w"].T
            b = p["b"][None, :]
        if i == 0:
            # rows: PyTorch (c, h, w) order -> kernel (h, w, c) order
            fout = w.shape[1]
            cconv = w.shape[0] // (Hc * Wc)                  # 32
            w = (w.reshape(cconv, Hc, Wc, fout)
                   .transpose(1, 2, 0, 3)
                   .reshape(Hc * Wc * cconv, fout))
        prepared["lin_w"].append(w.astype(jnp.bfloat16))
        prepared["lin_b"].append(b.astype(jnp.float32))
    return prepared


# ----------------------------------------------------------------------------
# Encoder forward pass (jit this)
# ----------------------------------------------------------------------------
def encoder_forward(x_nchw, prepared):
    N, C, H, W = x_nchw.shape
    assert C == 1
    # F.pad(x, (4,4,4,4)) pads last two dims (W then H) by 4 on each side.
    x = jnp.pad(x_nchw, ((0, 0), (0, 0), (4, 4), (4, 4)))
    # NCHW -> NHWC: with Cin == 1 this is a pure (free) reshape.
    x = x.reshape(N, H + 8, W + 8, 1).astype(jnp.bfloat16)

    for wmat, b in prepared["conv"]:
        x = conv_bn_relu(x, wmat, b)

    # Flatten in NHWC (h, w, c) order; the first MLP weight was row-permuted
    # in prepare_params to match, so no transpose is needed here.
    x = x.reshape(N, -1)  # (N, 16*11*32) = (N, 5632), bf16

    return fused_mlp(x, prepared["lin_w"], prepared["lin_b"])


# ----------------------------------------------------------------------------
# Pure-JAX (f32) reference of the PyTorch module, for a numerical sanity check
# ----------------------------------------------------------------------------
def encoder_reference(x_nchw, params):
    x = jnp.pad(x_nchw, ((0, 0), (0, 0), (4, 4), (4, 4)))
    for p in params["conv"]:
        x = lax.conv_general_dilated(
            x, p["w"], window_strides=(2, 2), padding="VALID",
            dimension_numbers=("NCHW", "OIHW", "NCHW"))
        x = x + p["b"][None, :, None, None]
        s = p["gamma"] / jnp.sqrt(p["var"] + EPS)
        x = ((x - p["mean"][None, :, None, None]) * s[None, :, None, None]
             + p["beta"][None, :, None, None])
        x = jnp.maximum(x, 0.0)
    x = x.reshape(x.shape[0], -1)
    n_lin = len(params["lin"])
    for i, p in enumerate(params["lin"]):
        x = x @ p["w"].T + p["b"]
        if i < n_lin - 1:
            s = p["gamma"] / jnp.sqrt(p["var"] + EPS)
            x = (x - p["mean"]) * s + p["beta"]
            x = jnp.maximum(x, 0.0)
    return x


if __name__ == "__main__":
    key = jax.random.PRNGKey(0)
    pkey, xkey = jax.random.split(key)

    encoded_space_dim = 16
    params = init_params(pkey, encoded_space_dim=encoded_space_dim,
                         fc_layer_size=128)
    prepared = prepare_params(params)

    # Spatial size 128x88 is fixed by the module: pad(4) + three stride-2
    # valid 3x3 convs -> 16x11 feature map, matching Linear(32*16*11, ...).
    x = jax.random.normal(xkey, (2, 1, 128, 88), jnp.float32)

    fwd = jax.jit(encoder_forward)
    out = jax.block_until_ready(fwd(x, prepared))

    assert out.shape == (2, encoded_space_dim), out.shape
    assert bool(jnp.all(jnp.isfinite(out)))

    # Numerical check vs a pure-JAX f32 reference (bf16 matmuls -> loose tol).
    ref = jax.block_until_ready(jax.jit(encoder_reference)(x, params))
    rel_err = float(jnp.linalg.norm(out - ref) /
                    (jnp.linalg.norm(ref) + 1e-9))
    assert rel_err < 0.1, f"relative error too large: {rel_err}"

    print("KERNEL_OK")
</pallas_src>

<mosaic_0001>
module attributes {stable_mosaic.version = 11 : i64} {
  func.func @_mm_bias_kernel(%arg0: i32, %arg1: memref<3152x9xbf16, #tpu.memory_space<vmem>>, %arg2: memref<9x8xbf16, #tpu.memory_space<vmem>>, %arg3: memref<1x8xf32, #tpu.memory_space<vmem>>, %arg4: memref<3152x8xbf16, #tpu.memory_space<vmem>>) attributes {dimension_semantics = [#tpu.dimension_semantics<parallel>], iteration_bounds = array<i64: 2>, scalar_prefetch = 0 : i64, scratch_operands = 0 : i64, tpu.core_type = #tpu.core_type<tc>, window_params = [{transform_indices = @transform_0, window_bounds = array<i64: 3152, 9>}, {pipeline_mode = #tpu.pipeline_mode<synchronous>, transform_indices = @transform_1, window_bounds = array<i64: 9, 8>}, {pipeline_mode = #tpu.pipeline_mode<synchronous>, transform_indices = @transform_2, window_bounds = array<i64: 1, 8>}, {transform_indices = @transform_3, window_bounds = array<i64: 3152, 8>}]} {
    %c0 = arith.constant 0 : index
    %c0_0 = arith.constant 0 : index
    %0 = vector.load %arg1[%c0, %c0_0] : memref<3152x9xbf16, #tpu.memory_space<vmem>>, vector<3152x9xbf16>
    %c0_1 = arith.constant 0 : index
    %c0_2 = arith.constant 0 : index
    %1 = vector.load %arg2[%c0_1, %c0_2] : memref<9x8xbf16, #tpu.memory_space<vmem>>, vector<9x8xbf16>
    %cst = arith.constant dense<0.000000e+00> : vector<3152x8xf32>
    %2 = tpu.matmul %0, %1, %cst {dimension_numbers = #tpu.dot_dimension_numbers<[1], [0], [0], [1], [0, 0, 1, 1], [], []>} : vector<3152x9xbf16>, vector<9x8xbf16>, vector<3152x8xf32> -> vector<3152x8xf32>
    %c0_3 = arith.constant 0 : index
    %c0_4 = arith.constant 0 : index
    %3 = vector.load %arg3[%c0_3, %c0_4] : memref<1x8xf32, #tpu.memory_space<vmem>>, vector<1x8xf32>
    %4 = vector.broadcast %3 : vector<1x8xf32> to vector<3152x8xf32>
    %5 = arith.addf %2, %4 : vector<3152x8xf32>
    %cst_5 = arith.constant 0.000000e+00 : f32
    %6 = vector.broadcast %cst_5 : f32 to vector<3152x8xf32>
    %7 = arith.maximumf %5, %6 : vector<3152x8xf32>
    %8 = arith.truncf %7 : vector<3152x8xf32> to vector<3152x8xbf16>
    %c0_6 = arith.constant 0 : index
    %c0_7 = arith.constant 0 : index
    %9 = vector.load %arg4[%c0_6, %c0_7] : memref<3152x8xbf16, #tpu.memory_space<vmem>>, vector<3152x8xbf16>
    tpu.vector_store %arg4[%c0_6, %c0_7], %8 {strides = array<i32>} : memref<3152x8xbf16, #tpu.memory_space<vmem>>, vector<3152x8xbf16>,
    return
  }
  func.func @transform_0(%arg0: i32) -> (i32, i32) {
    %c0_i32 = arith.constant 0 : i32
    %c0_i32_0 = arith.constant 0 : i32
    return %arg0, %c0_i32 : i32, i32
  }
  func.func @transform_1(%arg0: i32) -> (i32, i32) {
    %c0_i32 = arith.constant 0 : i32
    %c0_i32_0 = arith.constant 0 : i32
    %c0_i32_1 = arith.constant 0 : i32
    return %c0_i32, %c0_i32_0 : i32, i32
  }
  func.func @transform_2(%arg0: i32) -> (i32, i32) {
    %c0_i32 = arith.constant 0 : i32
    %c0_i32_0 = arith.constant 0 : i32
    %c0_i32_1 = arith.constant 0 : i32
    return %c0_i32, %c0_i32_0 : i32, i32
  }
  func.func @transform_3(%arg0: i32) -> (i32, i32) {
    %c0_i32 = arith.constant 0 : i32
    %c0_i32_0 = arith.constant 0 : i32
    return %arg0, %c0_i32 : i32, i32
  }
}

module attributes {stable_mosaic.version = 11 : i64} {
  func.func @_mm_bias_kernel(%arg0: i32, %arg1: memref<768x72xbf16, #tpu.memory_space<vmem>>, %arg2: memref<72x16xbf16, #tpu.memory_space<vmem>>, %arg3: memref<1x16xf32, #tpu.memory_space<vmem>>, %arg4: memref<768x16xbf16, #tpu.memory_space<vmem>>) attributes {dimension_semantics = [#tpu.dimension_semantics<parallel>], iteration_bounds = array<i64: 2>, scalar_prefetch = 0 : i64, scratch_operands = 0 : i64, tpu.core_type = #tpu.core_type<tc>, window_params = [{transform_indices = @transform_0, window_bounds = array<i64: 768, 72>}, {pipeline_mode = #tpu.pipeline_mode<synchronous>, transform_indices = @transform_1, window_bounds = array<i64: 72, 16>}, {pipeline_mode = #tpu.pipeline_mode<synchronous>, transform_indices = @transform_2, window_bounds = array<i64: 1, 16>}, {transform_indices = @transform_3, window_bounds = array<i64: 768, 16>}]} {
    %c0 = arith.constant 0 : index
    %c0_0 = arith.constant 0 : index
    %0 = vector.load %arg1[%c0, %c0_0] : memref<768x72xbf16, #tpu.memory_space<vmem>>, vector<768x72xbf16>
    %c0_1 = arith.constant 0 : index
    %c0_2 = arith.constant 0 : index
    %1 = vector.load %arg2[%c0_1, %c0_2] : memref<72x16xbf16, #tpu.memory_space<vmem>>, vector<72x16xbf16>
    %cst = arith.constant dense<0.000000e+00> : vector<768x16xf32>
    %2 = tpu.matmul %0, %1, %cst {dimension_numbers = #tpu.dot_dimension_numbers<[1], [0], [0], [1], [0, 0, 1, 1], [], []>} : vector<768x72xbf16>, vector<72x16xbf16>, vector<768x16xf32> -> vector<768x16xf32>
    %c0_3 = arith.constant 0 : index
    %c0_4 = arith.constant 0 : index
    %3 = vector.load %arg3[%c0_3, %c0_4] : memref<1x16xf32, #tpu.memory_space<vmem>>, vector<1x16xf32>
    %4 = vector.broadcast %3 : vector<1x16xf32> to vector<768x16xf32>
    %5 = arith.addf %2, %4 : vector<768x16xf32>
    %cst_5 = arith.constant 0.000000e+00 : f32
    %6 = vector.broadcast %cst_5 : f32 to vector<768x16xf32>
    %7 = arith.maximumf %5, %6 : vector<768x16xf32>
    %8 = arith.truncf %7 : vector<768x16xf32> to vector<768x16xbf16>
    %c0_6 = arith.constant 0 : index
    %c0_7 = arith.constant 0 : index
    %9 = vector.load %arg4[%c0_6, %c0_7] : memref<768x16xbf16, #tpu.memory_space<vmem>>, vector<768x16xbf16>
    tpu.vector_store %arg4[%c0_6, %c0_7], %8 {strides = array<i32>} : memref<768x16xbf16, #tpu.memory_space<vmem>>, vector<768x16xbf16>,
    return
  }
  func.func @transform_0(%arg0: i32) -> (i32, i32) {
    %c0_i32 = arith.constant 0 : i32
    %c0_i32_0 = arith.constant 0 : i32
    return %arg0, %c0_i32 : i32, i32
  }
  func.func @transform_1(%arg0: i32) -> (i32, i32) {
    %c0_i32 = arith.constant 0 : i32
    %c0_i32_0 = arith.constant 0 : i32
    %c0_i32_1 = arith.constant 0 : i32
    return %c0_i32, %c0_i32_0 : i32, i32
  }
  func.func @transform_2(%arg0: i32) -> (i32, i32) {
    %c0_i32 = arith.constant 0 : i32
    %c0_i32_0 = arith.constant 0 : i32
    %c0_i32_1 = arith.constant 0 : i32
    return %c0_i32, %c0_i32_0 : i32, i32
  }
  func.func @transform_3(%arg0: i32) -> (i32, i32) {
    %c0_i32 = arith.constant 0 : i32
    %c0_i32_0 = arith.constant 0 : i32
    return %arg0, %c0_i32 : i32, i32
  }
}

module attributes {stable_mosaic.version = 11 : i64} {
  func.func @_mm_bias_kernel(%arg0: i32, %arg1: memref<176x144xbf16, #tpu.memory_space<vmem>>, %arg2: memref<144x32xbf16, #tpu.memory_space<vmem>>, %arg3: memref<1x32xf32, #tpu.memory_space<vmem>>, %arg4: memref<176x32xbf16, #tpu.memory_space<vmem>>) attributes {dimension_semantics = [#tpu.dimension_semantics<parallel>], iteration_bounds = array<i64: 2>, scalar_prefetch = 0 : i64, scratch_operands = 0 : i64, tpu.core_type = #tpu.core_type<tc>, window_params = [{transform_indices = @transform_0, window_bounds = array<i64: 176, 144>}, {pipeline_mode = #tpu.pipeline_mode<synchronous>, transform_indices = @transform_1, window_bounds = array<i64: 144, 32>}, {pipeline_mode = #tpu.pipeline_mode<synchronous>, transform_indices = @transform_2, window_bounds = array<i64: 1, 32>}, {transform_indices = @transform_3, window_bounds = array<i64: 176, 32>}]} {
    %c0 = arith.constant 0 : index
    %c0_0 = arith.constant 0 : index
    %0 = vector.load %arg1[%c0, %c0_0] : memref<176x144xbf16, #tpu.memory_space<vmem>>, vector<176x144xbf16>
    %c0_1 = arith.constant 0 : index
    %c0_2 = arith.constant 0 : index
    %1 = vector.load %arg2[%c0_1, %c0_2] : memref<144x32xbf16, #tpu.memory_space<vmem>>, vector<144x32xbf16>
    %cst = arith.constant dense<0.000000e+00> : vector<176x32xf32>
    %2 = tpu.matmul %0, %1, %cst {dimension_numbers = #tpu.dot_dimension_numbers<[1], [0], [0], [1], [0, 0, 1, 1], [], []>} : vector<176x144xbf16>, vector<144x32xbf16>, vector<176x32xf32> -> vector<176x32xf32>
    %c0_3 = arith.constant 0 : index
    %c0_4 = arith.constant 0 : index
    %3 = vector.load %arg3[%c0_3, %c0_4] : memref<1x32xf32, #tpu.memory_space<vmem>>, vector<1x32xf32>
    %4 = vector.broadcast %3 : vector<1x32xf32> to vector<176x32xf32>
    %5 = arith.addf %2, %4 : vector<176x32xf32>
    %cst_5 = arith.constant 0.000000e+00 : f32
    %6 = vector.broadcast %cst_5 : f32 to vector<176x32xf32>
    %7 = arith.maximumf %5, %6 : vector<176x32xf32>
    %8 = arith.truncf %7 : vector<176x32xf32> to vector<176x32xbf16>
    %c0_6 = arith.constant 0 : index
    %c0_7 = arith.constant 0 : index
    %9 = vector.load %arg4[%c0_6, %c0_7] : memref<176x32xbf16, #tpu.memory_space<vmem>>, vector<176x32xbf16>
    tpu.vector_store %arg4[%c0_6, %c0_7], %8 {strides = array<i32>} : memref<176x32xbf16, #tpu.memory_space<vmem>>, vector<176x32xbf16>,
    return
  }
  func.func @transform_0(%arg0: i32) -> (i32, i32) {
    %c0_i32 = arith.constant 0 : i32
    %c0_i32_0 = arith.constant 0 : i32
    return %arg0, %c0_i32 : i32, i32
  }
  func.func @transform_1(%arg0: i32) -> (i32, i32) {
    %c0_i32 = arith.constant 0 : i32
    %c0_i32_0 = arith.constant 0 : i32
    %c0_i32_1 = arith.constant 0 : i32
    return %c0_i32, %c0_i32_0 : i32, i32
  }
  func.func @transform_2(%arg0: i32) -> (i32, i32) {
    %c0_i32 = arith.constant 0 : i32
    %c0_i32_0 = arith.constant 0 : i32
    %c0_i32_1 = arith.constant 0 : i32
    return %c0_i32, %c0_i32_0 : i32, i32
  }
  func.func @transform_3(%arg0: i32) -> (i32, i32) {
    %c0_i32 = arith.constant 0 : i32
    %c0_i32_0 = arith.constant 0 : i32
    return %arg0, %c0_i32 : i32, i32
  }
}

module attributes {stable_mosaic.version = 11 : i64} {
  func.func @_mlp_kernel(%arg0: i32, %arg1: memref<16x5632xbf16, #tpu.memory_space<vmem>>, %arg2: memref<5632x128xbf16, #tpu.memory_space<vmem>>, %arg3: memref<1x128xf32, #tpu.memory_space<vmem>>, %arg4: memref<128x128xbf16, #tpu.memory_space<vmem>>, %arg5: memref<1x128xf32, #tpu.memory_space<vmem>>, %arg6: memref<128x128xbf16, #tpu.memory_space<vmem>>, %arg7: memref<1x128xf32, #tpu.memory_space<vmem>>, %arg8: memref<128x128xbf16, #tpu.memory_space<vmem>>, %arg9: memref<1x128xf32, #tpu.memory_space<vmem>>, %arg10: memref<128x128xbf16, #tpu.memory_space<vmem>>, %arg11: memref<1x128xf32, #tpu.memory_space<vmem>>, %arg12: memref<128x16xbf16, #tpu.memory_space<vmem>>, %arg13: memref<1x16xf32, #tpu.memory_space<vmem>>, %arg14: memref<16x16xf32, #tpu.memory_space<vmem>>) attributes {dimension_semantics = [#tpu.dimension_semantics<arbitrary>], iteration_bounds = array<i64: 1>, scalar_prefetch = 0 : i64, scratch_operands = 0 : i64, tpu.core_type = #tpu.core_type<tc>, window_params = [{pipeline_mode = #tpu.pipeline_mode<synchronous>, transform_indices = @transform_0, window_bounds = array<i64: 16, 5632>}, {pipeline_mode = #tpu.pipeline_mode<synchronous>, transform_indices = @transform_1, window_bounds = array<i64: 5632, 128>}, {pipeline_mode = #tpu.pipeline_mode<synchronous>, transform_indices = @transform_2, window_bounds = array<i64: 1, 128>}, {pipeline_mode = #tpu.pipeline_mode<synchronous>, transform_indices = @transform_3, window_bounds = array<i64: 128, 128>}, {pipeline_mode = #tpu.pipeline_mode<synchronous>, transform_indices = @transform_4, window_bounds = array<i64: 1, 128>}, {pipeline_mode = #tpu.pipeline_mode<synchronous>, transform_indices = @transform_5, window_bounds = array<i64: 128, 128>}, {pipeline_mode = #tpu.pipeline_mode<synchronous>, transform_indices = @transform_6, window_bounds = array<i64: 1, 128>}, {pipeline_mode = #tpu.pipeline_mode<synchronous>, transform_indices = @transform_7, window_bounds = array<i64: 128, 128>}, {pipeline_mode = #tpu.pipeline_mode<synchronous>, transform_indices = @transform_8, window_bounds = array<i64: 1, 128>}, {pipeline_mode = #tpu.pipeline_mode<synchronous>, transform_indices = @transform_9, window_bounds = array<i64: 128, 128>}, {pipeline_mode = #tpu.pipeline_mode<synchronous>, transform_indices = @transform_10, window_bounds = array<i64: 1, 128>}, {pipeline_mode = #tpu.pipeline_mode<synchronous>, transform_indices = @transform_11, window_bounds = array<i64: 128, 16>}, {pipeline_mode = #tpu.pipeline_mode<synchronous>, transform_indices = @transform_12, window_bounds = array<i64: 1, 16>}, {pipeline_mode = #tpu.pipeline_mode<synchronous>, transform_indices = @transform_13, window_bounds = array<i64: 16, 16>}]} {
    %c0 = arith.constant 0 : index
    %c0_0 = arith.constant 0 : index
    %0 = vector.load %arg1[%c0, %c0_0] : memref<16x5632xbf16, #tpu.memory_space<vmem>>, vector<16x5632xbf16>
    %c0_1 = arith.constant 0 : index
    %c0_2 = arith.constant 0 : index
    %1 = vector.load %arg2[%c0_1, %c0_2] : memref<5632x128xbf16, #tpu.memory_space<vmem>>, vector<5632x128xbf16>
    %c0_3 = arith.constant 0 : index
    %c0_4 = arith.constant 0 : index
    %2 = vector.load %arg3[%c0_3, %c0_4] : memref<1x128xf32, #tpu.memory_space<vmem>>, vector<1x128xf32>
    %cst = arith.constant dense<0.000000e+00> : vector<16x128xf32>
    %3 = tpu.matmul %0, %1, %cst {dimension_numbers = #tpu.dot_dimension_numbers<[1], [0], [0], [1], [0, 0, 1, 1], [], []>} : vector<16x5632xbf16>, vector<5632x128xbf16>, vector<16x128xf32> -> vector<16x128xf32>
    %4 = vector.broadcast %2 : vector<1x128xf32> to vector<16x128xf32>
    %5 = arith.addf %3, %4 : vector<16x128xf32>
    %cst_5 = arith.constant 0.000000e+00 : f32
    %6 = vector.broadcast %cst_5 : f32 to vector<16x128xf32>
    %7 = arith.maximumf %5, %6 : vector<16x128xf32>
    %8 = arith.truncf %7 : vector<16x128xf32> to vector<16x128xbf16>
    %c0_6 = arith.constant 0 : index
    %c0_7 = arith.constant 0 : index
    %9 = vector.load %arg4[%c0_6, %c0_7] : memref<128x128xbf16, #tpu.memory_space<vmem>>, vector<128x128xbf16>
    %c0_8 = arith.constant 0 : index
    %c0_9 = arith.constant 0 : index
    %10 = vector.load %arg5[%c0_8, %c0_9] : memref<1x128xf32, #tpu.memory_space<vmem>>, vector<1x128xf32>
    %cst_10 = arith.constant dense<0.000000e+00> : vector<16x128xf32>
    %11 = tpu.matmul %8, %9, %cst_10 {dimension_numbers = #tpu.dot_dimension_numbers<[1], [0], [0], [1], [0, 0, 1, 1], [], []>} : vector<16x128xbf16>, vector<128x128xbf16>, vector<16x128xf32> -> vector<16x128xf32>
    %12 = vector.broadcast %10 : vector<1x128xf32> to vector<16x128xf32>
    %13 = arith.addf %11, %12 : vector<16x128xf32>
    %cst_11 = arith.constant 0.000000e+00 : f32
    %14 = vector.broadcast %cst_11 : f32 to vector<16x128xf32>
    %15 = arith.maximumf %13, %14 : vector<16x128xf32>
    %16 = arith.truncf %15 : vector<16x128xf32> to vector<16x128xbf16>
    %c0_12 = arith.constant 0 : index
    %c0_13 = arith.constant 0 : index
    %17 = vector.load %arg6[%c0_12, %c0_13] : memref<128x128xbf16, #tpu.memory_space<vmem>>, vector<128x128xbf16>
    %c0_14 = arith.constant 0 : index
    %c0_15 = arith.constant 0 : index
    %18 = vector.load %arg7[%c0_14, %c0_15] : memref<1x128xf32, #tpu.memory_space<vmem>>, vector<1x128xf32>
    %cst_16 = arith.constant dense<0.000000e+00> : vector<16x128xf32>
    %19 = tpu.matmul %16, %17, %cst_16 {dimension_numbers = #tpu.dot_dimension_numbers<[1], [0], [0], [1], [0, 0, 1, 1], [], []>} : vector<16x128xbf16>, vector<128x128xbf16>, vector<16x128xf32> -> vector<16x128xf32>
    %20 = vector.broadcast %18 : vector<1x128xf32> to vector<16x128xf32>
    %21 = arith.addf %19, %20 : vector<16x128xf32>
    %cst_17 = arith.constant 0.000000e+00 : f32
    %22 = vector.broadcast %cst_17 : f32 to vector<16x128xf32>
    %23 = arith.maximumf %21, %22 : vector<16x128xf32>
    %24 = arith.truncf %23 : vector<16x128xf32> to vector<16x128xbf16>
    %c0_18 = arith.constant 0 : index
    %c0_19 = arith.constant 0 : index
    %25 = vector.load %arg8[%c0_18, %c0_19] : memref<128x128xbf16, #tpu.memory_space<vmem>>, vector<128x128xbf16>
    %c0_20 = arith.constant 0 : index
    %c0_21 = arith.constant 0 : index
    %26 = vector.load %arg9[%c0_20, %c0_21] : memref<1x128xf32, #tpu.memory_space<vmem>>, vector<1x128xf32>
    %cst_22 = arith.constant dense<0.000000e+00> : vector<16x128xf32>
    %27 = tpu.matmul %24, %25, %cst_22 {dimension_numbers = #tpu.dot_dimension_numbers<[1], [0], [0], [1], [0, 0, 1, 1], [], []>} : vector<16x128xbf16>, vector<128x128xbf16>, vector<16x128xf32> -> vector<16x128xf32>
    %28 = vector.broadcast %26 : vector<1x128xf32> to vector<16x128xf32>
    %29 = arith.addf %27, %28 : vector<16x128xf32>
    %cst_23 = arith.constant 0.000000e+00 : f32
    %30 = vector.broadcast %cst_23 : f32 to vector<16x128xf32>
    %31 = arith.maximumf %29, %30 : vector<16x128xf32>
    %32 = arith.truncf %31 : vector<16x128xf32> to vector<16x128xbf16>
    %c0_24 = arith.constant 0 : index
    %c0_25 = arith.constant 0 : index
    %33 = vector.load %arg10[%c0_24, %c0_25] : memref<128x128xbf16, #tpu.memory_space<vmem>>, vector<128x128xbf16>
    %c0_26 = arith.constant 0 : index
    %c0_27 = arith.constant 0 : index
    %34 = vector.load %arg11[%c0_26, %c0_27] : memref<1x128xf32, #tpu.memory_space<vmem>>, vector<1x128xf32>
    %cst_28 = arith.constant dense<0.000000e+00> : vector<16x128xf32>
    %35 = tpu.matmul %32, %33, %cst_28 {dimension_numbers = #tpu.dot_dimension_numbers<[1], [0], [0], [1], [0, 0, 1, 1], [], []>} : vector<16x128xbf16>, vector<128x128xbf16>, vector<16x128xf32> -> vector<16x128xf32>
    %36 = vector.broadcast %34 : vector<1x128xf32> to vector<16x128xf32>
    %37 = arith.addf %35, %36 : vector<16x128xf32>
    %cst_29 = arith.constant 0.000000e+00 : f32
    %38 = vector.broadcast %cst_29 : f32 to vector<16x128xf32>
    %39 = arith.maximumf %37, %38 : vector<16x128xf32>
    %40 = arith.truncf %39 : vector<16x128xf32> to vector<16x128xbf16>
    %c0_30 = arith.constant 0 : index
    %c0_31 = arith.constant 0 : index
    %41 = vector.load %arg12[%c0_30, %c0_31] : memref<128x16xbf16, #tpu.memory_space<vmem>>, vector<128x16xbf16>
    %c0_32 = arith.constant 0 : index
    %c0_33 = arith.constant 0 : index
    %42 = vector.load %arg13[%c0_32, %c0_33] : memref<1x16xf32, #tpu.memory_space<vmem>>, vector<1x16xf32>
    %cst_34 = arith.constant dense<0.000000e+00> : vector<16x16xf32>
    %43 = tpu.matmul %40, %41, %cst_34 {dimension_numbers = #tpu.dot_dimension_numbers<[1], [0], [0], [1], [0, 0, 1, 1], [], []>} : vector<16x128xbf16>, vector<128x16xbf16>, vector<16x16xf32> -> vector<16x16xf32>
    %44 = vector.broadcast %42 : vector<1x16xf32> to vector<16x16xf32>
    %45 = arith.addf %43, %44 : vector<16x16xf32>
    %c0_35 = arith.constant 0 : index
    %c0_36 = arith.constant 0 : index
    %46 = vector.load %arg14[%c0_35, %c0_36] : memref<16x16xf32, #tpu.memory_space<vmem>>, vector<16x16xf32>
    tpu.vector_store %arg14[%c0_35, %c0_36], %45 {strides = array<i32>} : memref<16x16xf32, #tpu.memory_space<vmem>>, vector<16x16xf32>,
    return
  }
  func.func @transform_0(%arg0: i32) -> (i32, i32) {
    %c0_i32 = arith.constant 0 : i32
    %c0_i32_0 = arith.constant 0 : i32
    %c0_i32_1 = arith.constant 0 : i32
    return %c0_i32, %c0_i32_0 : i32, i32
  }
  func.func @transform_1(%arg0: i32) -> (i32, i32) {
    %c0_i32 = arith.constant 0 : i32
    %c0_i32_0 = arith.constant 0 : i32
    %c0_i32_1 = arith.constant 0 : i32
    return %c0_i32, %c0_i32_0 : i32, i32
  }
  func.func @transform_2(%arg0: i32) -> (i32, i32) {
    %c0_i32 = arith.constant 0 : i32
    %c0_i32_0 = arith.constant 0 : i32
    %c0_i32_1 = arith.constant 0 : i32
    return %c0_i32, %c0_i32_0 : i32, i32
  }
  func.func @transform_3(%arg0: i32) -> (i32, i32) {
    %c0_i32 = arith.constant 0 : i32
    %c0_i32_0 = arith.constant 0 : i32
    %c0_i32_1 = arith.constant 0 : i32
    return %c0_i32, %c0_i32_0 : i32, i32
  }
  func.func @transform_4(%arg0: i32) -> (i32, i32) {
    %c0_i32 = arith.constant 0 : i32
    %c0_i32_0 = arith.constant 0 : i32
    %c0_i32_1 = arith.constant 0 : i32
    return %c0_i32, %c0_i32_0 : i32, i32
  }
  func.func @transform_5(%arg0: i32) -> (i32, i32) {
    %c0_i32 = arith.constant 0 : i32
    %c0_i32_0 = arith.constant 0 : i32
    %c0_i32_1 = arith.constant 0 : i32
    return %c0_i32, %c0_i32_0 : i32, i32
  }
  func.func @transform_6(%arg0: i32) -> (i32, i32) {
    %c0_i32 = arith.constant 0 : i32
    %c0_i32_0 = arith.constant 0 : i32
    %c0_i32_1 = arith.constant 0 : i32
    return %c0_i32, %c0_i32_0 : i32, i32
  }
  func.func @transform_7(%arg0: i32) -> (i32, i32) {
    %c0_i32 = arith.constant 0 : i32
    %c0_i32_0 = arith.constant 0 : i32
    %c0_i32_1 = arith.constant 0 : i32
    return %c0_i32, %c0_i32_0 : i32, i32
  }
  func.func @transform_8(%arg0: i32) -> (i32, i32) {
    %c0_i32 = arith.constant 0 : i32
    %c0_i32_0 = arith.constant 0 : i32
    %c0_i32_1 = arith.constant 0 : i32
    return %c0_i32, %c0_i32_0 : i32, i32
  }
  func.func @transform_9(%arg0: i32) -> (i32, i32) {
    %c0_i32 = arith.constant 0 : i32
    %c0_i32_0 = arith.constant 0 : i32
    %c0_i32_1 = arith.constant 0 : i32
    return %c0_i32, %c0_i32_0 : i32, i32
  }
  func.func @transform_10(%arg0: i32) -> (i32, i32) {
    %c0_i32 = arith.constant 0 : i32
    %c0_i32_0 = arith.constant 0 : i32
    %c0_i32_1 = arith.constant 0 : i32
    return %c0_i32, %c0_i32_0 : i32, i32
  }
  func.func @transform_11(%arg0: i32) -> (i32, i32) {
    %c0_i32 = arith.constant 0 : i32
    %c0_i32_0 = arith.constant 0 : i32
    %c0_i32_1 = arith.constant 0 : i32
    return %c0_i32, %c0_i32_0 : i32, i32
  }
  func.func @transform_12(%arg0: i32) -> (i32, i32) {
    %c0_i32 = arith.constant 0 : i32
    %c0_i32_0 = arith.constant 0 : i32
    %c0_i32_1 = arith.constant 0 : i32
    return %c0_i32, %c0_i32_0 : i32, i32
  }
  func.func @transform_13(%arg0: i32) -> (i32, i32) {
    %c0_i32 = arith.constant 0 : i32
    %c0_i32_0 = arith.constant 0 : i32
    %c0_i32_1 = arith.constant 0 : i32
    return %c0_i32, %c0_i32_0 : i32, i32
  }
}

</mosaic_0001>

<bundles_post_ra>
// kernel: encoder_forward.4
= control target key start
LH: loop header
LB: loop body
LE: loop exit
PB: predicated region body
PF: predicated region fallthrough
CT: control target
= control target key end

     0   :  { %s5639_s12 = smov 0   ;;  %s7274_s0 = inlined_call_operand.vmem [shape: bf16[6304,9], index: 0, kind: input, shape index: {}]   ;;  %s7275_s1 = inlined_call_operand.vmem [shape: bf16[9,8], index: 1, kind: input, shape index: {}]   ;;  %s7276_s2 = inlined_call_operand.vmem [shape: f32[1,8], index: 2, kind: input, shape index: {}]   ;;  %s7277_s3 = inlined_call_operand.vmem [shape: bf16[6304,8], index: 3, kind: output, shape index: {}]  }
   0x1 LB: > { %s4397_s13 = sadd.s32 4294967295, %s5616_s12   ;;  %p4401_p0 = scmp.ge.s32.totalorder %s5616_s12, 1  ;;  %s5616_s12 = sphi %s5639_s12, %s13_s12  }
   0x2   : > { %p138_p1 = scmp.lt.s32.totalorder %s5616_s12, 3 }
   0x4   : > { %p139_p2 = pnand %p4401_p0, %p138_p1 }
   0x5   : > { %s162_s18 = smul.u32 (!%p139_p2), 394, %s4397_s13 }
   0x6   : > { %142 = sbr.rel (%p139_p2) target bundleno = 952 (0x3b8), region = 32 }
   0x7   : > { %p163_p3 = scmp.lt.s32.totalorder (!%p139_p2), %s162_s18, 787 }
   0xb   : > { %v5194_v0 = vld [vmem:[%s7275_s1] sm:$0xf]  ;;  %v5592_v1 = vld [vmem:[%s7275_s1] sm:$0x10]  ;;  %vm2157_vm0 = vcmask 1043456   ;;  %vm2158_vm1 = vcmask 1044480  }
   0xc   : > { %v5195_v2 = vor.u32 %v5592_v1, %v5194_v0  ;;  %v5618_v3 = vmov 65535   ;;  %s7279_s18 = smov (!%p163_p3, %s162_s18), 787  ;;  %vm1565_vm2 = vcmask 72704   ;;  %v5730_v39 = vld [vmem:[%s7276_s2] ss:$0 sm:$0xff]  ;;  %vm3946_vm3 = vcmask 60416  }
   0xd   : > { %v2159_v4 = vsel %vm2157_vm0, 4294967295, %v5618_v3  ;;  %s4402_s19 = sshll.u32 %s7279_s18, 2 }
   0xe   : > { %v2160_v5 = vsel %vm2158_vm1, %v2159_v4, 0  ;;  %s5661_s22 = scalar_lea.vmem %s7274_s0, %s4402_s19  ;;  %s5744_s27 = scalar_lea.vmem %s7277_s3, %s4402_s19 }
   0xf   : > { %v2162_v6 = vand.u32 %v5195_v2, %v2160_v5  ;;  %v5395_v7 = vld [vmem:[%s5661_s22] sm:$0xff]  ;;  %v5445_v8 = vld [vmem:[%s5661_s22 + $0x190] sm:$0xff]  ;;  %v5396_v11 = vld [vmem:[%s5661_s22 + $0x8] sm:$0xff] }
  0x10   : > { %v5495_v9 = vld [vmem:[%s5661_s22 + $0x320] sm:$0xff]  ;;  %v5545_v10 = vld [vmem:[%s5661_s22 + $0x4b0] sm:$0xff]  ;;  %v5446_v12 = vld [vmem:[%s5661_s22 + $0x198] sm:$0xff] }
  0x11   : > { %2171 = vmatpush.bf16.msra.mxu0 %v2162_v6  ;;  %5593 = vmatpush.bf16.msra.mxu1 %v2162_v6  ;;  %v5496_v13 = vld [vmem:[%s5661_s22 + $0x328] sm:$0xff]  ;;  %v5546_v14 = vld [vmem:[%s5661_s22 + $0x4b8] sm:$0xff]  ;;  %v5397_v15 = vld [vmem:[%s5661_s22 + $0x10] sm:$0xff] }
  0x12   : > { %5594 = vmatpush.bf16.msra.mxu2 %v2162_v6  ;;  %5595 = vmatpush.bf16.msra.mxu3 %v2162_v6  ;;  %v5447_v16 = vld [vmem:[%s5661_s22 + $0x1a0] sm:$0xff]  ;;  %v5497_v17 = vld [vmem:[%s5661_s22 + $0x330] sm:$0xff]  ;;  %v5398_v19 = vld [vmem:[%s5661_s22 + $0x18] sm:$0xff] }
  0x13   : > { %v5547_v18 = vld [vmem:[%s5661_s22 + $0x4c0] sm:$0xff]  ;;  %v5448_v20 = vld [vmem:[%s5661_s22 + $0x1a8] sm:$0xff]  ;;  %v5498_v21 = vld [vmem:[%s5661_s22 + $0x338] sm:$0xff] }
  0x14   : > { %5196 = vmatmul.msk.bf16.vlgmr.msra.gmra.mxu0 %vm1565_vm2, %v5395_v7  ;;  %5246 = vmatmul.msk.bf16.vlgmr.msra.gmra.mxu1 %vm1565_vm2, %v5445_v8  ;;  %v5548_v22 = vld [vmem:[%s5661_s22 + $0x4c8] sm:$0xff]  ;;  %v5399_v23 = vld [vmem:[%s5661_s22 + $0x20] sm:$0xff]  ;;  %v5449_v24 = vld [vmem:[%s5661_s22 + $0x1b0] sm:$0xff] }
  0x15   : > { %5296 = vmatmul.msk.bf16.vlgmr.msra.gmra.mxu2 %vm1565_vm2, %v5495_v9  ;;  %5346 = vmatmul.msk.bf16.vlgmr.msra.gmra.mxu3 %vm1565_vm2, %v5545_v10  ;;  %v5499_v25 = vld [vmem:[%s5661_s22 + $0x340] sm:$0xff]  ;;  %v5549_v26 = vld [vmem:[%s5661_s22 + $0x4d0] sm:$0xff]  ;;  %v5400_v27 = vld [vmem:[%s5661_s22 + $0x28] sm:$0xff] }
  0x16   : > { %v5450_v28 = vld [vmem:[%s5661_s22 + $0x1b8] sm:$0xff]  ;;  %v5500_v29 = vld [vmem:[%s5661_s22 + $0x348] sm:$0xff]  ;;  %v5401_v31 = vld [vmem:[%s5661_s22 + $0x30] sm:$0xff] }
  0x17   : > { %v5550_v30 = vld [vmem:[%s5661_s22 + $0x4d8] sm:$0xff]  ;;  %v5451_v32 = vld [vmem:[%s5661_s22 + $0x1c0] sm:$0xff]  ;;  %v5501_v33 = vld [vmem:[%s5661_s22 + $0x350] sm:$0xff] }
  0x18   : > { %v5551_v34 = vld [vmem:[%s5661_s22 + $0x4e0] sm:$0xff]  ;;  %v5402_v35 = vld [vmem:[%s5661_s22 + $0x38] sm:$0xff]  ;;  %v5452_v36 = vld [vmem:[%s5661_s22 + $0x1c8] sm:$0xff] }
  0x19   : > { %v5502_v37 = vld [vmem:[%s5661_s22 + $0x358] sm:$0xff]  ;;  %v5552_v38 = vld [vmem:[%s5661_s22 + $0x4e8] sm:$0xff]  ;;  %v5403_v40 = vld [vmem:[%s5661_s22 + $0x40] sm:$0xff] }
  0x1a   : > { %v5453_v41 = vld [vmem:[%s5661_s22 + $0x1d0] sm:$0xff]  ;;  %v5503_v44 = vld [vmem:[%s5661_s22 + $0x360] sm:$0xff]  ;;  %v5404_v1 = vld [vmem:[%s5661_s22 + $0x48] sm:$0xff] }
  0x1b   : > { %v5553_v58 = vld [vmem:[%s5661_s22 + $0x4f0] sm:$0xff]  ;;  %v5454_v2 = vld [vmem:[%s5661_s22 + $0x1d8] sm:$0xff]  ;;  %v5504_v7 = vld [vmem:[%s5661_s22 + $0x368] sm:$0xff] }
  0x24   : > { %5197 = vmatmul.msk.bf16.gmra.mxu0 %vm1565_vm2, %v5396_v11  ;;  %5247 = vmatmul.msk.bf16.gmra.mxu1 %vm1565_vm2, %v5446_v12 }
  0x25   : > { %5297 = vmatmul.msk.bf16.gmra.mxu2 %vm1565_vm2, %v5496_v13  ;;  %5347 = vmatmul.msk.bf16.gmra.mxu3 %vm1565_vm2, %v5546_v14 }
  0x34   : > { %5198 = vmatmul.msk.bf16.gmra.mxu0 %vm1565_vm2, %v5397_v15  ;;  %5248 = vmatmul.msk.bf16.gmra.mxu1 %vm1565_vm2, %v5447_v16 }
  0x35   : > { %5298 = vmatmul.msk.bf16.gmra.mxu2 %vm1565_vm2, %v5497_v17  ;;  %5348 = vmatmul.msk.bf16.gmra.mxu3 %vm1565_vm2, %v5547_v18 }
  0x44   : > { %5199 = vmatmul.msk.bf16.gmra.mxu0 %vm1565_vm2, %v5398_v19  ;;  %5249 = vmatmul.msk.bf16.gmra.mxu1 %vm1565_vm2, %v5448_v20 }
  0x45   : > { %5299 = vmatmul.msk.bf16.gmra.mxu2 %vm1565_vm2, %v5498_v21  ;;  %5349 = vmatmul.msk.bf16.gmra.mxu3 %vm1565_vm2, %v5548_v22 }
  0x54   : > { %5200 = vmatmul.msk.bf16.gmra.mxu0 %vm1565_vm2, %v5399_v23  ;;  %5250 = vmatmul.msk.bf16.gmra.mxu1 %vm1565_vm2, %v5449_v24 }
  0x55   : > { %5300 = vmatmul.msk.bf16.gmra.mxu2 %vm1565_vm2, %v5499_v25  ;;  %5350 = vmatmul.msk.bf16.gmra.mxu3 %vm1565_vm2, %v5549_v26 }
  0x64   : > { %5201 = vmatmul.msk.bf16.gmra.mxu0 %vm1565_vm2, %v5400_v27  ;;  %5251 = vmatmul.msk.bf16.gmra.mxu1 %vm1565_vm2, %v5450_v28 }
  0x65   : > { %5301 = vmatmul.msk.bf16.gmra.mxu2 %vm1565_vm2, %v5500_v29  ;;  %5351 = vmatmul.msk.bf16.gmra.mxu3 %vm1565_vm2, %v5550_v30  ;;  %v5554_v29 = vld [vmem:[%s5661_s22 + $0x4f8] sm:$0xff] }
  0x74   : > { %5202 = vmatmul.msk.bf16.gmra.mxu0 %vm1565_vm2, %v5401_v31  ;;  %5252 = vmatmul.msk.bf16.gmra.mxu1 %vm1565_vm2, %v5451_v32 }
  0x75   : > { %5302 = vmatmul.msk.bf16.gmra.mxu2 %vm1565_vm2, %v5501_v33  ;;  %5352 = vmatmul.msk.bf16.gmra.mxu3 %vm1565_vm2, %v5551_v34 }
  0x84   : > { %5203 = vmatmul.msk.bf16.gmra.mxu0 %vm1565_vm2, %v5402_v35  ;;  %5253 = vmatmul.msk.bf16.gmra.mxu1 %vm1565_vm2, %v5452_v36 }
  0x85   : > { %5303 = vmatmul.msk.bf16.gmra.mxu2 %vm1565_vm2, %v5502_v37  ;;  %5353 = vmatmul.msk.bf16.gmra.mxu3 %vm1565_vm2, %v5552_v38  ;;  %v5405_v37 = vld [vmem:[%s5661_s22 + $0x50] sm:$0xff]  ;;  %v5455_v38 = vld [vmem:[%s5661_s22 + $0x1e0] sm:$0xff] }
  0x91   : > { %v2173_v42 = vpop.f32.mrf.mxu0  ;;  %v2423_v43 = vpop.f32.mrf.mxu1 }
  0x92   : > { %v2174_v45 = vadd.f32 %v5730_v39, %v2173_v42  ;;  %v2424_v46 = vadd.f32 %v5730_v39, %v2423_v43 }
  0x94   : > { %v3158_v47 = vmax.f32 %v2174_v45, 0.0  ;;  %v3258_v48 = vmax.f32 %v2424_v46, 0.0  ;;  %5204 = vmatmul.msk.bf16.gmra.mxu0 %vm1565_vm2, %v5403_v40  ;;  %5254 = vmatmul.msk.bf16.gmra.mxu1 %vm1565_vm2, %v5453_v41 }
  0x95   : > { %5304 = vmatmul.msk.bf16.gmra.mxu2 %vm1565_vm2, %v5503_v44  ;;  %5354 = vmatmul.msk.bf16.gmra.mxu3 %vm1565_vm2, %v5553_v58  ;;  %v5505_v44 = vld [vmem:[%s5661_s22 + $0x370] sm:$0xff] }
  0x96   : > { %v3552_v49 = vpack.c.bf16 %v3158_v47, %v3158_v47  ;;  %v3652_v50 = vpack.c.bf16 %v3258_v48, %v3258_v48 }
  0x98   : > { %3947 = vst.msk [vmem:[%s5744_s27] sm:$0xf] %vm3946_vm3, %v3552_v49  ;;  %v2673_v51 = vpop.f32.mrf.mxu2  ;;  %v2923_v3 = vpop.f32.mrf.mxu3 }
  0x99   : > { %4047 = vst.msk [vmem:[%s5744_s27 + $0x190] sm:$0xf] %vm3946_vm3, %v3652_v50  ;;  %v2674_v52 = vadd.f32 %v5730_v39, %v2673_v51  ;;  %v2175_v53 = vpop.f32.mrf.mxu0  ;;  %v2425_v54 = vpop.f32.mrf.mxu1  ;;  %v2924_v16 = vadd.f32 %v5730_v39, %v2923_v3 }
  0x9a   : > { %v2176_v55 = vadd.f32 %v5730_v39, %v2175_v53  ;;  %v2426_v56 = vadd.f32 %v5730_v39, %v2425_v54 }
  0x9b   : > { %v3358_v57 = vmax.f32 %v2674_v52, 0.0  ;;  %v3458_v22 = vmax.f32 %v2924_v16, 0.0  ;;  %v5506_v16 = vld [vmem:[%s5661_s22 + $0x378] sm:$0xff] }
  0x9c   : > { %v3159_v59 = vmax.f32 %v2176_v55, 0.0  ;;  %v3259_v60 = vmax.f32 %v2426_v56, 0.0 }
  0x9d   : > { %v3752_v61 = vpack.c.bf16 %v3358_v57, %v3358_v57  ;;  %v3852_v27 = vpack.c.bf16 %v3458_v22, %v3458_v22 }
  0x9e   : > { %v3553_v62 = vpack.c.bf16 %v3159_v59, %v3159_v59  ;;  %v3653_v63 = vpack.c.bf16 %v3259_v60, %v3259_v60 }
  0x9f   : > { %4147 = vst.msk [vmem:[%s5744_s27 + $0x320] sm:$0xf] %vm3946_vm3, %v3752_v61 }
  0xa0   : > { %3948 = vst.msk [vmem:[%s5744_s27 + $0x4] sm:$0xf] %vm3946_vm3, %v3553_v62  ;;  %v2675_v0 = vpop.f32.mrf.mxu2  ;;  %v2925_v18 = vpop.f32.mrf.mxu3 }
  0xa1   : > { %4048 = vst.msk [vmem:[%s5744_s27 + $0x194] sm:$0xf] %vm3946_vm3, %v3653_v63  ;;  %v2676_v4 = vadd.f32 %v5730_v39, %v2675_v0  ;;  %v2178_v5 = vpop.f32.mrf.mxu0  ;;  %v2428_v6 = vpop.f32.mrf.mxu1  ;;  %v2926_v23 = vadd.f32 %v5730_v39, %v2925_v18 }
  0xa2   : > { %v2179_v8 = vadd.f32 %v5730_v39, %v2178_v5  ;;  %v2429_v9 = vadd.f32 %v5730_v39, %v2428_v6  ;;  %4247 = vst.msk [vmem:[%s5744_s27 + $0x4b0] sm:$0xf] %vm3946_vm3, %v3852_v27 }
  0xa3   : > { %v3359_v10 = vmax.f32 %v2676_v4, 0.0  ;;  %v3459_v28 = vmax.f32 %v2926_v23, 0.0 }
  0xa4   : > { %v3160_v11 = vmax.f32 %v2179_v8, 0.0  ;;  %v3260_v12 = vmax.f32 %v2429_v9, 0.0  ;;  %5205 = vmatmul.msk.bf16.gmra.mxu0 %vm1565_vm2, %v5404_v1  ;;  %5255 = vmatmul.msk.bf16.gmra.mxu1 %vm1565_vm2, %v5454_v2  ;;  %v5555_v2 = vld [vmem:[%s5661_s22 + $0x500] sm:$0xff] }
  0xa5   : > { %v3753_v13 = vpack.c.bf16 %v3359_v10, %v3359_v10  ;;  %5305 = vmatmul.msk.bf16.gmra.mxu2 %vm1565_vm2, %v5504_v7  ;;  %5355 = vmatmul.msk.bf16.gmra.mxu3 %vm1565_vm2, %v5554_v29  ;;  %v3853_v35 = vpack.c.bf16 %v3459_v28, %v3459_v28  ;;  %v5406_v10 = vld [vmem:[%s5661_s22 + $0x58] sm:$0xff] }
  0xa6   : > { %v3554_v14 = vpack.c.bf16 %v3160_v11, %v3160_v11  ;;  %v3654_v15 = vpack.c.bf16 %v3260_v12, %v3260_v12  ;;  %v5456_v11 = vld [vmem:[%s5661_s22 + $0x1e8] sm:$0xff] }
  0xa7   : > { %4148 = vst.msk [vmem:[%s5744_s27 + $0x324] sm:$0xf] %vm3946_vm3, %v3753_v13 }
  0xa8   : > { %3949 = vst.msk [vmem:[%s5744_s27 + $0x8] sm:$0xf] %vm3946_vm3, %v3554_v14  ;;  %v2678_v17 = vpop.f32.mrf.mxu2  ;;  %v2928_v40 = vpop.f32.mrf.mxu3 }
  0xa9   : > { %4049 = vst.msk [vmem:[%s5744_s27 + $0x198] sm:$0xf] %vm3946_vm3, %v3654_v15  ;;  %v2679_v19 = vadd.f32 %v5730_v39, %v2678_v17  ;;  %v2180_v20 = vpop.f32.mrf.mxu0  ;;  %v2430_v21 = vpop.f32.mrf.mxu1  ;;  %v2929_v53 = vadd.f32 %v5730_v39, %v2928_v40 }
  0xaa   : > { %v2181_v24 = vadd.f32 %v5730_v39, %v2180_v20  ;;  %v2431_v25 = vadd.f32 %v5730_v39, %v2430_v21  ;;  %4248 = vst.msk [vmem:[%s5744_s27 + $0x4b4] sm:$0xf] %vm3946_vm3, %v3853_v35 }
  0xab   : > { %v3360_v26 = vmax.f32 %v2679_v19, 0.0  ;;  %v3460_v59 = vmax.f32 %v2929_v53, 0.0  ;;  %v5507_v53 = vld [vmem:[%s5661_s22 + $0x380] sm:$0xff] }
  0xac   : > { %v3161_v30 = vmax.f32 %v2181_v24, 0.0  ;;  %v3261_v31 = vmax.f32 %v2431_v25, 0.0 }
  0xad   : > { %v3754_v32 = vpack.c.bf16 %v3360_v26, %v3360_v26  ;;  %v3854_v0 = vpack.c.bf16 %v3460_v59, %v3460_v59 }
  0xae   : > { %v3555_v33 = vpack.c.bf16 %v3161_v30, %v3161_v30  ;;  %v3655_v34 = vpack.c.bf16 %v3261_v31, %v3261_v31 }
  0xaf   : > { %4149 = vst.msk [vmem:[%s5744_s27 + $0x328] sm:$0xf] %vm3946_vm3, %v3754_v32 }
  0xb0   : > { %3950 = vst.msk [vmem:[%s5744_s27 + $0xc] sm:$0xf] %vm3946_vm3, %v3555_v33  ;;  %v2680_v36 = vpop.f32.mrf.mxu2  ;;  %v2930_v55 = vpop.f32.mrf.mxu3 }
  0xb1   : > { %4050 = vst.msk [vmem:[%s5744_s27 + $0x19c] sm:$0xf] %vm3946_vm3, %v3655_v34  ;;  %v2681_v41 = vadd.f32 %v5730_v39, %v2680_v36  ;;  %v2183_v42 = vpop.f32.mrf.mxu0  ;;  %v2433_v43 = vpop.f32.mrf.mxu1  ;;  %v2931_v60 = vadd.f32 %v5730_v39, %v2930_v55 }
  0xb2   : > { %v2184_v45 = vadd.f32 %v5730_v39, %v2183_v42  ;;  %v2434_v46 = vadd.f32 %v5730_v39, %v2433_v43  ;;  %4249 = vst.msk [vmem:[%s5744_s27 + $0x4b8] sm:$0xf] %vm3946_vm3, %v3854_v0 }
  0xb3   : > { %v3361_v47 = vmax.f32 %v2681_v41, 0.0  ;;  %v3461_v1 = vmax.f32 %v2931_v60, 0.0 }
  0xb4   : > { %v3162_v48 = vmax.f32 %v2184_v45, 0.0  ;;  %v3262_v49 = vmax.f32 %v2434_v46, 0.0  ;;  %5206 = vmatmul.msk.bf16.gmra.mxu0 %vm1565_vm2, %v5405_v37  ;;  %5256 = vmatmul.msk.bf16.gmra.mxu1 %vm1565_vm2, %v5455_v38  ;;  %v5556_v38 = vld [vmem:[%s5661_s22 + $0x508] sm:$0xff] }
  0xb5   : > { %v3755_v50 = vpack.c.bf16 %v3361_v47, %v3361_v47  ;;  %5306 = vmatmul.msk.bf16.gmra.mxu2 %vm1565_vm2, %v5505_v44  ;;  %5356 = vmatmul.msk.bf16.gmra.mxu3 %vm1565_vm2, %v5555_v2  ;;  %v3855_v8 = vpack.c.bf16 %v3461_v1, %v3461_v1  ;;  %v5407_v47 = vld [vmem:[%s5661_s22 + $0x60] sm:$0xff] }
  0xb6   : > { %v3556_v51 = vpack.c.bf16 %v3162_v48, %v3162_v48  ;;  %v3656_v52 = vpack.c.bf16 %v3262_v49, %v3262_v49  ;;  %v5457_v48 = vld [vmem:[%s5661_s22 + $0x1f0] sm:$0xff] }
  0xb7   : > { %4150 = vst.msk [vmem:[%s5744_s27 + $0x32c] sm:$0xf] %vm3946_vm3, %v3755_v50 }
  0xb8   : > { %3951 = vst.msk [vmem:[%s5744_s27 + $0x10] sm:$0xf] %vm3946_vm3, %v3556_v51  ;;  %v2683_v54 = vpop.f32.mrf.mxu2  ;;  %v2933_v12 = vpop.f32.mrf.mxu3 }
  0xb9   : > { %4051 = vst.msk [vmem:[%s5744_s27 + $0x1a0] sm:$0xf] %vm3946_vm3, %v3656_v52  ;;  %v2684_v56 = vadd.f32 %v5730_v39, %v2683_v54  ;;  %v2185_v57 = vpop.f32.mrf.mxu0  ;;  %v2435_v58 = vpop.f32.mrf.mxu1  ;;  %v2934_v25 = vadd.f32 %v5730_v39, %v2933_v12 }
  0xba   : > { %v2186_v61 = vadd.f32 %v5730_v39, %v2185_v57  ;;  %v2436_v62 = vadd.f32 %v5730_v39, %v2435_v58  ;;  %4250 = vst.msk [vmem:[%s5744_s27 + $0x4bc] sm:$0xf] %vm3946_vm3, %v3855_v8 }
  0xbb   : > { %v3362_v63 = vmax.f32 %v2684_v56, 0.0  ;;  %v3462_v31 = vmax.f32 %v2934_v25, 0.0  ;;  %v5508_v25 = vld [vmem:[%s5661_s22 + $0x388] sm:$0xff] }
  0xbc   : > { %v3163_v3 = vmax.f32 %v2186_v61, 0.0  ;;  %v3263_v4 = vmax.f32 %v2436_v62, 0.0 }
  0xbd   : > { %v3756_v5 = vpack.c.bf16 %v3362_v63, %v3362_v63  ;;  %v3856_v36 = vpack.c.bf16 %v3462_v31, %v3462_v31 }
  0xbe   : > { %v3557_v6 = vpack.c.bf16 %v3163_v3, %v3163_v3  ;;  %v3657_v7 = vpack.c.bf16 %v3263_v4, %v3263_v4 }
  0xbf   : > { %4151 = vst.msk [vmem:[%s5744_s27 + $0x330] sm:$0xf] %vm3946_vm3, %v3756_v5 }
  0xc0   : > { %3952 = vst.msk [vmem:[%s5744_s27 + $0x14] sm:$0xf] %vm3946_vm3, %v3557_v6  ;;  %v2685_v9 = vpop.f32.mrf.mxu2  ;;  %v2935_v27 = vpop.f32.mrf.mxu3 }
  0xc1   : > { %4052 = vst.msk [vmem:[%s5744_s27 + $0x1a4] sm:$0xf] %vm3946_vm3, %v3657_v7  ;;  %v2686_v13 = vadd.f32 %v5730_v39, %v2685_v9  ;;  %v2188_v14 = vpop.f32.mrf.mxu0  ;;  %v2438_v15 = vpop.f32.mrf.mxu1  ;;  %v2936_v32 = vadd.f32 %v5730_v39, %v2935_v27 }
  0xc2   : > { %v2189_v17 = vadd.f32 %v5730_v39, %v2188_v14  ;;  %v2439_v18 = vadd.f32 %v5730_v39, %v2438_v15  ;;  %4251 = vst.msk [vmem:[%s5744_s27 + $0x4c0] sm:$0xf] %vm3946_vm3, %v3856_v36 }
  0xc3   : > { %v3363_v19 = vmax.f32 %v2686_v13, 0.0  ;;  %v3463_v37 = vmax.f32 %v2936_v32, 0.0 }
  0xc4   : > { %v3164_v20 = vmax.f32 %v2189_v17, 0.0  ;;  %v3264_v21 = vmax.f32 %v2439_v18, 0.0  ;;  %5207 = vmatmul.msk.bf16.gmra.mxu0 %vm1565_vm2, %v5406_v10  ;;  %5257 = vmatmul.msk.bf16.gmra.mxu1 %vm1565_vm2, %v5456_v11  ;;  %v5557_v11 = vld [vmem:[%s5661_s22 + $0x510] sm:$0xff] }
  0xc5   : > { %v3757_v22 = vpack.c.bf16 %v3363_v19, %v3363_v19  ;;  %5307 = vmatmul.msk.bf16.gmra.mxu2 %vm1565_vm2, %v5506_v16  ;;  %5357 = vmatmul.msk.bf16.gmra.mxu3 %vm1565_vm2, %v5556_v38  ;;  %v3857_v45 = vpack.c.bf16 %v3463_v37, %v3463_v37  ;;  %v5408_v19 = vld [vmem:[%s5661_s22 + $0x68] sm:$0xff] }
  0xc6   : > { %v3558_v23 = vpack.c.bf16 %v3164_v20, %v3164_v20  ;;  %v3658_v24 = vpack.c.bf16 %v3264_v21, %v3264_v21  ;;  %v5458_v20 = vld [vmem:[%s5661_s22 + $0x1f8] sm:$0xff] }
  0xc7   : > { %4152 = vst.msk [vmem:[%s5744_s27 + $0x334] sm:$0xf] %vm3946_vm3, %v3757_v22 }
  0xc8   : > { %3953 = vst.msk [vmem:[%s5744_s27 + $0x18] sm:$0xf] %vm3946_vm3, %v3558_v23  ;;  %v2688_v26 = vpop.f32.mrf.mxu2  ;;  %v2938_v49 = vpop.f32.mrf.mxu3 }
  0xc9   : > { %4053 = vst.msk [vmem:[%s5744_s27 + $0x1a8] sm:$0xf] %vm3946_vm3, %v3658_v24  ;;  %v2689_v28 = vadd.f32 %v5730_v39, %v2688_v26  ;;  %v2190_v29 = vpop.f32.mrf.mxu0  ;;  %v2440_v30 = vpop.f32.mrf.mxu1  ;;  %v2939_v62 = vadd.f32 %v5730_v39, %v2938_v49 }
  0xca   : > { %v2191_v33 = vadd.f32 %v5730_v39, %v2190_v29  ;;  %v2441_v34 = vadd.f32 %v5730_v39, %v2440_v30  ;;  %4252 = vst.msk [vmem:[%s5744_s27 + $0x4c4] sm:$0xf] %vm3946_vm3, %v3857_v45 }
  0xcb   : > { %v3364_v35 = vmax.f32 %v2689_v28, 0.0  ;;  %v3464_v4 = vmax.f32 %v2939_v62, 0.0  ;;  %v5509_v62 = vld [vmem:[%s5661_s22 + $0x390] sm:$0xff] }
  0xcc   : > { %v3165_v40 = vmax.f32 %v2191_v33, 0.0  ;;  %v3265_v41 = vmax.f32 %v2441_v34, 0.0 }
  0xcd   : > { %v3758_v42 = vpack.c.bf16 %v3364_v35, %v3364_v35  ;;  %v3858_v9 = vpack.c.bf16 %v3464_v4, %v3464_v4 }
  0xce   : > { %v3559_v43 = vpack.c.bf16 %v3165_v40, %v3165_v40  ;;  %v3659_v44 = vpack.c.bf16 %v3265_v41, %v3265_v41 }
  0xcf   : > { %4153 = vst.msk [vmem:[%s5744_s27 + $0x338] sm:$0xf] %vm3946_vm3, %v3758_v42 }
  0xd0   : > { %3954 = vst.msk [vmem:[%s5744_s27 + $0x1c] sm:$0xf] %vm3946_vm3, %v3559_v43  ;;  %v2690_v46 = vpop.f32.mrf.mxu2  ;;  %v2940_v0 = vpop.f32.mrf.mxu3 }
  0xd1   : > { %4054 = vst.msk [vmem:[%s5744_s27 + $0x1ac] sm:$0xf] %vm3946_vm3, %v3659_v44  ;;  %v2691_v50 = vadd.f32 %v5730_v39, %v2690_v46  ;;  %v2193_v51 = vpop.f32.mrf.mxu0  ;;  %v2443_v52 = vpop.f32.mrf.mxu1  ;;  %v2941_v5 = vadd.f32 %v5730_v39, %v2940_v0 }
  0xd2   : > { %v2194_v54 = vadd.f32 %v5730_v39, %v2193_v51  ;;  %v2444_v55 = vadd.f32 %v5730_v39, %v2443_v52  ;;  %4253 = vst.msk [vmem:[%s5744_s27 + $0x4c8] sm:$0xf] %vm3946_vm3, %v3858_v9 }
  0xd3   : > { %v3365_v56 = vmax.f32 %v2691_v50, 0.0  ;;  %v3465_v10 = vmax.f32 %v2941_v5, 0.0 }
  0xd4   : > { %v3166_v57 = vmax.f32 %v2194_v54, 0.0  ;;  %v3266_v58 = vmax.f32 %v2444_v55, 0.0  ;;  %5208 = vmatmul.msk.bf16.gmra.mxu0 %vm1565_vm2, %v5407_v47  ;;  %5258 = vmatmul.msk.bf16.gmra.mxu1 %vm1565_vm2, %v5457_v48  ;;  %v5558_v48 = vld [vmem:[%s5661_s22 + $0x518] sm:$0xff] }
  0xd5   : > { %v3759_v59 = vpack.c.bf16 %v3365_v56, %v3365_v56  ;;  %5308 = vmatmul.msk.bf16.gmra.mxu2 %vm1565_vm2, %v5507_v53  ;;  %5358 = vmatmul.msk.bf16.gmra.mxu3 %vm1565_vm2, %v5557_v11  ;;  %v3859_v17 = vpack.c.bf16 %v3465_v10, %v3465_v10  ;;  %v5409_v56 = vld [vmem:[%s5661_s22 + $0x70] sm:$0xff] }
  0xd6   : > { %v3560_v60 = vpack.c.bf16 %v3166_v57, %v3166_v57  ;;  %v3660_v61 = vpack.c.bf16 %v3266_v58, %v3266_v58  ;;  %v5459_v57 = vld [vmem:[%s5661_s22 + $0x200] sm:$0xff] }
  0xd7   : > { %4154 = vst.msk [vmem:[%s5744_s27 + $0x33c] sm:$0xf] %vm3946_vm3, %v3759_v59 }
  0xd8   : > { %3955 = vst.msk [vmem:[%s5744_s27 + $0x20] sm:$0xf] %vm3946_vm3, %v3560_v60  ;;  %v2693_v63 = vpop.f32.mrf.mxu2  ;;  %v2943_v21 = vpop.f32.mrf.mxu3 }
  0xd9   : > { %4055 = vst.msk [vmem:[%s5744_s27 + $0x1b0] sm:$0xf] %vm3946_vm3, %v3660_v61  ;;  %v2694_v1 = vadd.f32 %v5730_v39, %v2693_v63  ;;  %v2195_v2 = vpop.f32.mrf.mxu0  ;;  %v2445_v3 = vpop.f32.mrf.mxu1  ;;  %v2944_v34 = vadd.f32 %v5730_v39, %v2943_v21 }
  0xda   : > { %v2196_v6 = vadd.f32 %v5730_v39, %v2195_v2  ;;  %v2446_v7 = vadd.f32 %v5730_v39, %v2445_v3  ;;  %4254 = vst.msk [vmem:[%s5744_s27 + $0x4cc] sm:$0xf] %vm3946_vm3, %v3859_v17 }
  0xdb   : > { %v3366_v8 = vmax.f32 %v2694_v1, 0.0  ;;  %v3466_v41 = vmax.f32 %v2944_v34, 0.0  ;;  %v5510_v34 = vld [vmem:[%s5661_s22 + $0x398] sm:$0xff] }
  0xdc   : > { %v3167_v12 = vmax.f32 %v2196_v6, 0.0  ;;  %v3267_v13 = vmax.f32 %v2446_v7, 0.0 }
  0xdd   : > { %v3760_v14 = vpack.c.bf16 %v3366_v8, %v3366_v8  ;;  %v3860_v46 = vpack.c.bf16 %v3466_v41, %v3466_v41 }
  0xde   : > { %v3561_v15 = vpack.c.bf16 %v3167_v12, %v3167_v12  ;;  %v3661_v16 = vpack.c.bf16 %v3267_v13, %v3267_v13 }
  0xdf   : > { %4155 = vst.msk [vmem:[%s5744_s27 + $0x340] sm:$0xf] %vm3946_vm3, %v3760_v14 }
  0xe0   : > { %3956 = vst.msk [vmem:[%s5744_s27 + $0x24] sm:$0xf] %vm3946_vm3, %v3561_v15  ;;  %v2695_v18 = vpop.f32.mrf.mxu2  ;;  %v2945_v36 = vpop.f32.mrf.mxu3 }
  0xe1   : > { %4056 = vst.msk [vmem:[%s5744_s27 + $0x1b4] sm:$0xf] %vm3946_vm3, %v3661_v16  ;;  %v2696_v22 = vadd.f32 %v5730_v39, %v2695_v18  ;;  %v2198_v23 = vpop.f32.mrf.mxu0  ;;  %v2448_v24 = vpop.f32.mrf.mxu1  ;;  %v2946_v42 = vadd.f32 %v5730_v39, %v2945_v36 }
  0xe2   : > { %v2199_v26 = vadd.f32 %v5730_v39, %v2198_v23  ;;  %v2449_v27 = vadd.f32 %v5730_v39, %v2448_v24  ;;  %4255 = vst.msk [vmem:[%s5744_s27 + $0x4d0] sm:$0xf] %vm3946_vm3, %v3860_v46 }
  0xe3   : > { %v3367_v28 = vmax.f32 %v2696_v22, 0.0  ;;  %v3467_v47 = vmax.f32 %v2946_v42, 0.0 }
  0xe4   : > { %v3168_v29 = vmax.f32 %v2199_v26, 0.0  ;;  %v3268_v30 = vmax.f32 %v2449_v27, 0.0  ;;  %5209 = vmatmul.msk.bf16.gmra.mxu0 %vm1565_vm2, %v5408_v19  ;;  %5259 = vmatmul.msk.bf16.gmra.mxu1 %vm1565_vm2, %v5458_v20  ;;  %v5559_v20 = vld [vmem:[%s5661_s22 + $0x520] sm:$0xff] }
  0xe5   : > { %v3761_v31 = vpack.c.bf16 %v3367_v28, %v3367_v28  ;;  %5309 = vmatmul.msk.bf16.gmra.mxu2 %vm1565_vm2, %v5508_v25  ;;  %5359 = vmatmul.msk.bf16.gmra.mxu3 %vm1565_vm2, %v5558_v48  ;;  %v3861_v54 = vpack.c.bf16 %v3467_v47, %v3467_v47  ;;  %v5410_v28 = vld [vmem:[%s5661_s22 + $0x78] sm:$0xff] }
  0xe6   : > { %v3562_v32 = vpack.c.bf16 %v3168_v29, %v3168_v29  ;;  %v3662_v33 = vpack.c.bf16 %v3268_v30, %v3268_v30  ;;  %v5460_v29 = vld [vmem:[%s5661_s22 + $0x208] sm:$0xff] }
  0xe7   : > { %4156 = vst.msk [vmem:[%s5744_s27 + $0x344] sm:$0xf] %vm3946_vm3, %v3761_v31 }
  0xe8   : > { %3957 = vst.msk [vmem:[%s5744_s27 + $0x28] sm:$0xf] %vm3946_vm3, %v3562_v32  ;;  %v2698_v35 = vpop.f32.mrf.mxu2  ;;  %v2948_v58 = vpop.f32.mrf.mxu3 }
  0xe9   : > { %4057 = vst.msk [vmem:[%s5744_s27 + $0x1b8] sm:$0xf] %vm3946_vm3, %v3662_v33  ;;  %v2699_v37 = vadd.f32 %v5730_v39, %v2698_v35  ;;  %v2200_v38 = vpop.f32.mrf.mxu0  ;;  %v2450_v40 = vpop.f32.mrf.mxu1  ;;  %v2949_v7 = vadd.f32 %v5730_v39, %v2948_v58 }
  0xea   : > { %v2201_v43 = vadd.f32 %v5730_v39, %v2200_v38  ;;  %v2451_v44 = vadd.f32 %v5730_v39, %v2450_v40  ;;  %4256 = vst.msk [vmem:[%s5744_s27 + $0x4d4] sm:$0xf] %vm3946_vm3, %v3861_v54 }
  0xeb   : > { %v3368_v45 = vmax.f32 %v2699_v37, 0.0  ;;  %v3468_v13 = vmax.f32 %v2949_v7, 0.0  ;;  %v5511_v7 = vld [vmem:[%s5661_s22 + $0x3a0] sm:$0xff] }
  0xec   : > { %v3169_v49 = vmax.f32 %v2201_v43, 0.0  ;;  %v3269_v50 = vmax.f32 %v2451_v44, 0.0 }
  0xed   : > { %v3762_v51 = vpack.c.bf16 %v3368_v45, %v3368_v45  ;;  %v3862_v18 = vpack.c.bf16 %v3468_v13, %v3468_v13 }
  0xee   : > { %v3563_v52 = vpack.c.bf16 %v3169_v49, %v3169_v49  ;;  %v3663_v53 = vpack.c.bf16 %v3269_v50, %v3269_v50 }
  0xef   : > { %4157 = vst.msk [vmem:[%s5744_s27 + $0x348] sm:$0xf] %vm3946_vm3, %v3762_v51 }
  0xf0   : > { %3958 = vst.msk [vmem:[%s5744_s27 + $0x2c] sm:$0xf] %vm3946_vm3, %v3563_v52  ;;  %v2700_v55 = vpop.f32.mrf.mxu2  ;;  %v2950_v9 = vpop.f32.mrf.mxu3 }
  0xf1   : > { %4058 = vst.msk [vmem:[%s5744_s27 + $0x1bc] sm:$0xf] %vm3946_vm3, %v3663_v53  ;;  %v2701_v59 = vadd.f32 %v5730_v39, %v2700_v55  ;;  %v2203_v60 = vpop.f32.mrf.mxu0  ;;  %v2453_v61 = vpop.f32.mrf.mxu1  ;;  %v2951_v14 = vadd.f32 %v5730_v39, %v2950_v9 }
  0xf2   : > { %v2204_v63 = vadd.f32 %v5730_v39, %v2203_v60  ;;  %v2454_v0 = vadd.f32 %v5730_v39, %v2453_v61  ;;  %4257 = vst.msk [vmem:[%s5744_s27 + $0x4d8] sm:$0xf] %vm3946_vm3, %v3862_v18 }
  0xf3   : > { %v3369_v1 = vmax.f32 %v2701_v59, 0.0  ;;  %v3469_v19 = vmax.f32 %v2951_v14, 0.0 }
  0xf4   : > { %v3170_v2 = vmax.f32 %v2204_v63, 0.0  ;;  %v3270_v3 = vmax.f32 %v2454_v0, 0.0  ;;  %5210 = vmatmul.msk.bf16.gmra.mxu0 %vm1565_vm2, %v5409_v56  ;;  %5260 = vmatmul.msk.bf16.gmra.mxu1 %vm1565_vm2, %v5459_v57  ;;  %v5560_v57 = vld [vmem:[%s5661_s22 + $0x528] sm:$0xff] }
  0xf5   : > { %v3763_v4 = vpack.c.bf16 %v3369_v1, %v3369_v1  ;;  %5310 = vmatmul.msk.bf16.gmra.mxu2 %vm1565_vm2, %v5509_v62  ;;  %5360 = vmatmul.msk.bf16.gmra.mxu3 %vm1565_vm2, %v5559_v20  ;;  %v3863_v26 = vpack.c.bf16 %v3469_v19, %v3469_v19  ;;  %v5411_v1 = vld [vmem:[%s5661_s22 + $0x80] sm:$0xff] }
  0xf6   : > { %v3564_v5 = vpack.c.bf16 %v3170_v2, %v3170_v2  ;;  %v3664_v6 = vpack.c.bf16 %v3270_v3, %v3270_v3  ;;  %v5461_v2 = vld [vmem:[%s5661_s22 + $0x210] sm:$0xff] }
  0xf7   : > { %4158 = vst.msk [vmem:[%s5744_s27 + $0x34c] sm:$0xf] %vm3946_vm3, %v3763_v4 }
  0xf8   : > { %3959 = vst.msk [vmem:[%s5744_s27 + $0x30] sm:$0xf] %vm3946_vm3, %v3564_v5  ;;  %v2703_v8 = vpop.f32.mrf.mxu2  ;;  %v2953_v30 = vpop.f32.mrf.mxu3 }
  0xf9   : > { %4059 = vst.msk [vmem:[%s5744_s27 + $0x1c0] sm:$0xf] %vm3946_vm3, %v3664_v6  ;;  %v2704_v10 = vadd.f32 %v5730_v39, %v2703_v8  ;;  %v2205_v11 = vpop.f32.mrf.mxu0  ;;  %v2455_v12 = vpop.f32.mrf.mxu1  ;;  %v2954_v44 = vadd.f32 %v5730_v39, %v2953_v30 }
  0xfa   : > { %v2206_v15 = vadd.f32 %v5730_v39, %v2205_v11  ;;  %v2456_v16 = vadd.f32 %v5730_v39, %v2455_v12  ;;  %4258 = vst.msk [vmem:[%s5744_s27 + $0x4dc] sm:$0xf] %vm3946_vm3, %v3863_v26 }
  0xfb   : > { %v3370_v17 = vmax.f32 %v2704_v10, 0.0  ;;  %v3470_v50 = vmax.f32 %v2954_v44, 0.0  ;;  %v5512_v44 = vld [vmem:[%s5661_s22 + $0x3a8] sm:$0xff] }
  0xfc   : > { %v3171_v21 = vmax.f32 %v2206_v15, 0.0  ;;  %v3271_v22 = vmax.f32 %v2456_v16, 0.0 }
  0xfd   : > { %v3764_v23 = vpack.c.bf16 %v3370_v17, %v3370_v17  ;;  %v3864_v55 = vpack.c.bf16 %v3470_v50, %v3470_v50 }
  0xfe   : > { %v3565_v24 = vpack.c.bf16 %v3171_v21, %v3171_v21  ;;  %v3665_v25 = vpack.c.bf16 %v3271_v22, %v3271_v22 }
  0xff   : > { %4159 = vst.msk [vmem:[%s5744_s27 + $0x350] sm:$0xf] %vm3946_vm3, %v3764_v23 }
 0x100   : > { %3960 = vst.msk [vmem:[%s5744_s27 + $0x34] sm:$0xf] %vm3946_vm3, %v3565_v24  ;;  %v2705_v27 = vpop.f32.mrf.mxu2  ;;  %v2955_v46 = vpop.f32.mrf.mxu3 }
 0x101   : > { %4060 = vst.msk [vmem:[%s5744_s27 + $0x1c4] sm:$0xf] %vm3946_vm3, %v3665_v25  ;;  %v2706_v31 = vadd.f32 %v5730_v39, %v2705_v27  ;;  %v2208_v32 = vpop.f32.mrf.mxu0  ;;  %v2458_v33 = vpop.f32.mrf.mxu1  ;;  %v2956_v51 = vadd.f32 %v5730_v39, %v2955_v46 }
 0x102   : > { %v2209_v35 = vadd.f32 %v5730_v39, %v2208_v32  ;;  %v2459_v36 = vadd.f32 %v5730_v39, %v2458_v33  ;;  %4259 = vst.msk [vmem:[%s5744_s27 + $0x4e0] sm:$0xf] %vm3946_vm3, %v3864_v55 }
 0x103   : > { %v3371_v37 = vmax.f32 %v2706_v31, 0.0  ;;  %v3471_v56 = vmax.f32 %v2956_v51, 0.0 }
 0x104   : > { %v3172_v38 = vmax.f32 %v2209_v35, 0.0  ;;  %v3272_v40 = vmax.f32 %v2459_v36, 0.0  ;;  %5211 = vmatmul.msk.bf16.gmra.mxu0 %vm1565_vm2, %v5410_v28  ;;  %5261 = vmatmul.msk.bf16.gmra.mxu1 %vm1565_vm2, %v5460_v29  ;;  %v5561_v29 = vld [vmem:[%s5661_s22 + $0x530] sm:$0xff] }
 0x105   : > { %v3765_v41 = vpack.c.bf16 %v3371_v37, %v3371_v37  ;;  %5311 = vmatmul.msk.bf16.gmra.mxu2 %vm1565_vm2, %v5510_v34  ;;  %5361 = vmatmul.msk.bf16.gmra.mxu3 %vm1565_vm2, %v5560_v57  ;;  %v3865_v63 = vpack.c.bf16 %v3471_v56, %v3471_v56  ;;  %v5412_v37 = vld [vmem:[%s5661_s22 + $0x88] sm:$0xff] }
 0x106   : > { %v3566_v42 = vpack.c.bf16 %v3172_v38, %v3172_v38  ;;  %v3666_v43 = vpack.c.bf16 %v3272_v40, %v3272_v40  ;;  %v5462_v38 = vld [vmem:[%s5661_s22 + $0x218] sm:$0xff] }
 0x107   : > { %4160 = vst.msk [vmem:[%s5744_s27 + $0x354] sm:$0xf] %vm3946_vm3, %v3765_v41 }
 0x108   : > { %3961 = vst.msk [vmem:[%s5744_s27 + $0x38] sm:$0xf] %vm3946_vm3, %v3566_v42  ;;  %v2708_v45 = vpop.f32.mrf.mxu2  ;;  %v2958_v3 = vpop.f32.mrf.mxu3 }
 0x109   : > { %4061 = vst.msk [vmem:[%s5744_s27 + $0x1c8] sm:$0xf] %vm3946_vm3, %v3666_v43  ;;  %v2709_v47 = vadd.f32 %v5730_v39, %v2708_v45  ;;  %v2210_v48 = vpop.f32.mrf.mxu0  ;;  %v2460_v49 = vpop.f32.mrf.mxu1  ;;  %v2959_v16 = vadd.f32 %v5730_v39, %v2958_v3 }
 0x10a   : > { %v2211_v52 = vadd.f32 %v5730_v39, %v2210_v48  ;;  %v2461_v53 = vadd.f32 %v5730_v39, %v2460_v49  ;;  %4260 = vst.msk [vmem:[%s5744_s27 + $0x4e4] sm:$0xf] %vm3946_vm3, %v3865_v63 }
 0x10b   : > { %v3372_v54 = vmax.f32 %v2709_v47, 0.0  ;;  %v3472_v22 = vmax.f32 %v2959_v16, 0.0  ;;  %v5513_v16 = vld [vmem:[%s5661_s22 + $0x3b0] sm:$0xff] }
 0x10c   : > { %v3173_v58 = vmax.f32 %v2211_v52, 0.0  ;;  %v3273_v59 = vmax.f32 %v2461_v53, 0.0 }
 0x10d   : > { %v3766_v60 = vpack.c.bf16 %v3372_v54, %v3372_v54  ;;  %v3866_v27 = vpack.c.bf16 %v3472_v22, %v3472_v22 }
 0x10e   : > { %v3567_v61 = vpack.c.bf16 %v3173_v58, %v3173_v58  ;;  %v3667_v62 = vpack.c.bf16 %v3273_v59, %v3273_v59 }
 0x10f   : > { %4161 = vst.msk [vmem:[%s5744_s27 + $0x358] sm:$0xf] %vm3946_vm3, %v3766_v60 }
 0x110   : > { %3962 = vst.msk [vmem:[%s5744_s27 + $0x3c] sm:$0xf] %vm3946_vm3, %v3567_v61  ;;  %v2710_v0 = vpop.f32.mrf.mxu2  ;;  %v2960_v18 = vpop.f32.mrf.mxu3 }
 0x111   : > { %4062 = vst.msk [vmem:[%s5744_s27 + $0x1cc] sm:$0xf] %vm3946_vm3, %v3667_v62  ;;  %v2711_v4 = vadd.f32 %v5730_v39, %v2710_v0  ;;  %v2213_v5 = vpop.f32.mrf.mxu0  ;;  %v2463_v6 = vpop.f32.mrf.mxu1  ;;  %v2961_v23 = vadd.f32 %v5730_v39, %v2960_v18 }
 0x112   : > { %v2214_v8 = vadd.f32 %v5730_v39, %v2213_v5  ;;  %v2464_v9 = vadd.f32 %v5730_v39, %v2463_v6  ;;  %4261 = vst.msk [vmem:[%s5744_s27 + $0x4e8] sm:$0xf] %vm3946_vm3, %v3866_v27 }
 0x113   : > { %v3373_v10 = vmax.f32 %v2711_v4, 0.0  ;;  %v3473_v28 = vmax.f32 %v2961_v23, 0.0 }
 0x114   : > { %v3174_v11 = vmax.f32 %v2214_v8, 0.0  ;;  %v3274_v12 = vmax.f32 %v2464_v9, 0.0  ;;  %5212 = vmatmul.msk.bf16.gmra.mxu0 %vm1565_vm2, %v5411_v1  ;;  %5262 = vmatmul.msk.bf16.gmra.mxu1 %vm1565_vm2, %v5461_v2  ;;  %v5562_v2 = vld [vmem:[%s5661_s22 + $0x538] sm:$0xff] }
 0x115   : > { %v3767_v13 = vpack.c.bf16 %v3373_v10, %v3373_v10  ;;  %5312 = vmatmul.msk.bf16.gmra.mxu2 %vm1565_vm2, %v5511_v7  ;;  %5362 = vmatmul.msk.bf16.gmra.mxu3 %vm1565_vm2, %v5561_v29  ;;  %v3867_v35 = vpack.c.bf16 %v3473_v28, %v3473_v28  ;;  %v5413_v10 = vld [vmem:[%s5661_s22 + $0x90] sm:$0xff] }
 0x116   : > { %v3568_v14 = vpack.c.bf16 %v3174_v11, %v3174_v11  ;;  %v3668_v15 = vpack.c.bf16 %v3274_v12, %v3274_v12  ;;  %v5463_v11 = vld [vmem:[%s5661_s22 + $0x220] sm:$0xff] }
 0x117   : > { %4162 = vst.msk [vmem:[%s5744_s27 + $0x35c] sm:$0xf] %vm3946_vm3, %v3767_v13 }
 0x118   : > { %3963 = vst.msk [vmem:[%s5744_s27 + $0x40] sm:$0xf] %vm3946_vm3, %v3568_v14  ;;  %v2713_v17 = vpop.f32.mrf.mxu2  ;;  %v2963_v40 = vpop.f32.mrf.mxu3 }
 0x119   : > { %4063 = vst.msk [vmem:[%s5744_s27 + $0x1d0] sm:$0xf] %vm3946_vm3, %v3668_v15  ;;  %v2714_v19 = vadd.f32 %v5730_v39, %v2713_v17  ;;  %v2215_v20 = vpop.f32.mrf.mxu0  ;;  %v2465_v21 = vpop.f32.mrf.mxu1  ;;  %v2964_v53 = vadd.f32 %v5730_v39, %v2963_v40 }
 0x11a   : > { %v2216_v24 = vadd.f32 %v5730_v39, %v2215_v20  ;;  %v2466_v25 = vadd.f32 %v5730_v39, %v2465_v21  ;;  %4262 = vst.msk [vmem:[%s5744_s27 + $0x4ec] sm:$0xf] %vm3946_vm3, %v3867_v35 }
 0x11b   : > { %v3374_v26 = vmax.f32 %v2714_v19, 0.0  ;;  %v3474_v59 = vmax.f32 %v2964_v53, 0.0  ;;  %v5514_v53 = vld [vmem:[%s5661_s22 + $0x3b8] sm:$0xff] }
 0x11c   : > { %v3175_v30 = vmax.f32 %v2216_v24, 0.0  ;;  %v3275_v31 = vmax.f32 %v2466_v25, 0.0 }
 0x11d   : > { %v3768_v32 = vpack.c.bf16 %v3374_v26, %v3374_v26  ;;  %v3868_v0 = vpack.c.bf16 %v3474_v59, %v3474_v59 }
 0x11e   : > { %v3569_v33 = vpack.c.bf16 %v3175_v30, %v3175_v30  ;;  %v3669_v34 = vpack.c.bf16 %v3275_v31, %v3275_v31 }
 0x11f   : > { %4163 = vst.msk [vmem:[%s5744_s27 + $0x360] sm:$0xf] %vm3946_vm3, %v3768_v32 }
 0x120   : > { %3964 = vst.msk [vmem:[%s5744_s27 + $0x44] sm:$0xf] %vm3946_vm3, %v3569_v33  ;;  %v2715_v36 = vpop.f32.mrf.mxu2  ;;  %v2965_v55 = vpop.f32.mrf.mxu3 }
 0x121   : > { %4064 = vst.msk [vmem:[%s5744_s27 + $0x1d4] sm:$0xf] %vm3946_vm3, %v3669_v34  ;;  %v2716_v41 = vadd.f32 %v5730_v39, %v2715_v36  ;;  %v2218_v42 = vpop.f32.mrf.mxu0  ;;  %v2468_v43 = vpop.f32.mrf.mxu1  ;;  %v2966_v60 = vadd.f32 %v5730_v39, %v2965_v55 }
 0x122   : > { %v2219_v45 = vadd.f32 %v5730_v39, %v2218_v42  ;;  %v2469_v46 = vadd.f32 %v5730_v39, %v2468_v43  ;;  %4263 = vst.msk [vmem:[%s5744_s27 + $0x4f0] sm:$0xf] %vm3946_vm3, %v3868_v0 }
 0x123   : > { %v3375_v47 = vmax.f32 %v2716_v41, 0.0  ;;  %v3475_v1 = vmax.f32 %v2966_v60, 0.0 }
 0x124   : > { %v3176_v48 = vmax.f32 %v2219_v45, 0.0  ;;  %v3276_v49 = vmax.f32 %v2469_v46, 0.0  ;;  %5213 = vmatmul.msk.bf16.gmra.mxu0 %vm1565_vm2, %v5412_v37  ;;  %5263 = vmatmul.msk.bf16.gmra.mxu1 %vm1565_vm2, %v5462_v38  ;;  %v5563_v38 = vld [vmem:[%s5661_s22 + $0x540] sm:$0xff]  ;;  %v5414_v46 = vld [vmem:[%s5661_s22 + $0x98] sm:$0xff] }
 0x125   : > { %v3769_v50 = vpack.c.bf16 %v3375_v47, %v3375_v47  ;;  %5313 = vmatmul.msk.bf16.gmra.mxu2 %vm1565_vm2, %v5512_v44  ;;  %5363 = vmatmul.msk.bf16.gmra.mxu3 %vm1565_vm2, %v5562_v2  ;;  %v3869_v8 = vpack.c.bf16 %v3475_v1, %v3475_v1  ;;  %v5464_v47 = vld [vmem:[%s5661_s22 + $0x228] sm:$0xff] }
 0x126   : > { %v3570_v51 = vpack.c.bf16 %v3176_v48, %v3176_v48  ;;  %v3670_v52 = vpack.c.bf16 %v3276_v49, %v3276_v49  ;;  %v6085_v49 = vld [vmem:[%s7276_s2] ss:$0 sm:$0xff] }
 0x127   : > { %4164 = vst.msk [vmem:[%s5744_s27 + $0x364] sm:$0xf] %vm3946_vm3, %v3769_v50 }
 0x128   : > { %3965 = vst.msk [vmem:[%s5744_s27 + $0x48] sm:$0xf] %vm3946_vm3, %v3570_v51  ;;  %v2718_v54 = vpop.f32.mrf.mxu2  ;;  %v2968_v12 = vpop.f32.mrf.mxu3 }
 0x129   : > { %4065 = vst.msk [vmem:[%s5744_s27 + $0x1d8] sm:$0xf] %vm3946_vm3, %v3670_v52  ;;  %v2719_v56 = vadd.f32 %v5730_v39, %v2718_v54  ;;  %v2220_v57 = vpop.f32.mrf.mxu0  ;;  %v2470_v58 = vpop.f32.mrf.mxu1  ;;  %v2969_v25 = vadd.f32 %v5730_v39, %v2968_v12 }
 0x12a   : > { %v2221_v61 = vadd.f32 %v5730_v39, %v2220_v57  ;;  %v2471_v62 = vadd.f32 %v5730_v39, %v2470_v58  ;;  %4264 = vst.msk [vmem:[%s5744_s27 + $0x4f4] sm:$0xf] %vm3946_vm3, %v3869_v8 }
 0x12b   : > { %v3376_v63 = vmax.f32 %v2719_v56, 0.0  ;;  %v3476_v31 = vmax.f32 %v2969_v25, 0.0  ;;  %v5515_v25 = vld [vmem:[%s5661_s22 + $0x3c0] sm:$0xff] }
 0x12c   : > { %v3177_v3 = vmax.f32 %v2221_v61, 0.0  ;;  %v3277_v4 = vmax.f32 %v2471_v62, 0.0 }
 0x12d   : > { %v3770_v5 = vpack.c.bf16 %v3376_v63, %v3376_v63  ;;  %v3870_v36 = vpack.c.bf16 %v3476_v31, %v3476_v31 }
 0x12e   : > { %v3571_v6 = vpack.c.bf16 %v3177_v3, %v3177_v3  ;;  %v3671_v7 = vpack.c.bf16 %v3277_v4, %v3277_v4 }
 0x12f   : > { %4165 = vst.msk [vmem:[%s5744_s27 + $0x368] sm:$0xf] %vm3946_vm3, %v3770_v5 }
 0x130   : > { %3966 = vst.msk [vmem:[%s5744_s27 + $0x4c] sm:$0xf] %vm3946_vm3, %v3571_v6  ;;  %v2720_v9 = vpop.f32.mrf.mxu2  ;;  %v2970_v27 = vpop.f32.mrf.mxu3 }
 0x131   : > { %4066 = vst.msk [vmem:[%s5744_s27 + $0x1dc] sm:$0xf] %vm3946_vm3, %v3671_v7  ;;  %v2721_v13 = vadd.f32 %v5730_v39, %v2720_v9  ;;  %v2223_v14 = vpop.f32.mrf.mxu0  ;;  %v2473_v15 = vpop.f32.mrf.mxu1  ;;  %v2971_v32 = vadd.f32 %v5730_v39, %v2970_v27 }
 0x132   : > { %v2224_v17 = vadd.f32 %v5730_v39, %v2223_v14  ;;  %v2474_v18 = vadd.f32 %v5730_v39, %v2473_v15  ;;  %4265 = vst.msk [vmem:[%s5744_s27 + $0x4f8] sm:$0xf] %vm3946_vm3, %v3870_v36 }
 0x133   : > { %v3377_v19 = vmax.f32 %v2721_v13, 0.0  ;;  %v3477_v37 = vmax.f32 %v2971_v32, 0.0 }
 0x134   : > { %v3178_v20 = vmax.f32 %v2224_v17, 0.0  ;;  %v3278_v21 = vmax.f32 %v2474_v18, 0.0  ;;  %5214 = vmatmul.msk.bf16.gmra.mxu0 %vm1565_vm2, %v5413_v10  ;;  %5264 = vmatmul.msk.bf16.gmra.mxu1 %vm1565_vm2, %v5463_v11  ;;  %v5564_v11 = vld [vmem:[%s5661_s22 + $0x548] sm:$0xff] }
 0x135   : > { %v3771_v22 = vpack.c.bf16 %v3377_v19, %v3377_v19  ;;  %5314 = vmatmul.msk.bf16.gmra.mxu2 %vm1565_vm2, %v5513_v16  ;;  %5364 = vmatmul.msk.bf16.gmra.mxu3 %vm1565_vm2, %v5563_v38  ;;  %v3871_v45 = vpack.c.bf16 %v3477_v37, %v3477_v37  ;;  %v5415_v19 = vld [vmem:[%s5661_s22 + $0xa0] sm:$0xff] }
 0x136   : > { %v3572_v23 = vpack.c.bf16 %v3178_v20, %v3178_v20  ;;  %v3672_v24 = vpack.c.bf16 %v3278_v21, %v3278_v21  ;;  %v5465_v20 = vld [vmem:[%s5661_s22 + $0x230] sm:$0xff] }
 0x137   : > { %4166 = vst.msk [vmem:[%s5744_s27 + $0x36c] sm:$0xf] %vm3946_vm3, %v3771_v22 }
 0x138   : > { %3967 = vst.msk [vmem:[%s5744_s27 + $0x50] sm:$0xf] %vm3946_vm3, %v3572_v23  ;;  %v2723_v26 = vpop.f32.mrf.mxu2  ;;  %v2973_v48 = vpop.f32.mrf.mxu3 }
 0x139   : > { %4067 = vst.msk [vmem:[%s5744_s27 + $0x1e0] sm:$0xf] %vm3946_vm3, %v3672_v24  ;;  %v2724_v28 = vadd.f32 %v5730_v39, %v2723_v26  ;;  %v2225_v29 = vpop.f32.mrf.mxu0  ;;  %v2475_v30 = vpop.f32.mrf.mxu1  ;;  %v2974_v62 = vadd.f32 %v6085_v49, %v2973_v48 }
 0x13a   : > { %v2226_v33 = vadd.f32 %v5730_v39, %v2225_v29  ;;  %v2476_v34 = vadd.f32 %v5730_v39, %v2475_v30  ;;  %4266 = vst.msk [vmem:[%s5744_s27 + $0x4fc] sm:$0xf] %vm3946_vm3, %v3871_v45 }
 0x13b   : > { %v3378_v35 = vmax.f32 %v2724_v28, 0.0  ;;  %v3478_v4 = vmax.f32 %v2974_v62, 0.0  ;;  %v5516_v62 = vld [vmem:[%s5661_s22 + $0x3c8] sm:$0xff] }
 0x13c   : > { %v3179_v40 = vmax.f32 %v2226_v33, 0.0  ;;  %v3279_v41 = vmax.f32 %v2476_v34, 0.0 }
 0x13d   : > { %v3772_v42 = vpack.c.bf16 %v3378_v35, %v3378_v35  ;;  %v3872_v9 = vpack.c.bf16 %v3478_v4, %v3478_v4 }
 0x13e   : > { %v3573_v43 = vpack.c.bf16 %v3179_v40, %v3179_v40  ;;  %v3673_v44 = vpack.c.bf16 %v3279_v41, %v3279_v41 }
 0x13f   : > { %4167 = vst.msk [vmem:[%s5744_s27 + $0x370] sm:$0xf] %vm3946_vm3, %v3772_v42 }
 0x140   : > { %3968 = vst.msk [vmem:[%s5744_s27 + $0x54] sm:$0xf] %vm3946_vm3, %v3573_v43  ;;  %v2725_v39 = vpop.f32.mrf.mxu2  ;;  %v2975_v0 = vpop.f32.mrf.mxu3 }
 0x141   : > { %4068 = vst.msk [vmem:[%s5744_s27 + $0x1e4] sm:$0xf] %vm3946_vm3, %v3673_v44  ;;  %v2726_v50 = vadd.f32 %v6085_v49, %v2725_v39  ;;  %v2228_v51 = vpop.f32.mrf.mxu0  ;;  %v2478_v52 = vpop.f32.mrf.mxu1  ;;  %v2976_v5 = vadd.f32 %v6085_v49, %v2975_v0 }
 0x142   : > { %v2229_v54 = vadd.f32 %v6085_v49, %v2228_v51  ;;  %v2479_v55 = vadd.f32 %v6085_v49, %v2478_v52  ;;  %4267 = vst.msk [vmem:[%s5744_s27 + $0x500] sm:$0xf] %vm3946_vm3, %v3872_v9 }
 0x143   : > { %v3379_v56 = vmax.f32 %v2726_v50, 0.0  ;;  %v3479_v10 = vmax.f32 %v2976_v5, 0.0 }
 0x144   : > { %v3180_v57 = vmax.f32 %v2229_v54, 0.0  ;;  %v3280_v58 = vmax.f32 %v2479_v55, 0.0  ;;  %5215 = vmatmul.msk.bf16.gmra.mxu0 %vm1565_vm2, %v5414_v46  ;;  %5265 = vmatmul.msk.bf16.gmra.mxu1 %vm1565_vm2, %v5464_v47  ;;  %v5565_v47 = vld [vmem:[%s5661_s22 + $0x550] sm:$0xff] }
 0x145   : > { %v3773_v59 = vpack.c.bf16 %v3379_v56, %v3379_v56  ;;  %5315 = vmatmul.msk.bf16.gmra.mxu2 %vm1565_vm2, %v5514_v53  ;;  %5365 = vmatmul.msk.bf16.gmra.mxu3 %vm1565_vm2, %v5564_v11  ;;  %v3873_v17 = vpack.c.bf16 %v3479_v10, %v3479_v10  ;;  %v5416_v56 = vld [vmem:[%s5661_s22 + $0xa8] sm:$0xff] }
 0x146   : > { %v3574_v60 = vpack.c.bf16 %v3180_v57, %v3180_v57  ;;  %v3674_v61 = vpack.c.bf16 %v3280_v58, %v3280_v58  ;;  %v5466_v57 = vld [vmem:[%s5661_s22 + $0x238] sm:$0xff] }
 0x147   : > { %4168 = vst.msk [vmem:[%s5744_s27 + $0x374] sm:$0xf] %vm3946_vm3, %v3773_v59 }
 0x148   : > { %3969 = vst.msk [vmem:[%s5744_s27 + $0x58] sm:$0xf] %vm3946_vm3, %v3574_v60  ;;  %v2728_v63 = vpop.f32.mrf.mxu2  ;;  %v2978_v21 = vpop.f32.mrf.mxu3 }
 0x149   : > { %4069 = vst.msk [vmem:[%s5744_s27 + $0x1e8] sm:$0xf] %vm3946_vm3, %v3674_v61  ;;  %v2729_v1 = vadd.f32 %v6085_v49, %v2728_v63  ;;  %v2230_v2 = vpop.f32.mrf.mxu0  ;;  %v2480_v3 = vpop.f32.mrf.mxu1  ;;  %v2979_v34 = vadd.f32 %v6085_v49, %v2978_v21 }
 0x14a   : > { %v2231_v6 = vadd.f32 %v6085_v49, %v2230_v2  ;;  %v2481_v7 = vadd.f32 %v6085_v49, %v2480_v3  ;;  %4268 = vst.msk [vmem:[%s5744_s27 + $0x504] sm:$0xf] %vm3946_vm3, %v3873_v17 }
 0x14b   : > { %v3380_v8 = vmax.f32 %v2729_v1, 0.0  ;;  %v3480_v41 = vmax.f32 %v2979_v34, 0.0  ;;  %v5517_v34 = vld [vmem:[%s5661_s22 + $0x3d0] sm:$0xff] }
 0x14c   : > { %v3181_v12 = vmax.f32 %v2231_v6, 0.0  ;;  %v3281_v13 = vmax.f32 %v2481_v7, 0.0 }
 0x14d   : > { %v3774_v14 = vpack.c.bf16 %v3380_v8, %v3380_v8  ;;  %v3874_v39 = vpack.c.bf16 %v3480_v41, %v3480_v41 }
 0x14e   : > { %v3575_v15 = vpack.c.bf16 %v3181_v12, %v3181_v12  ;;  %v3675_v16 = vpack.c.bf16 %v3281_v13, %v3281_v13 }
 0x14f   : > { %4169 = vst.msk [vmem:[%s5744_s27 + $0x378] sm:$0xf] %vm3946_vm3, %v3774_v14 }
 0x150   : > { %3970 = vst.msk [vmem:[%s5744_s27 + $0x5c] sm:$0xf] %vm3946_vm3, %v3575_v15  ;;  %v2730_v18 = vpop.f32.mrf.mxu2  ;;  %v2980_v36 = vpop.f32.mrf.mxu3 }
 0x151   : > { %4070 = vst.msk [vmem:[%s5744_s27 + $0x1ec] sm:$0xf] %vm3946_vm3, %v3675_v16  ;;  %v2731_v22 = vadd.f32 %v6085_v49, %v2730_v18  ;;  %v2233_v23 = vpop.f32.mrf.mxu0  ;;  %v2483_v24 = vpop.f32.mrf.mxu1  ;;  %v2981_v42 = vadd.f32 %v6085_v49, %v2980_v36 }
 0x152   : > { %v2234_v26 = vadd.f32 %v6085_v49, %v2233_v23  ;;  %v2484_v27 = vadd.f32 %v6085_v49, %v2483_v24  ;;  %4269 = vst.msk [vmem:[%s5744_s27 + $0x508] sm:$0xf] %vm3946_vm3, %v3874_v39 }
 0x153   : > { %v3381_v28 = vmax.f32 %v2731_v22, 0.0  ;;  %v3481_v46 = vmax.f32 %v2981_v42, 0.0 }
 0x154   : > { %v3182_v29 = vmax.f32 %v2234_v26, 0.0  ;;  %v3282_v30 = vmax.f32 %v2484_v27, 0.0  ;;  %5216 = vmatmul.msk.bf16.gmra.mxu0 %vm1565_vm2, %v5415_v19  ;;  %5266 = vmatmul.msk.bf16.gmra.mxu1 %vm1565_vm2, %v5465_v20  ;;  %v5566_v20 = vld [vmem:[%s5661_s22 + $0x558] sm:$0xff] }
 0x155   : > { %v3775_v31 = vpack.c.bf16 %v3381_v28, %v3381_v28  ;;  %5316 = vmatmul.msk.bf16.gmra.mxu2 %vm1565_vm2, %v5515_v25  ;;  %5366 = vmatmul.msk.bf16.gmra.mxu3 %vm1565_vm2, %v5565_v47  ;;  %v3875_v54 = vpack.c.bf16 %v3481_v46, %v3481_v46  ;;  %v5417_v28 = vld [vmem:[%s5661_s22 + $0xb0] sm:$0xff] }
 0x156   : > { %v3576_v32 = vpack.c.bf16 %v3182_v29, %v3182_v29  ;;  %v3676_v33 = vpack.c.bf16 %v3282_v30, %v3282_v30  ;;  %v5467_v29 = vld [vmem:[%s5661_s22 + $0x240] sm:$0xff] }
 0x157   : > { %4170 = vst.msk [vmem:[%s5744_s27 + $0x37c] sm:$0xf] %vm3946_vm3, %v3775_v31 }
 0x158   : > { %3971 = vst.msk [vmem:[%s5744_s27 + $0x60] sm:$0xf] %vm3946_vm3, %v3576_v32  ;;  %v2733_v35 = vpop.f32.mrf.mxu2  ;;  %v2983_v58 = vpop.f32.mrf.mxu3 }
 0x159   : > { %4071 = vst.msk [vmem:[%s5744_s27 + $0x1f0] sm:$0xf] %vm3946_vm3, %v3676_v33  ;;  %v2734_v37 = vadd.f32 %v6085_v49, %v2733_v35  ;;  %v2235_v38 = vpop.f32.mrf.mxu0  ;;  %v2485_v40 = vpop.f32.mrf.mxu1  ;;  %v2984_v7 = vadd.f32 %v6085_v49, %v2983_v58 }
 0x15a   : > { %v2236_v43 = vadd.f32 %v6085_v49, %v2235_v38  ;;  %v2486_v44 = vadd.f32 %v6085_v49, %v2485_v40  ;;  %4270 = vst.msk [vmem:[%s5744_s27 + $0x50c] sm:$0xf] %vm3946_vm3, %v3875_v54 }
 0x15b   : > { %v3382_v45 = vmax.f32 %v2734_v37, 0.0  ;;  %v3482_v13 = vmax.f32 %v2984_v7, 0.0  ;;  %v5518_v7 = vld [vmem:[%s5661_s22 + $0x3d8] sm:$0xff] }
 0x15c   : > { %v3183_v48 = vmax.f32 %v2236_v43, 0.0  ;;  %v3283_v50 = vmax.f32 %v2486_v44, 0.0 }
 0x15d   : > { %v3776_v51 = vpack.c.bf16 %v3382_v45, %v3382_v45  ;;  %v3876_v18 = vpack.c.bf16 %v3482_v13, %v3482_v13 }
 0x15e   : > { %v3577_v52 = vpack.c.bf16 %v3183_v48, %v3183_v48  ;;  %v3677_v53 = vpack.c.bf16 %v3283_v50, %v3283_v50 }
 0x15f   : > { %4171 = vst.msk [vmem:[%s5744_s27 + $0x380] sm:$0xf] %vm3946_vm3, %v3776_v51 }
 0x160   : > { %3972 = vst.msk [vmem:[%s5744_s27 + $0x64] sm:$0xf] %vm3946_vm3, %v3577_v52  ;;  %v2735_v55 = vpop.f32.mrf.mxu2  ;;  %v2985_v9 = vpop.f32.mrf.mxu3 }
 0x161   : > { %4072 = vst.msk [vmem:[%s5744_s27 + $0x1f4] sm:$0xf] %vm3946_vm3, %v3677_v53  ;;  %v2736_v59 = vadd.f32 %v6085_v49, %v2735_v55  ;;  %v2238_v60 = vpop.f32.mrf.mxu0  ;;  %v2488_v61 = vpop.f32.mrf.mxu1  ;;  %v2986_v14 = vadd.f32 %v6085_v49, %v2985_v9 }
 0x162   : > { %v2239_v63 = vadd.f32 %v6085_v49, %v2238_v60  ;;  %v2489_v0 = vadd.f32 %v6085_v49, %v2488_v61  ;;  %4271 = vst.msk [vmem:[%s5744_s27 + $0x510] sm:$0xf] %vm3946_vm3, %v3876_v18 }
 0x163   : > { %v3383_v1 = vmax.f32 %v2736_v59, 0.0  ;;  %v3483_v19 = vmax.f32 %v2986_v14, 0.0 }
 0x164   : > { %v3184_v2 = vmax.f32 %v2239_v63, 0.0  ;;  %v3284_v3 = vmax.f32 %v2489_v0, 0.0  ;;  %5217 = vmatmul.msk.bf16.gmra.mxu0 %vm1565_vm2, %v5416_v56  ;;  %5267 = vmatmul.msk.bf16.gmra.mxu1 %vm1565_vm2, %v5466_v57  ;;  %v5567_v57 = vld [vmem:[%s5661_s22 + $0x560] sm:$0xff] }
 0x165   : > { %v3777_v4 = vpack.c.bf16 %v3383_v1, %v3383_v1  ;;  %5317 = vmatmul.msk.bf16.gmra.mxu2 %vm1565_vm2, %v5516_v62  ;;  %5367 = vmatmul.msk.bf16.gmra.mxu3 %vm1565_vm2, %v5566_v20  ;;  %v3877_v26 = vpack.c.bf16 %v3483_v19, %v3483_v19  ;;  %v5418_v1 = vld [vmem:[%s5661_s22 + $0xb8] sm:$0xff] }
 0x166   : > { %v3578_v5 = vpack.c.bf16 %v3184_v2, %v3184_v2  ;;  %v3678_v6 = vpack.c.bf16 %v3284_v3, %v3284_v3  ;;  %v5468_v2 = vld [vmem:[%s5661_s22 + $0x248] sm:$0xff] }
 0x167   : > { %4172 = vst.msk [vmem:[%s5744_s27 + $0x384] sm:$0xf] %vm3946_vm3, %v3777_v4 }
 0x168   : > { %3973 = vst.msk [vmem:[%s5744_s27 + $0x68] sm:$0xf] %vm3946_vm3, %v3578_v5  ;;  %v2738_v8 = vpop.f32.mrf.mxu2  ;;  %v2988_v30 = vpop.f32.mrf.mxu3 }
 0x169   : > { %4073 = vst.msk [vmem:[%s5744_s27 + $0x1f8] sm:$0xf] %vm3946_vm3, %v3678_v6  ;;  %v2739_v10 = vadd.f32 %v6085_v49, %v2738_v8  ;;  %v2240_v11 = vpop.f32.mrf.mxu0  ;;  %v2490_v12 = vpop.f32.mrf.mxu1  ;;  %v2989_v44 = vadd.f32 %v6085_v49, %v2988_v30 }
 0x16a   : > { %v2241_v15 = vadd.f32 %v6085_v49, %v2240_v11  ;;  %v2491_v16 = vadd.f32 %v6085_v49, %v2490_v12  ;;  %4272 = vst.msk [vmem:[%s5744_s27 + $0x514] sm:$0xf] %vm3946_vm3, %v3877_v26 }
 0x16b   : > { %v3384_v17 = vmax.f32 %v2739_v10, 0.0  ;;  %v3484_v50 = vmax.f32 %v2989_v44, 0.0  ;;  %v5519_v44 = vld [vmem:[%s5661_s22 + $0x3e0] sm:$0xff] }
 0x16c   : > { %v3185_v21 = vmax.f32 %v2241_v15, 0.0  ;;  %v3285_v22 = vmax.f32 %v2491_v16, 0.0 }
 0x16d   : > { %v3778_v23 = vpack.c.bf16 %v3384_v17, %v3384_v17  ;;  %v3878_v55 = vpack.c.bf16 %v3484_v50, %v3484_v50 }
 0x16e   : > { %v3579_v24 = vpack.c.bf16 %v3185_v21, %v3185_v21  ;;  %v3679_v25 = vpack.c.bf16 %v3285_v22, %v3285_v22 }
 0x16f   : > { %4173 = vst.msk [vmem:[%s5744_s27 + $0x388] sm:$0xf] %vm3946_vm3, %v3778_v23 }
 0x170   : > { %3974 = vst.msk [vmem:[%s5744_s27 + $0x6c] sm:$0xf] %vm3946_vm3, %v3579_v24  ;;  %v2740_v27 = vpop.f32.mrf.mxu2  ;;  %v2990_v39 = vpop.f32.mrf.mxu3 }
 0x171   : > { %4074 = vst.msk [vmem:[%s5744_s27 + $0x1fc] sm:$0xf] %vm3946_vm3, %v3679_v25  ;;  %v2741_v31 = vadd.f32 %v6085_v49, %v2740_v27  ;;  %v2243_v32 = vpop.f32.mrf.mxu0  ;;  %v2493_v33 = vpop.f32.mrf.mxu1  ;;  %v2991_v51 = vadd.f32 %v6085_v49, %v2990_v39 }
 0x172   : > { %v2244_v35 = vadd.f32 %v6085_v49, %v2243_v32  ;;  %v2494_v36 = vadd.f32 %v6085_v49, %v2493_v33  ;;  %4273 = vst.msk [vmem:[%s5744_s27 + $0x518] sm:$0xf] %vm3946_vm3, %v3878_v55 }
 0x173   : > { %v3385_v37 = vmax.f32 %v2741_v31, 0.0  ;;  %v3485_v56 = vmax.f32 %v2991_v51, 0.0 }
 0x174   : > { %v3186_v38 = vmax.f32 %v2244_v35, 0.0  ;;  %v3286_v40 = vmax.f32 %v2494_v36, 0.0  ;;  %5218 = vmatmul.msk.bf16.gmra.mxu0 %vm1565_vm2, %v5417_v28  ;;  %5268 = vmatmul.msk.bf16.gmra.mxu1 %vm1565_vm2, %v5467_v29  ;;  %v5568_v29 = vld [vmem:[%s5661_s22 + $0x568] sm:$0xff] }
 0x175   : > { %v3779_v41 = vpack.c.bf16 %v3385_v37, %v3385_v37  ;;  %5318 = vmatmul.msk.bf16.gmra.mxu2 %vm1565_vm2, %v5517_v34  ;;  %5368 = vmatmul.msk.bf16.gmra.mxu3 %vm1565_vm2, %v5567_v57  ;;  %v3879_v63 = vpack.c.bf16 %v3485_v56, %v3485_v56  ;;  %v5419_v37 = vld [vmem:[%s5661_s22 + $0xc0] sm:$0xff] }
 0x176   : > { %v3580_v42 = vpack.c.bf16 %v3186_v38, %v3186_v38  ;;  %v3680_v43 = vpack.c.bf16 %v3286_v40, %v3286_v40  ;;  %v5469_v38 = vld [vmem:[%s5661_s22 + $0x250] sm:$0xff] }
 0x177   : > { %4174 = vst.msk [vmem:[%s5744_s27 + $0x38c] sm:$0xf] %vm3946_vm3, %v3779_v41 }
 0x178   : > { %3975 = vst.msk [vmem:[%s5744_s27 + $0x70] sm:$0xf] %vm3946_vm3, %v3580_v42  ;;  %v2743_v45 = vpop.f32.mrf.mxu2  ;;  %v2993_v3 = vpop.f32.mrf.mxu3 }
 0x179   : > { %4075 = vst.msk [vmem:[%s5744_s27 + $0x200] sm:$0xf] %vm3946_vm3, %v3680_v43  ;;  %v2744_v46 = vadd.f32 %v6085_v49, %v2743_v45  ;;  %v2245_v47 = vpop.f32.mrf.mxu0  ;;  %v2495_v48 = vpop.f32.mrf.mxu1  ;;  %v2994_v16 = vadd.f32 %v6085_v49, %v2993_v3 }
 0x17a   : > { %v2246_v52 = vadd.f32 %v6085_v49, %v2245_v47  ;;  %v2496_v53 = vadd.f32 %v6085_v49, %v2495_v48  ;;  %4274 = vst.msk [vmem:[%s5744_s27 + $0x51c] sm:$0xf] %vm3946_vm3, %v3879_v63 }
 0x17b   : > { %v3386_v54 = vmax.f32 %v2744_v46, 0.0  ;;  %v3486_v22 = vmax.f32 %v2994_v16, 0.0  ;;  %v5520_v16 = vld [vmem:[%s5661_s22 + $0x3e8] sm:$0xff] }
 0x17c   : > { %v3187_v58 = vmax.f32 %v2246_v52, 0.0  ;;  %v3287_v59 = vmax.f32 %v2496_v53, 0.0 }
 0x17d   : > { %v3780_v60 = vpack.c.bf16 %v3386_v54, %v3386_v54  ;;  %v3880_v27 = vpack.c.bf16 %v3486_v22, %v3486_v22 }
 0x17e   : > { %v3581_v61 = vpack.c.bf16 %v3187_v58, %v3187_v58  ;;  %v3681_v62 = vpack.c.bf16 %v3287_v59, %v3287_v59 }
 0x17f   : > { %4175 = vst.msk [vmem:[%s5744_s27 + $0x390] sm:$0xf] %vm3946_vm3, %v3780_v60 }
 0x180   : > { %3976 = vst.msk [vmem:[%s5744_s27 + $0x74] sm:$0xf] %vm3946_vm3, %v3581_v61  ;;  %v2745_v0 = vpop.f32.mrf.mxu2  ;;  %v2995_v18 = vpop.f32.mrf.mxu3 }
 0x181   : > { %4076 = vst.msk [vmem:[%s5744_s27 + $0x204] sm:$0xf] %vm3946_vm3, %v3681_v62  ;;  %v2746_v4 = vadd.f32 %v6085_v49, %v2745_v0  ;;  %v2248_v5 = vpop.f32.mrf.mxu0  ;;  %v2498_v6 = vpop.f32.mrf.mxu1  ;;  %v2996_v23 = vadd.f32 %v6085_v49, %v2995_v18 }
 0x182   : > { %v2249_v8 = vadd.f32 %v6085_v49, %v2248_v5  ;;  %v2499_v9 = vadd.f32 %v6085_v49, %v2498_v6  ;;  %4275 = vst.msk [vmem:[%s5744_s27 + $0x520] sm:$0xf] %vm3946_vm3, %v3880_v27 }
 0x183   : > { %v3387_v10 = vmax.f32 %v2746_v4, 0.0  ;;  %v3487_v28 = vmax.f32 %v2996_v23, 0.0 }
 0x184   : > { %v3188_v11 = vmax.f32 %v2249_v8, 0.0  ;;  %v3288_v12 = vmax.f32 %v2499_v9, 0.0  ;;  %5219 = vmatmul.msk.bf16.gmra.mxu0 %vm1565_vm2, %v5418_v1  ;;  %5269 = vmatmul.msk.bf16.gmra.mxu1 %vm1565_vm2, %v5468_v2  ;;  %v5569_v2 = vld [vmem:[%s5661_s22 + $0x570] sm:$0xff] }
 0x185   : > { %v3781_v13 = vpack.c.bf16 %v3387_v10, %v3387_v10  ;;  %5319 = vmatmul.msk.bf16.gmra.mxu2 %vm1565_vm2, %v5518_v7  ;;  %5369 = vmatmul.msk.bf16.gmra.mxu3 %vm1565_vm2, %v5568_v29  ;;  %v3881_v35 = vpack.c.bf16 %v3487_v28, %v3487_v28  ;;  %v5420_v10 = vld [vmem:[%s5661_s22 + $0xc8] sm:$0xff] }
 0x186   : > { %v3582_v14 = vpack.c.bf16 %v3188_v11, %v3188_v11  ;;  %v3682_v15 = vpack.c.bf16 %v3288_v12, %v3288_v12  ;;  %v5470_v11 = vld [vmem:[%s5661_s22 + $0x258] sm:$0xff] }
 0x187   : > { %4176 = vst.msk [vmem:[%s5744_s27 + $0x394] sm:$0xf] %vm3946_vm3, %v3781_v13 }
 0x188   : > { %3977 = vst.msk [vmem:[%s5744_s27 + $0x78] sm:$0xf] %vm3946_vm3, %v3582_v14  ;;  %v2748_v17 = vpop.f32.mrf.mxu2  ;;  %v2998_v40 = vpop.f32.mrf.mxu3 }
 0x189   : > { %4077 = vst.msk [vmem:[%s5744_s27 + $0x208] sm:$0xf] %vm3946_vm3, %v3682_v15  ;;  %v2749_v19 = vadd.f32 %v6085_v49, %v2748_v17  ;;  %v2250_v20 = vpop.f32.mrf.mxu0  ;;  %v2500_v21 = vpop.f32.mrf.mxu1  ;;  %v2999_v53 = vadd.f32 %v6085_v49, %v2998_v40 }
 0x18a   : > { %v2251_v24 = vadd.f32 %v6085_v49, %v2250_v20  ;;  %v2501_v25 = vadd.f32 %v6085_v49, %v2500_v21  ;;  %4276 = vst.msk [vmem:[%s5744_s27 + $0x524] sm:$0xf] %vm3946_vm3, %v3881_v35 }
 0x18b   : > { %v3388_v26 = vmax.f32 %v2749_v19, 0.0  ;;  %v3488_v59 = vmax.f32 %v2999_v53, 0.0  ;;  %v5521_v53 = vld [vmem:[%s5661_s22 + $0x3f0] sm:$0xff] }
 0x18c   : > { %v3189_v30 = vmax.f32 %v2251_v24, 0.0  ;;  %v3289_v31 = vmax.f32 %v2501_v25, 0.0 }
 0x18d   : > { %v3782_v32 = vpack.c.bf16 %v3388_v26, %v3388_v26  ;;  %v3882_v0 = vpack.c.bf16 %v3488_v59, %v3488_v59 }
 0x18e   : > { %v3583_v33 = vpack.c.bf16 %v3189_v30, %v3189_v30  ;;  %v3683_v34 = vpack.c.bf16 %v3289_v31, %v3289_v31 }
 0x18f   : > { %4177 = vst.msk [vmem:[%s5744_s27 + $0x398] sm:$0xf] %vm3946_vm3, %v3782_v32 }
 0x190   : > { %3978 = vst.msk [vmem:[%s5744_s27 + $0x7c] sm:$0xf] %vm3946_vm3, %v3583_v33  ;;  %v2750_v36 = vpop.f32.mrf.mxu2  ;;  %v3000_v55 = vpop.f32.mrf.mxu3 }
 0x191   : > { %4078 = vst.msk [vmem:[%s5744_s27 + $0x20c] sm:$0xf] %vm3946_vm3, %v3683_v34  ;;  %v2751_v41 = vadd.f32 %v6085_v49, %v2750_v36  ;;  %v2253_v42 = vpop.f32.mrf.mxu0  ;;  %v2503_v43 = vpop.f32.mrf.mxu1  ;;  %v3001_v60 = vadd.f32 %v6085_v49, %v3000_v55 }
 0x192   : > { %v2254_v45 = vadd.f32 %v6085_v49, %v2253_v42  ;;  %v2504_v39 = vadd.f32 %v6085_v49, %v2503_v43  ;;  %4277 = vst.msk [vmem:[%s5744_s27 + $0x528] sm:$0xf] %vm3946_vm3, %v3882_v0 }
 0x193   : > { %v3389_v46 = vmax.f32 %v2751_v41, 0.0  ;;  %v3489_v1 = vmax.f32 %v3001_v60, 0.0 }
 0x194   : > { %v3190_v47 = vmax.f32 %v2254_v45, 0.0  ;;  %v3290_v48 = vmax.f32 %v2504_v39, 0.0  ;;  %5220 = vmatmul.msk.bf16.gmra.mxu0 %vm1565_vm2, %v5419_v37  ;;  %5270 = vmatmul.msk.bf16.gmra.mxu1 %vm1565_vm2, %v5469_v38  ;;  %v5570_v38 = vld [vmem:[%s5661_s22 + $0x578] sm:$0xff] }
 0x195   : > { %v3783_v50 = vpack.c.bf16 %v3389_v46, %v3389_v46  ;;  %5320 = vmatmul.msk.bf16.gmra.mxu2 %vm1565_vm2, %v5519_v44  ;;  %5370 = vmatmul.msk.bf16.gmra.mxu3 %vm1565_vm2, %v5569_v2  ;;  %v3883_v8 = vpack.c.bf16 %v3489_v1, %v3489_v1  ;;  %v5421_v46 = vld [vmem:[%s5661_s22 + $0xd0] sm:$0xff] }
 0x196   : > { %v3584_v51 = vpack.c.bf16 %v3190_v47, %v3190_v47  ;;  %v3684_v52 = vpack.c.bf16 %v3290_v48, %v3290_v48  ;;  %v5471_v47 = vld [vmem:[%s5661_s22 + $0x260] sm:$0xff] }
 0x197   : > { %4178 = vst.msk [vmem:[%s5744_s27 + $0x39c] sm:$0xf] %vm3946_vm3, %v3783_v50 }
 0x198   : > { %3979 = vst.msk [vmem:[%s5744_s27 + $0x80] sm:$0xf] %vm3946_vm3, %v3584_v51  ;;  %v2753_v54 = vpop.f32.mrf.mxu2  ;;  %v3003_v12 = vpop.f32.mrf.mxu3 }
 0x199   : > { %4079 = vst.msk [vmem:[%s5744_s27 + $0x210] sm:$0xf] %vm3946_vm3, %v3684_v52  ;;  %v2754_v56 = vadd.f32 %v6085_v49, %v2753_v54  ;;  %v2255_v57 = vpop.f32.mrf.mxu0  ;;  %v2505_v58 = vpop.f32.mrf.mxu1  ;;  %v3004_v25 = vadd.f32 %v6085_v49, %v3003_v12 }
 0x19a   : > { %v2256_v61 = vadd.f32 %v6085_v49, %v2255_v57  ;;  %v2506_v62 = vadd.f32 %v6085_v49, %v2505_v58  ;;  %4278 = vst.msk [vmem:[%s5744_s27 + $0x52c] sm:$0xf] %vm3946_vm3, %v3883_v8 }
 0x19b   : > { %v3390_v63 = vmax.f32 %v2754_v56, 0.0  ;;  %v3490_v31 = vmax.f32 %v3004_v25, 0.0  ;;  %v5522_v25 = vld [vmem:[%s5661_s22 + $0x3f8] sm:$0xff] }
 0x19c   : > { %v3191_v3 = vmax.f32 %v2256_v61, 0.0  ;;  %v3291_v4 = vmax.f32 %v2506_v62, 0.0 }
 0x19d   : > { %v3784_v5 = vpack.c.bf16 %v3390_v63, %v3390_v63  ;;  %v3884_v36 = vpack.c.bf16 %v3490_v31, %v3490_v31 }
 0x19e   : > { %v3585_v6 = vpack.c.bf16 %v3191_v3, %v3191_v3  ;;  %v3685_v7 = vpack.c.bf16 %v3291_v4, %v3291_v4 }
 0x19f   : > { %4179 = vst.msk [vmem:[%s5744_s27 + $0x3a0] sm:$0xf] %vm3946_vm3, %v3784_v5 }
 0x1a0   : > { %3980 = vst.msk [vmem:[%s5744_s27 + $0x84] sm:$0xf] %vm3946_vm3, %v3585_v6  ;;  %v2755_v9 = vpop.f32.mrf.mxu2  ;;  %v3005_v27 = vpop.f32.mrf.mxu3 }
 0x1a1   : > { %4080 = vst.msk [vmem:[%s5744_s27 + $0x214] sm:$0xf] %vm3946_vm3, %v3685_v7  ;;  %v2756_v13 = vadd.f32 %v6085_v49, %v2755_v9  ;;  %v2258_v14 = vpop.f32.mrf.mxu0  ;;  %v2508_v15 = vpop.f32.mrf.mxu1  ;;  %v3006_v32 = vadd.f32 %v6085_v49, %v3005_v27 }
 0x1a2   : > { %v2259_v17 = vadd.f32 %v6085_v49, %v2258_v14  ;;  %v2509_v18 = vadd.f32 %v6085_v49, %v2508_v15  ;;  %4279 = vst.msk [vmem:[%s5744_s27 + $0x530] sm:$0xf] %vm3946_vm3, %v3884_v36 }
 0x1a3   : > { %v3391_v19 = vmax.f32 %v2756_v13, 0.0  ;;  %v3491_v37 = vmax.f32 %v3006_v32, 0.0 }
 0x1a4   : > { %v3192_v20 = vmax.f32 %v2259_v17, 0.0  ;;  %v3292_v21 = vmax.f32 %v2509_v18, 0.0  ;;  %5221 = vmatmul.msk.bf16.gmra.mxu0 %vm1565_vm2, %v5420_v10  ;;  %5271 = vmatmul.msk.bf16.gmra.mxu1 %vm1565_vm2, %v5470_v11  ;;  %v5571_v11 = vld [vmem:[%s5661_s22 + $0x580] sm:$0xff] }
 0x1a5   : > { %v3785_v22 = vpack.c.bf16 %v3391_v19, %v3391_v19  ;;  %5321 = vmatmul.msk.bf16.gmra.mxu2 %vm1565_vm2, %v5520_v16  ;;  %5371 = vmatmul.msk.bf16.gmra.mxu3 %vm1565_vm2, %v5570_v38  ;;  %v3885_v45 = vpack.c.bf16 %v3491_v37, %v3491_v37  ;;  %v5422_v19 = vld [vmem:[%s5661_s22 + $0xd8] sm:$0xff] }
 0x1a6   : > { %v3586_v23 = vpack.c.bf16 %v3192_v20, %v3192_v20  ;;  %v3686_v24 = vpack.c.bf16 %v3292_v21, %v3292_v21  ;;  %v5472_v20 = vld [vmem:[%s5661_s22 + $0x268] sm:$0xff] }
 0x1a7   : > { %4180 = vst.msk [vmem:[%s5744_s27 + $0x3a4] sm:$0xf] %vm3946_vm3, %v3785_v22 }
 0x1a8   : > { %3981 = vst.msk [vmem:[%s5744_s27 + $0x88] sm:$0xf] %vm3946_vm3, %v3586_v23  ;;  %v2758_v26 = vpop.f32.mrf.mxu2  ;;  %v3008_v48 = vpop.f32.mrf.mxu3 }
 0x1a9   : > { %4081 = vst.msk [vmem:[%s5744_s27 + $0x218] sm:$0xf] %vm3946_vm3, %v3686_v24  ;;  %v2759_v28 = vadd.f32 %v6085_v49, %v2758_v26  ;;  %v2260_v29 = vpop.f32.mrf.mxu0  ;;  %v2510_v30 = vpop.f32.mrf.mxu1  ;;  %v3009_v62 = vadd.f32 %v6085_v49, %v3008_v48 }
 0x1aa   : > { %v2261_v33 = vadd.f32 %v6085_v49, %v2260_v29  ;;  %v2511_v34 = vadd.f32 %v6085_v49, %v2510_v30  ;;  %4280 = vst.msk [vmem:[%s5744_s27 + $0x534] sm:$0xf] %vm3946_vm3, %v3885_v45 }
 0x1ab   : > { %v3392_v35 = vmax.f32 %v2759_v28, 0.0  ;;  %v3492_v4 = vmax.f32 %v3009_v62, 0.0  ;;  %v5523_v62 = vld [vmem:[%s5661_s22 + $0x400] sm:$0xff] }
 0x1ac   : > { %v3193_v40 = vmax.f32 %v2261_v33, 0.0  ;;  %v3293_v41 = vmax.f32 %v2511_v34, 0.0 }
 0x1ad   : > { %v3786_v42 = vpack.c.bf16 %v3392_v35, %v3392_v35  ;;  %v3886_v9 = vpack.c.bf16 %v3492_v4, %v3492_v4 }
 0x1ae   : > { %v3587_v43 = vpack.c.bf16 %v3193_v40, %v3193_v40  ;;  %v3687_v44 = vpack.c.bf16 %v3293_v41, %v3293_v41 }
 0x1af   : > { %4181 = vst.msk [vmem:[%s5744_s27 + $0x3a8] sm:$0xf] %vm3946_vm3, %v3786_v42 }
 0x1b0   : > { %3982 = vst.msk [vmem:[%s5744_s27 + $0x8c] sm:$0xf] %vm3946_vm3, %v3587_v43  ;;  %v2760_v39 = vpop.f32.mrf.mxu2  ;;  %v3010_v0 = vpop.f32.mrf.mxu3 }
 0x1b1   : > { %4082 = vst.msk [vmem:[%s5744_s27 + $0x21c] sm:$0xf] %vm3946_vm3, %v3687_v44  ;;  %v2761_v50 = vadd.f32 %v6085_v49, %v2760_v39  ;;  %v2263_v51 = vpop.f32.mrf.mxu0  ;;  %v2513_v52 = vpop.f32.mrf.mxu1  ;;  %v3011_v5 = vadd.f32 %v6085_v49, %v3010_v0 }
 0x1b2   : > { %v2264_v54 = vadd.f32 %v6085_v49, %v2263_v51  ;;  %v2514_v55 = vadd.f32 %v6085_v49, %v2513_v52  ;;  %4281 = vst.msk [vmem:[%s5744_s27 + $0x538] sm:$0xf] %vm3946_vm3, %v3886_v9 }
 0x1b3   : > { %v3393_v56 = vmax.f32 %v2761_v50, 0.0  ;;  %v3493_v10 = vmax.f32 %v3011_v5, 0.0 }
 0x1b4   : > { %v3194_v57 = vmax.f32 %v2264_v54, 0.0  ;;  %v3294_v58 = vmax.f32 %v2514_v55, 0.0  ;;  %5222 = vmatmul.msk.bf16.gmra.mxu0 %vm1565_vm2, %v5421_v46  ;;  %5272 = vmatmul.msk.bf16.gmra.mxu1 %vm1565_vm2, %v5471_v47  ;;  %v5572_v47 = vld [vmem:[%s5661_s22 + $0x588] sm:$0xff] }
 0x1b5   : > { %v3787_v59 = vpack.c.bf16 %v3393_v56, %v3393_v56  ;;  %5322 = vmatmul.msk.bf16.gmra.mxu2 %vm1565_vm2, %v5521_v53  ;;  %5372 = vmatmul.msk.bf16.gmra.mxu3 %vm1565_vm2, %v5571_v11  ;;  %v3887_v17 = vpack.c.bf16 %v3493_v10, %v3493_v10  ;;  %v5423_v56 = vld [vmem:[%s5661_s22 + $0xe0] sm:$0xff] }
 0x1b6   : > { %v3588_v60 = vpack.c.bf16 %v3194_v57, %v3194_v57  ;;  %v3688_v61 = vpack.c.bf16 %v3294_v58, %v3294_v58  ;;  %v5473_v57 = vld [vmem:[%s5661_s22 + $0x270] sm:$0xff] }
 0x1b7   : > { %4182 = vst.msk [vmem:[%s5744_s27 + $0x3ac] sm:$0xf] %vm3946_vm3, %v3787_v59 }
 0x1b8   : > { %3983 = vst.msk [vmem:[%s5744_s27 + $0x90] sm:$0xf] %vm3946_vm3, %v3588_v60  ;;  %v2763_v63 = vpop.f32.mrf.mxu2  ;;  %v3013_v21 = vpop.f32.mrf.mxu3 }
 0x1b9   : > { %4083 = vst.msk [vmem:[%s5744_s27 + $0x220] sm:$0xf] %vm3946_vm3, %v3688_v61  ;;  %v2764_v1 = vadd.f32 %v6085_v49, %v2763_v63  ;;  %v2265_v2 = vpop.f32.mrf.mxu0  ;;  %v2515_v3 = vpop.f32.mrf.mxu1  ;;  %v3014_v34 = vadd.f32 %v6085_v49, %v3013_v21 }
 0x1ba   : > { %v2266_v6 = vadd.f32 %v6085_v49, %v2265_v2  ;;  %v2516_v7 = vadd.f32 %v6085_v49, %v2515_v3  ;;  %4282 = vst.msk [vmem:[%s5744_s27 + $0x53c] sm:$0xf] %vm3946_vm3, %v3887_v17 }
 0x1bb   : > { %v3394_v8 = vmax.f32 %v2764_v1, 0.0  ;;  %v3494_v41 = vmax.f32 %v3014_v34, 0.0  ;;  %v5524_v34 = vld [vmem:[%s5661_s22 + $0x408] sm:$0xff] }
 0x1bc   : > { %v3195_v12 = vmax.f32 %v2266_v6, 0.0  ;;  %v3295_v13 = vmax.f32 %v2516_v7, 0.0 }
 0x1bd   : > { %v3788_v14 = vpack.c.bf16 %v3394_v8, %v3394_v8  ;;  %v3888_v39 = vpack.c.bf16 %v3494_v41, %v3494_v41 }
 0x1be   : > { %v3589_v15 = vpack.c.bf16 %v3195_v12, %v3195_v12  ;;  %v3689_v16 = vpack.c.bf16 %v3295_v13, %v3295_v13 }
 0x1bf   : > { %4183 = vst.msk [vmem:[%s5744_s27 + $0x3b0] sm:$0xf] %vm3946_vm3, %v3788_v14 }
 0x1c0   : > { %3984 = vst.msk [vmem:[%s5744_s27 + $0x94] sm:$0xf] %vm3946_vm3, %v3589_v15  ;;  %v2765_v18 = vpop.f32.mrf.mxu2  ;;  %v3015_v36 = vpop.f32.mrf.mxu3 }
 0x1c1   : > { %4084 = vst.msk [vmem:[%s5744_s27 + $0x224] sm:$0xf] %vm3946_vm3, %v3689_v16  ;;  %v2766_v22 = vadd.f32 %v6085_v49, %v2765_v18  ;;  %v2268_v23 = vpop.f32.mrf.mxu0  ;;  %v2518_v24 = vpop.f32.mrf.mxu1  ;;  %v3016_v42 = vadd.f32 %v6085_v49, %v3015_v36 }
 0x1c2   : > { %v2269_v26 = vadd.f32 %v6085_v49, %v2268_v23  ;;  %v2519_v27 = vadd.f32 %v6085_v49, %v2518_v24  ;;  %4283 = vst.msk [vmem:[%s5744_s27 + $0x540] sm:$0xf] %vm3946_vm3, %v3888_v39 }
 0x1c3   : > { %v3395_v28 = vmax.f32 %v2766_v22, 0.0  ;;  %v3495_v46 = vmax.f32 %v3016_v42, 0.0 }
 0x1c4   : > { %v3196_v29 = vmax.f32 %v2269_v26, 0.0  ;;  %v3296_v30 = vmax.f32 %v2519_v27, 0.0  ;;  %5223 = vmatmul.msk.bf16.gmra.mxu0 %vm1565_vm2, %v5422_v19  ;;  %5273 = vmatmul.msk.bf16.gmra.mxu1 %vm1565_vm2, %v5472_v20  ;;  %v5573_v20 = vld [vmem:[%s5661_s22 + $0x590] sm:$0xff] }
 0x1c5   : > { %v3789_v31 = vpack.c.bf16 %v3395_v28, %v3395_v28  ;;  %5323 = vmatmul.msk.bf16.gmra.mxu2 %vm1565_vm2, %v5522_v25  ;;  %5373 = vmatmul.msk.bf16.gmra.mxu3 %vm1565_vm2, %v5572_v47  ;;  %v3889_v54 = vpack.c.bf16 %v3495_v46, %v3495_v46  ;;  %v5424_v28 = vld [vmem:[%s5661_s22 + $0xe8] sm:$0xff] }
 0x1c6   : > { %v3590_v32 = vpack.c.bf16 %v3196_v29, %v3196_v29  ;;  %v3690_v33 = vpack.c.bf16 %v3296_v30, %v3296_v30  ;;  %v5474_v29 = vld [vmem:[%s5661_s22 + $0x278] sm:$0xff] }
 0x1c7   : > { %4184 = vst.msk [vmem:[%s5744_s27 + $0x3b4] sm:$0xf] %vm3946_vm3, %v3789_v31 }
 0x1c8   : > { %3985 = vst.msk [vmem:[%s5744_s27 + $0x98] sm:$0xf] %vm3946_vm3, %v3590_v32  ;;  %v2768_v35 = vpop.f32.mrf.mxu2  ;;  %v3018_v58 = vpop.f32.mrf.mxu3 }
 0x1c9   : > { %4085 = vst.msk [vmem:[%s5744_s27 + $0x228] sm:$0xf] %vm3946_vm3, %v3690_v33  ;;  %v2769_v37 = vadd.f32 %v6085_v49, %v2768_v35  ;;  %v2270_v38 = vpop.f32.mrf.mxu0  ;;  %v2520_v40 = vpop.f32.mrf.mxu1  ;;  %v3019_v7 = vadd.f32 %v6085_v49, %v3018_v58 }
 0x1ca   : > { %v2271_v43 = vadd.f32 %v6085_v49, %v2270_v38  ;;  %v2521_v44 = vadd.f32 %v6085_v49, %v2520_v40  ;;  %4284 = vst.msk [vmem:[%s5744_s27 + $0x544] sm:$0xf] %vm3946_vm3, %v3889_v54 }
 0x1cb   : > { %v3396_v45 = vmax.f32 %v2769_v37, 0.0  ;;  %v3496_v13 = vmax.f32 %v3019_v7, 0.0  ;;  %v5525_v7 = vld [vmem:[%s5661_s22 + $0x410] sm:$0xff] }
 0x1cc   : > { %v3197_v48 = vmax.f32 %v2271_v43, 0.0  ;;  %v3297_v50 = vmax.f32 %v2521_v44, 0.0 }
 0x1cd   : > { %v3790_v51 = vpack.c.bf16 %v3396_v45, %v3396_v45  ;;  %v3890_v18 = vpack.c.bf16 %v3496_v13, %v3496_v13 }
 0x1ce   : > { %v3591_v52 = vpack.c.bf16 %v3197_v48, %v3197_v48  ;;  %v3691_v53 = vpack.c.bf16 %v3297_v50, %v3297_v50 }
 0x1cf   : > { %4185 = vst.msk [vmem:[%s5744_s27 + $0x3b8] sm:$0xf] %vm3946_vm3, %v3790_v51 }
 0x1d0   : > { %3986 = vst.msk [vmem:[%s5744_s27 + $0x9c] sm:$0xf] %vm3946_vm3, %v3591_v52  ;;  %v2770_v55 = vpop.f32.mrf.mxu2  ;;  %v3020_v9 = vpop.f32.mrf.mxu3 }
 0x1d1   : > { %4086 = vst.msk [vmem:[%s5744_s27 + $0x22c] sm:$0xf] %vm3946_vm3, %v3691_v53  ;;  %v2771_v59 = vadd.f32 %v6085_v49, %v2770_v55  ;;  %v2273_v60 = vpop.f32.mrf.mxu0  ;;  %v2523_v61 = vpop.f32.mrf.mxu1  ;;  %v3021_v14 = vadd.f32 %v6085_v49, %v3020_v9 }
 0x1d2   : > { %v2274_v63 = vadd.f32 %v6085_v49, %v2273_v60  ;;  %v2524_v0 = vadd.f32 %v6085_v49, %v2523_v61  ;;  %4285 = vst.msk [vmem:[%s5744_s27 + $0x548] sm:$0xf] %vm3946_vm3, %v3890_v18 }
 0x1d3   : > { %v3397_v1 = vmax.f32 %v2771_v59, 0.0  ;;  %v3497_v19 = vmax.f32 %v3021_v14, 0.0 }
 0x1d4   : > { %v3198_v2 = vmax.f32 %v2274_v63, 0.0  ;;  %v3298_v3 = vmax.f32 %v2524_v0, 0.0  ;;  %5224 = vmatmul.msk.bf16.gmra.mxu0 %vm1565_vm2, %v5423_v56  ;;  %5274 = vmatmul.msk.bf16.gmra.mxu1 %vm1565_vm2, %v5473_v57  ;;  %v5574_v57 = vld [vmem:[%s5661_s22 + $0x598] sm:$0xff]  ;;  %v5425_v0 = vld [vmem:[%s5661_s22 + $0xf0] sm:$0xff] }
 0x1d5   : > { %v3791_v4 = vpack.c.bf16 %v3397_v1, %v3397_v1  ;;  %5324 = vmatmul.msk.bf16.gmra.mxu2 %vm1565_vm2, %v5523_v62  ;;  %5374 = vmatmul.msk.bf16.gmra.mxu3 %vm1565_vm2, %v5573_v20  ;;  %v3891_v26 = vpack.c.bf16 %v3497_v19, %v3497_v19  ;;  %v5475_v1 = vld [vmem:[%s5661_s22 + $0x280] sm:$0xff] }
 0x1d6   : > { %v3592_v5 = vpack.c.bf16 %v3198_v2, %v3198_v2  ;;  %v3692_v6 = vpack.c.bf16 %v3298_v3, %v3298_v3  ;;  %v6442_v3 = vld [vmem:[%s7276_s2] ss:$0 sm:$0xff] }
 0x1d7   : > { %4186 = vst.msk [vmem:[%s5744_s27 + $0x3bc] sm:$0xf] %vm3946_vm3, %v3791_v4 }
 0x1d8   : > { %3987 = vst.msk [vmem:[%s5744_s27 + $0xa0] sm:$0xf] %vm3946_vm3, %v3592_v5  ;;  %v2773_v8 = vpop.f32.mrf.mxu2  ;;  %v3023_v30 = vpop.f32.mrf.mxu3 }
 0x1d9   : > { %4087 = vst.msk [vmem:[%s5744_s27 + $0x230] sm:$0xf] %vm3946_vm3, %v3692_v6  ;;  %v2774_v10 = vadd.f32 %v6085_v49, %v2773_v8  ;;  %v2275_v11 = vpop.f32.mrf.mxu0  ;;  %v2525_v12 = vpop.f32.mrf.mxu1  ;;  %v3024_v44 = vadd.f32 %v6085_v49, %v3023_v30 }
 0x1da   : > { %v2276_v15 = vadd.f32 %v6085_v49, %v2275_v11  ;;  %v2526_v16 = vadd.f32 %v6085_v49, %v2525_v12  ;;  %4286 = vst.msk [vmem:[%s5744_s27 + $0x54c] sm:$0xf] %vm3946_vm3, %v3891_v26 }
 0x1db   : > { %v3398_v17 = vmax.f32 %v2774_v10, 0.0  ;;  %v3498_v50 = vmax.f32 %v3024_v44, 0.0  ;;  %v5526_v44 = vld [vmem:[%s5661_s22 + $0x418] sm:$0xff] }
 0x1dc   : > { %v3199_v21 = vmax.f32 %v2276_v15, 0.0  ;;  %v3299_v22 = vmax.f32 %v2526_v16, 0.0 }
 0x1dd   : > { %v3792_v23 = vpack.c.bf16 %v3398_v17, %v3398_v17  ;;  %v3892_v55 = vpack.c.bf16 %v3498_v50, %v3498_v50 }
 0x1de   : > { %v3593_v24 = vpack.c.bf16 %v3199_v21, %v3199_v21  ;;  %v3693_v25 = vpack.c.bf16 %v3299_v22, %v3299_v22 }
 0x1df   : > { %4187 = vst.msk [vmem:[%s5744_s27 + $0x3c0] sm:$0xf] %vm3946_vm3, %v3792_v23 }
 0x1e0   : > { %3988 = vst.msk [vmem:[%s5744_s27 + $0xa4] sm:$0xf] %vm3946_vm3, %v3593_v24  ;;  %v2775_v27 = vpop.f32.mrf.mxu2  ;;  %v3025_v39 = vpop.f32.mrf.mxu3 }
 0x1e1   : > { %4088 = vst.msk [vmem:[%s5744_s27 + $0x234] sm:$0xf] %vm3946_vm3, %v3693_v25  ;;  %v2776_v31 = vadd.f32 %v6085_v49, %v2775_v27  ;;  %v2278_v32 = vpop.f32.mrf.mxu0  ;;  %v2528_v33 = vpop.f32.mrf.mxu1  ;;  %v3026_v51 = vadd.f32 %v6085_v49, %v3025_v39 }
 0x1e2   : > { %v2279_v35 = vadd.f32 %v6085_v49, %v2278_v32  ;;  %v2529_v36 = vadd.f32 %v6085_v49, %v2528_v33  ;;  %4287 = vst.msk [vmem:[%s5744_s27 + $0x550] sm:$0xf] %vm3946_vm3, %v3892_v55 }
 0x1e3   : > { %v3399_v37 = vmax.f32 %v2776_v31, 0.0  ;;  %v3499_v56 = vmax.f32 %v3026_v51, 0.0 }
 0x1e4   : > { %v3200_v38 = vmax.f32 %v2279_v35, 0.0  ;;  %v3300_v40 = vmax.f32 %v2529_v36, 0.0  ;;  %5225 = vmatmul.msk.bf16.gmra.mxu0 %vm1565_vm2, %v5424_v28  ;;  %5275 = vmatmul.msk.bf16.gmra.mxu1 %vm1565_vm2, %v5474_v29  ;;  %v5575_v29 = vld [vmem:[%s5661_s22 + $0x5a0] sm:$0xff] }
 0x1e5   : > { %v3793_v41 = vpack.c.bf16 %v3399_v37, %v3399_v37  ;;  %5325 = vmatmul.msk.bf16.gmra.mxu2 %vm1565_vm2, %v5524_v34  ;;  %5375 = vmatmul.msk.bf16.gmra.mxu3 %vm1565_vm2, %v5574_v57  ;;  %v3893_v63 = vpack.c.bf16 %v3499_v56, %v3499_v56  ;;  %v5426_v37 = vld [vmem:[%s5661_s22 + $0xf8] sm:$0xff] }
 0x1e6   : > { %v3594_v42 = vpack.c.bf16 %v3200_v38, %v3200_v38  ;;  %v3694_v43 = vpack.c.bf16 %v3300_v40, %v3300_v40  ;;  %v5476_v38 = vld [vmem:[%s5661_s22 + $0x288] sm:$0xff] }
 0x1e7   : > { %4188 = vst.msk [vmem:[%s5744_s27 + $0x3c4] sm:$0xf] %vm3946_vm3, %v3793_v41 }
 0x1e8   : > { %3989 = vst.msk [vmem:[%s5744_s27 + $0xa8] sm:$0xf] %vm3946_vm3, %v3594_v42  ;;  %v2778_v45 = vpop.f32.mrf.mxu2  ;;  %v3028_v2 = vpop.f32.mrf.mxu3 }
 0x1e9   : > { %4089 = vst.msk [vmem:[%s5744_s27 + $0x238] sm:$0xf] %vm3946_vm3, %v3694_v43  ;;  %v2779_v46 = vadd.f32 %v6085_v49, %v2778_v45  ;;  %v2280_v47 = vpop.f32.mrf.mxu0  ;;  %v2530_v48 = vpop.f32.mrf.mxu1  ;;  %v3029_v16 = vadd.f32 %v6442_v3, %v3028_v2 }
 0x1ea   : > { %v2281_v52 = vadd.f32 %v6085_v49, %v2280_v47  ;;  %v2531_v53 = vadd.f32 %v6085_v49, %v2530_v48  ;;  %4288 = vst.msk [vmem:[%s5744_s27 + $0x554] sm:$0xf] %vm3946_vm3, %v3893_v63 }
 0x1eb   : > { %v3400_v54 = vmax.f32 %v2779_v46, 0.0  ;;  %v3500_v22 = vmax.f32 %v3029_v16, 0.0  ;;  %v5527_v16 = vld [vmem:[%s5661_s22 + $0x420] sm:$0xff] }
 0x1ec   : > { %v3201_v58 = vmax.f32 %v2281_v52, 0.0  ;;  %v3301_v59 = vmax.f32 %v2531_v53, 0.0 }
 0x1ed   : > { %v3794_v60 = vpack.c.bf16 %v3400_v54, %v3400_v54  ;;  %v3894_v27 = vpack.c.bf16 %v3500_v22, %v3500_v22 }
 0x1ee   : > { %v3595_v61 = vpack.c.bf16 %v3201_v58, %v3201_v58  ;;  %v3695_v62 = vpack.c.bf16 %v3301_v59, %v3301_v59 }
 0x1ef   : > { %4189 = vst.msk [vmem:[%s5744_s27 + $0x3c8] sm:$0xf] %vm3946_vm3, %v3794_v60 }
 0x1f0   : > { %3990 = vst.msk [vmem:[%s5744_s27 + $0xac] sm:$0xf] %vm3946_vm3, %v3595_v61  ;;  %v2780_v49 = vpop.f32.mrf.mxu2  ;;  %v3030_v18 = vpop.f32.mrf.mxu3 }
 0x1f1   : > { %4090 = vst.msk [vmem:[%s5744_s27 + $0x23c] sm:$0xf] %vm3946_vm3, %v3695_v62  ;;  %v2781_v4 = vadd.f32 %v6442_v3, %v2780_v49  ;;  %v2283_v5 = vpop.f32.mrf.mxu0  ;;  %v2533_v6 = vpop.f32.mrf.mxu1  ;;  %v3031_v23 = vadd.f32 %v6442_v3, %v3030_v18 }
 0x1f2   : > { %v2284_v8 = vadd.f32 %v6442_v3, %v2283_v5  ;;  %v2534_v9 = vadd.f32 %v6442_v3, %v2533_v6  ;;  %4289 = vst.msk [vmem:[%s5744_s27 + $0x558] sm:$0xf] %vm3946_vm3, %v3894_v27 }
 0x1f3   : > { %v3401_v10 = vmax.f32 %v2781_v4, 0.0  ;;  %v3501_v28 = vmax.f32 %v3031_v23, 0.0 }
 0x1f4   : > { %v3202_v11 = vmax.f32 %v2284_v8, 0.0  ;;  %v3302_v12 = vmax.f32 %v2534_v9, 0.0  ;;  %5226 = vmatmul.msk.bf16.gmra.mxu0 %vm1565_vm2, %v5425_v0  ;;  %5276 = vmatmul.msk.bf16.gmra.mxu1 %vm1565_vm2, %v5475_v1  ;;  %v5576_v1 = vld [vmem:[%s5661_s22 + $0x5a8] sm:$0xff] }
 0x1f5   : > { %v3795_v13 = vpack.c.bf16 %v3401_v10, %v3401_v10  ;;  %5326 = vmatmul.msk.bf16.gmra.mxu2 %vm1565_vm2, %v5525_v7  ;;  %5376 = vmatmul.msk.bf16.gmra.mxu3 %vm1565_vm2, %v5575_v29  ;;  %v3895_v35 = vpack.c.bf16 %v3501_v28, %v3501_v28  ;;  %v5427_v10 = vld [vmem:[%s5661_s22 + $0x100] sm:$0xff] }
 0x1f6   : > { %v3596_v14 = vpack.c.bf16 %v3202_v11, %v3202_v11  ;;  %v3696_v15 = vpack.c.bf16 %v3302_v12, %v3302_v12  ;;  %v5477_v11 = vld [vmem:[%s5661_s22 + $0x290] sm:$0xff] }
 0x1f7   : > { %4190 = vst.msk [vmem:[%s5744_s27 + $0x3cc] sm:$0xf] %vm3946_vm3, %v3795_v13 }
 0x1f8   : > { %3991 = vst.msk [vmem:[%s5744_s27 + $0xb0] sm:$0xf] %vm3946_vm3, %v3596_v14  ;;  %v2783_v17 = vpop.f32.mrf.mxu2  ;;  %v3033_v40 = vpop.f32.mrf.mxu3 }
 0x1f9   : > { %4091 = vst.msk [vmem:[%s5744_s27 + $0x240] sm:$0xf] %vm3946_vm3, %v3696_v15  ;;  %v2784_v19 = vadd.f32 %v6442_v3, %v2783_v17  ;;  %v2285_v20 = vpop.f32.mrf.mxu0  ;;  %v2535_v21 = vpop.f32.mrf.mxu1  ;;  %v3034_v53 = vadd.f32 %v6442_v3, %v3033_v40 }
 0x1fa   : > { %v2286_v24 = vadd.f32 %v6442_v3, %v2285_v20  ;;  %v2536_v25 = vadd.f32 %v6442_v3, %v2535_v21  ;;  %4290 = vst.msk [vmem:[%s5744_s27 + $0x55c] sm:$0xf] %vm3946_vm3, %v3895_v35 }
 0x1fb   : > { %v3402_v26 = vmax.f32 %v2784_v19, 0.0  ;;  %v3502_v59 = vmax.f32 %v3034_v53, 0.0  ;;  %v5528_v53 = vld [vmem:[%s5661_s22 + $0x428] sm:$0xff] }
 0x1fc   : > { %v3203_v30 = vmax.f32 %v2286_v24, 0.0  ;;  %v3303_v31 = vmax.f32 %v2536_v25, 0.0 }
 0x1fd   : > { %v3796_v32 = vpack.c.bf16 %v3402_v26, %v3402_v26  ;;  %v3896_v49 = vpack.c.bf16 %v3502_v59, %v3502_v59 }
 0x1fe   : > { %v3597_v33 = vpack.c.bf16 %v3203_v30, %v3203_v30  ;;  %v3697_v34 = vpack.c.bf16 %v3303_v31, %v3303_v31 }
 0x1ff   : > { %4191 = vst.msk [vmem:[%s5744_s27 + $0x3d0] sm:$0xf] %vm3946_vm3, %v3796_v32 }
 0x200   : > { %3992 = vst.msk [vmem:[%s5744_s27 + $0xb4] sm:$0xf] %vm3946_vm3, %v3597_v33  ;;  %v2785_v36 = vpop.f32.mrf.mxu2  ;;  %v3035_v55 = vpop.f32.mrf.mxu3 }
 0x201   : > { %4092 = vst.msk [vmem:[%s5744_s27 + $0x244] sm:$0xf] %vm3946_vm3, %v3697_v34  ;;  %v2786_v41 = vadd.f32 %v6442_v3, %v2785_v36  ;;  %v2288_v42 = vpop.f32.mrf.mxu0  ;;  %v2538_v43 = vpop.f32.mrf.mxu1  ;;  %v3036_v60 = vadd.f32 %v6442_v3, %v3035_v55 }
 0x202   : > { %v2289_v45 = vadd.f32 %v6442_v3, %v2288_v42  ;;  %v2539_v39 = vadd.f32 %v6442_v3, %v2538_v43  ;;  %4291 = vst.msk [vmem:[%s5744_s27 + $0x560] sm:$0xf] %vm3946_vm3, %v3896_v49 }
 0x203   : > { %v3403_v46 = vmax.f32 %v2786_v41, 0.0  ;;  %v3503_v0 = vmax.f32 %v3036_v60, 0.0 }
 0x204   : > { %v3204_v47 = vmax.f32 %v2289_v45, 0.0  ;;  %v3304_v48 = vmax.f32 %v2539_v39, 0.0  ;;  %5227 = vmatmul.msk.bf16.gmra.mxu0 %vm1565_vm2, %v5426_v37  ;;  %5277 = vmatmul.msk.bf16.gmra.mxu1 %vm1565_vm2, %v5476_v38  ;;  %v5577_v38 = vld [vmem:[%s5661_s22 + $0x5b0] sm:$0xff] }
 0x205   : > { %v3797_v50 = vpack.c.bf16 %v3403_v46, %v3403_v46  ;;  %5327 = vmatmul.msk.bf16.gmra.mxu2 %vm1565_vm2, %v5526_v44  ;;  %5377 = vmatmul.msk.bf16.gmra.mxu3 %vm1565_vm2, %v5576_v1  ;;  %v3897_v8 = vpack.c.bf16 %v3503_v0, %v3503_v0  ;;  %v5428_v46 = vld [vmem:[%s5661_s22 + $0x108] sm:$0xff] }
 0x206   : > { %v3598_v51 = vpack.c.bf16 %v3204_v47, %v3204_v47  ;;  %v3698_v52 = vpack.c.bf16 %v3304_v48, %v3304_v48  ;;  %v5478_v47 = vld [vmem:[%s5661_s22 + $0x298] sm:$0xff] }
 0x207   : > { %4192 = vst.msk [vmem:[%s5744_s27 + $0x3d4] sm:$0xf] %vm3946_vm3, %v3797_v50 }
 0x208   : > { %3993 = vst.msk [vmem:[%s5744_s27 + $0xb8] sm:$0xf] %vm3946_vm3, %v3598_v51  ;;  %v2788_v54 = vpop.f32.mrf.mxu2  ;;  %v3038_v12 = vpop.f32.mrf.mxu3 }
 0x209   : > { %4093 = vst.msk [vmem:[%s5744_s27 + $0x248] sm:$0xf] %vm3946_vm3, %v3698_v52  ;;  %v2789_v56 = vadd.f32 %v6442_v3, %v2788_v54  ;;  %v2290_v57 = vpop.f32.mrf.mxu0  ;;  %v2540_v58 = vpop.f32.mrf.mxu1  ;;  %v3039_v25 = vadd.f32 %v6442_v3, %v3038_v12 }
 0x20a   : > { %v2291_v61 = vadd.f32 %v6442_v3, %v2290_v57  ;;  %v2541_v62 = vadd.f32 %v6442_v3, %v2540_v58  ;;  %4292 = vst.msk [vmem:[%s5744_s27 + $0x564] sm:$0xf] %vm3946_vm3, %v3897_v8 }
 0x20b   : > { %v3404_v63 = vmax.f32 %v2789_v56, 0.0  ;;  %v3504_v31 = vmax.f32 %v3039_v25, 0.0  ;;  %v5529_v25 = vld [vmem:[%s5661_s22 + $0x430] sm:$0xff] }
 0x20c   : > { %v3205_v2 = vmax.f32 %v2291_v61, 0.0  ;;  %v3305_v4 = vmax.f32 %v2541_v62, 0.0 }
 0x20d   : > { %v3798_v5 = vpack.c.bf16 %v3404_v63, %v3404_v63  ;;  %v3898_v36 = vpack.c.bf16 %v3504_v31, %v3504_v31 }
 0x20e   : > { %v3599_v6 = vpack.c.bf16 %v3205_v2, %v3205_v2  ;;  %v3699_v7 = vpack.c.bf16 %v3305_v4, %v3305_v4 }
 0x20f   : > { %4193 = vst.msk [vmem:[%s5744_s27 + $0x3d8] sm:$0xf] %vm3946_vm3, %v3798_v5 }
 0x210   : > { %3994 = vst.msk [vmem:[%s5744_s27 + $0xbc] sm:$0xf] %vm3946_vm3, %v3599_v6  ;;  %v2790_v9 = vpop.f32.mrf.mxu2  ;;  %v3040_v27 = vpop.f32.mrf.mxu3 }
 0x211   : > { %4094 = vst.msk [vmem:[%s5744_s27 + $0x24c] sm:$0xf] %vm3946_vm3, %v3699_v7  ;;  %v2791_v13 = vadd.f32 %v6442_v3, %v2790_v9  ;;  %v2293_v14 = vpop.f32.mrf.mxu0  ;;  %v2543_v15 = vpop.f32.mrf.mxu1  ;;  %v3041_v32 = vadd.f32 %v6442_v3, %v3040_v27 }
 0x212   : > { %v2294_v17 = vadd.f32 %v6442_v3, %v2293_v14  ;;  %v2544_v18 = vadd.f32 %v6442_v3, %v2543_v15  ;;  %4293 = vst.msk [vmem:[%s5744_s27 + $0x568] sm:$0xf] %vm3946_vm3, %v3898_v36 }
 0x213   : > { %v3405_v19 = vmax.f32 %v2791_v13, 0.0  ;;  %v3505_v37 = vmax.f32 %v3041_v32, 0.0 }
 0x214   : > { %v3206_v20 = vmax.f32 %v2294_v17, 0.0  ;;  %v3306_v21 = vmax.f32 %v2544_v18, 0.0  ;;  %5228 = vmatmul.msk.bf16.gmra.mxu0 %vm1565_vm2, %v5427_v10  ;;  %5278 = vmatmul.msk.bf16.gmra.mxu1 %vm1565_vm2, %v5477_v11  ;;  %v5578_v11 = vld [vmem:[%s5661_s22 + $0x5b8] sm:$0xff] }
 0x215   : > { %v3799_v22 = vpack.c.bf16 %v3405_v19, %v3405_v19  ;;  %5328 = vmatmul.msk.bf16.gmra.mxu2 %vm1565_vm2, %v5527_v16  ;;  %5378 = vmatmul.msk.bf16.gmra.mxu3 %vm1565_vm2, %v5577_v38  ;;  %v3899_v45 = vpack.c.bf16 %v3505_v37, %v3505_v37  ;;  %v5429_v19 = vld [vmem:[%s5661_s22 + $0x110] sm:$0xff] }
 0x216   : > { %v3600_v23 = vpack.c.bf16 %v3206_v20, %v3206_v20  ;;  %v3700_v24 = vpack.c.bf16 %v3306_v21, %v3306_v21  ;;  %v5479_v20 = vld [vmem:[%s5661_s22 + $0x2a0] sm:$0xff] }
 0x217   : > { %4194 = vst.msk [vmem:[%s5744_s27 + $0x3dc] sm:$0xf] %vm3946_vm3, %v3799_v22 }
 0x218   : > { %3995 = vst.msk [vmem:[%s5744_s27 + $0xc0] sm:$0xf] %vm3946_vm3, %v3600_v23  ;;  %v2793_v26 = vpop.f32.mrf.mxu2  ;;  %v3043_v48 = vpop.f32.mrf.mxu3 }
 0x219   : > { %4095 = vst.msk [vmem:[%s5744_s27 + $0x250] sm:$0xf] %vm3946_vm3, %v3700_v24  ;;  %v2794_v28 = vadd.f32 %v6442_v3, %v2793_v26  ;;  %v2295_v29 = vpop.f32.mrf.mxu0  ;;  %v2545_v30 = vpop.f32.mrf.mxu1  ;;  %v3044_v62 = vadd.f32 %v6442_v3, %v3043_v48 }
 0x21a   : > { %v2296_v33 = vadd.f32 %v6442_v3, %v2295_v29  ;;  %v2546_v34 = vadd.f32 %v6442_v3, %v2545_v30  ;;  %4294 = vst.msk [vmem:[%s5744_s27 + $0x56c] sm:$0xf] %vm3946_vm3, %v3899_v45 }
 0x21b   : > { %v3406_v35 = vmax.f32 %v2794_v28, 0.0  ;;  %v3506_v4 = vmax.f32 %v3044_v62, 0.0  ;;  %v5530_v62 = vld [vmem:[%s5661_s22 + $0x438] sm:$0xff] }
 0x21c   : > { %v3207_v40 = vmax.f32 %v2296_v33, 0.0  ;;  %v3307_v41 = vmax.f32 %v2546_v34, 0.0 }
 0x21d   : > { %v3800_v42 = vpack.c.bf16 %v3406_v35, %v3406_v35  ;;  %v3900_v9 = vpack.c.bf16 %v3506_v4, %v3506_v4 }
 0x21e   : > { %v3601_v43 = vpack.c.bf16 %v3207_v40, %v3207_v40  ;;  %v3701_v44 = vpack.c.bf16 %v3307_v41, %v3307_v41 }
 0x21f   : > { %4195 = vst.msk [vmem:[%s5744_s27 + $0x3e0] sm:$0xf] %vm3946_vm3, %v3800_v42 }
 0x220   : > { %3996 = vst.msk [vmem:[%s5744_s27 + $0xc4] sm:$0xf] %vm3946_vm3, %v3601_v43  ;;  %v2795_v39 = vpop.f32.mrf.mxu2  ;;  %v3045_v49 = vpop.f32.mrf.mxu3 }
 0x221   : > { %4096 = vst.msk [vmem:[%s5744_s27 + $0x254] sm:$0xf] %vm3946_vm3, %v3701_v44  ;;  %v2796_v50 = vadd.f32 %v6442_v3, %v2795_v39  ;;  %v2298_v51 = vpop.f32.mrf.mxu0  ;;  %v2548_v52 = vpop.f32.mrf.mxu1  ;;  %v3046_v5 = vadd.f32 %v6442_v3, %v3045_v49 }
 0x222   : > { %v2299_v54 = vadd.f32 %v6442_v3, %v2298_v51  ;;  %v2549_v55 = vadd.f32 %v6442_v3, %v2548_v52  ;;  %4295 = vst.msk [vmem:[%s5744_s27 + $0x570] sm:$0xf] %vm3946_vm3, %v3900_v9 }
 0x223   : > { %v3407_v56 = vmax.f32 %v2796_v50, 0.0  ;;  %v3507_v10 = vmax.f32 %v3046_v5, 0.0 }
 0x224   : > { %v3208_v57 = vmax.f32 %v2299_v54, 0.0  ;;  %v3308_v58 = vmax.f32 %v2549_v55, 0.0  ;;  %5229 = vmatmul.msk.bf16.gmra.mxu0 %vm1565_vm2, %v5428_v46  ;;  %5279 = vmatmul.msk.bf16.gmra.mxu1 %vm1565_vm2, %v5478_v47  ;;  %v5579_v47 = vld [vmem:[%s5661_s22 + $0x5c0] sm:$0xff] }
 0x225   : > { %v3801_v59 = vpack.c.bf16 %v3407_v56, %v3407_v56  ;;  %5329 = vmatmul.msk.bf16.gmra.mxu2 %vm1565_vm2, %v5528_v53  ;;  %5379 = vmatmul.msk.bf16.gmra.mxu3 %vm1565_vm2, %v5578_v11  ;;  %v3901_v17 = vpack.c.bf16 %v3507_v10, %v3507_v10  ;;  %v5430_v56 = vld [vmem:[%s5661_s22 + $0x118] sm:$0xff] }
 0x226   : > { %v3602_v60 = vpack.c.bf16 %v3208_v57, %v3208_v57  ;;  %v3702_v61 = vpack.c.bf16 %v3308_v58, %v3308_v58  ;;  %v5480_v57 = vld [vmem:[%s5661_s22 + $0x2a8] sm:$0xff] }
 0x227   : > { %4196 = vst.msk [vmem:[%s5744_s27 + $0x3e4] sm:$0xf] %vm3946_vm3, %v3801_v59 }
 0x228   : > { %3997 = vst.msk [vmem:[%s5744_s27 + $0xc8] sm:$0xf] %vm3946_vm3, %v3602_v60  ;;  %v2798_v63 = vpop.f32.mrf.mxu2  ;;  %v3048_v21 = vpop.f32.mrf.mxu3 }
 0x229   : > { %4097 = vst.msk [vmem:[%s5744_s27 + $0x258] sm:$0xf] %vm3946_vm3, %v3702_v61  ;;  %v2799_v0 = vadd.f32 %v6442_v3, %v2798_v63  ;;  %v2300_v1 = vpop.f32.mrf.mxu0  ;;  %v2550_v2 = vpop.f32.mrf.mxu1  ;;  %v3049_v34 = vadd.f32 %v6442_v3, %v3048_v21 }
 0x22a   : > { %v2301_v6 = vadd.f32 %v6442_v3, %v2300_v1  ;;  %v2551_v7 = vadd.f32 %v6442_v3, %v2550_v2  ;;  %4296 = vst.msk [vmem:[%s5744_s27 + $0x574] sm:$0xf] %vm3946_vm3, %v3901_v17 }
 0x22b   : > { %v3408_v8 = vmax.f32 %v2799_v0, 0.0  ;;  %v3508_v41 = vmax.f32 %v3049_v34, 0.0  ;;  %v5531_v34 = vld [vmem:[%s5661_s22 + $0x440] sm:$0xff] }
 0x22c   : > { %v3209_v12 = vmax.f32 %v2301_v6, 0.0  ;;  %v3309_v13 = vmax.f32 %v2551_v7, 0.0 }
 0x22d   : > { %v3802_v14 = vpack.c.bf16 %v3408_v8, %v3408_v8  ;;  %v3902_v39 = vpack.c.bf16 %v3508_v41, %v3508_v41 }
 0x22e   : > { %v3603_v15 = vpack.c.bf16 %v3209_v12, %v3209_v12  ;;  %v3703_v16 = vpack.c.bf16 %v3309_v13, %v3309_v13 }
 0x22f   : > { %4197 = vst.msk [vmem:[%s5744_s27 + $0x3e8] sm:$0xf] %vm3946_vm3, %v3802_v14 }
 0x230   : > { %3998 = vst.msk [vmem:[%s5744_s27 + $0xcc] sm:$0xf] %vm3946_vm3, %v3603_v15  ;;  %v2800_v18 = vpop.f32.mrf.mxu2  ;;  %v3050_v36 = vpop.f32.mrf.mxu3 }
 0x231   : > { %4098 = vst.msk [vmem:[%s5744_s27 + $0x25c] sm:$0xf] %vm3946_vm3, %v3703_v16  ;;  %v2801_v22 = vadd.f32 %v6442_v3, %v2800_v18  ;;  %v2303_v23 = vpop.f32.mrf.mxu0  ;;  %v2553_v24 = vpop.f32.mrf.mxu1  ;;  %v3051_v42 = vadd.f32 %v6442_v3, %v3050_v36 }
 0x232   : > { %v2304_v26 = vadd.f32 %v6442_v3, %v2303_v23  ;;  %v2554_v27 = vadd.f32 %v6442_v3, %v2553_v24  ;;  %4297 = vst.msk [vmem:[%s5744_s27 + $0x578] sm:$0xf] %vm3946_vm3, %v3902_v39 }
 0x233   : > { %v3409_v28 = vmax.f32 %v2801_v22, 0.0  ;;  %v3509_v46 = vmax.f32 %v3051_v42, 0.0 }
 0x234   : > { %v3210_v29 = vmax.f32 %v2304_v26, 0.0  ;;  %v3310_v30 = vmax.f32 %v2554_v27, 0.0  ;;  %5230 = vmatmul.msk.bf16.gmra.mxu0 %vm1565_vm2, %v5429_v19  ;;  %5280 = vmatmul.msk.bf16.gmra.mxu1 %vm1565_vm2, %v5479_v20  ;;  %v5580_v20 = vld [vmem:[%s5661_s22 + $0x5c8] sm:$0xff] }
 0x235   : > { %v3803_v31 = vpack.c.bf16 %v3409_v28, %v3409_v28  ;;  %5330 = vmatmul.msk.bf16.gmra.mxu2 %vm1565_vm2, %v5529_v25  ;;  %5380 = vmatmul.msk.bf16.gmra.mxu3 %vm1565_vm2, %v5579_v47  ;;  %v3903_v54 = vpack.c.bf16 %v3509_v46, %v3509_v46  ;;  %v5431_v28 = vld [vmem:[%s5661_s22 + $0x120] sm:$0xff] }
 0x236   : > { %v3604_v32 = vpack.c.bf16 %v3210_v29, %v3210_v29  ;;  %v3704_v33 = vpack.c.bf16 %v3310_v30, %v3310_v30  ;;  %v5481_v29 = vld [vmem:[%s5661_s22 + $0x2b0] sm:$0xff] }
 0x237   : > { %4198 = vst.msk [vmem:[%s5744_s27 + $0x3ec] sm:$0xf] %vm3946_vm3, %v3803_v31 }
 0x238   : > { %3999 = vst.msk [vmem:[%s5744_s27 + $0xd0] sm:$0xf] %vm3946_vm3, %v3604_v32  ;;  %v2803_v35 = vpop.f32.mrf.mxu2  ;;  %v3053_v58 = vpop.f32.mrf.mxu3 }
 0x239   : > { %4099 = vst.msk [vmem:[%s5744_s27 + $0x260] sm:$0xf] %vm3946_vm3, %v3704_v33  ;;  %v2804_v37 = vadd.f32 %v6442_v3, %v2803_v35  ;;  %v2305_v38 = vpop.f32.mrf.mxu0  ;;  %v2555_v40 = vpop.f32.mrf.mxu1  ;;  %v3054_v7 = vadd.f32 %v6442_v3, %v3053_v58 }
 0x23a   : > { %v2306_v43 = vadd.f32 %v6442_v3, %v2305_v38  ;;  %v2556_v44 = vadd.f32 %v6442_v3, %v2555_v40  ;;  %4298 = vst.msk [vmem:[%s5744_s27 + $0x57c] sm:$0xf] %vm3946_vm3, %v3903_v54 }
 0x23b   : > { %v3410_v45 = vmax.f32 %v2804_v37, 0.0  ;;  %v3510_v13 = vmax.f32 %v3054_v7, 0.0  ;;  %v5532_v7 = vld [vmem:[%s5661_s22 + $0x448] sm:$0xff] }
 0x23c   : > { %v3211_v48 = vmax.f32 %v2306_v43, 0.0  ;;  %v3311_v50 = vmax.f32 %v2556_v44, 0.0 }
 0x23d   : > { %v3804_v51 = vpack.c.bf16 %v3410_v45, %v3410_v45  ;;  %v3904_v18 = vpack.c.bf16 %v3510_v13, %v3510_v13 }
 0x23e   : > { %v3605_v52 = vpack.c.bf16 %v3211_v48, %v3211_v48  ;;  %v3705_v53 = vpack.c.bf16 %v3311_v50, %v3311_v50 }
 0x23f   : > { %4199 = vst.msk [vmem:[%s5744_s27 + $0x3f0] sm:$0xf] %vm3946_vm3, %v3804_v51 }
 0x240   : > { %4000 = vst.msk [vmem:[%s5744_s27 + $0xd4] sm:$0xf] %vm3946_vm3, %v3605_v52  ;;  %v2805_v55 = vpop.f32.mrf.mxu2  ;;  %v3055_v9 = vpop.f32.mrf.mxu3 }
 0x241   : > { %4100 = vst.msk [vmem:[%s5744_s27 + $0x264] sm:$0xf] %vm3946_vm3, %v3705_v53  ;;  %v2806_v59 = vadd.f32 %v6442_v3, %v2805_v55  ;;  %v2308_v60 = vpop.f32.mrf.mxu0  ;;  %v2558_v61 = vpop.f32.mrf.mxu1  ;;  %v3056_v14 = vadd.f32 %v6442_v3, %v3055_v9 }
 0x242   : > { %v2309_v63 = vadd.f32 %v6442_v3, %v2308_v60  ;;  %v2559_v49 = vadd.f32 %v6442_v3, %v2558_v61  ;;  %4299 = vst.msk [vmem:[%s5744_s27 + $0x580] sm:$0xf] %vm3946_vm3, %v3904_v18 }
 0x243   : > { %v3411_v0 = vmax.f32 %v2806_v59, 0.0  ;;  %v3511_v19 = vmax.f32 %v3056_v14, 0.0 }
 0x244   : > { %v3212_v1 = vmax.f32 %v2309_v63, 0.0  ;;  %v3312_v2 = vmax.f32 %v2559_v49, 0.0  ;;  %5231 = vmatmul.msk.bf16.gmra.mxu0 %vm1565_vm2, %v5430_v56  ;;  %5281 = vmatmul.msk.bf16.gmra.mxu1 %vm1565_vm2, %v5480_v57  ;;  %v5581_v57 = vld [vmem:[%s5661_s22 + $0x5d0] sm:$0xff] }
 0x245   : > { %v3805_v4 = vpack.c.bf16 %v3411_v0, %v3411_v0  ;;  %5331 = vmatmul.msk.bf16.gmra.mxu2 %vm1565_vm2, %v5530_v62  ;;  %5381 = vmatmul.msk.bf16.gmra.mxu3 %vm1565_vm2, %v5580_v20  ;;  %v3905_v26 = vpack.c.bf16 %v3511_v19, %v3511_v19  ;;  %v5432_v0 = vld [vmem:[%s5661_s22 + $0x128] sm:$0xff] }
 0x246   : > { %v3606_v5 = vpack.c.bf16 %v3212_v1, %v3212_v1  ;;  %v3706_v6 = vpack.c.bf16 %v3312_v2, %v3312_v2  ;;  %v5482_v1 = vld [vmem:[%s5661_s22 + $0x2b8] sm:$0xff] }
 0x247   : > { %4200 = vst.msk [vmem:[%s5744_s27 + $0x3f4] sm:$0xf] %vm3946_vm3, %v3805_v4 }
 0x248   : > { %4001 = vst.msk [vmem:[%s5744_s27 + $0xd8] sm:$0xf] %vm3946_vm3, %v3606_v5  ;;  %v2808_v8 = vpop.f32.mrf.mxu2  ;;  %v3058_v30 = vpop.f32.mrf.mxu3 }
 0x249   : > { %4101 = vst.msk [vmem:[%s5744_s27 + $0x268] sm:$0xf] %vm3946_vm3, %v3706_v6  ;;  %v2809_v10 = vadd.f32 %v6442_v3, %v2808_v8  ;;  %v2310_v11 = vpop.f32.mrf.mxu0  ;;  %v2560_v12 = vpop.f32.mrf.mxu1  ;;  %v3059_v44 = vadd.f32 %v6442_v3, %v3058_v30 }
 0x24a   : > { %v2311_v15 = vadd.f32 %v6442_v3, %v2310_v11  ;;  %v2561_v16 = vadd.f32 %v6442_v3, %v2560_v12  ;;  %4300 = vst.msk [vmem:[%s5744_s27 + $0x584] sm:$0xf] %vm3946_vm3, %v3905_v26 }
 0x24b   : > { %v3412_v17 = vmax.f32 %v2809_v10, 0.0  ;;  %v3512_v50 = vmax.f32 %v3059_v44, 0.0  ;;  %v5533_v44 = vld [vmem:[%s5661_s22 + $0x450] sm:$0xff] }
 0x24c   : > { %v3213_v21 = vmax.f32 %v2311_v15, 0.0  ;;  %v3313_v22 = vmax.f32 %v2561_v16, 0.0 }
 0x24d   : > { %v3806_v23 = vpack.c.bf16 %v3412_v17, %v3412_v17  ;;  %v3906_v55 = vpack.c.bf16 %v3512_v50, %v3512_v50 }
 0x24e   : > { %v3607_v24 = vpack.c.bf16 %v3213_v21, %v3213_v21  ;;  %v3707_v25 = vpack.c.bf16 %v3313_v22, %v3313_v22 }
 0x24f   : > { %4201 = vst.msk [vmem:[%s5744_s27 + $0x3f8] sm:$0xf] %vm3946_vm3, %v3806_v23 }
 0x250   : > { %4002 = vst.msk [vmem:[%s5744_s27 + $0xdc] sm:$0xf] %vm3946_vm3, %v3607_v24  ;;  %v2810_v27 = vpop.f32.mrf.mxu2  ;;  %v3060_v39 = vpop.f32.mrf.mxu3 }
 0x251   : > { %4102 = vst.msk [vmem:[%s5744_s27 + $0x26c] sm:$0xf] %vm3946_vm3, %v3707_v25  ;;  %v2811_v31 = vadd.f32 %v6442_v3, %v2810_v27  ;;  %v2313_v32 = vpop.f32.mrf.mxu0  ;;  %v2563_v33 = vpop.f32.mrf.mxu1  ;;  %v3061_v51 = vadd.f32 %v6442_v3, %v3060_v39 }
 0x252   : > { %v2314_v35 = vadd.f32 %v6442_v3, %v2313_v32  ;;  %v2564_v36 = vadd.f32 %v6442_v3, %v2563_v33  ;;  %4301 = vst.msk [vmem:[%s5744_s27 + $0x588] sm:$0xf] %vm3946_vm3, %v3906_v55 }
 0x253   : > { %v3413_v37 = vmax.f32 %v2811_v31, 0.0  ;;  %v3513_v56 = vmax.f32 %v3061_v51, 0.0 }
 0x254   : > { %v3214_v38 = vmax.f32 %v2314_v35, 0.0  ;;  %v3314_v40 = vmax.f32 %v2564_v36, 0.0  ;;  %5232 = vmatmul.msk.bf16.gmra.mxu0 %vm1565_vm2, %v5431_v28  ;;  %5282 = vmatmul.msk.bf16.gmra.mxu1 %vm1565_vm2, %v5481_v29  ;;  %v5582_v29 = vld [vmem:[%s5661_s22 + $0x5d8] sm:$0xff] }
 0x255   : > { %v3807_v41 = vpack.c.bf16 %v3413_v37, %v3413_v37  ;;  %5332 = vmatmul.msk.bf16.gmra.mxu2 %vm1565_vm2, %v5531_v34  ;;  %5382 = vmatmul.msk.bf16.gmra.mxu3 %vm1565_vm2, %v5581_v57  ;;  %v3907_v63 = vpack.c.bf16 %v3513_v56, %v3513_v56  ;;  %v5433_v37 = vld [vmem:[%s5661_s22 + $0x130] sm:$0xff] }
 0x256   : > { %v3608_v42 = vpack.c.bf16 %v3214_v38, %v3214_v38  ;;  %v3708_v43 = vpack.c.bf16 %v3314_v40, %v3314_v40  ;;  %v5483_v38 = vld [vmem:[%s5661_s22 + $0x2c0] sm:$0xff] }
 0x257   : > { %4202 = vst.msk [vmem:[%s5744_s27 + $0x3fc] sm:$0xf] %vm3946_vm3, %v3807_v41 }
 0x258   : > { %4003 = vst.msk [vmem:[%s5744_s27 + $0xe0] sm:$0xf] %vm3946_vm3, %v3608_v42  ;;  %v2813_v45 = vpop.f32.mrf.mxu2  ;;  %v3063_v2 = vpop.f32.mrf.mxu3 }
 0x259   : > { %4103 = vst.msk [vmem:[%s5744_s27 + $0x270] sm:$0xf] %vm3946_vm3, %v3708_v43  ;;  %v2814_v46 = vadd.f32 %v6442_v3, %v2813_v45  ;;  %v2315_v47 = vpop.f32.mrf.mxu0  ;;  %v2565_v48 = vpop.f32.mrf.mxu1  ;;  %v3064_v16 = vadd.f32 %v6442_v3, %v3063_v2 }
 0x25a   : > { %v2316_v52 = vadd.f32 %v6442_v3, %v2315_v47  ;;  %v2566_v53 = vadd.f32 %v6442_v3, %v2565_v48  ;;  %4302 = vst.msk [vmem:[%s5744_s27 + $0x58c] sm:$0xf] %vm3946_vm3, %v3907_v63 }
 0x25b   : > { %v3414_v54 = vmax.f32 %v2814_v46, 0.0  ;;  %v3514_v22 = vmax.f32 %v3064_v16, 0.0  ;;  %v5534_v16 = vld [vmem:[%s5661_s22 + $0x458] sm:$0xff] }
 0x25c   : > { %v3215_v58 = vmax.f32 %v2316_v52, 0.0  ;;  %v3315_v59 = vmax.f32 %v2566_v53, 0.0 }
 0x25d   : > { %v3808_v60 = vpack.c.bf16 %v3414_v54, %v3414_v54  ;;  %v3908_v27 = vpack.c.bf16 %v3514_v22, %v3514_v22 }
 0x25e   : > { %v3609_v61 = vpack.c.bf16 %v3215_v58, %v3215_v58  ;;  %v3709_v62 = vpack.c.bf16 %v3315_v59, %v3315_v59 }
 0x25f   : > { %4203 = vst.msk [vmem:[%s5744_s27 + $0x400] sm:$0xf] %vm3946_vm3, %v3808_v60 }
 0x260   : > { %4004 = vst.msk [vmem:[%s5744_s27 + $0xe4] sm:$0xf] %vm3946_vm3, %v3609_v61  ;;  %v2815_v49 = vpop.f32.mrf.mxu2  ;;  %v3065_v18 = vpop.f32.mrf.mxu3 }
 0x261   : > { %4104 = vst.msk [vmem:[%s5744_s27 + $0x274] sm:$0xf] %vm3946_vm3, %v3709_v62  ;;  %v2816_v4 = vadd.f32 %v6442_v3, %v2815_v49  ;;  %v2318_v5 = vpop.f32.mrf.mxu0  ;;  %v2568_v6 = vpop.f32.mrf.mxu1  ;;  %v3066_v23 = vadd.f32 %v6442_v3, %v3065_v18 }
 0x262   : > { %v2319_v8 = vadd.f32 %v6442_v3, %v2318_v5  ;;  %v2569_v9 = vadd.f32 %v6442_v3, %v2568_v6  ;;  %4303 = vst.msk [vmem:[%s5744_s27 + $0x590] sm:$0xf] %vm3946_vm3, %v3908_v27 }
 0x263   : > { %v3415_v10 = vmax.f32 %v2816_v4, 0.0  ;;  %v3515_v28 = vmax.f32 %v3066_v23, 0.0 }
 0x264   : > { %v3216_v11 = vmax.f32 %v2319_v8, 0.0  ;;  %v3316_v12 = vmax.f32 %v2569_v9, 0.0  ;;  %5233 = vmatmul.msk.bf16.gmra.mxu0 %vm1565_vm2, %v5432_v0  ;;  %5283 = vmatmul.msk.bf16.gmra.mxu1 %vm1565_vm2, %v5482_v1  ;;  %v5583_v1 = vld [vmem:[%s5661_s22 + $0x5e0] sm:$0xff] }
 0x265   : > { %v3809_v13 = vpack.c.bf16 %v3415_v10, %v3415_v10  ;;  %5333 = vmatmul.msk.bf16.gmra.mxu2 %vm1565_vm2, %v5532_v7  ;;  %5383 = vmatmul.msk.bf16.gmra.mxu3 %vm1565_vm2, %v5582_v29  ;;  %v3909_v35 = vpack.c.bf16 %v3515_v28, %v3515_v28  ;;  %v5434_v10 = vld [vmem:[%s5661_s22 + $0x138] sm:$0xff] }
 0x266   : > { %v3610_v14 = vpack.c.bf16 %v3216_v11, %v3216_v11  ;;  %v3710_v15 = vpack.c.bf16 %v3316_v12, %v3316_v12  ;;  %v5484_v11 = vld [vmem:[%s5661_s22 + $0x2c8] sm:$0xff] }
 0x267   : > { %4204 = vst.msk [vmem:[%s5744_s27 + $0x404] sm:$0xf] %vm3946_vm3, %v3809_v13 }
 0x268   : > { %4005 = vst.msk [vmem:[%s5744_s27 + $0xe8] sm:$0xf] %vm3946_vm3, %v3610_v14  ;;  %v2818_v17 = vpop.f32.mrf.mxu2  ;;  %v3068_v40 = vpop.f32.mrf.mxu3 }
 0x269   : > { %4105 = vst.msk [vmem:[%s5744_s27 + $0x278] sm:$0xf] %vm3946_vm3, %v3710_v15  ;;  %v2819_v19 = vadd.f32 %v6442_v3, %v2818_v17  ;;  %v2320_v20 = vpop.f32.mrf.mxu0  ;;  %v2570_v21 = vpop.f32.mrf.mxu1  ;;  %v3069_v53 = vadd.f32 %v6442_v3, %v3068_v40 }
 0x26a   : > { %v2321_v24 = vadd.f32 %v6442_v3, %v2320_v20  ;;  %v2571_v25 = vadd.f32 %v6442_v3, %v2570_v21  ;;  %4304 = vst.msk [vmem:[%s5744_s27 + $0x594] sm:$0xf] %vm3946_vm3, %v3909_v35 }
 0x26b   : > { %v3416_v26 = vmax.f32 %v2819_v19, 0.0  ;;  %v3516_v59 = vmax.f32 %v3069_v53, 0.0  ;;  %v5535_v53 = vld [vmem:[%s5661_s22 + $0x460] sm:$0xff] }
 0x26c   : > { %v3217_v30 = vmax.f32 %v2321_v24, 0.0  ;;  %v3317_v31 = vmax.f32 %v2571_v25, 0.0 }
 0x26d   : > { %v3810_v32 = vpack.c.bf16 %v3416_v26, %v3416_v26  ;;  %v3910_v49 = vpack.c.bf16 %v3516_v59, %v3516_v59 }
 0x26e   : > { %v3611_v33 = vpack.c.bf16 %v3217_v30, %v3217_v30  ;;  %v3711_v34 = vpack.c.bf16 %v3317_v31, %v3317_v31 }
 0x26f   : > { %4205 = vst.msk [vmem:[%s5744_s27 + $0x408] sm:$0xf] %vm3946_vm3, %v3810_v32 }
 0x270   : > { %4006 = vst.msk [vmem:[%s5744_s27 + $0xec] sm:$0xf] %vm3946_vm3, %v3611_v33  ;;  %v2820_v36 = vpop.f32.mrf.mxu2  ;;  %v3070_v55 = vpop.f32.mrf.mxu3 }
 0x271   : > { %4106 = vst.msk [vmem:[%s5744_s27 + $0x27c] sm:$0xf] %vm3946_vm3, %v3711_v34  ;;  %v2821_v41 = vadd.f32 %v6442_v3, %v2820_v36  ;;  %v2323_v42 = vpop.f32.mrf.mxu0  ;;  %v2573_v43 = vpop.f32.mrf.mxu1  ;;  %v3071_v60 = vadd.f32 %v6442_v3, %v3070_v55 }
 0x272   : > { %v2324_v45 = vadd.f32 %v6442_v3, %v2323_v42  ;;  %v2574_v39 = vadd.f32 %v6442_v3, %v2573_v43  ;;  %4305 = vst.msk [vmem:[%s5744_s27 + $0x598] sm:$0xf] %vm3946_vm3, %v3910_v49 }
 0x273   : > { %v3417_v46 = vmax.f32 %v2821_v41, 0.0  ;;  %v3517_v0 = vmax.f32 %v3071_v60, 0.0 }
 0x274   : > { %v3218_v47 = vmax.f32 %v2324_v45, 0.0  ;;  %v3318_v48 = vmax.f32 %v2574_v39, 0.0  ;;  %5234 = vmatmul.msk.bf16.gmra.mxu0 %vm1565_vm2, %v5433_v37  ;;  %5284 = vmatmul.msk.bf16.gmra.mxu1 %vm1565_vm2, %v5483_v38  ;;  %v5584_v38 = vld [vmem:[%s5661_s22 + $0x5e8] sm:$0xff] }
 0x275   : > { %v3811_v50 = vpack.c.bf16 %v3417_v46, %v3417_v46  ;;  %5334 = vmatmul.msk.bf16.gmra.mxu2 %vm1565_vm2, %v5533_v44  ;;  %5384 = vmatmul.msk.bf16.gmra.mxu3 %vm1565_vm2, %v5583_v1  ;;  %v3911_v8 = vpack.c.bf16 %v3517_v0, %v3517_v0  ;;  %v5435_v46 = vld [vmem:[%s5661_s22 + $0x140] sm:$0xff] }
 0x276   : > { %v3612_v51 = vpack.c.bf16 %v3218_v47, %v3218_v47  ;;  %v3712_v52 = vpack.c.bf16 %v3318_v48, %v3318_v48  ;;  %v5485_v47 = vld [vmem:[%s5661_s22 + $0x2d0] sm:$0xff] }
 0x277   : > { %4206 = vst.msk [vmem:[%s5744_s27 + $0x40c] sm:$0xf] %vm3946_vm3, %v3811_v50 }
 0x278   : > { %4007 = vst.msk [vmem:[%s5744_s27 + $0xf0] sm:$0xf] %vm3946_vm3, %v3612_v51  ;;  %v2823_v54 = vpop.f32.mrf.mxu2  ;;  %v3073_v12 = vpop.f32.mrf.mxu3 }
 0x279   : > { %4107 = vst.msk [vmem:[%s5744_s27 + $0x280] sm:$0xf] %vm3946_vm3, %v3712_v52  ;;  %v2824_v56 = vadd.f32 %v6442_v3, %v2823_v54  ;;  %v2325_v57 = vpop.f32.mrf.mxu0  ;;  %v2575_v58 = vpop.f32.mrf.mxu1  ;;  %v3074_v25 = vadd.f32 %v6442_v3, %v3073_v12 }
 0x27a   : > { %v2326_v61 = vadd.f32 %v6442_v3, %v2325_v57  ;;  %v2576_v62 = vadd.f32 %v6442_v3, %v2575_v58  ;;  %4306 = vst.msk [vmem:[%s5744_s27 + $0x59c] sm:$0xf] %vm3946_vm3, %v3911_v8 }
 0x27b   : > { %v3418_v63 = vmax.f32 %v2824_v56, 0.0  ;;  %v3518_v31 = vmax.f32 %v3074_v25, 0.0  ;;  %v5536_v25 = vld [vmem:[%s5661_s22 + $0x468] sm:$0xff] }
 0x27c   : > { %v3219_v2 = vmax.f32 %v2326_v61, 0.0  ;;  %v3319_v4 = vmax.f32 %v2576_v62, 0.0 }
 0x27d   : > { %v3812_v5 = vpack.c.bf16 %v3418_v63, %v3418_v63  ;;  %v3912_v36 = vpack.c.bf16 %v3518_v31, %v3518_v31 }
 0x27e   : > { %v3613_v6 = vpack.c.bf16 %v3219_v2, %v3219_v2  ;;  %v3713_v7 = vpack.c.bf16 %v3319_v4, %v3319_v4 }
 0x27f   : > { %4207 = vst.msk [vmem:[%s5744_s27 + $0x410] sm:$0xf] %vm3946_vm3, %v3812_v5 }
 0x280   : > { %4008 = vst.msk [vmem:[%s5744_s27 + $0xf4] sm:$0xf] %vm3946_vm3, %v3613_v6  ;;  %v2825_v9 = vpop.f32.mrf.mxu2  ;;  %v3075_v27 = vpop.f32.mrf.mxu3 }
 0x281   : > { %4108 = vst.msk [vmem:[%s5744_s27 + $0x284] sm:$0xf] %vm3946_vm3, %v3713_v7  ;;  %v2826_v13 = vadd.f32 %v6442_v3, %v2825_v9  ;;  %v2328_v14 = vpop.f32.mrf.mxu0  ;;  %v2578_v15 = vpop.f32.mrf.mxu1  ;;  %v3076_v32 = vadd.f32 %v6442_v3, %v3075_v27 }
 0x282   : > { %v2329_v17 = vadd.f32 %v6442_v3, %v2328_v14  ;;  %v2579_v18 = vadd.f32 %v6442_v3, %v2578_v15  ;;  %4307 = vst.msk [vmem:[%s5744_s27 + $0x5a0] sm:$0xf] %vm3946_vm3, %v3912_v36 }
 0x283   : > { %v3419_v19 = vmax.f32 %v2826_v13, 0.0  ;;  %v3519_v37 = vmax.f32 %v3076_v32, 0.0 }
 0x284   : > { %v3220_v20 = vmax.f32 %v2329_v17, 0.0  ;;  %v3320_v21 = vmax.f32 %v2579_v18, 0.0  ;;  %5235 = vmatmul.msk.bf16.gmra.mxu0 %vm1565_vm2, %v5434_v10  ;;  %5285 = vmatmul.msk.bf16.gmra.mxu1 %vm1565_vm2, %v5484_v11  ;;  %v5585_v11 = vld [vmem:[%s5661_s22 + $0x5f0] sm:$0xff]  ;;  %v5436_v18 = vld [vmem:[%s5661_s22 + $0x148] sm:$0xff] }
 0x285   : > { %v3813_v22 = vpack.c.bf16 %v3419_v19, %v3419_v19  ;;  %5335 = vmatmul.msk.bf16.gmra.mxu2 %vm1565_vm2, %v5534_v16  ;;  %5385 = vmatmul.msk.bf16.gmra.mxu3 %vm1565_vm2, %v5584_v38  ;;  %v3913_v45 = vpack.c.bf16 %v3519_v37, %v3519_v37  ;;  %v5486_v19 = vld [vmem:[%s5661_s22 + $0x2d8] sm:$0xff] }
 0x286   : > { %v3614_v23 = vpack.c.bf16 %v3220_v20, %v3220_v20  ;;  %v3714_v24 = vpack.c.bf16 %v3320_v21, %v3320_v21  ;;  %v6799_v21 = vld [vmem:[%s7276_s2] ss:$0 sm:$0xff] }
 0x287   : > { %4208 = vst.msk [vmem:[%s5744_s27 + $0x414] sm:$0xf] %vm3946_vm3, %v3813_v22 }
 0x288   : > { %4009 = vst.msk [vmem:[%s5744_s27 + $0xf8] sm:$0xf] %vm3946_vm3, %v3614_v23  ;;  %v2828_v26 = vpop.f32.mrf.mxu2  ;;  %v3078_v48 = vpop.f32.mrf.mxu3 }
 0x289   : > { %4109 = vst.msk [vmem:[%s5744_s27 + $0x288] sm:$0xf] %vm3946_vm3, %v3714_v24  ;;  %v2829_v28 = vadd.f32 %v6442_v3, %v2828_v26  ;;  %v2330_v29 = vpop.f32.mrf.mxu0  ;;  %v2580_v30 = vpop.f32.mrf.mxu1  ;;  %v3079_v62 = vadd.f32 %v6442_v3, %v3078_v48 }
 0x28a   : > { %v2331_v33 = vadd.f32 %v6442_v3, %v2330_v29  ;;  %v2581_v34 = vadd.f32 %v6442_v3, %v2580_v30  ;;  %4308 = vst.msk [vmem:[%s5744_s27 + $0x5a4] sm:$0xf] %vm3946_vm3, %v3913_v45 }
 0x28b   : > { %v3420_v35 = vmax.f32 %v2829_v28, 0.0  ;;  %v3520_v4 = vmax.f32 %v3079_v62, 0.0  ;;  %v5537_v62 = vld [vmem:[%s5661_s22 + $0x470] sm:$0xff] }
 0x28c   : > { %v3221_v40 = vmax.f32 %v2331_v33, 0.0  ;;  %v3321_v41 = vmax.f32 %v2581_v34, 0.0 }
 0x28d   : > { %v3814_v42 = vpack.c.bf16 %v3420_v35, %v3420_v35  ;;  %v3914_v9 = vpack.c.bf16 %v3520_v4, %v3520_v4 }
 0x28e   : > { %v3615_v43 = vpack.c.bf16 %v3221_v40, %v3221_v40  ;;  %v3715_v44 = vpack.c.bf16 %v3321_v41, %v3321_v41 }
 0x28f   : > { %4209 = vst.msk [vmem:[%s5744_s27 + $0x418] sm:$0xf] %vm3946_vm3, %v3814_v42 }
 0x290   : > { %4010 = vst.msk [vmem:[%s5744_s27 + $0xfc] sm:$0xf] %vm3946_vm3, %v3615_v43  ;;  %v2830_v39 = vpop.f32.mrf.mxu2  ;;  %v3080_v49 = vpop.f32.mrf.mxu3 }
 0x291   : > { %4110 = vst.msk [vmem:[%s5744_s27 + $0x28c] sm:$0xf] %vm3946_vm3, %v3715_v44  ;;  %v2831_v50 = vadd.f32 %v6442_v3, %v2830_v39  ;;  %v2333_v51 = vpop.f32.mrf.mxu0  ;;  %v2583_v52 = vpop.f32.mrf.mxu1  ;;  %v3081_v5 = vadd.f32 %v6442_v3, %v3080_v49 }
 0x292   : > { %v2334_v54 = vadd.f32 %v6442_v3, %v2333_v51  ;;  %v2584_v55 = vadd.f32 %v6442_v3, %v2583_v52  ;;  %4309 = vst.msk [vmem:[%s5744_s27 + $0x5a8] sm:$0xf] %vm3946_vm3, %v3914_v9 }
 0x293   : > { %v3421_v56 = vmax.f32 %v2831_v50, 0.0  ;;  %v3521_v10 = vmax.f32 %v3081_v5, 0.0 }
 0x294   : > { %v3222_v57 = vmax.f32 %v2334_v54, 0.0  ;;  %v3322_v58 = vmax.f32 %v2584_v55, 0.0  ;;  %5236 = vmatmul.msk.bf16.gmra.mxu0 %vm1565_vm2, %v5435_v46  ;;  %5286 = vmatmul.msk.bf16.gmra.mxu1 %vm1565_vm2, %v5485_v47  ;;  %v5586_v47 = vld [vmem:[%s5661_s22 + $0x5f8] sm:$0xff] }
 0x295   : > { %v3815_v59 = vpack.c.bf16 %v3421_v56, %v3421_v56  ;;  %5336 = vmatmul.msk.bf16.gmra.mxu2 %vm1565_vm2, %v5535_v53  ;;  %5386 = vmatmul.msk.bf16.gmra.mxu3 %vm1565_vm2, %v5585_v11  ;;  %v3915_v17 = vpack.c.bf16 %v3521_v10, %v3521_v10  ;;  %v5437_v56 = vld [vmem:[%s5661_s22 + $0x150] sm:$0xff] }
 0x296   : > { %v3616_v60 = vpack.c.bf16 %v3222_v57, %v3222_v57  ;;  %v3716_v61 = vpack.c.bf16 %v3322_v58, %v3322_v58  ;;  %v5487_v57 = vld [vmem:[%s5661_s22 + $0x2e0] sm:$0xff] }
 0x297   : > { %4210 = vst.msk [vmem:[%s5744_s27 + $0x41c] sm:$0xf] %vm3946_vm3, %v3815_v59 }
 0x298   : > { %4011 = vst.msk [vmem:[%s5744_s27 + $0x100] sm:$0xf] %vm3946_vm3, %v3616_v60  ;;  %v2833_v63 = vpop.f32.mrf.mxu2  ;;  %v3083_v20 = vpop.f32.mrf.mxu3 }
 0x299   : > { %4111 = vst.msk [vmem:[%s5744_s27 + $0x290] sm:$0xf] %vm3946_vm3, %v3716_v61  ;;  %v2834_v0 = vadd.f32 %v6442_v3, %v2833_v63  ;;  %v2335_v1 = vpop.f32.mrf.mxu0  ;;  %v2585_v2 = vpop.f32.mrf.mxu1  ;;  %v3084_v34 = vadd.f32 %v6799_v21, %v3083_v20 }
 0x29a   : > { %v2336_v6 = vadd.f32 %v6442_v3, %v2335_v1  ;;  %v2586_v7 = vadd.f32 %v6442_v3, %v2585_v2  ;;  %4310 = vst.msk [vmem:[%s5744_s27 + $0x5ac] sm:$0xf] %vm3946_vm3, %v3915_v17 }
 0x29b   : > { %v3422_v8 = vmax.f32 %v2834_v0, 0.0  ;;  %v3522_v41 = vmax.f32 %v3084_v34, 0.0  ;;  %v5538_v34 = vld [vmem:[%s5661_s22 + $0x478] sm:$0xff] }
 0x29c   : > { %v3223_v12 = vmax.f32 %v2336_v6, 0.0  ;;  %v3323_v13 = vmax.f32 %v2586_v7, 0.0 }
 0x29d   : > { %v3816_v14 = vpack.c.bf16 %v3422_v8, %v3422_v8  ;;  %v3916_v39 = vpack.c.bf16 %v3522_v41, %v3522_v41 }
 0x29e   : > { %v3617_v15 = vpack.c.bf16 %v3223_v12, %v3223_v12  ;;  %v3717_v16 = vpack.c.bf16 %v3323_v13, %v3323_v13 }
 0x29f   : > { %4211 = vst.msk [vmem:[%s5744_s27 + $0x420] sm:$0xf] %vm3946_vm3, %v3816_v14 }
 0x2a0   : > { %4012 = vst.msk [vmem:[%s5744_s27 + $0x104] sm:$0xf] %vm3946_vm3, %v3617_v15  ;;  %v2835_v3 = vpop.f32.mrf.mxu2  ;;  %v3085_v36 = vpop.f32.mrf.mxu3 }
 0x2a1   : > { %4112 = vst.msk [vmem:[%s5744_s27 + $0x294] sm:$0xf] %vm3946_vm3, %v3717_v16  ;;  %v2836_v22 = vadd.f32 %v6799_v21, %v2835_v3  ;;  %v2338_v23 = vpop.f32.mrf.mxu0  ;;  %v2588_v24 = vpop.f32.mrf.mxu1  ;;  %v3086_v42 = vadd.f32 %v6799_v21, %v3085_v36 }
 0x2a2   : > { %v2339_v26 = vadd.f32 %v6799_v21, %v2338_v23  ;;  %v2589_v27 = vadd.f32 %v6799_v21, %v2588_v24  ;;  %4311 = vst.msk [vmem:[%s5744_s27 + $0x5b0] sm:$0xf] %vm3946_vm3, %v3916_v39 }
 0x2a3   : > { %v3423_v28 = vmax.f32 %v2836_v22, 0.0  ;;  %v3523_v46 = vmax.f32 %v3086_v42, 0.0 }
 0x2a4   : > { %v3224_v29 = vmax.f32 %v2339_v26, 0.0  ;;  %v3324_v30 = vmax.f32 %v2589_v27, 0.0  ;;  %5237 = vmatmul.msk.bf16.gmra.mxu0 %vm1565_vm2, %v5436_v18  ;;  %5287 = vmatmul.msk.bf16.gmra.mxu1 %vm1565_vm2, %v5486_v19  ;;  %v5587_v19 = vld [vmem:[%s5661_s22 + $0x600] sm:$0xff] }
 0x2a5   : > { %v3817_v31 = vpack.c.bf16 %v3423_v28, %v3423_v28  ;;  %5337 = vmatmul.msk.bf16.gmra.mxu2 %vm1565_vm2, %v5536_v25  ;;  %5387 = vmatmul.msk.bf16.gmra.mxu3 %vm1565_vm2, %v5586_v47  ;;  %v3917_v54 = vpack.c.bf16 %v3523_v46, %v3523_v46  ;;  %v5438_v28 = vld [vmem:[%s5661_s22 + $0x158] sm:$0xff] }
 0x2a6   : > { %v3618_v32 = vpack.c.bf16 %v3224_v29, %v3224_v29  ;;  %v3718_v33 = vpack.c.bf16 %v3324_v30, %v3324_v30  ;;  %v5488_v29 = vld [vmem:[%s5661_s22 + $0x2e8] sm:$0xff] }
 0x2a7   : > { %4212 = vst.msk [vmem:[%s5744_s27 + $0x424] sm:$0xf] %vm3946_vm3, %v3817_v31 }
 0x2a8   : > { %4013 = vst.msk [vmem:[%s5744_s27 + $0x108] sm:$0xf] %vm3946_vm3, %v3618_v32  ;;  %v2838_v35 = vpop.f32.mrf.mxu2  ;;  %v3088_v58 = vpop.f32.mrf.mxu3 }
 0x2a9   : > { %4113 = vst.msk [vmem:[%s5744_s27 + $0x298] sm:$0xf] %vm3946_vm3, %v3718_v33  ;;  %v2839_v37 = vadd.f32 %v6799_v21, %v2838_v35  ;;  %v2340_v38 = vpop.f32.mrf.mxu0  ;;  %v2590_v40 = vpop.f32.mrf.mxu1  ;;  %v3089_v7 = vadd.f32 %v6799_v21, %v3088_v58 }
 0x2aa   : > { %v2341_v43 = vadd.f32 %v6799_v21, %v2340_v38  ;;  %v2591_v44 = vadd.f32 %v6799_v21, %v2590_v40  ;;  %4312 = vst.msk [vmem:[%s5744_s27 + $0x5b4] sm:$0xf] %vm3946_vm3, %v3917_v54 }
 0x2ab   : > { %v3424_v45 = vmax.f32 %v2839_v37, 0.0  ;;  %v3524_v13 = vmax.f32 %v3089_v7, 0.0  ;;  %v5539_v7 = vld [vmem:[%s5661_s22 + $0x480] sm:$0xff] }
 0x2ac   : > { %v3225_v48 = vmax.f32 %v2341_v43, 0.0  ;;  %v3325_v50 = vmax.f32 %v2591_v44, 0.0 }
 0x2ad   : > { %v3818_v51 = vpack.c.bf16 %v3424_v45, %v3424_v45  ;;  %v3918_v3 = vpack.c.bf16 %v3524_v13, %v3524_v13 }
 0x2ae   : > { %v3619_v52 = vpack.c.bf16 %v3225_v48, %v3225_v48  ;;  %v3719_v53 = vpack.c.bf16 %v3325_v50, %v3325_v50 }
 0x2af   : > { %4213 = vst.msk [vmem:[%s5744_s27 + $0x428] sm:$0xf] %vm3946_vm3, %v3818_v51 }
 0x2b0   : > { %4014 = vst.msk [vmem:[%s5744_s27 + $0x10c] sm:$0xf] %vm3946_vm3, %v3619_v52  ;;  %v2840_v55 = vpop.f32.mrf.mxu2  ;;  %v3090_v9 = vpop.f32.mrf.mxu3 }
 0x2b1   : > { %4114 = vst.msk [vmem:[%s5744_s27 + $0x29c] sm:$0xf] %vm3946_vm3, %v3719_v53  ;;  %v2841_v59 = vadd.f32 %v6799_v21, %v2840_v55  ;;  %v2343_v60 = vpop.f32.mrf.mxu0  ;;  %v2593_v61 = vpop.f32.mrf.mxu1  ;;  %v3091_v14 = vadd.f32 %v6799_v21, %v3090_v9 }
 0x2b2   : > { %v2344_v63 = vadd.f32 %v6799_v21, %v2343_v60  ;;  %v2594_v49 = vadd.f32 %v6799_v21, %v2593_v61  ;;  %4313 = vst.msk [vmem:[%s5744_s27 + $0x5b8] sm:$0xf] %vm3946_vm3, %v3918_v3 }
 0x2b3   : > { %v3425_v0 = vmax.f32 %v2841_v59, 0.0  ;;  %v3525_v18 = vmax.f32 %v3091_v14, 0.0 }
 0x2b4   : > { %v3226_v1 = vmax.f32 %v2344_v63, 0.0  ;;  %v3326_v2 = vmax.f32 %v2594_v49, 0.0  ;;  %5238 = vmatmul.msk.bf16.gmra.mxu0 %vm1565_vm2, %v5437_v56  ;;  %5288 = vmatmul.msk.bf16.gmra.mxu1 %vm1565_vm2, %v5487_v57  ;;  %v5588_v57 = vld [vmem:[%s5661_s22 + $0x608] sm:$0xff] }
 0x2b5   : > { %v3819_v4 = vpack.c.bf16 %v3425_v0, %v3425_v0  ;;  %5338 = vmatmul.msk.bf16.gmra.mxu2 %vm1565_vm2, %v5537_v62  ;;  %5388 = vmatmul.msk.bf16.gmra.mxu3 %vm1565_vm2, %v5587_v19  ;;  %v3919_v26 = vpack.c.bf16 %v3525_v18, %v3525_v18  ;;  %v5439_v0 = vld [vmem:[%s5661_s22 + $0x160] sm:$0xff] }
 0x2b6   : > { %v3620_v5 = vpack.c.bf16 %v3226_v1, %v3226_v1  ;;  %v3720_v6 = vpack.c.bf16 %v3326_v2, %v3326_v2  ;;  %v5489_v1 = vld [vmem:[%s5661_s22 + $0x2f0] sm:$0xff] }
 0x2b7   : > { %4214 = vst.msk [vmem:[%s5744_s27 + $0x42c] sm:$0xf] %vm3946_vm3, %v3819_v4 }
 0x2b8   : > { %4015 = vst.msk [vmem:[%s5744_s27 + $0x110] sm:$0xf] %vm3946_vm3, %v3620_v5  ;;  %v2843_v8 = vpop.f32.mrf.mxu2  ;;  %v3093_v30 = vpop.f32.mrf.mxu3 }
 0x2b9   : > { %4115 = vst.msk [vmem:[%s5744_s27 + $0x2a0] sm:$0xf] %vm3946_vm3, %v3720_v6  ;;  %v2844_v10 = vadd.f32 %v6799_v21, %v2843_v8  ;;  %v2345_v11 = vpop.f32.mrf.mxu0  ;;  %v2595_v12 = vpop.f32.mrf.mxu1  ;;  %v3094_v44 = vadd.f32 %v6799_v21, %v3093_v30 }
 0x2ba   : > { %v2346_v15 = vadd.f32 %v6799_v21, %v2345_v11  ;;  %v2596_v16 = vadd.f32 %v6799_v21, %v2595_v12  ;;  %4314 = vst.msk [vmem:[%s5744_s27 + $0x5bc] sm:$0xf] %vm3946_vm3, %v3919_v26 }
 0x2bb   : > { %v3426_v17 = vmax.f32 %v2844_v10, 0.0  ;;  %v3526_v50 = vmax.f32 %v3094_v44, 0.0  ;;  %v5540_v44 = vld [vmem:[%s5661_s22 + $0x488] sm:$0xff] }
 0x2bc   : > { %v3227_v20 = vmax.f32 %v2346_v15, 0.0  ;;  %v3327_v22 = vmax.f32 %v2596_v16, 0.0 }
 0x2bd   : > { %v3820_v23 = vpack.c.bf16 %v3426_v17, %v3426_v17  ;;  %v3920_v55 = vpack.c.bf16 %v3526_v50, %v3526_v50 }
 0x2be   : > { %v3621_v24 = vpack.c.bf16 %v3227_v20, %v3227_v20  ;;  %v3721_v25 = vpack.c.bf16 %v3327_v22, %v3327_v22 }
 0x2bf   : > { %4215 = vst.msk [vmem:[%s5744_s27 + $0x430] sm:$0xf] %vm3946_vm3, %v3820_v23 }
 0x2c0   : > { %4016 = vst.msk [vmem:[%s5744_s27 + $0x114] sm:$0xf] %vm3946_vm3, %v3621_v24  ;;  %v2845_v27 = vpop.f32.mrf.mxu2  ;;  %v3095_v39 = vpop.f32.mrf.mxu3 }
 0x2c1   : > { %4116 = vst.msk [vmem:[%s5744_s27 + $0x2a4] sm:$0xf] %vm3946_vm3, %v3721_v25  ;;  %v2846_v31 = vadd.f32 %v6799_v21, %v2845_v27  ;;  %v2348_v32 = vpop.f32.mrf.mxu0  ;;  %v2598_v33 = vpop.f32.mrf.mxu1  ;;  %v3096_v51 = vadd.f32 %v6799_v21, %v3095_v39 }
 0x2c2   : > { %v2349_v35 = vadd.f32 %v6799_v21, %v2348_v32  ;;  %v2599_v36 = vadd.f32 %v6799_v21, %v2598_v33  ;;  %4315 = vst.msk [vmem:[%s5744_s27 + $0x5c0] sm:$0xf] %vm3946_vm3, %v3920_v55 }
 0x2c3   : > { %v3427_v37 = vmax.f32 %v2846_v31, 0.0  ;;  %v3527_v56 = vmax.f32 %v3096_v51, 0.0 }
 0x2c4   : > { %v3228_v38 = vmax.f32 %v2349_v35, 0.0  ;;  %v3328_v40 = vmax.f32 %v2599_v36, 0.0  ;;  %5239 = vmatmul.msk.bf16.gmra.mxu0 %vm1565_vm2, %v5438_v28  ;;  %5289 = vmatmul.msk.bf16.gmra.mxu1 %vm1565_vm2, %v5488_v29  ;;  %v5589_v29 = vld [vmem:[%s5661_s22 + $0x610] sm:$0xff] }
 0x2c5   : > { %v3821_v41 = vpack.c.bf16 %v3427_v37, %v3427_v37  ;;  %5339 = vmatmul.msk.bf16.gmra.mxu2 %vm1565_vm2, %v5538_v34  ;;  %5389 = vmatmul.msk.bf16.gmra.mxu3 %vm1565_vm2, %v5588_v57  ;;  %v3921_v63 = vpack.c.bf16 %v3527_v56, %v3527_v56  ;;  %v5440_v37 = vld [vmem:[%s5661_s22 + $0x168] sm:$0xff] }
 0x2c6   : > { %v3622_v42 = vpack.c.bf16 %v3228_v38, %v3228_v38  ;;  %v3722_v43 = vpack.c.bf16 %v3328_v40, %v3328_v40  ;;  %v5490_v38 = vld [vmem:[%s5661_s22 + $0x2f8] sm:$0xff] }
 0x2c7   : > { %4216 = vst.msk [vmem:[%s5744_s27 + $0x434] sm:$0xf] %vm3946_vm3, %v3821_v41 }
 0x2c8   : > { %4017 = vst.msk [vmem:[%s5744_s27 + $0x118] sm:$0xf] %vm3946_vm3, %v3622_v42  ;;  %v2848_v45 = vpop.f32.mrf.mxu2  ;;  %v3098_v2 = vpop.f32.mrf.mxu3 }
 0x2c9   : > { %4117 = vst.msk [vmem:[%s5744_s27 + $0x2a8] sm:$0xf] %vm3946_vm3, %v3722_v43  ;;  %v2849_v46 = vadd.f32 %v6799_v21, %v2848_v45  ;;  %v2350_v47 = vpop.f32.mrf.mxu0  ;;  %v2600_v48 = vpop.f32.mrf.mxu1  ;;  %v3099_v16 = vadd.f32 %v6799_v21, %v3098_v2 }
 0x2ca   : > { %v2351_v52 = vadd.f32 %v6799_v21, %v2350_v47  ;;  %v2601_v53 = vadd.f32 %v6799_v21, %v2600_v48  ;;  %4316 = vst.msk [vmem:[%s5744_s27 + $0x5c4] sm:$0xf] %vm3946_vm3, %v3921_v63 }
 0x2cb   : > { %v3428_v54 = vmax.f32 %v2849_v46, 0.0  ;;  %v3528_v22 = vmax.f32 %v3099_v16, 0.0  ;;  %v5541_v16 = vld [vmem:[%s5661_s22 + $0x490] sm:$0xff] }
 0x2cc   : > { %v3229_v58 = vmax.f32 %v2351_v52, 0.0  ;;  %v3329_v59 = vmax.f32 %v2601_v53, 0.0 }
 0x2cd   : > { %v3822_v60 = vpack.c.bf16 %v3428_v54, %v3428_v54  ;;  %v3922_v27 = vpack.c.bf16 %v3528_v22, %v3528_v22 }
 0x2ce   : > { %v3623_v61 = vpack.c.bf16 %v3229_v58, %v3229_v58  ;;  %v3723_v62 = vpack.c.bf16 %v3329_v59, %v3329_v59 }
 0x2cf   : > { %4217 = vst.msk [vmem:[%s5744_s27 + $0x438] sm:$0xf] %vm3946_vm3, %v3822_v60 }
 0x2d0   : > { %4018 = vst.msk [vmem:[%s5744_s27 + $0x11c] sm:$0xf] %vm3946_vm3, %v3623_v61  ;;  %v2850_v49 = vpop.f32.mrf.mxu2  ;;  %v3100_v3 = vpop.f32.mrf.mxu3 }
 0x2d1   : > { %4118 = vst.msk [vmem:[%s5744_s27 + $0x2ac] sm:$0xf] %vm3946_vm3, %v3723_v62  ;;  %v2851_v4 = vadd.f32 %v6799_v21, %v2850_v49  ;;  %v2353_v5 = vpop.f32.mrf.mxu0  ;;  %v2603_v6 = vpop.f32.mrf.mxu1  ;;  %v3101_v23 = vadd.f32 %v6799_v21, %v3100_v3 }
 0x2d2   : > { %v2354_v8 = vadd.f32 %v6799_v21, %v2353_v5  ;;  %v2604_v9 = vadd.f32 %v6799_v21, %v2603_v6  ;;  %4317 = vst.msk [vmem:[%s5744_s27 + $0x5c8] sm:$0xf] %vm3946_vm3, %v3922_v27 }
 0x2d3   : > { %v3429_v10 = vmax.f32 %v2851_v4, 0.0  ;;  %v3529_v28 = vmax.f32 %v3101_v23, 0.0 }
 0x2d4   : > { %v3230_v11 = vmax.f32 %v2354_v8, 0.0  ;;  %v3330_v12 = vmax.f32 %v2604_v9, 0.0  ;;  %5240 = vmatmul.msk.bf16.gmra.mxu0 %vm1565_vm2, %v5439_v0  ;;  %5290 = vmatmul.msk.bf16.gmra.mxu1 %vm1565_vm2, %v5489_v1  ;;  %v5590_v1 = vld [vmem:[%s5661_s22 + $0x618] sm:$0xff] }
 0x2d5   : > { %v3823_v13 = vpack.c.bf16 %v3429_v10, %v3429_v10  ;;  %5340 = vmatmul.msk.bf16.gmra.mxu2 %vm1565_vm2, %v5539_v7  ;;  %5390 = vmatmul.msk.bf16.gmra.mxu3 %vm1565_vm2, %v5589_v29  ;;  %v3923_v35 = vpack.c.bf16 %v3529_v28, %v3529_v28  ;;  %v5441_v10 = vld [vmem:[%s5661_s22 + $0x170] sm:$0xff] }
 0x2d6   : > { %v3624_v14 = vpack.c.bf16 %v3230_v11, %v3230_v11  ;;  %v3724_v15 = vpack.c.bf16 %v3330_v12, %v3330_v12  ;;  %v5491_v11 = vld [vmem:[%s5661_s22 + $0x300] sm:$0xff] }
 0x2d7   : > { %4218 = vst.msk [vmem:[%s5744_s27 + $0x43c] sm:$0xf] %vm3946_vm3, %v3823_v13 }
 0x2d8   : > { %4019 = vst.msk [vmem:[%s5744_s27 + $0x120] sm:$0xf] %vm3946_vm3, %v3624_v14  ;;  %v2853_v17 = vpop.f32.mrf.mxu2  ;;  %v3103_v40 = vpop.f32.mrf.mxu3 }
 0x2d9   : > { %4119 = vst.msk [vmem:[%s5744_s27 + $0x2b0] sm:$0xf] %vm3946_vm3, %v3724_v15  ;;  %v2854_v18 = vadd.f32 %v6799_v21, %v2853_v17  ;;  %v2355_v19 = vpop.f32.mrf.mxu0  ;;  %v2605_v20 = vpop.f32.mrf.mxu1  ;;  %v3104_v53 = vadd.f32 %v6799_v21, %v3103_v40 }
 0x2da   : > { %v2356_v24 = vadd.f32 %v6799_v21, %v2355_v19  ;;  %v2606_v25 = vadd.f32 %v6799_v21, %v2605_v20  ;;  %4318 = vst.msk [vmem:[%s5744_s27 + $0x5cc] sm:$0xf] %vm3946_vm3, %v3923_v35 }
 0x2db   : > { %v3430_v26 = vmax.f32 %v2854_v18, 0.0  ;;  %v3530_v59 = vmax.f32 %v3104_v53, 0.0  ;;  %v5542_v53 = vld [vmem:[%s5661_s22 + $0x498] sm:$0xff] }
 0x2dc   : > { %v3231_v30 = vmax.f32 %v2356_v24, 0.0  ;;  %v3331_v31 = vmax.f32 %v2606_v25, 0.0 }
 0x2dd   : > { %v3824_v32 = vpack.c.bf16 %v3430_v26, %v3430_v26  ;;  %v3924_v49 = vpack.c.bf16 %v3530_v59, %v3530_v59 }
 0x2de   : > { %v3625_v33 = vpack.c.bf16 %v3231_v30, %v3231_v30  ;;  %v3725_v34 = vpack.c.bf16 %v3331_v31, %v3331_v31 }
 0x2df   : > { %4219 = vst.msk [vmem:[%s5744_s27 + $0x440] sm:$0xf] %vm3946_vm3, %v3824_v32 }
 0x2e0   : > { %4020 = vst.msk [vmem:[%s5744_s27 + $0x124] sm:$0xf] %vm3946_vm3, %v3625_v33  ;;  %v2855_v36 = vpop.f32.mrf.mxu2  ;;  %v3105_v55 = vpop.f32.mrf.mxu3 }
 0x2e1   : > { %4120 = vst.msk [vmem:[%s5744_s27 + $0x2b4] sm:$0xf] %vm3946_vm3, %v3725_v34  ;;  %v2856_v41 = vadd.f32 %v6799_v21, %v2855_v36  ;;  %v2358_v42 = vpop.f32.mrf.mxu0  ;;  %v2608_v43 = vpop.f32.mrf.mxu1  ;;  %v3106_v60 = vadd.f32 %v6799_v21, %v3105_v55 }
 0x2e2   : > { %v2359_v45 = vadd.f32 %v6799_v21, %v2358_v42  ;;  %v2609_v39 = vadd.f32 %v6799_v21, %v2608_v43  ;;  %4319 = vst.msk [vmem:[%s5744_s27 + $0x5d0] sm:$0xf] %vm3946_vm3, %v3924_v49 }
 0x2e3   : > { %v3431_v46 = vmax.f32 %v2856_v41, 0.0  ;;  %v3531_v0 = vmax.f32 %v3106_v60, 0.0 }
 0x2e4   : > { %v3232_v47 = vmax.f32 %v2359_v45, 0.0  ;;  %v3332_v48 = vmax.f32 %v2609_v39, 0.0  ;;  %5241 = vmatmul.msk.bf16.gmra.mxu0 %vm1565_vm2, %v5440_v37  ;;  %5291 = vmatmul.msk.bf16.gmra.mxu1 %vm1565_vm2, %v5490_v38  ;;  %v5591_v38 = vld [vmem:[%s5661_s22 + $0x620] sm:$0xff] }
 0x2e5   : > { %v3825_v50 = vpack.c.bf16 %v3431_v46, %v3431_v46  ;;  %5341 = vmatmul.msk.bf16.gmra.mxu2 %vm1565_vm2, %v5540_v44  ;;  %5391 = vmatmul.msk.bf16.gmra.mxu3 %vm1565_vm2, %v5590_v1  ;;  %v3925_v8 = vpack.c.bf16 %v3531_v0, %v3531_v0  ;;  %v5442_v46 = vld [vmem:[%s5661_s22 + $0x178] sm:$0xff] }
 0x2e6   : > { %v3626_v51 = vpack.c.bf16 %v3232_v47, %v3232_v47  ;;  %v3726_v52 = vpack.c.bf16 %v3332_v48, %v3332_v48  ;;  %v5492_v47 = vld [vmem:[%s5661_s22 + $0x308] sm:$0xff] }
 0x2e7   : > { %4220 = vst.msk [vmem:[%s5744_s27 + $0x444] sm:$0xf] %vm3946_vm3, %v3825_v50 }
 0x2e8   : > { %4021 = vst.msk [vmem:[%s5744_s27 + $0x128] sm:$0xf] %vm3946_vm3, %v3626_v51  ;;  %v2858_v54 = vpop.f32.mrf.mxu2  ;;  %v3108_v12 = vpop.f32.mrf.mxu3 }
 0x2e9   : > { %4121 = vst.msk [vmem:[%s5744_s27 + $0x2b8] sm:$0xf] %vm3946_vm3, %v3726_v52  ;;  %v2859_v56 = vadd.f32 %v6799_v21, %v2858_v54  ;;  %v2360_v57 = vpop.f32.mrf.mxu0  ;;  %v2610_v58 = vpop.f32.mrf.mxu1  ;;  %v3109_v25 = vadd.f32 %v6799_v21, %v3108_v12 }
 0x2ea   : > { %v2361_v61 = vadd.f32 %v6799_v21, %v2360_v57  ;;  %v2611_v62 = vadd.f32 %v6799_v21, %v2610_v58  ;;  %4320 = vst.msk [vmem:[%s5744_s27 + $0x5d4] sm:$0xf] %vm3946_vm3, %v3925_v8 }
 0x2eb   : > { %v3432_v63 = vmax.f32 %v2859_v56, 0.0  ;;  %v3532_v31 = vmax.f32 %v3109_v25, 0.0 }
 0x2ec   : > { %v3233_v2 = vmax.f32 %v2361_v61, 0.0  ;;  %v3333_v4 = vmax.f32 %v2611_v62, 0.0 }
 0x2ed   : > { %v3826_v5 = vpack.c.bf16 %v3432_v63, %v3432_v63  ;;  %v3926_v36 = vpack.c.bf16 %v3532_v31, %v3532_v31 }
 0x2ee   : > { %v3627_v6 = vpack.c.bf16 %v3233_v2, %v3233_v2  ;;  %v3727_v7 = vpack.c.bf16 %v3333_v4, %v3333_v4 }
 0x2ef   : > { %4221 = vst.msk [vmem:[%s5744_s27 + $0x448] sm:$0xf] %vm3946_vm3, %v3826_v5 }
 0x2f0   : > { %4022 = vst.msk [vmem:[%s5744_s27 + $0x12c] sm:$0xf] %vm3946_vm3, %v3627_v6  ;;  %v2860_v9 = vpop.f32.mrf.mxu2  ;;  %v3110_v27 = vpop.f32.mrf.mxu3 }
 0x2f1   : > { %4122 = vst.msk [vmem:[%s5744_s27 + $0x2bc] sm:$0xf] %vm3946_vm3, %v3727_v7  ;;  %v2861_v13 = vadd.f32 %v6799_v21, %v2860_v9  ;;  %v2363_v14 = vpop.f32.mrf.mxu0  ;;  %v2613_v15 = vpop.f32.mrf.mxu1  ;;  %v3111_v32 = vadd.f32 %v6799_v21, %v3110_v27 }
 0x2f2   : > { %v2364_v17 = vadd.f32 %v6799_v21, %v2363_v14  ;;  %v2614_v3 = vadd.f32 %v6799_v21, %v2613_v15  ;;  %4321 = vst.msk [vmem:[%s5744_s27 + $0x5d8] sm:$0xf] %vm3946_vm3, %v3926_v36 }
 0x2f3   : > { %v3433_v18 = vmax.f32 %v2861_v13, 0.0  ;;  %v3533_v37 = vmax.f32 %v3111_v32, 0.0 }
 0x2f4   : > { %v3234_v19 = vmax.f32 %v2364_v17, 0.0  ;;  %v3334_v20 = vmax.f32 %v2614_v3, 0.0  ;;  %5242 = vmatmul.msk.bf16.gmra.mxu0 %vm1565_vm2, %v5441_v10  ;;  %5292 = vmatmul.msk.bf16.gmra.mxu1 %vm1565_vm2, %v5491_v11  ;;  %v5443_v3 = vld [vmem:[%s5661_s22 + $0x180] sm:$0xff] }
 0x2f5   : > { %v3827_v22 = vpack.c.bf16 %v3433_v18, %v3433_v18  ;;  %5342 = vmatmul.msk.bf16.gmra.mxu2 %vm1565_vm2, %v5541_v16  ;;  %5392 = vmatmul.msk.bf16.gmra.mxu3 %vm1565_vm2, %v5591_v38  ;;  %v3927_v45 = vpack.c.bf16 %v3533_v37, %v3533_v37  ;;  %v5493_v18 = vld [vmem:[%s5661_s22 + $0x310] sm:$0xff] }
 0x2f6   : > { %v3628_v23 = vpack.c.bf16 %v3234_v19, %v3234_v19  ;;  %v3728_v24 = vpack.c.bf16 %v3334_v20, %v3334_v20 }
 0x2f7   : > { %4222 = vst.msk [vmem:[%s5744_s27 + $0x44c] sm:$0xf] %vm3946_vm3, %v3827_v22 }
 0x2f8   : > { %4023 = vst.msk [vmem:[%s5744_s27 + $0x130] sm:$0xf] %vm3946_vm3, %v3628_v23  ;;  %v2863_v26 = vpop.f32.mrf.mxu2  ;;  %v3113_v48 = vpop.f32.mrf.mxu3 }
 0x2f9   : > { %4123 = vst.msk [vmem:[%s5744_s27 + $0x2c0] sm:$0xf] %vm3946_vm3, %v3728_v24  ;;  %v2864_v28 = vadd.f32 %v6799_v21, %v2863_v26  ;;  %v2365_v29 = vpop.f32.mrf.mxu0  ;;  %v2615_v30 = vpop.f32.mrf.mxu1  ;;  %v3114_v62 = vadd.f32 %v6799_v21, %v3113_v48  ;;  %v5543_v24 = vld [vmem:[%s5661_s22 + $0x4a0] sm:$0xff] }
 0x2fa   : > { %v2366_v33 = vadd.f32 %v6799_v21, %v2365_v29  ;;  %v2616_v34 = vadd.f32 %v6799_v21, %v2615_v30  ;;  %4322 = vst.msk [vmem:[%s5744_s27 + $0x5dc] sm:$0xf] %vm3946_vm3, %v3927_v45 }
 0x2fb   : > { %v3434_v35 = vmax.f32 %v2864_v28, 0.0  ;;  %v3534_v4 = vmax.f32 %v3114_v62, 0.0 }
 0x2fc   : > { %v3235_v40 = vmax.f32 %v2366_v33, 0.0  ;;  %v3335_v41 = vmax.f32 %v2616_v34, 0.0 }
 0x2fd   : > { %v3828_v42 = vpack.c.bf16 %v3434_v35, %v3434_v35  ;;  %v3928_v9 = vpack.c.bf16 %v3534_v4, %v3534_v4 }
 0x2fe   : > { %v3629_v43 = vpack.c.bf16 %v3235_v40, %v3235_v40  ;;  %v3729_v44 = vpack.c.bf16 %v3335_v41, %v3335_v41 }
 0x2ff   : > { %4223 = vst.msk [vmem:[%s5744_s27 + $0x450] sm:$0xf] %vm3946_vm3, %v3828_v42 }
 0x300   : > { %4024 = vst.msk [vmem:[%s5744_s27 + $0x134] sm:$0xf] %vm3946_vm3, %v3629_v43  ;;  %v2865_v39 = vpop.f32.mrf.mxu2  ;;  %v3115_v49 = vpop.f32.mrf.mxu3 }
 0x301   : > { %4124 = vst.msk [vmem:[%s5744_s27 + $0x2c4] sm:$0xf] %vm3946_vm3, %v3729_v44  ;;  %v2866_v50 = vadd.f32 %v6799_v21, %v2865_v39  ;;  %v2368_v51 = vpop.f32.mrf.mxu0  ;;  %v2618_v52 = vpop.f32.mrf.mxu1  ;;  %v3116_v5 = vadd.f32 %v6799_v21, %v3115_v49 }
 0x302   : > { %v2369_v54 = vadd.f32 %v6799_v21, %v2368_v51  ;;  %v2619_v55 = vadd.f32 %v6799_v21, %v2618_v52  ;;  %4323 = vst.msk [vmem:[%s5744_s27 + $0x5e0] sm:$0xf] %vm3946_vm3, %v3928_v9 }
 0x303   : > { %v3435_v56 = vmax.f32 %v2866_v50, 0.0  ;;  %v3535_v10 = vmax.f32 %v3116_v5, 0.0 }
 0x304   : > { %v3236_v57 = vmax.f32 %v2369_v54, 0.0  ;;  %v3336_v58 = vmax.f32 %v2619_v55, 0.0  ;;  %5243 = vmatmul.msk.bf16.gmra.mxu0 %vm1565_vm2, %v5442_v46  ;;  %5293 = vmatmul.msk.bf16.gmra.mxu1 %vm1565_vm2, %v5492_v47  ;;  %v5444_v54 = vld [vmem:[%s5661_s22 + $0x188] sm:$0xff]  ;;  %v5494_v55 = vld [vmem:[%s5661_s22 + $0x318] sm:$0xff] }
 0x305   : > { %v3829_v59 = vpack.c.bf16 %v3435_v56, %v3435_v56  ;;  %5343 = vmatmul.msk.bf16.gmra.mxu2 %vm1565_vm2, %v5542_v53  ;;  %v3929_v16 = vpack.c.bf16 %v3535_v10, %v3535_v10 }
 0x306   : > { %v3630_v60 = vpack.c.bf16 %v3236_v57, %v3236_v57  ;;  %v3730_v61 = vpack.c.bf16 %v3336_v58, %v3336_v58 }
 0x307   : > { %4224 = vst.msk [vmem:[%s5744_s27 + $0x454] sm:$0xf] %vm3946_vm3, %v3829_v59 }
 0x308   : > { %4025 = vst.msk [vmem:[%s5744_s27 + $0x138] sm:$0xf] %vm3946_vm3, %v3630_v60  ;;  %v2868_v63 = vpop.f32.mrf.mxu2  ;;  %v3118_v19 = vpop.f32.mrf.mxu3  ;;  %v5544_v60 = vld [vmem:[%s5661_s22 + $0x4a8] sm:$0xff] }
 0x309   : > { %4125 = vst.msk [vmem:[%s5744_s27 + $0x2c8] sm:$0xf] %vm3946_vm3, %v3730_v61  ;;  %v2869_v0 = vadd.f32 %v6799_v21, %v2868_v63  ;;  %v2370_v1 = vpop.f32.mrf.mxu0  ;;  %v2620_v2 = vpop.f32.mrf.mxu1  ;;  %v3119_v33 = vadd.f32 %v6799_v21, %v3118_v19 }
 0x30a   : > { %v2371_v6 = vadd.f32 %v6799_v21, %v2370_v1  ;;  %v2621_v7 = vadd.f32 %v6799_v21, %v2620_v2  ;;  %4324 = vst.msk [vmem:[%s5744_s27 + $0x5e4] sm:$0xf] %vm3946_vm3, %v3929_v16 }
 0x30b   : > { %v3436_v8 = vmax.f32 %v2869_v0, 0.0  ;;  %v3536_v40 = vmax.f32 %v3119_v33, 0.0 }
 0x30c   : > { %v3237_v11 = vmax.f32 %v2371_v6, 0.0  ;;  %v3337_v12 = vmax.f32 %v2621_v7, 0.0 }
 0x30d   : > { %v3830_v13 = vpack.c.bf16 %v3436_v8, %v3436_v8  ;;  %v3930_v45 = vpack.c.bf16 %v3536_v40, %v3536_v40 }
 0x30e   : > { %v3631_v14 = vpack.c.bf16 %v3237_v11, %v3237_v11  ;;  %v3731_v15 = vpack.c.bf16 %v3337_v12, %v3337_v12 }
 0x30f   : > { %4225 = vst.msk [vmem:[%s5744_s27 + $0x458] sm:$0xf] %vm3946_vm3, %v3830_v13 }
 0x310   : > { %4026 = vst.msk [vmem:[%s5744_s27 + $0x13c] sm:$0xf] %vm3946_vm3, %v3631_v14  ;;  %v2870_v17 = vpop.f32.mrf.mxu2  ;;  %v3120_v35 = vpop.f32.mrf.mxu3 }
 0x311   : > { %4126 = vst.msk [vmem:[%s5744_s27 + $0x2cc] sm:$0xf] %vm3946_vm3, %v3731_v15  ;;  %v2871_v20 = vadd.f32 %v6799_v21, %v2870_v17  ;;  %v2373_v22 = vpop.f32.mrf.mxu0  ;;  %v2623_v23 = vpop.f32.mrf.mxu1  ;;  %v3121_v41 = vadd.f32 %v6799_v21, %v3120_v35 }
 0x312   : > { %v2374_v25 = vadd.f32 %v6799_v21, %v2373_v22  ;;  %v2624_v26 = vadd.f32 %v6799_v21, %v2623_v23  ;;  %4325 = vst.msk [vmem:[%s5744_s27 + $0x5e8] sm:$0xf] %vm3946_vm3, %v3930_v45 }
 0x313   : > { %v3437_v27 = vmax.f32 %v2871_v20, 0.0  ;;  %v3537_v39 = vmax.f32 %v3121_v41, 0.0 }
 0x314   : > { %v3238_v28 = vmax.f32 %v2374_v25, 0.0  ;;  %v3338_v29 = vmax.f32 %v2624_v26, 0.0  ;;  %5244 = vmatmul.msk.bf16.gmra.mxu0 %vm1565_vm2, %v5443_v3  ;;  %5294 = vmatmul.msk.bf16.gmra.mxu1 %vm1565_vm2, %v5493_v18 }
 0x315   : > { %v3831_v30 = vpack.c.bf16 %v3437_v27, %v3437_v27  ;;  %5344 = vmatmul.msk.bf16.gmra.mxu2 %vm1565_vm2, %v5543_v24  ;;  %v3931_v52 = vpack.c.bf16 %v3537_v39, %v3537_v39 }
 0x316   : > { %v3632_v31 = vpack.c.bf16 %v3238_v28, %v3238_v28  ;;  %v3732_v32 = vpack.c.bf16 %v3338_v29, %v3338_v29 }
 0x317   : > { %4226 = vst.msk [vmem:[%s5744_s27 + $0x45c] sm:$0xf] %vm3946_vm3, %v3831_v30 }
 0x318   : > { %4027 = vst.msk [vmem:[%s5744_s27 + $0x140] sm:$0xf] %vm3946_vm3, %v3632_v31  ;;  %v2873_v34 = vpop.f32.mrf.mxu2  ;;  %v3123_v56 = vpop.f32.mrf.mxu3 }
 0x319   : > { %4127 = vst.msk [vmem:[%s5744_s27 + $0x2d0] sm:$0xf] %vm3946_vm3, %v3732_v32  ;;  %v2874_v36 = vadd.f32 %v6799_v21, %v2873_v34  ;;  %v2375_v37 = vpop.f32.mrf.mxu0  ;;  %v2625_v38 = vpop.f32.mrf.mxu1  ;;  %v3124_v5 = vadd.f32 %v6799_v21, %v3123_v56 }
 0x31a   : > { %v2376_v42 = vadd.f32 %v6799_v21, %v2375_v37  ;;  %v2626_v43 = vadd.f32 %v6799_v21, %v2625_v38  ;;  %4326 = vst.msk [vmem:[%s5744_s27 + $0x5ec] sm:$0xf] %vm3946_vm3, %v3931_v52 }
 0x31b   : > { %v3438_v44 = vmax.f32 %v2874_v36, 0.0  ;;  %v3538_v11 = vmax.f32 %v3124_v5, 0.0 }
 0x31c   : > { %v3239_v46 = vmax.f32 %v2376_v42, 0.0  ;;  %v3339_v47 = vmax.f32 %v2626_v43, 0.0 }
 0x31d   : > { %v3832_v48 = vpack.c.bf16 %v3438_v44, %v3438_v44  ;;  %v3932_v16 = vpack.c.bf16 %v3538_v11, %v3538_v11 }
 0x31e   : > { %v3633_v50 = vpack.c.bf16 %v3239_v46, %v3239_v46  ;;  %v3733_v51 = vpack.c.bf16 %v3339_v47, %v3339_v47 }
 0x31f   : > { %4227 = vst.msk [vmem:[%s5744_s27 + $0x460] sm:$0xf] %vm3946_vm3, %v3832_v48 }
 0x320   : > { %4028 = vst.msk [vmem:[%s5744_s27 + $0x144] sm:$0xf] %vm3946_vm3, %v3633_v50  ;;  %v2875_v53 = vpop.f32.mrf.mxu2  ;;  %v3125_v7 = vpop.f32.mrf.mxu3 }
 0x321   : > { %4128 = vst.msk [vmem:[%s5744_s27 + $0x2d4] sm:$0xf] %vm3946_vm3, %v3733_v51  ;;  %v2876_v57 = vadd.f32 %v6799_v21, %v2875_v53  ;;  %v2378_v58 = vpop.f32.mrf.mxu0  ;;  %v2628_v59 = vpop.f32.mrf.mxu1  ;;  %v3126_v12 = vadd.f32 %v6799_v21, %v3125_v7 }
 0x322   : > { %v2379_v61 = vadd.f32 %v6799_v21, %v2378_v58  ;;  %v2629_v62 = vadd.f32 %v6799_v21, %v2628_v59  ;;  %4327 = vst.msk [vmem:[%s5744_s27 + $0x5f0] sm:$0xf] %vm3946_vm3, %v3932_v16 }
 0x323   : > { %v3439_v63 = vmax.f32 %v2876_v57, 0.0  ;;  %v3539_v17 = vmax.f32 %v3126_v12, 0.0 }
 0x324   : > { %v3240_v49 = vmax.f32 %v2379_v61, 0.0  ;;  %v3340_v0 = vmax.f32 %v2629_v62, 0.0  ;;  %5245 = vmatmul.msk.bf16.gmra.mxu0 %vm1565_vm2, %v5444_v54  ;;  %5295 = vmatmul.msk.bf16.gmra.mxu1 %vm1565_vm2, %v5494_v55 }
 0x325   : > { %v3833_v1 = vpack.c.bf16 %v3439_v63, %v3439_v63  ;;  %5345 = vmatmul.msk.bf16.gmra.mxu2 %vm1565_vm2, %v5544_v60  ;;  %v3933_v23 = vpack.c.bf16 %v3539_v17, %v3539_v17 }
 0x326   : > { %v3634_v2 = vpack.c.bf16 %v3240_v49, %v3240_v49  ;;  %v3734_v4 = vpack.c.bf16 %v3340_v0, %v3340_v0 }
 0x327   : > { %4228 = vst.msk [vmem:[%s5744_s27 + $0x464] sm:$0xf] %vm3946_vm3, %v3833_v1 }
 0x328   : > { %4029 = vst.msk [vmem:[%s5744_s27 + $0x148] sm:$0xf] %vm3946_vm3, %v3634_v2  ;;  %v2878_v6 = vpop.f32.mrf.mxu2  ;;  %v3128_v25 = vpop.f32.mrf.mxu3 }
 0x329   : > { %4129 = vst.msk [vmem:[%s5744_s27 + $0x2d8] sm:$0xf] %vm3946_vm3, %v3734_v4  ;;  %v2879_v8 = vadd.f32 %v6799_v21, %v2878_v6  ;;  %v2380_v9 = vpop.f32.mrf.mxu0  ;;  %v2630_v10 = vpop.f32.mrf.mxu1  ;;  %v3129_v37 = vadd.f32 %v6799_v21, %v3128_v25 }
 0x32a   : > { %v2381_v13 = vadd.f32 %v6799_v21, %v2380_v9  ;;  %v2631_v14 = vadd.f32 %v6799_v21, %v2630_v10  ;;  %4328 = vst.msk [vmem:[%s5744_s27 + $0x5f4] sm:$0xf] %vm3946_vm3, %v3933_v23 }
 0x32b   : > { %v3440_v15 = vmax.f32 %v2879_v8, 0.0  ;;  %v3540_v44 = vmax.f32 %v3129_v37, 0.0 }
 0x32c   : > { %v3241_v3 = vmax.f32 %v2381_v13, 0.0  ;;  %v3341_v18 = vmax.f32 %v2631_v14, 0.0 }
 0x32d   : > { %v3834_v19 = vpack.c.bf16 %v3440_v15, %v3440_v15  ;;  %v3934_v48 = vpack.c.bf16 %v3540_v44, %v3540_v44 }
 0x32e   : > { %v3635_v20 = vpack.c.bf16 %v3241_v3, %v3241_v3  ;;  %v3735_v22 = vpack.c.bf16 %v3341_v18, %v3341_v18 }
 0x32f   : > { %4229 = vst.msk [vmem:[%s5744_s27 + $0x468] sm:$0xf] %vm3946_vm3, %v3834_v19 }
 0x330   : > { %4030 = vst.msk [vmem:[%s5744_s27 + $0x14c] sm:$0xf] %vm3946_vm3, %v3635_v20  ;;  %v2880_v24 = vpop.f32.mrf.mxu2  ;;  %v3130_v40 = vpop.f32.mrf.mxu3 }
 0x331   : > { %4130 = vst.msk [vmem:[%s5744_s27 + $0x2dc] sm:$0xf] %vm3946_vm3, %v3735_v22  ;;  %v2881_v26 = vadd.f32 %v6799_v21, %v2880_v24  ;;  %v2383_v27 = vpop.f32.mrf.mxu0  ;;  %v2633_v28 = vpop.f32.mrf.mxu1  ;;  %v3131_v45 = vadd.f32 %v6799_v21, %v3130_v40 }
 0x332   : > { %v2384_v29 = vadd.f32 %v6799_v21, %v2383_v27  ;;  %v2634_v30 = vadd.f32 %v6799_v21, %v2633_v28  ;;  %4329 = vst.msk [vmem:[%s5744_s27 + $0x5f8] sm:$0xf] %vm3946_vm3, %v3934_v48 }
 0x333   : > { %v3441_v31 = vmax.f32 %v2881_v26, 0.0  ;;  %v3541_v50 = vmax.f32 %v3131_v45, 0.0 }
 0x334   : > { %v3242_v32 = vmax.f32 %v2384_v29, 0.0  ;;  %v3342_v33 = vmax.f32 %v2634_v30, 0.0 }
 0x335   : > { %v3835_v34 = vpack.c.bf16 %v3441_v31, %v3441_v31  ;;  %v3935_v56 = vpack.c.bf16 %v3541_v50, %v3541_v50 }
 0x336   : > { %v3636_v35 = vpack.c.bf16 %v3242_v32, %v3242_v32  ;;  %v3736_v36 = vpack.c.bf16 %v3342_v33, %v3342_v33 }
 0x337   : > { %4230 = vst.msk [vmem:[%s5744_s27 + $0x46c] sm:$0xf] %vm3946_vm3, %v3835_v34 }
 0x338   : > { %4031 = vst.msk [vmem:[%s5744_s27 + $0x150] sm:$0xf] %vm3946_vm3, %v3636_v35  ;;  %v2883_v38 = vpop.f32.mrf.mxu2  ;;  %v3133_v58 = vpop.f32.mrf.mxu3 }
 0x339   : > { %4131 = vst.msk [vmem:[%s5744_s27 + $0x2e0] sm:$0xf] %vm3946_vm3, %v3736_v36  ;;  %v2884_v41 = vadd.f32 %v6799_v21, %v2883_v38  ;;  %v2385_v42 = vpop.f32.mrf.mxu0  ;;  %v2635_v43 = vpop.f32.mrf.mxu1  ;;  %v3134_v6 = vadd.f32 %v6799_v21, %v3133_v58  ;;  %v7139_v38 = vld [vmem:[%s7276_s2] ss:$0 sm:$0xff] }
 0x33a   : > { %v2386_v39 = vadd.f32 %v6799_v21, %v2385_v42  ;;  %v2636_v46 = vadd.f32 %v6799_v21, %v2635_v43  ;;  %4330 = vst.msk [vmem:[%s5744_s27 + $0x5fc] sm:$0xf] %vm3946_vm3, %v3935_v56 }
 0x33b   : > { %v3442_v47 = vmax.f32 %v2884_v41, 0.0  ;;  %v3542_v12 = vmax.f32 %v3134_v6, 0.0 }
 0x33c   : > { %v3243_v51 = vmax.f32 %v2386_v39, 0.0  ;;  %v3343_v52 = vmax.f32 %v2636_v46, 0.0 }
 0x33d   : > { %v3836_v53 = vpack.c.bf16 %v3442_v47, %v3442_v47  ;;  %v3936_v17 = vpack.c.bf16 %v3542_v12, %v3542_v12 }
 0x33e   : > { %v3637_v54 = vpack.c.bf16 %v3243_v51, %v3243_v51  ;;  %v3737_v55 = vpack.c.bf16 %v3343_v52, %v3343_v52 }
 0x33f   : > { %4231 = vst.msk [vmem:[%s5744_s27 + $0x470] sm:$0xf] %vm3946_vm3, %v3836_v53 }
 0x340   : > { %4032 = vst.msk [vmem:[%s5744_s27 + $0x154] sm:$0xf] %vm3946_vm3, %v3637_v54  ;;  %v2885_v57 = vpop.f32.mrf.mxu2  ;;  %v3135_v8 = vpop.f32.mrf.mxu3 }
 0x341   : > { %4132 = vst.msk [vmem:[%s5744_s27 + $0x2e4] sm:$0xf] %vm3946_vm3, %v3737_v55  ;;  %v2886_v59 = vadd.f32 %v6799_v21, %v2885_v57  ;;  %v2388_v60 = vpop.f32.mrf.mxu0  ;;  %v2638_v61 = vpop.f32.mrf.mxu1  ;;  %v3136_v13 = vadd.f32 %v6799_v21, %v3135_v8 }
 0x342   : > { %v2389_v62 = vadd.f32 %v6799_v21, %v2388_v60  ;;  %v2639_v63 = vadd.f32 %v6799_v21, %v2638_v61  ;;  %4331 = vst.msk [vmem:[%s5744_s27 + $0x600] sm:$0xf] %vm3946_vm3, %v3936_v17 }
 0x343   : > { %v3443_v49 = vmax.f32 %v2886_v59, 0.0  ;;  %v3543_v3 = vmax.f32 %v3136_v13, 0.0 }
 0x344   : > { %v3244_v0 = vmax.f32 %v2389_v62, 0.0  ;;  %v3344_v1 = vmax.f32 %v2639_v63, 0.0 }
 0x345   : > { %v3837_v2 = vpack.c.bf16 %v3443_v49, %v3443_v49  ;;  %v3937_v24 = vpack.c.bf16 %v3543_v3, %v3543_v3 }
 0x346   : > { %v3638_v4 = vpack.c.bf16 %v3244_v0, %v3244_v0  ;;  %v3738_v5 = vpack.c.bf16 %v3344_v1, %v3344_v1 }
 0x347   : > { %4232 = vst.msk [vmem:[%s5744_s27 + $0x474] sm:$0xf] %vm3946_vm3, %v3837_v2 }
 0x348   : > { %4033 = vst.msk [vmem:[%s5744_s27 + $0x158] sm:$0xf] %vm3946_vm3, %v3638_v4  ;;  %v2888_v7 = vpop.f32.mrf.mxu2  ;;  %v3138_v26 = vpop.f32.mrf.mxu3 }
 0x349   : > { %4133 = vst.msk [vmem:[%s5744_s27 + $0x2e8] sm:$0xf] %vm3946_vm3, %v3738_v5  ;;  %v2889_v9 = vadd.f32 %v6799_v21, %v2888_v7  ;;  %v2390_v10 = vpop.f32.mrf.mxu0  ;;  %v2640_v11 = vpop.f32.mrf.mxu1  ;;  %v3139_v40 = vadd.f32 %v7139_v38, %v3138_v26 }
 0x34a   : > { %v2391_v14 = vadd.f32 %v6799_v21, %v2390_v10  ;;  %v2641_v15 = vadd.f32 %v6799_v21, %v2640_v11  ;;  %4332 = vst.msk [vmem:[%s5744_s27 + $0x604] sm:$0xf] %vm3946_vm3, %v3937_v24 }
 0x34b   : > { %v3444_v16 = vmax.f32 %v2889_v9, 0.0  ;;  %v3544_v45 = vmax.f32 %v3139_v40, 0.0 }
 0x34c   : > { %v3245_v18 = vmax.f32 %v2391_v14, 0.0  ;;  %v3345_v19 = vmax.f32 %v2641_v15, 0.0 }
 0x34d   : > { %v3838_v20 = vpack.c.bf16 %v3444_v16, %v3444_v16  ;;  %v3938_v50 = vpack.c.bf16 %v3544_v45, %v3544_v45 }
 0x34e   : > { %v3639_v22 = vpack.c.bf16 %v3245_v18, %v3245_v18  ;;  %v3739_v23 = vpack.c.bf16 %v3345_v19, %v3345_v19 }
 0x34f   : > { %4233 = vst.msk [vmem:[%s5744_s27 + $0x478] sm:$0xf] %vm3946_vm3, %v3838_v20 }
 0x350   : > { %4034 = vst.msk [vmem:[%s5744_s27 + $0x15c] sm:$0xf] %vm3946_vm3, %v3639_v22  ;;  %v2890_v25 = vpop.f32.mrf.mxu2  ;;  %v3140_v41 = vpop.f32.mrf.mxu3 }
 0x351   : > { %4134 = vst.msk [vmem:[%s5744_s27 + $0x2ec] sm:$0xf] %vm3946_vm3, %v3739_v23  ;;  %v2891_v27 = vadd.f32 %v6799_v21, %v2890_v25  ;;  %v2393_v28 = vpop.f32.mrf.mxu0  ;;  %v2643_v29 = vpop.f32.mrf.mxu1  ;;  %v3141_v39 = vadd.f32 %v7139_v38, %v3140_v41 }
 0x352   : > { %v2394_v30 = vadd.f32 %v6799_v21, %v2393_v28  ;;  %v2644_v31 = vadd.f32 %v6799_v21, %v2643_v29  ;;  %4333 = vst.msk [vmem:[%s5744_s27 + $0x608] sm:$0xf] %vm3946_vm3, %v3938_v50 }
 0x353   : > { %v3445_v32 = vmax.f32 %v2891_v27, 0.0  ;;  %v3545_v51 = vmax.f32 %v3141_v39, 0.0 }
 0x354   : > { %v3246_v33 = vmax.f32 %v2394_v30, 0.0  ;;  %v3346_v34 = vmax.f32 %v2644_v31, 0.0 }
 0x355   : > { %v3839_v35 = vpack.c.bf16 %v3445_v32, %v3445_v32  ;;  %v3939_v57 = vpack.c.bf16 %v3545_v51, %v3545_v51 }
 0x356   : > { %v3640_v36 = vpack.c.bf16 %v3246_v33, %v3246_v33  ;;  %v3740_v37 = vpack.c.bf16 %v3346_v34, %v3346_v34 }
 0x357   : > { %4234 = vst.msk [vmem:[%s5744_s27 + $0x47c] sm:$0xf] %vm3946_vm3, %v3839_v35 }
 0x358   : > { %4035 = vst.msk [vmem:[%s5744_s27 + $0x160] sm:$0xf] %vm3946_vm3, %v3640_v36  ;;  %v2893_v21 = vpop.f32.mrf.mxu2  ;;  %v3143_v59 = vpop.f32.mrf.mxu3 }
 0x359   : > { %4135 = vst.msk [vmem:[%s5744_s27 + $0x2f0] sm:$0xf] %vm3946_vm3, %v3740_v37  ;;  %v2894_v42 = vadd.f32 %v7139_v38, %v2893_v21  ;;  %v2395_v43 = vpop.f32.mrf.mxu0  ;;  %v2645_v44 = vpop.f32.mrf.mxu1  ;;  %v3144_v7 = vadd.f32 %v7139_v38, %v3143_v59 }
 0x35a   : > { %v2396_v46 = vadd.f32 %v7139_v38, %v2395_v43  ;;  %v2646_v47 = vadd.f32 %v7139_v38, %v2645_v44  ;;  %4334 = vst.msk [vmem:[%s5744_s27 + $0x60c] sm:$0xf] %vm3946_vm3, %v3939_v57 }
 0x35b   : > { %v3446_v48 = vmax.f32 %v2894_v42, 0.0  ;;  %v3546_v13 = vmax.f32 %v3144_v7, 0.0 }
 0x35c   : > { %v3247_v52 = vmax.f32 %v2396_v46, 0.0  ;;  %v3347_v53 = vmax.f32 %v2646_v47, 0.0 }
 0x35d   : > { %v3840_v54 = vpack.c.bf16 %v3446_v48, %v3446_v48  ;;  %v3940_v3 = vpack.c.bf16 %v3546_v13, %v3546_v13 }
 0x35e   : > { %v3641_v55 = vpack.c.bf16 %v3247_v52, %v3247_v52  ;;  %v3741_v56 = vpack.c.bf16 %v3347_v53, %v3347_v53 }
 0x35f   : > { %4235 = vst.msk [vmem:[%s5744_s27 + $0x480] sm:$0xf] %vm3946_vm3, %v3840_v54 }
 0x360   : > { %4036 = vst.msk [vmem:[%s5744_s27 + $0x164] sm:$0xf] %vm3946_vm3, %v3641_v55  ;;  %v2895_v58 = vpop.f32.mrf.mxu2  ;;  %v3145_v9 = vpop.f32.mrf.mxu3 }
 0x361   : > { %4136 = vst.msk [vmem:[%s5744_s27 + $0x2f4] sm:$0xf] %vm3946_vm3, %v3741_v56  ;;  %v2896_v60 = vadd.f32 %v7139_v38, %v2895_v58  ;;  %v2398_v61 = vpop.f32.mrf.mxu0  ;;  %v2648_v62 = vpop.f32.mrf.mxu1  ;;  %v3146_v14 = vadd.f32 %v7139_v38, %v3145_v9 }
 0x362   : > { %v2399_v63 = vadd.f32 %v7139_v38, %v2398_v61  ;;  %v2649_v49 = vadd.f32 %v7139_v38, %v2648_v62  ;;  %4335 = vst.msk [vmem:[%s5744_s27 + $0x610] sm:$0xf] %vm3946_vm3, %v3940_v3 }
 0x363   : > { %v3447_v0 = vmax.f32 %v2896_v60, 0.0  ;;  %v3547_v18 = vmax.f32 %v3146_v14, 0.0 }
 0x364   : > { %v3248_v1 = vmax.f32 %v2399_v63, 0.0  ;;  %v3348_v2 = vmax.f32 %v2649_v49, 0.0 }
 0x365   : > { %v3841_v4 = vpack.c.bf16 %v3447_v0, %v3447_v0  ;;  %v3941_v25 = vpack.c.bf16 %v3547_v18, %v3547_v18 }
 0x366   : > { %v3642_v5 = vpack.c.bf16 %v3248_v1, %v3248_v1  ;;  %v3742_v6 = vpack.c.bf16 %v3348_v2, %v3348_v2 }
 0x367   : > { %4236 = vst.msk [vmem:[%s5744_s27 + $0x484] sm:$0xf] %vm3946_vm3, %v3841_v4 }
 0x368   : > { %4037 = vst.msk [vmem:[%s5744_s27 + $0x168] sm:$0xf] %vm3946_vm3, %v3642_v5  ;;  %v2898_v8 = vpop.f32.mrf.mxu2  ;;  %v3148_v27 = vpop.f32.mrf.mxu3 }
 0x369   : > { %4137 = vst.msk [vmem:[%s5744_s27 + $0x2f8] sm:$0xf] %vm3946_vm3, %v3742_v6  ;;  %v2899_v10 = vadd.f32 %v7139_v38, %v2898_v8  ;;  %v2400_v11 = vpop.f32.mrf.mxu0  ;;  %v2650_v12 = vpop.f32.mrf.mxu1  ;;  %v3149_v21 = vadd.f32 %v7139_v38, %v3148_v27 }
 0x36a   : > { %v2401_v15 = vadd.f32 %v7139_v38, %v2400_v11  ;;  %v2651_v16 = vadd.f32 %v7139_v38, %v2650_v12  ;;  %4336 = vst.msk [vmem:[%s5744_s27 + $0x614] sm:$0xf] %vm3946_vm3, %v3941_v25 }
 0x36b   : > { %v3448_v17 = vmax.f32 %v2899_v10, 0.0  ;;  %v3548_v39 = vmax.f32 %v3149_v21, 0.0 }
 0x36c   : > { %v3249_v19 = vmax.f32 %v2401_v15, 0.0  ;;  %v3349_v20 = vmax.f32 %v2651_v16, 0.0 }
 0x36d   : > { %v3842_v22 = vpack.c.bf16 %v3448_v17, %v3448_v17  ;;  %v3942_v51 = vpack.c.bf16 %v3548_v39, %v3548_v39 }
 0x36e   : > { %v3643_v23 = vpack.c.bf16 %v3249_v19, %v3249_v19  ;;  %v3743_v24 = vpack.c.bf16 %v3349_v20, %v3349_v20 }
 0x36f   : > { %4237 = vst.msk [vmem:[%s5744_s27 + $0x488] sm:$0xf] %vm3946_vm3, %v3842_v22 }
 0x370   : > { %4038 = vst.msk [vmem:[%s5744_s27 + $0x16c] sm:$0xf] %vm3946_vm3, %v3643_v23  ;;  %v2900_v26 = vpop.f32.mrf.mxu2  ;;  %v3150_v42 = vpop.f32.mrf.mxu3 }
 0x371   : > { %4138 = vst.msk [vmem:[%s5744_s27 + $0x2fc] sm:$0xf] %vm3946_vm3, %v3743_v24  ;;  %v2901_v28 = vadd.f32 %v7139_v38, %v2900_v26  ;;  %v2403_v29 = vpop.f32.mrf.mxu0  ;;  %v2653_v30 = vpop.f32.mrf.mxu1  ;;  %v3151_v46 = vadd.f32 %v7139_v38, %v3150_v42 }
 0x372   : > { %v2404_v31 = vadd.f32 %v7139_v38, %v2403_v29  ;;  %v2654_v32 = vadd.f32 %v7139_v38, %v2653_v30  ;;  %4337 = vst.msk [vmem:[%s5744_s27 + $0x618] sm:$0xf] %vm3946_vm3, %v3942_v51 }
 0x373   : > { %v3449_v33 = vmax.f32 %v2901_v28, 0.0  ;;  %v3549_v52 = vmax.f32 %v3151_v46, 0.0 }
 0x374   : > { %v3250_v34 = vmax.f32 %v2404_v31, 0.0  ;;  %v3350_v35 = vmax.f32 %v2654_v32, 0.0 }
 0x375   : > { %v3843_v36 = vpack.c.bf16 %v3449_v33, %v3449_v33  ;;  %v3943_v58 = vpack.c.bf16 %v3549_v52, %v3549_v52 }
 0x376   : > { %v3644_v37 = vpack.c.bf16 %v3250_v34, %v3250_v34  ;;  %v3744_v40 = vpack.c.bf16 %v3350_v35, %v3350_v35 }
 0x377   : > { %4238 = vst.msk [vmem:[%s5744_s27 + $0x48c] sm:$0xf] %vm3946_vm3, %v3843_v36 }
 0x378   : > { %4039 = vst.msk [vmem:[%s5744_s27 + $0x170] sm:$0xf] %vm3946_vm3, %v3644_v37  ;;  %v2903_v41 = vpop.f32.mrf.mxu2  ;;  %v3153_v60 = vpop.f32.mrf.mxu3 }
 0x379   : > { %4139 = vst.msk [vmem:[%s5744_s27 + $0x300] sm:$0xf] %vm3946_vm3, %v3744_v40  ;;  %v2904_v43 = vadd.f32 %v7139_v38, %v2903_v41  ;;  %v2405_v44 = vpop.f32.mrf.mxu0  ;;  %v2655_v45 = vpop.f32.mrf.mxu1  ;;  %v3154_v8 = vadd.f32 %v7139_v38, %v3153_v60 }
 0x37a   : > { %v2406_v47 = vadd.f32 %v7139_v38, %v2405_v44  ;;  %v2656_v48 = vadd.f32 %v7139_v38, %v2655_v45  ;;  %4338 = vst.msk [vmem:[%s5744_s27 + $0x61c] sm:$0xf] %vm3946_vm3, %v3943_v58 }
 0x37b   : > { %v3450_v50 = vmax.f32 %v2904_v43, 0.0  ;;  %v3550_v14 = vmax.f32 %v3154_v8, 0.0 }
 0x37c   : > { %v3251_v53 = vmax.f32 %v2406_v47, 0.0  ;;  %v3351_v54 = vmax.f32 %v2656_v48, 0.0 }
 0x37d   : > { %v3844_v55 = vpack.c.bf16 %v3450_v50, %v3450_v50  ;;  %v3944_v18 = vpack.c.bf16 %v3550_v14, %v3550_v14 }
 0x37e   : > { %v3645_v56 = vpack.c.bf16 %v3251_v53, %v3251_v53  ;;  %v3745_v57 = vpack.c.bf16 %v3351_v54, %v3351_v54 }
 0x37f   : > { %4239 = vst.msk [vmem:[%s5744_s27 + $0x490] sm:$0xf] %vm3946_vm3, %v3844_v55 }
 0x380   : > { %4040 = vst.msk [vmem:[%s5744_s27 + $0x174] sm:$0xf] %vm3946_vm3, %v3645_v56  ;;  %v2905_v59 = vpop.f32.mrf.mxu2  ;;  %v3155_v10 = vpop.f32.mrf.mxu3 }
 0x381   : > { %4140 = vst.msk [vmem:[%s5744_s27 + $0x304] sm:$0xf] %vm3946_vm3, %v3745_v57  ;;  %v2906_v61 = vadd.f32 %v7139_v38, %v2905_v59  ;;  %v2408_v62 = vpop.f32.mrf.mxu0  ;;  %v2658_v63 = vpop.f32.mrf.mxu1  ;;  %v3156_v15 = vadd.f32 %v7139_v38, %v3155_v10 }
 0x382   : > { %v2409_v49 = vadd.f32 %v7139_v38, %v2408_v62  ;;  %v2659_v0 = vadd.f32 %v7139_v38, %v2658_v63  ;;  %4339 = vst.msk [vmem:[%s5744_s27 + $0x620] sm:$0xf] %vm3946_vm3, %v3944_v18 }
 0x383   : > { %v3451_v1 = vmax.f32 %v2906_v61, 0.0  ;;  %v3551_v19 = vmax.f32 %v3156_v15, 0.0 }
 0x384   : > { %v3252_v2 = vmax.f32 %v2409_v49, 0.0  ;;  %v3352_v4 = vmax.f32 %v2659_v0, 0.0 }
 0x385   : > { %v3845_v5 = vpack.c.bf16 %v3451_v1, %v3451_v1  ;;  %v3945_v26 = vpack.c.bf16 %v3551_v19, %v3551_v19 }
 0x386   : > { %v3646_v6 = vpack.c.bf16 %v3252_v2, %v3252_v2  ;;  %v3746_v7 = vpack.c.bf16 %v3352_v4, %v3352_v4 }
 0x387   : > { %4240 = vst.msk [vmem:[%s5744_s27 + $0x494] sm:$0xf] %vm3946_vm3, %v3845_v5 }
 0x388   : > { %4041 = vst.msk [vmem:[%s5744_s27 + $0x178] sm:$0xf] %vm3946_vm3, %v3646_v6  ;;  %v2908_v9 = vpop.f32.mrf.mxu2 }
 0x389   : > { %4141 = vst.msk [vmem:[%s5744_s27 + $0x308] sm:$0xf] %vm3946_vm3, %v3746_v7  ;;  %v2909_v11 = vadd.f32 %v7139_v38, %v2908_v9  ;;  %v2410_v12 = vpop.f32.mrf.mxu0  ;;  %v2660_v13 = vpop.f32.mrf.mxu1 }
 0x38a   : > { %v2411_v16 = vadd.f32 %v7139_v38, %v2410_v12  ;;  %v2661_v17 = vadd.f32 %v7139_v38, %v2660_v13  ;;  %4340 = vst.msk [vmem:[%s5744_s27 + $0x624] sm:$0xf] %vm3946_vm3, %v3945_v26 }
 0x38b   : > { %v3452_v3 = vmax.f32 %v2909_v11, 0.0 }
 0x38c   : > { %v3253_v20 = vmax.f32 %v2411_v16, 0.0  ;;  %v3353_v22 = vmax.f32 %v2661_v17, 0.0 }
 0x38d   : > { %v3846_v23 = vpack.c.bf16 %v3452_v3, %v3452_v3 }
 0x38e   : > { %v3647_v24 = vpack.c.bf16 %v3253_v20, %v3253_v20  ;;  %v3747_v25 = vpack.c.bf16 %v3353_v22, %v3353_v22 }
 0x38f   : > { %4241 = vst.msk [vmem:[%s5744_s27 + $0x498] sm:$0xf] %vm3946_vm3, %v3846_v23 }
 0x390   : > { %4042 = vst.msk [vmem:[%s5744_s27 + $0x17c] sm:$0xf] %vm3946_vm3, %v3647_v24  ;;  %v2910_v27 = vpop.f32.mrf.mxu2 }
 0x391   : > { %4142 = vst.msk [vmem:[%s5744_s27 + $0x30c] sm:$0xf] %vm3946_vm3, %v3747_v25  ;;  %v2911_v28 = vadd.f32 %v7139_v38, %v2910_v27  ;;  %v2413_v29 = vpop.f32.mrf.mxu0  ;;  %v2663_v30 = vpop.f32.mrf.mxu1 }
 0x392   : > { %v2414_v31 = vadd.f32 %v7139_v38, %v2413_v29  ;;  %v2664_v32 = vadd.f32 %v7139_v38, %v2663_v30 }
 0x393   : > { %v3453_v33 = vmax.f32 %v2911_v28, 0.0 }
 0x394   : > { %v3254_v34 = vmax.f32 %v2414_v31, 0.0  ;;  %v3354_v35 = vmax.f32 %v2664_v32, 0.0 }
 0x395   : > { %v3847_v36 = vpack.c.bf16 %v3453_v33, %v3453_v33 }
 0x396   : > { %v3648_v37 = vpack.c.bf16 %v3254_v34, %v3254_v34  ;;  %v3748_v40 = vpack.c.bf16 %v3354_v35, %v3354_v35 }
 0x397   : > { %4242 = vst.msk [vmem:[%s5744_s27 + $0x49c] sm:$0xf] %vm3946_vm3, %v3847_v36 }
 0x398   : > { %4043 = vst.msk [vmem:[%s5744_s27 + $0x180] sm:$0xf] %vm3946_vm3, %v3648_v37  ;;  %v2913_v21 = vpop.f32.mrf.mxu2 }
 0x399   : > { %4143 = vst.msk [vmem:[%s5744_s27 + $0x310] sm:$0xf] %vm3946_vm3, %v3748_v40  ;;  %v2914_v41 = vadd.f32 %v7139_v38, %v2913_v21  ;;  %v2415_v42 = vpop.f32.mrf.mxu0  ;;  %v2665_v43 = vpop.f32.mrf.mxu1 }
 0x39a   : > { %v2416_v44 = vadd.f32 %v7139_v38, %v2415_v42  ;;  %v2666_v45 = vadd.f32 %v7139_v38, %v2665_v43 }
 0x39b   : > { %v3454_v39 = vmax.f32 %v2914_v41, 0.0 }
 0x39c   : > { %v3255_v46 = vmax.f32 %v2416_v44, 0.0  ;;  %v3355_v47 = vmax.f32 %v2666_v45, 0.0 }
 0x39d   : > { %v3848_v48 = vpack.c.bf16 %v3454_v39, %v3454_v39 }
 0x39e   : > { %v3649_v50 = vpack.c.bf16 %v3255_v46, %v3255_v46  ;;  %v3749_v51 = vpack.c.bf16 %v3355_v47, %v3355_v47 }
 0x39f   : > { %4243 = vst.msk [vmem:[%s5744_s27 + $0x4a0] sm:$0xf] %vm3946_vm3, %v3848_v48 }
 0x3a0   : > { %4044 = vst.msk [vmem:[%s5744_s27 + $0x184] sm:$0xf] %vm3946_vm3, %v3649_v50  ;;  %v2915_v52 = vpop.f32.mrf.mxu2 }
 0x3a1   : > { %4144 = vst.msk [vmem:[%s5744_s27 + $0x314] sm:$0xf] %vm3946_vm3, %v3749_v51  ;;  %v2916_v53 = vadd.f32 %v7139_v38, %v2915_v52  ;;  %v2418_v54 = vpop.f32.mrf.mxu0  ;;  %v2668_v55 = vpop.f32.mrf.mxu1 }
 0x3a2   : > { %v2419_v56 = vadd.f32 %v7139_v38, %v2418_v54  ;;  %v2669_v57 = vadd.f32 %v7139_v38, %v2668_v55 }
 0x3a3   : > { %v3455_v58 = vmax.f32 %v2916_v53, 0.0 }
 0x3a4   : > { %v3256_v59 = vmax.f32 %v2419_v56, 0.0  ;;  %v3356_v60 = vmax.f32 %v2669_v57, 0.0 }
 0x3a5   : > { %v3849_v61 = vpack.c.bf16 %v3455_v58, %v3455_v58 }
 0x3a6   : > { %v3650_v62 = vpack.c.bf16 %v3256_v59, %v3256_v59  ;;  %v3750_v63 = vpack.c.bf16 %v3356_v60, %v3356_v60 }
 0x3a7   : > { %4244 = vst.msk [vmem:[%s5744_s27 + $0x4a4] sm:$0xf] %vm3946_vm3, %v3849_v61 }
 0x3a8   : > { %4045 = vst.msk [vmem:[%s5744_s27 + $0x188] sm:$0xf] %vm3946_vm3, %v3650_v62  ;;  %v2918_v49 = vpop.f32.mrf.mxu2 }
 0x3a9   : > { %4145 = vst.msk [vmem:[%s5744_s27 + $0x318] sm:$0xf] %vm3946_vm3, %v3750_v63  ;;  %v2919_v0 = vadd.f32 %v7139_v38, %v2918_v49  ;;  %v2420_v1 = vpop.f32.mrf.mxu0  ;;  %v2670_v2 = vpop.f32.mrf.mxu1 }
 0x3aa   : > { %v2421_v4 = vadd.f32 %v7139_v38, %v2420_v1  ;;  %v2671_v5 = vadd.f32 %v7139_v38, %v2670_v2 }
 0x3ab   : > { %v3456_v6 = vmax.f32 %v2919_v0, 0.0 }
 0x3ac   : > { %v3257_v7 = vmax.f32 %v2421_v4, 0.0  ;;  %v3357_v8 = vmax.f32 %v2671_v5, 0.0 }
 0x3ad   : > { %v3850_v9 = vpack.c.bf16 %v3456_v6, %v3456_v6 }
 0x3ae   : > { %v3651_v10 = vpack.c.bf16 %v3257_v7, %v3257_v7  ;;  %v3751_v11 = vpack.c.bf16 %v3357_v8, %v3357_v8 }
 0x3af   : > { %4245 = vst.msk [vmem:[%s5744_s27 + $0x4a8] sm:$0xf] %vm3946_vm3, %v3850_v9 }
 0x3b0   : > { %4046 = vst.msk [vmem:[%s5744_s27 + $0x18c] sm:$0xf] %vm3946_vm3, %v3651_v10  ;;  %v2920_v12 = vpop.f32.mrf.mxu2 }
 0x3b1   : > { %4146 = vst.msk [vmem:[%s5744_s27 + $0x31c] sm:$0xf] %vm3946_vm3, %v3751_v11  ;;  %v2921_v13 = vadd.f32 %v7139_v38, %v2920_v12 }
 0x3b3   : > { %v3457_v14 = vmax.f32 %v2921_v13, 0.0 }
 0x3b5   : > { %v3851_v15 = vpack.c.bf16 %v3457_v14, %v3457_v14 }
 0x3b7   : > { %4246 = vst.msk [vmem:[%s5744_s27 + $0x4ac] sm:$0xf] %vm3946_vm3, %v3851_v15 }
 0x3b8 PF: > { %s13_s12 = sadd.s32 1, %s5616_s12  }
 0x3b9   : > { %p10_p4 = scmp.ge.s32.totalorder %s13_s12, 4  }
 0x3bb   :  { %12 = sbr.rel (!%p10_p4) target bundleno = 1 (0x1), region = 62 }

// kernel: encoder_forward.5
= control target key start
LH: loop header
LB: loop body
LE: loop exit
PB: predicated region body
PF: predicated region fallthrough
CT: control target
= control target key end

     0   :  { %s1663_s12 = smov 0   ;;  %s2095_s0 = inlined_call_operand.vmem [shape: bf16[1536,72], index: 0, kind: input, shape index: {}]   ;;  %s2096_s1 = inlined_call_operand.vmem [shape: bf16[72,16], index: 1, kind: input, shape index: {}]   ;;  %s2097_s2 = inlined_call_operand.vmem [shape: f32[1,16], index: 2, kind: input, shape index: {}]   ;;  %s2098_s3 = inlined_call_operand.vmem [shape: bf16[1536,16], index: 3, kind: output, shape index: {}]  }
   0x1 LB: > { %s1294_s13 = sadd.s32 4294967295, %s1641_s12   ;;  %p1298_p0 = scmp.ge.s32.totalorder %s1641_s12, 1  ;;  %s1641_s12 = sphi %s1663_s12, %s13_s12  }
   0x2   : > { %p138_p1 = scmp.lt.s32.totalorder %s1641_s12, 3 }
   0x4   : > { %p139_p2 = pnand %p1298_p0, %p138_p1 }
   0x5   : > { %s162_s16 = smul.u32 (!%p139_p2), 96, %s1294_s13 }
   0x6   : > { %142 = sbr.rel (%p139_p2) target bundleno = 361 (0x169), region = 32 }
   0x7   : > { %p163_p3 = scmp.lt.s32.totalorder (!%p139_p2), %s162_s16, 191 }
   0xb   : > { %v279_v0 = vld [vmem:[%s2096_s1 + $0x20] sm:$0xf]  ;;  %vm696_vm0 = vcmask 1043456   ;;  %v1610_v4 = vld [vmem:[%s2096_s1 + $0x18] sm:$0xff]  ;;  %v1609_v5 = vld [vmem:[%s2096_s1 + $0x10] sm:$0xff]  ;;  %s2100_s16 = smov (!%p163_p3, %s162_s16), 191 }
   0xc   : > { %v541_v1 = vunpack.c.l.b16 %v279_v0  ;;  %v1608_v6 = vld [vmem:[%s2096_s1 + $0x8] sm:$0xff]  ;;  %s1299_s23 = sshll.u32 %s2100_s16, 2  ;;  %v1607_v7 = vld [vmem:[%s2096_s1] sm:$0xff]  ;;  %vm551_vm1 = vcmask 588800   ;;  %vm1141_vm2 = vcmask 125952  }
   0xd   : > { %s1694_s28 = scalar_lea.vmem %s2095_s0, %s1299_s23  ;;  %v1763_v40 = vld [vmem:[%s2097_s2] ss:$0 sm:$0xff]  ;;  %s1778_s6 = scalar_lea.vmem %s2098_s3, %s1299_s23 }
   0xe   : > { %v546_v2 = vpack.c.b16 %v541_v1, %v541_v1  ;;  %v1559_v8 = vld [vmem:[%s1694_s28] sm:$0xff]  ;;  %v1560_v12 = vld [vmem:[%s1694_s28 + $0x8] sm:$0xff]  ;;  %v1561_v16 = vld [vmem:[%s1694_s28 + $0x10] sm:$0xff] }
   0xf   : > { %v1571_v9 = vld [vmem:[%s1694_s28 + $0x60] sm:$0xff]  ;;  %v1572_v13 = vld [vmem:[%s1694_s28 + $0x68] sm:$0xff]  ;;  %v1573_v17 = vld [vmem:[%s1694_s28 + $0x70] sm:$0xff] }
  0x10   : > { %v698_v3 = vsel %vm696_vm0, %v546_v2, 0  ;;  %v1583_v10 = vld [vmem:[%s1694_s28 + $0xc0] sm:$0xff]  ;;  %v1584_v14 = vld [vmem:[%s1694_s28 + $0xc8] sm:$0xff]  ;;  %v1585_v18 = vld [vmem:[%s1694_s28 + $0xd0] sm:$0xff] }
  0x11   : > { %703 = vmatpush.bf16.msra.mxu0 %v698_v3  ;;  %1611 = vmatpush.bf16.msra.mxu1 %v698_v3  ;;  %v1595_v11 = vld [vmem:[%s1694_s28 + $0x120] sm:$0xff]  ;;  %v1596_v15 = vld [vmem:[%s1694_s28 + $0x128] sm:$0xff]  ;;  %v1597_v19 = vld [vmem:[%s1694_s28 + $0x130] sm:$0xff] }
  0x12   : > { %1612 = vmatpush.bf16.msra.mxu2 %v698_v3  ;;  %1613 = vmatpush.bf16.msra.mxu3 %v698_v3  ;;  %v1562_v20 = vld [vmem:[%s1694_s28 + $0x18] sm:$0xff]  ;;  %v1563_v24 = vld [vmem:[%s1694_s28 + $0x20] sm:$0xff]  ;;  %v1564_v28 = vld [vmem:[%s1694_s28 + $0x28] sm:$0xff] }
  0x13   : > { %v1574_v21 = vld [vmem:[%s1694_s28 + $0x78] sm:$0xff]  ;;  %v1575_v25 = vld [vmem:[%s1694_s28 + $0x80] sm:$0xff]  ;;  %v1576_v29 = vld [vmem:[%s1694_s28 + $0x88] sm:$0xff] }
  0x14   : > { %v1586_v22 = vld [vmem:[%s1694_s28 + $0xd8] sm:$0xff]  ;;  %v1587_v26 = vld [vmem:[%s1694_s28 + $0xe0] sm:$0xff]  ;;  %v1588_v30 = vld [vmem:[%s1694_s28 + $0xe8] sm:$0xff] }
  0x15   : > { %704 = vmatpush.bf16.msra.mxu0 %v1610_v4  ;;  %1614 = vmatpush.bf16.msra.mxu1 %v1610_v4  ;;  %v1598_v23 = vld [vmem:[%s1694_s28 + $0x138] sm:$0xff]  ;;  %v1599_v27 = vld [vmem:[%s1694_s28 + $0x140] sm:$0xff]  ;;  %v1600_v31 = vld [vmem:[%s1694_s28 + $0x148] sm:$0xff] }
  0x16   : > { %1615 = vmatpush.bf16.msra.mxu2 %v1610_v4  ;;  %1616 = vmatpush.bf16.msra.mxu3 %v1610_v4  ;;  %v1565_v32 = vld [vmem:[%s1694_s28 + $0x30] sm:$0xff]  ;;  %v1566_v36 = vld [vmem:[%s1694_s28 + $0x38] sm:$0xff]  ;;  %v1567_v41 = vld [vmem:[%s1694_s28 + $0x40] sm:$0xff] }
  0x17   : > { %v1577_v33 = vld [vmem:[%s1694_s28 + $0x90] sm:$0xff]  ;;  %v1578_v37 = vld [vmem:[%s1694_s28 + $0x98] sm:$0xff]  ;;  %v1579_v42 = vld [vmem:[%s1694_s28 + $0xa0] sm:$0xff] }
  0x18   : > { %v1589_v34 = vld [vmem:[%s1694_s28 + $0xf0] sm:$0xff]  ;;  %v1590_v38 = vld [vmem:[%s1694_s28 + $0xf8] sm:$0xff]  ;;  %v1591_v45 = vld [vmem:[%s1694_s28 + $0x100] sm:$0xff] }
  0x19   : > { %705 = vmatpush.bf16.msra.mxu0 %v1609_v5  ;;  %1617 = vmatpush.bf16.msra.mxu1 %v1609_v5  ;;  %v1601_v35 = vld [vmem:[%s1694_s28 + $0x150] sm:$0xff]  ;;  %v1602_v39 = vld [vmem:[%s1694_s28 + $0x158] sm:$0xff]  ;;  %v1603_v46 = vld [vmem:[%s1694_s28 + $0x160] sm:$0xff] }
  0x1a   : > { %1618 = vmatpush.bf16.msra.mxu2 %v1609_v5  ;;  %1619 = vmatpush.bf16.msra.mxu3 %v1609_v5 }
  0x1d   : > { %706 = vmatpush.bf16.msra.mxu0 %v1608_v6  ;;  %1620 = vmatpush.bf16.msra.mxu1 %v1608_v6 }
  0x1e   : > { %1621 = vmatpush.bf16.msra.mxu2 %v1608_v6  ;;  %1622 = vmatpush.bf16.msra.mxu3 %v1608_v6 }
  0x21   : > { %707 = vmatpush.bf16.msra.mxu0 %v1607_v7  ;;  %1623 = vmatpush.bf16.msra.mxu1 %v1607_v7 }
  0x22   : > { %1624 = vmatpush.bf16.msra.mxu2 %v1607_v7  ;;  %1625 = vmatpush.bf16.msra.mxu3 %v1607_v7  ;;  %v1568_v7 = vld [vmem:[%s1694_s28 + $0x48] sm:$0xff] }
  0x24   : > { %1509 = vmatmul.msk.bf16.vlgmr.msra.gmra.mxu0 %vm551_vm1, %v1559_v8  ;;  %1521 = vmatmul.msk.bf16.vlgmr.msra.gmra.mxu1 %vm551_vm1, %v1571_v9  ;;  %v1580_v8 = vld [vmem:[%s1694_s28 + $0xa8] sm:$0xff] }
  0x25   : > { %1533 = vmatmul.msk.bf16.vlgmr.msra.gmra.mxu2 %vm551_vm1, %v1583_v10  ;;  %1545 = vmatmul.msk.bf16.vlgmr.msra.gmra.mxu3 %vm551_vm1, %v1595_v11 }
  0x34   : > { %1510 = vmatmul.msk.bf16.gmra.mxu0 %vm551_vm1, %v1560_v12  ;;  %1522 = vmatmul.msk.bf16.gmra.mxu1 %vm551_vm1, %v1572_v13  ;;  %v1592_v13 = vld [vmem:[%s1694_s28 + $0x108] sm:$0xff] }
  0x35   : > { %1534 = vmatmul.msk.bf16.gmra.mxu2 %vm551_vm1, %v1584_v14  ;;  %1546 = vmatmul.msk.bf16.gmra.mxu3 %vm551_vm1, %v1596_v15  ;;  %v1604_v14 = vld [vmem:[%s1694_s28 + $0x168] sm:$0xff] }
  0x44   : > { %1511 = vmatmul.msk.bf16.gmra.mxu0 %vm551_vm1, %v1561_v16  ;;  %1523 = vmatmul.msk.bf16.gmra.mxu1 %vm551_vm1, %v1573_v17 }
  0x45   : > { %1535 = vmatmul.msk.bf16.gmra.mxu2 %vm551_vm1, %v1585_v18  ;;  %1547 = vmatmul.msk.bf16.gmra.mxu3 %vm551_vm1, %v1597_v19 }
  0x54   : > { %1512 = vmatmul.msk.bf16.gmra.mxu0 %vm551_vm1, %v1562_v20  ;;  %1524 = vmatmul.msk.bf16.gmra.mxu1 %vm551_vm1, %v1574_v21 }
  0x55   : > { %1536 = vmatmul.msk.bf16.gmra.mxu2 %vm551_vm1, %v1586_v22  ;;  %1548 = vmatmul.msk.bf16.gmra.mxu3 %vm551_vm1, %v1598_v23 }
  0x64   : > { %1513 = vmatmul.msk.bf16.gmra.mxu0 %vm551_vm1, %v1563_v24  ;;  %1525 = vmatmul.msk.bf16.gmra.mxu1 %vm551_vm1, %v1575_v25 }
  0x65   : > { %1537 = vmatmul.msk.bf16.gmra.mxu2 %vm551_vm1, %v1587_v26  ;;  %1549 = vmatmul.msk.bf16.gmra.mxu3 %vm551_vm1, %v1599_v27 }
  0x74   : > { %1514 = vmatmul.msk.bf16.gmra.mxu0 %vm551_vm1, %v1564_v28  ;;  %1526 = vmatmul.msk.bf16.gmra.mxu1 %vm551_vm1, %v1576_v29 }
  0x75   : > { %1538 = vmatmul.msk.bf16.gmra.mxu2 %vm551_vm1, %v1588_v30  ;;  %1550 = vmatmul.msk.bf16.gmra.mxu3 %vm551_vm1, %v1600_v31 }
  0x84   : > { %1515 = vmatmul.msk.bf16.gmra.mxu0 %vm551_vm1, %v1565_v32  ;;  %1527 = vmatmul.msk.bf16.gmra.mxu1 %vm551_vm1, %v1577_v33 }
  0x85   : > { %1539 = vmatmul.msk.bf16.gmra.mxu2 %vm551_vm1, %v1589_v34  ;;  %1551 = vmatmul.msk.bf16.gmra.mxu3 %vm551_vm1, %v1601_v35 }
  0x94   : > { %1516 = vmatmul.msk.bf16.gmra.mxu0 %vm551_vm1, %v1566_v36  ;;  %1528 = vmatmul.msk.bf16.gmra.mxu1 %vm551_vm1, %v1578_v37 }
  0x95   : > { %1540 = vmatmul.msk.bf16.gmra.mxu2 %vm551_vm1, %v1590_v38  ;;  %1552 = vmatmul.msk.bf16.gmra.mxu3 %vm551_vm1, %v1602_v39 }
  0xa1   : > { %v709_v43 = vpop.f32.mrf.mxu0  ;;  %v769_v44 = vpop.f32.mrf.mxu1 }
  0xa2   : > { %v710_v47 = vadd.f32 %v1763_v40, %v709_v43  ;;  %v770_v48 = vadd.f32 %v1763_v40, %v769_v44  ;;  %v1569_v44 = vld [vmem:[%s1694_s28 + $0x50] sm:$0xff] }
  0xa4   : > { %v949_v49 = vmax.f32 %v710_v47, 0.0  ;;  %v973_v50 = vmax.f32 %v770_v48, 0.0  ;;  %1517 = vmatmul.msk.bf16.gmra.mxu0 %vm551_vm1, %v1567_v41  ;;  %1529 = vmatmul.msk.bf16.gmra.mxu1 %vm551_vm1, %v1579_v42 }
  0xa5   : > { %1541 = vmatmul.msk.bf16.gmra.mxu2 %vm551_vm1, %v1591_v45  ;;  %1553 = vmatmul.msk.bf16.gmra.mxu3 %vm551_vm1, %v1603_v46  ;;  %v1581_v45 = vld [vmem:[%s1694_s28 + $0xb0] sm:$0xff] }
  0xa6   : > { %v1045_v51 = vpack.c.bf16 %v949_v49, %v949_v49  ;;  %v1069_v52 = vpack.c.bf16 %v973_v50, %v973_v50  ;;  %v1593_v50 = vld [vmem:[%s1694_s28 + $0x110] sm:$0xff] }
  0xa8   : > { %1142 = vst.msk [vmem:[%s1778_s6] sm:$0xf] %vm1141_vm2, %v1045_v51  ;;  %v829_v53 = vpop.f32.mrf.mxu2  ;;  %v889_v54 = vpop.f32.mrf.mxu3  ;;  %v1605_v51 = vld [vmem:[%s1694_s28 + $0x170] sm:$0xff] }
  0xa9   : > { %1166 = vst.msk [vmem:[%s1778_s6 + $0x60] sm:$0xf] %vm1141_vm2, %v1069_v52  ;;  %v830_v55 = vadd.f32 %v1763_v40, %v829_v53  ;;  %v890_v56 = vadd.f32 %v1763_v40, %v889_v54  ;;  %v711_v57 = vpop.f32.mrf.mxu0  ;;  %v771_v58 = vpop.f32.mrf.mxu1 }
  0xaa   : > { %v712_v59 = vadd.f32 %v1763_v40, %v711_v57  ;;  %v772_v60 = vadd.f32 %v1763_v40, %v771_v58 }
  0xab   : > { %v997_v61 = vmax.f32 %v830_v55, 0.0  ;;  %v1021_v62 = vmax.f32 %v890_v56, 0.0 }
  0xac   : > { %v950_v63 = vmax.f32 %v712_v59, 0.0  ;;  %v974_v0 = vmax.f32 %v772_v60, 0.0 }
  0xad   : > { %v1093_v1 = vpack.c.bf16 %v997_v61, %v997_v61  ;;  %v1117_v2 = vpack.c.bf16 %v1021_v62, %v1021_v62 }
  0xae   : > { %v1046_v3 = vpack.c.bf16 %v950_v63, %v950_v63  ;;  %v1070_v4 = vpack.c.bf16 %v974_v0, %v974_v0 }
  0xaf   : > { %1190 = vst.msk [vmem:[%s1778_s6 + $0xc0] sm:$0xf] %vm1141_vm2, %v1093_v1 }
  0xb0   : > { %1214 = vst.msk [vmem:[%s1778_s6 + $0x120] sm:$0xf] %vm1141_vm2, %v1117_v2  ;;  %v831_v5 = vpop.f32.mrf.mxu2  ;;  %v891_v6 = vpop.f32.mrf.mxu3 }
  0xb1   : > { %1143 = vst.msk [vmem:[%s1778_s6 + $0x4] sm:$0xf] %vm1141_vm2, %v1046_v3  ;;  %v832_v9 = vadd.f32 %v1763_v40, %v831_v5  ;;  %v892_v10 = vadd.f32 %v1763_v40, %v891_v6  ;;  %v714_v11 = vpop.f32.mrf.mxu0  ;;  %v774_v12 = vpop.f32.mrf.mxu1 }
  0xb2   : > { %1167 = vst.msk [vmem:[%s1778_s6 + $0x64] sm:$0xf] %vm1141_vm2, %v1070_v4  ;;  %v715_v15 = vadd.f32 %v1763_v40, %v714_v11  ;;  %v775_v16 = vadd.f32 %v1763_v40, %v774_v12 }
  0xb3   : > { %v998_v17 = vmax.f32 %v832_v9, 0.0  ;;  %v1022_v18 = vmax.f32 %v892_v10, 0.0 }
  0xb4   : > { %v951_v19 = vmax.f32 %v715_v15, 0.0  ;;  %v975_v20 = vmax.f32 %v775_v16, 0.0  ;;  %1518 = vmatmul.msk.bf16.gmra.mxu0 %vm551_vm1, %v1568_v7  ;;  %1530 = vmatmul.msk.bf16.gmra.mxu1 %vm551_vm1, %v1580_v8  ;;  %v1570_v16 = vld [vmem:[%s1694_s28 + $0x58] sm:$0xff] }
  0xb5   : > { %v1094_v21 = vpack.c.bf16 %v998_v17, %v998_v17  ;;  %v1118_v22 = vpack.c.bf16 %v1022_v18, %v1022_v18  ;;  %1542 = vmatmul.msk.bf16.gmra.mxu2 %vm551_vm1, %v1592_v13  ;;  %1554 = vmatmul.msk.bf16.gmra.mxu3 %vm551_vm1, %v1604_v14  ;;  %v1582_v17 = vld [vmem:[%s1694_s28 + $0xb8] sm:$0xff] }
  0xb6   : > { %v1047_v23 = vpack.c.bf16 %v951_v19, %v951_v19  ;;  %v1071_v24 = vpack.c.bf16 %v975_v20, %v975_v20 }
  0xb7   : > { %1191 = vst.msk [vmem:[%s1778_s6 + $0xc4] sm:$0xf] %vm1141_vm2, %v1094_v21 }
  0xb8   : > { %1215 = vst.msk [vmem:[%s1778_s6 + $0x124] sm:$0xf] %vm1141_vm2, %v1118_v22  ;;  %v834_v25 = vpop.f32.mrf.mxu2  ;;  %v894_v26 = vpop.f32.mrf.mxu3  ;;  %v1594_v22 = vld [vmem:[%s1694_s28 + $0x118] sm:$0xff] }
  0xb9   : > { %1144 = vst.msk [vmem:[%s1778_s6 + $0x8] sm:$0xf] %vm1141_vm2, %v1047_v23  ;;  %v835_v27 = vadd.f32 %v1763_v40, %v834_v25  ;;  %v895_v28 = vadd.f32 %v1763_v40, %v894_v26  ;;  %v716_v29 = vpop.f32.mrf.mxu0  ;;  %v776_v30 = vpop.f32.mrf.mxu1  ;;  %v1606_v23 = vld [vmem:[%s1694_s28 + $0x178] sm:$0xff] }
  0xba   : > { %1168 = vst.msk [vmem:[%s1778_s6 + $0x68] sm:$0xf] %vm1141_vm2, %v1071_v24  ;;  %v717_v31 = vadd.f32 %v1763_v40, %v716_v29  ;;  %v777_v32 = vadd.f32 %v1763_v40, %v776_v30 }
  0xbb   : > { %v999_v33 = vmax.f32 %v835_v27, 0.0  ;;  %v1023_v34 = vmax.f32 %v895_v28, 0.0 }
  0xbc   : > { %v952_v35 = vmax.f32 %v717_v31, 0.0  ;;  %v976_v36 = vmax.f32 %v777_v32, 0.0 }
  0xbd   : > { %v1095_v37 = vpack.c.bf16 %v999_v33, %v999_v33  ;;  %v1119_v38 = vpack.c.bf16 %v1023_v34, %v1023_v34 }
  0xbe   : > { %v1048_v39 = vpack.c.bf16 %v952_v35, %v952_v35  ;;  %v1072_v41 = vpack.c.bf16 %v976_v36, %v976_v36 }
  0xbf   : > { %1192 = vst.msk [vmem:[%s1778_s6 + $0xc8] sm:$0xf] %vm1141_vm2, %v1095_v37 }
  0xc0   : > { %1216 = vst.msk [vmem:[%s1778_s6 + $0x128] sm:$0xf] %vm1141_vm2, %v1119_v38  ;;  %v836_v42 = vpop.f32.mrf.mxu2  ;;  %v896_v43 = vpop.f32.mrf.mxu3 }
  0xc1   : > { %1145 = vst.msk [vmem:[%s1778_s6 + $0xc] sm:$0xf] %vm1141_vm2, %v1048_v39  ;;  %v837_v46 = vadd.f32 %v1763_v40, %v836_v42  ;;  %v897_v47 = vadd.f32 %v1763_v40, %v896_v43  ;;  %v719_v48 = vpop.f32.mrf.mxu0  ;;  %v779_v49 = vpop.f32.mrf.mxu1 }
  0xc2   : > { %1169 = vst.msk [vmem:[%s1778_s6 + $0x6c] sm:$0xf] %vm1141_vm2, %v1072_v41  ;;  %v720_v52 = vadd.f32 %v1763_v40, %v719_v48  ;;  %v780_v53 = vadd.f32 %v1763_v40, %v779_v49 }
  0xc3   : > { %v1000_v54 = vmax.f32 %v837_v46, 0.0  ;;  %v1024_v55 = vmax.f32 %v897_v47, 0.0 }
  0xc4   : > { %v953_v56 = vmax.f32 %v720_v52, 0.0  ;;  %v977_v57 = vmax.f32 %v780_v53, 0.0  ;;  %1519 = vmatmul.msk.bf16.gmra.mxu0 %vm551_vm1, %v1569_v44  ;;  %1531 = vmatmul.msk.bf16.gmra.mxu1 %vm551_vm1, %v1581_v45 }
  0xc5   : > { %v1096_v58 = vpack.c.bf16 %v1000_v54, %v1000_v54  ;;  %v1120_v59 = vpack.c.bf16 %v1024_v55, %v1024_v55  ;;  %1543 = vmatmul.msk.bf16.gmra.mxu2 %vm551_vm1, %v1593_v50  ;;  %1555 = vmatmul.msk.bf16.gmra.mxu3 %vm551_vm1, %v1605_v51 }
  0xc6   : > { %v1049_v60 = vpack.c.bf16 %v953_v56, %v953_v56  ;;  %v1073_v61 = vpack.c.bf16 %v977_v57, %v977_v57 }
  0xc7   : > { %1193 = vst.msk [vmem:[%s1778_s6 + $0xcc] sm:$0xf] %vm1141_vm2, %v1096_v58 }
  0xc8   : > { %1217 = vst.msk [vmem:[%s1778_s6 + $0x12c] sm:$0xf] %vm1141_vm2, %v1120_v59  ;;  %v839_v62 = vpop.f32.mrf.mxu2  ;;  %v899_v63 = vpop.f32.mrf.mxu3 }
  0xc9   : > { %1146 = vst.msk [vmem:[%s1778_s6 + $0x10] sm:$0xf] %vm1141_vm2, %v1049_v60  ;;  %v840_v0 = vadd.f32 %v1763_v40, %v839_v62  ;;  %v900_v1 = vadd.f32 %v1763_v40, %v899_v63  ;;  %v721_v2 = vpop.f32.mrf.mxu0  ;;  %v781_v3 = vpop.f32.mrf.mxu1 }
  0xca   : > { %1170 = vst.msk [vmem:[%s1778_s6 + $0x70] sm:$0xf] %vm1141_vm2, %v1073_v61  ;;  %v722_v4 = vadd.f32 %v1763_v40, %v721_v2  ;;  %v782_v5 = vadd.f32 %v1763_v40, %v781_v3 }
  0xcb   : > { %v1001_v6 = vmax.f32 %v840_v0, 0.0  ;;  %v1025_v7 = vmax.f32 %v900_v1, 0.0 }
  0xcc   : > { %v954_v8 = vmax.f32 %v722_v4, 0.0  ;;  %v978_v9 = vmax.f32 %v782_v5, 0.0 }
  0xcd   : > { %v1097_v10 = vpack.c.bf16 %v1001_v6, %v1001_v6  ;;  %v1121_v11 = vpack.c.bf16 %v1025_v7, %v1025_v7 }
  0xce   : > { %v1050_v12 = vpack.c.bf16 %v954_v8, %v954_v8  ;;  %v1074_v13 = vpack.c.bf16 %v978_v9, %v978_v9 }
  0xcf   : > { %1194 = vst.msk [vmem:[%s1778_s6 + $0xd0] sm:$0xf] %vm1141_vm2, %v1097_v10 }
  0xd0   : > { %1218 = vst.msk [vmem:[%s1778_s6 + $0x130] sm:$0xf] %vm1141_vm2, %v1121_v11  ;;  %v841_v14 = vpop.f32.mrf.mxu2  ;;  %v901_v15 = vpop.f32.mrf.mxu3 }
  0xd1   : > { %1147 = vst.msk [vmem:[%s1778_s6 + $0x14] sm:$0xf] %vm1141_vm2, %v1050_v12  ;;  %v842_v18 = vadd.f32 %v1763_v40, %v841_v14  ;;  %v902_v19 = vadd.f32 %v1763_v40, %v901_v15  ;;  %v724_v20 = vpop.f32.mrf.mxu0  ;;  %v784_v21 = vpop.f32.mrf.mxu1 }
  0xd2   : > { %1171 = vst.msk [vmem:[%s1778_s6 + $0x74] sm:$0xf] %vm1141_vm2, %v1074_v13  ;;  %v725_v24 = vadd.f32 %v1763_v40, %v724_v20  ;;  %v785_v25 = vadd.f32 %v1763_v40, %v784_v21 }
  0xd3   : > { %v1002_v26 = vmax.f32 %v842_v18, 0.0  ;;  %v1026_v27 = vmax.f32 %v902_v19, 0.0 }
  0xd4   : > { %v955_v28 = vmax.f32 %v725_v24, 0.0  ;;  %v979_v29 = vmax.f32 %v785_v25, 0.0  ;;  %1520 = vmatmul.msk.bf16.gmra.mxu0 %vm551_vm1, %v1570_v16  ;;  %1532 = vmatmul.msk.bf16.gmra.mxu1 %vm551_vm1, %v1582_v17 }
  0xd5   : > { %v1098_v30 = vpack.c.bf16 %v1002_v26, %v1002_v26  ;;  %v1122_v31 = vpack.c.bf16 %v1026_v27, %v1026_v27  ;;  %1544 = vmatmul.msk.bf16.gmra.mxu2 %vm551_vm1, %v1594_v22  ;;  %1556 = vmatmul.msk.bf16.gmra.mxu3 %vm551_vm1, %v1606_v23 }
  0xd6   : > { %v1051_v32 = vpack.c.bf16 %v955_v28, %v955_v28  ;;  %v1075_v33 = vpack.c.bf16 %v979_v29, %v979_v29 }
  0xd7   : > { %1195 = vst.msk [vmem:[%s1778_s6 + $0xd4] sm:$0xf] %vm1141_vm2, %v1098_v30 }
  0xd8   : > { %1219 = vst.msk [vmem:[%s1778_s6 + $0x134] sm:$0xf] %vm1141_vm2, %v1122_v31  ;;  %v844_v34 = vpop.f32.mrf.mxu2  ;;  %v904_v35 = vpop.f32.mrf.mxu3 }
  0xd9   : > { %1148 = vst.msk [vmem:[%s1778_s6 + $0x18] sm:$0xf] %vm1141_vm2, %v1051_v32  ;;  %v845_v36 = vadd.f32 %v1763_v40, %v844_v34  ;;  %v905_v37 = vadd.f32 %v1763_v40, %v904_v35  ;;  %v726_v38 = vpop.f32.mrf.mxu0  ;;  %v786_v39 = vpop.f32.mrf.mxu1 }
  0xda   : > { %1172 = vst.msk [vmem:[%s1778_s6 + $0x78] sm:$0xf] %vm1141_vm2, %v1075_v33  ;;  %v727_v41 = vadd.f32 %v1763_v40, %v726_v38  ;;  %v787_v42 = vadd.f32 %v1763_v40, %v786_v39 }
  0xdb   : > { %v1003_v43 = vmax.f32 %v845_v36, 0.0  ;;  %v1027_v44 = vmax.f32 %v905_v37, 0.0 }
  0xdc   : > { %v956_v45 = vmax.f32 %v727_v41, 0.0  ;;  %v980_v46 = vmax.f32 %v787_v42, 0.0 }
  0xdd   : > { %v1099_v47 = vpack.c.bf16 %v1003_v43, %v1003_v43  ;;  %v1123_v48 = vpack.c.bf16 %v1027_v44, %v1027_v44 }
  0xde   : > { %v1052_v49 = vpack.c.bf16 %v956_v45, %v956_v45  ;;  %v1076_v50 = vpack.c.bf16 %v980_v46, %v980_v46 }
  0xdf   : > { %1196 = vst.msk [vmem:[%s1778_s6 + $0xd8] sm:$0xf] %vm1141_vm2, %v1099_v47 }
  0xe0   : > { %1220 = vst.msk [vmem:[%s1778_s6 + $0x138] sm:$0xf] %vm1141_vm2, %v1123_v48  ;;  %v846_v51 = vpop.f32.mrf.mxu2  ;;  %v906_v52 = vpop.f32.mrf.mxu3 }
  0xe1   : > { %1149 = vst.msk [vmem:[%s1778_s6 + $0x1c] sm:$0xf] %vm1141_vm2, %v1052_v49  ;;  %v847_v53 = vadd.f32 %v1763_v40, %v846_v51  ;;  %v907_v54 = vadd.f32 %v1763_v40, %v906_v52  ;;  %v729_v55 = vpop.f32.mrf.mxu0  ;;  %v789_v56 = vpop.f32.mrf.mxu1 }
  0xe2   : > { %1173 = vst.msk [vmem:[%s1778_s6 + $0x7c] sm:$0xf] %vm1141_vm2, %v1076_v50  ;;  %v730_v57 = vadd.f32 %v1763_v40, %v729_v55  ;;  %v790_v58 = vadd.f32 %v1763_v40, %v789_v56 }
  0xe3   : > { %v1004_v59 = vmax.f32 %v847_v53, 0.0  ;;  %v1028_v60 = vmax.f32 %v907_v54, 0.0 }
  0xe4   : > { %v957_v61 = vmax.f32 %v730_v57, 0.0  ;;  %v981_v62 = vmax.f32 %v790_v58, 0.0 }
  0xe5   : > { %v1100_v63 = vpack.c.bf16 %v1004_v59, %v1004_v59  ;;  %v1124_v0 = vpack.c.bf16 %v1028_v60, %v1028_v60 }
  0xe6   : > { %v1053_v1 = vpack.c.bf16 %v957_v61, %v957_v61  ;;  %v1077_v2 = vpack.c.bf16 %v981_v62, %v981_v62 }
  0xe7   : > { %1197 = vst.msk [vmem:[%s1778_s6 + $0xdc] sm:$0xf] %vm1141_vm2, %v1100_v63 }
  0xe8   : > { %1221 = vst.msk [vmem:[%s1778_s6 + $0x13c] sm:$0xf] %vm1141_vm2, %v1124_v0  ;;  %v849_v3 = vpop.f32.mrf.mxu2  ;;  %v909_v4 = vpop.f32.mrf.mxu3 }
  0xe9   : > { %1150 = vst.msk [vmem:[%s1778_s6 + $0x20] sm:$0xf] %vm1141_vm2, %v1053_v1  ;;  %v850_v5 = vadd.f32 %v1763_v40, %v849_v3  ;;  %v910_v6 = vadd.f32 %v1763_v40, %v909_v4  ;;  %v731_v7 = vpop.f32.mrf.mxu0  ;;  %v791_v8 = vpop.f32.mrf.mxu1 }
  0xea   : > { %1174 = vst.msk [vmem:[%s1778_s6 + $0x80] sm:$0xf] %vm1141_vm2, %v1077_v2  ;;  %v732_v9 = vadd.f32 %v1763_v40, %v731_v7  ;;  %v792_v10 = vadd.f32 %v1763_v40, %v791_v8 }
  0xeb   : > { %v1005_v11 = vmax.f32 %v850_v5, 0.0  ;;  %v1029_v12 = vmax.f32 %v910_v6, 0.0 }
  0xec   : > { %v958_v13 = vmax.f32 %v732_v9, 0.0  ;;  %v982_v14 = vmax.f32 %v792_v10, 0.0 }
  0xed   : > { %v1101_v15 = vpack.c.bf16 %v1005_v11, %v1005_v11  ;;  %v1125_v16 = vpack.c.bf16 %v1029_v12, %v1029_v12 }
  0xee   : > { %v1054_v17 = vpack.c.bf16 %v958_v13, %v958_v13  ;;  %v1078_v18 = vpack.c.bf16 %v982_v14, %v982_v14 }
  0xef   : > { %1198 = vst.msk [vmem:[%s1778_s6 + $0xe0] sm:$0xf] %vm1141_vm2, %v1101_v15 }
  0xf0   : > { %1222 = vst.msk [vmem:[%s1778_s6 + $0x140] sm:$0xf] %vm1141_vm2, %v1125_v16  ;;  %v851_v19 = vpop.f32.mrf.mxu2  ;;  %v911_v20 = vpop.f32.mrf.mxu3 }
  0xf1   : > { %1151 = vst.msk [vmem:[%s1778_s6 + $0x24] sm:$0xf] %vm1141_vm2, %v1054_v17  ;;  %v852_v21 = vadd.f32 %v1763_v40, %v851_v19  ;;  %v912_v22 = vadd.f32 %v1763_v40, %v911_v20  ;;  %v734_v23 = vpop.f32.mrf.mxu0  ;;  %v794_v24 = vpop.f32.mrf.mxu1 }
  0xf2   : > { %1175 = vst.msk [vmem:[%s1778_s6 + $0x84] sm:$0xf] %vm1141_vm2, %v1078_v18  ;;  %v735_v25 = vadd.f32 %v1763_v40, %v734_v23  ;;  %v795_v26 = vadd.f32 %v1763_v40, %v794_v24 }
  0xf3   : > { %v1006_v27 = vmax.f32 %v852_v21, 0.0  ;;  %v1030_v28 = vmax.f32 %v912_v22, 0.0 }
  0xf4   : > { %v959_v29 = vmax.f32 %v735_v25, 0.0  ;;  %v983_v30 = vmax.f32 %v795_v26, 0.0 }
  0xf5   : > { %v1102_v31 = vpack.c.bf16 %v1006_v27, %v1006_v27  ;;  %v1126_v32 = vpack.c.bf16 %v1030_v28, %v1030_v28 }
  0xf6   : > { %v1055_v33 = vpack.c.bf16 %v959_v29, %v959_v29  ;;  %v1079_v34 = vpack.c.bf16 %v983_v30, %v983_v30 }
  0xf7   : > { %1199 = vst.msk [vmem:[%s1778_s6 + $0xe4] sm:$0xf] %vm1141_vm2, %v1102_v31 }
  0xf8   : > { %1223 = vst.msk [vmem:[%s1778_s6 + $0x144] sm:$0xf] %vm1141_vm2, %v1126_v32  ;;  %v854_v35 = vpop.f32.mrf.mxu2  ;;  %v914_v36 = vpop.f32.mrf.mxu3 }
  0xf9   : > { %1152 = vst.msk [vmem:[%s1778_s6 + $0x28] sm:$0xf] %vm1141_vm2, %v1055_v33  ;;  %v855_v37 = vadd.f32 %v1763_v40, %v854_v35  ;;  %v915_v38 = vadd.f32 %v1763_v40, %v914_v36  ;;  %v736_v39 = vpop.f32.mrf.mxu0  ;;  %v796_v41 = vpop.f32.mrf.mxu1 }
  0xfa   : > { %1176 = vst.msk [vmem:[%s1778_s6 + $0x88] sm:$0xf] %vm1141_vm2, %v1079_v34  ;;  %v737_v42 = vadd.f32 %v1763_v40, %v736_v39  ;;  %v797_v43 = vadd.f32 %v1763_v40, %v796_v41 }
  0xfb   : > { %v1007_v44 = vmax.f32 %v855_v37, 0.0  ;;  %v1031_v45 = vmax.f32 %v915_v38, 0.0 }
  0xfc   : > { %v960_v46 = vmax.f32 %v737_v42, 0.0  ;;  %v984_v47 = vmax.f32 %v797_v43, 0.0 }
  0xfd   : > { %v1103_v48 = vpack.c.bf16 %v1007_v44, %v1007_v44  ;;  %v1127_v49 = vpack.c.bf16 %v1031_v45, %v1031_v45 }
  0xfe   : > { %v1056_v50 = vpack.c.bf16 %v960_v46, %v960_v46  ;;  %v1080_v51 = vpack.c.bf16 %v984_v47, %v984_v47 }
  0xff   : > { %1200 = vst.msk [vmem:[%s1778_s6 + $0xe8] sm:$0xf] %vm1141_vm2, %v1103_v48 }
 0x100   : > { %1224 = vst.msk [vmem:[%s1778_s6 + $0x148] sm:$0xf] %vm1141_vm2, %v1127_v49  ;;  %v856_v52 = vpop.f32.mrf.mxu2  ;;  %v916_v53 = vpop.f32.mrf.mxu3 }
 0x101   : > { %1153 = vst.msk [vmem:[%s1778_s6 + $0x2c] sm:$0xf] %vm1141_vm2, %v1056_v50  ;;  %v857_v54 = vadd.f32 %v1763_v40, %v856_v52  ;;  %v917_v55 = vadd.f32 %v1763_v40, %v916_v53  ;;  %v739_v56 = vpop.f32.mrf.mxu0  ;;  %v799_v57 = vpop.f32.mrf.mxu1 }
 0x102   : > { %1177 = vst.msk [vmem:[%s1778_s6 + $0x8c] sm:$0xf] %vm1141_vm2, %v1080_v51  ;;  %v740_v58 = vadd.f32 %v1763_v40, %v739_v56  ;;  %v800_v59 = vadd.f32 %v1763_v40, %v799_v57 }
 0x103   : > { %v1008_v60 = vmax.f32 %v857_v54, 0.0  ;;  %v1032_v61 = vmax.f32 %v917_v55, 0.0 }
 0x104   : > { %v961_v62 = vmax.f32 %v740_v58, 0.0  ;;  %v985_v63 = vmax.f32 %v800_v59, 0.0 }
 0x105   : > { %v1104_v0 = vpack.c.bf16 %v1008_v60, %v1008_v60  ;;  %v1128_v1 = vpack.c.bf16 %v1032_v61, %v1032_v61 }
 0x106   : > { %v1057_v2 = vpack.c.bf16 %v961_v62, %v961_v62  ;;  %v1081_v3 = vpack.c.bf16 %v985_v63, %v985_v63 }
 0x107   : > { %1201 = vst.msk [vmem:[%s1778_s6 + $0xec] sm:$0xf] %vm1141_vm2, %v1104_v0 }
 0x108   : > { %1225 = vst.msk [vmem:[%s1778_s6 + $0x14c] sm:$0xf] %vm1141_vm2, %v1128_v1  ;;  %v859_v4 = vpop.f32.mrf.mxu2  ;;  %v919_v5 = vpop.f32.mrf.mxu3 }
 0x109   : > { %1154 = vst.msk [vmem:[%s1778_s6 + $0x30] sm:$0xf] %vm1141_vm2, %v1057_v2  ;;  %v860_v6 = vadd.f32 %v1763_v40, %v859_v4  ;;  %v920_v7 = vadd.f32 %v1763_v40, %v919_v5  ;;  %v741_v8 = vpop.f32.mrf.mxu0  ;;  %v801_v9 = vpop.f32.mrf.mxu1 }
 0x10a   : > { %1178 = vst.msk [vmem:[%s1778_s6 + $0x90] sm:$0xf] %vm1141_vm2, %v1081_v3  ;;  %v742_v10 = vadd.f32 %v1763_v40, %v741_v8  ;;  %v802_v11 = vadd.f32 %v1763_v40, %v801_v9 }
 0x10b   : > { %v1009_v12 = vmax.f32 %v860_v6, 0.0  ;;  %v1033_v13 = vmax.f32 %v920_v7, 0.0 }
 0x10c   : > { %v962_v14 = vmax.f32 %v742_v10, 0.0  ;;  %v986_v15 = vmax.f32 %v802_v11, 0.0 }
 0x10d   : > { %v1105_v16 = vpack.c.bf16 %v1009_v12, %v1009_v12  ;;  %v1129_v17 = vpack.c.bf16 %v1033_v13, %v1033_v13 }
 0x10e   : > { %v1058_v18 = vpack.c.bf16 %v962_v14, %v962_v14  ;;  %v1082_v19 = vpack.c.bf16 %v986_v15, %v986_v15 }
 0x10f   : > { %1202 = vst.msk [vmem:[%s1778_s6 + $0xf0] sm:$0xf] %vm1141_vm2, %v1105_v16 }
 0x110   : > { %1226 = vst.msk [vmem:[%s1778_s6 + $0x150] sm:$0xf] %vm1141_vm2, %v1129_v17  ;;  %v861_v20 = vpop.f32.mrf.mxu2  ;;  %v921_v21 = vpop.f32.mrf.mxu3 }
 0x111   : > { %1155 = vst.msk [vmem:[%s1778_s6 + $0x34] sm:$0xf] %vm1141_vm2, %v1058_v18  ;;  %v862_v22 = vadd.f32 %v1763_v40, %v861_v20  ;;  %v922_v23 = vadd.f32 %v1763_v40, %v921_v21  ;;  %v744_v24 = vpop.f32.mrf.mxu0  ;;  %v804_v25 = vpop.f32.mrf.mxu1 }
 0x112   : > { %1179 = vst.msk [vmem:[%s1778_s6 + $0x94] sm:$0xf] %vm1141_vm2, %v1082_v19  ;;  %v745_v26 = vadd.f32 %v1763_v40, %v744_v24  ;;  %v805_v27 = vadd.f32 %v1763_v40, %v804_v25 }
 0x113   : > { %v1010_v28 = vmax.f32 %v862_v22, 0.0  ;;  %v1034_v29 = vmax.f32 %v922_v23, 0.0 }
 0x114   : > { %v963_v30 = vmax.f32 %v745_v26, 0.0  ;;  %v987_v31 = vmax.f32 %v805_v27, 0.0 }
 0x115   : > { %v1106_v32 = vpack.c.bf16 %v1010_v28, %v1010_v28  ;;  %v1130_v33 = vpack.c.bf16 %v1034_v29, %v1034_v29 }
 0x116   : > { %v1059_v34 = vpack.c.bf16 %v963_v30, %v963_v30  ;;  %v1083_v35 = vpack.c.bf16 %v987_v31, %v987_v31 }
 0x117   : > { %1203 = vst.msk [vmem:[%s1778_s6 + $0xf4] sm:$0xf] %vm1141_vm2, %v1106_v32 }
 0x118   : > { %1227 = vst.msk [vmem:[%s1778_s6 + $0x154] sm:$0xf] %vm1141_vm2, %v1130_v33  ;;  %v864_v36 = vpop.f32.mrf.mxu2  ;;  %v924_v37 = vpop.f32.mrf.mxu3 }
 0x119   : > { %1156 = vst.msk [vmem:[%s1778_s6 + $0x38] sm:$0xf] %vm1141_vm2, %v1059_v34  ;;  %v865_v38 = vadd.f32 %v1763_v40, %v864_v36  ;;  %v925_v39 = vadd.f32 %v1763_v40, %v924_v37  ;;  %v746_v41 = vpop.f32.mrf.mxu0  ;;  %v806_v42 = vpop.f32.mrf.mxu1 }
 0x11a   : > { %1180 = vst.msk [vmem:[%s1778_s6 + $0x98] sm:$0xf] %vm1141_vm2, %v1083_v35  ;;  %v747_v43 = vadd.f32 %v1763_v40, %v746_v41  ;;  %v807_v44 = vadd.f32 %v1763_v40, %v806_v42 }
 0x11b   : > { %v1011_v45 = vmax.f32 %v865_v38, 0.0  ;;  %v1035_v46 = vmax.f32 %v925_v39, 0.0 }
 0x11c   : > { %v964_v47 = vmax.f32 %v747_v43, 0.0  ;;  %v988_v48 = vmax.f32 %v807_v44, 0.0 }
 0x11d   : > { %v1107_v49 = vpack.c.bf16 %v1011_v45, %v1011_v45  ;;  %v1131_v50 = vpack.c.bf16 %v1035_v46, %v1035_v46 }
 0x11e   : > { %v1060_v51 = vpack.c.bf16 %v964_v47, %v964_v47  ;;  %v1084_v52 = vpack.c.bf16 %v988_v48, %v988_v48 }
 0x11f   : > { %1204 = vst.msk [vmem:[%s1778_s6 + $0xf8] sm:$0xf] %vm1141_vm2, %v1107_v49 }
 0x120   : > { %1228 = vst.msk [vmem:[%s1778_s6 + $0x158] sm:$0xf] %vm1141_vm2, %v1131_v50  ;;  %v866_v53 = vpop.f32.mrf.mxu2  ;;  %v926_v54 = vpop.f32.mrf.mxu3 }
 0x121   : > { %1157 = vst.msk [vmem:[%s1778_s6 + $0x3c] sm:$0xf] %vm1141_vm2, %v1060_v51  ;;  %v867_v55 = vadd.f32 %v1763_v40, %v866_v53  ;;  %v927_v56 = vadd.f32 %v1763_v40, %v926_v54  ;;  %v749_v57 = vpop.f32.mrf.mxu0  ;;  %v809_v58 = vpop.f32.mrf.mxu1 }
 0x122   : > { %1181 = vst.msk [vmem:[%s1778_s6 + $0x9c] sm:$0xf] %vm1141_vm2, %v1084_v52  ;;  %v750_v59 = vadd.f32 %v1763_v40, %v749_v57  ;;  %v810_v60 = vadd.f32 %v1763_v40, %v809_v58 }
 0x123   : > { %v1012_v61 = vmax.f32 %v867_v55, 0.0  ;;  %v1036_v62 = vmax.f32 %v927_v56, 0.0 }
 0x124   : > { %v965_v63 = vmax.f32 %v750_v59, 0.0  ;;  %v989_v0 = vmax.f32 %v810_v60, 0.0 }
 0x125   : > { %v1108_v1 = vpack.c.bf16 %v1012_v61, %v1012_v61  ;;  %v1132_v2 = vpack.c.bf16 %v1036_v62, %v1036_v62 }
 0x126   : > { %v1061_v3 = vpack.c.bf16 %v965_v63, %v965_v63  ;;  %v1085_v4 = vpack.c.bf16 %v989_v0, %v989_v0 }
 0x127   : > { %1205 = vst.msk [vmem:[%s1778_s6 + $0xfc] sm:$0xf] %vm1141_vm2, %v1108_v1 }
 0x128   : > { %1229 = vst.msk [vmem:[%s1778_s6 + $0x15c] sm:$0xf] %vm1141_vm2, %v1132_v2  ;;  %v869_v5 = vpop.f32.mrf.mxu2  ;;  %v929_v6 = vpop.f32.mrf.mxu3 }
 0x129   : > { %1158 = vst.msk [vmem:[%s1778_s6 + $0x40] sm:$0xf] %vm1141_vm2, %v1061_v3  ;;  %v870_v7 = vadd.f32 %v1763_v40, %v869_v5  ;;  %v930_v8 = vadd.f32 %v1763_v40, %v929_v6  ;;  %v751_v9 = vpop.f32.mrf.mxu0  ;;  %v811_v10 = vpop.f32.mrf.mxu1 }
 0x12a   : > { %1182 = vst.msk [vmem:[%s1778_s6 + $0xa0] sm:$0xf] %vm1141_vm2, %v1085_v4  ;;  %v752_v11 = vadd.f32 %v1763_v40, %v751_v9  ;;  %v812_v12 = vadd.f32 %v1763_v40, %v811_v10 }
 0x12b   : > { %v1013_v13 = vmax.f32 %v870_v7, 0.0  ;;  %v1037_v14 = vmax.f32 %v930_v8, 0.0 }
 0x12c   : > { %v966_v15 = vmax.f32 %v752_v11, 0.0  ;;  %v990_v16 = vmax.f32 %v812_v12, 0.0 }
 0x12d   : > { %v1109_v17 = vpack.c.bf16 %v1013_v13, %v1013_v13  ;;  %v1133_v18 = vpack.c.bf16 %v1037_v14, %v1037_v14 }
 0x12e   : > { %v1062_v19 = vpack.c.bf16 %v966_v15, %v966_v15  ;;  %v1086_v20 = vpack.c.bf16 %v990_v16, %v990_v16 }
 0x12f   : > { %1206 = vst.msk [vmem:[%s1778_s6 + $0x100] sm:$0xf] %vm1141_vm2, %v1109_v17 }
 0x130   : > { %1230 = vst.msk [vmem:[%s1778_s6 + $0x160] sm:$0xf] %vm1141_vm2, %v1133_v18  ;;  %v871_v21 = vpop.f32.mrf.mxu2  ;;  %v931_v22 = vpop.f32.mrf.mxu3 }
 0x131   : > { %1159 = vst.msk [vmem:[%s1778_s6 + $0x44] sm:$0xf] %vm1141_vm2, %v1062_v19  ;;  %v872_v23 = vadd.f32 %v1763_v40, %v871_v21  ;;  %v932_v24 = vadd.f32 %v1763_v40, %v931_v22  ;;  %v754_v25 = vpop.f32.mrf.mxu0  ;;  %v814_v26 = vpop.f32.mrf.mxu1 }
 0x132   : > { %1183 = vst.msk [vmem:[%s1778_s6 + $0xa4] sm:$0xf] %vm1141_vm2, %v1086_v20  ;;  %v755_v27 = vadd.f32 %v1763_v40, %v754_v25  ;;  %v815_v28 = vadd.f32 %v1763_v40, %v814_v26 }
 0x133   : > { %v1014_v29 = vmax.f32 %v872_v23, 0.0  ;;  %v1038_v30 = vmax.f32 %v932_v24, 0.0 }
 0x134   : > { %v967_v31 = vmax.f32 %v755_v27, 0.0  ;;  %v991_v32 = vmax.f32 %v815_v28, 0.0 }
 0x135   : > { %v1110_v33 = vpack.c.bf16 %v1014_v29, %v1014_v29  ;;  %v1134_v34 = vpack.c.bf16 %v1038_v30, %v1038_v30 }
 0x136   : > { %v1063_v35 = vpack.c.bf16 %v967_v31, %v967_v31  ;;  %v1087_v36 = vpack.c.bf16 %v991_v32, %v991_v32 }
 0x137   : > { %1207 = vst.msk [vmem:[%s1778_s6 + $0x104] sm:$0xf] %vm1141_vm2, %v1110_v33 }
 0x138   : > { %1231 = vst.msk [vmem:[%s1778_s6 + $0x164] sm:$0xf] %vm1141_vm2, %v1134_v34  ;;  %v874_v37 = vpop.f32.mrf.mxu2  ;;  %v934_v38 = vpop.f32.mrf.mxu3 }
 0x139   : > { %1160 = vst.msk [vmem:[%s1778_s6 + $0x48] sm:$0xf] %vm1141_vm2, %v1063_v35  ;;  %v875_v39 = vadd.f32 %v1763_v40, %v874_v37  ;;  %v935_v41 = vadd.f32 %v1763_v40, %v934_v38  ;;  %v756_v42 = vpop.f32.mrf.mxu0  ;;  %v816_v43 = vpop.f32.mrf.mxu1 }
 0x13a   : > { %1184 = vst.msk [vmem:[%s1778_s6 + $0xa8] sm:$0xf] %vm1141_vm2, %v1087_v36  ;;  %v757_v44 = vadd.f32 %v1763_v40, %v756_v42  ;;  %v817_v45 = vadd.f32 %v1763_v40, %v816_v43 }
 0x13b   : > { %v1015_v46 = vmax.f32 %v875_v39, 0.0  ;;  %v1039_v47 = vmax.f32 %v935_v41, 0.0 }
 0x13c   : > { %v968_v48 = vmax.f32 %v757_v44, 0.0  ;;  %v992_v49 = vmax.f32 %v817_v45, 0.0 }
 0x13d   : > { %v1111_v50 = vpack.c.bf16 %v1015_v46, %v1015_v46  ;;  %v1135_v51 = vpack.c.bf16 %v1039_v47, %v1039_v47 }
 0x13e   : > { %v1064_v52 = vpack.c.bf16 %v968_v48, %v968_v48  ;;  %v1088_v53 = vpack.c.bf16 %v992_v49, %v992_v49 }
 0x13f   : > { %1208 = vst.msk [vmem:[%s1778_s6 + $0x108] sm:$0xf] %vm1141_vm2, %v1111_v50 }
 0x140   : > { %1232 = vst.msk [vmem:[%s1778_s6 + $0x168] sm:$0xf] %vm1141_vm2, %v1135_v51  ;;  %v876_v54 = vpop.f32.mrf.mxu2  ;;  %v936_v55 = vpop.f32.mrf.mxu3 }
 0x141   : > { %1161 = vst.msk [vmem:[%s1778_s6 + $0x4c] sm:$0xf] %vm1141_vm2, %v1064_v52  ;;  %v877_v56 = vadd.f32 %v1763_v40, %v876_v54  ;;  %v937_v57 = vadd.f32 %v1763_v40, %v936_v55  ;;  %v759_v58 = vpop.f32.mrf.mxu0  ;;  %v819_v59 = vpop.f32.mrf.mxu1 }
 0x142   : > { %1185 = vst.msk [vmem:[%s1778_s6 + $0xac] sm:$0xf] %vm1141_vm2, %v1088_v53  ;;  %v760_v60 = vadd.f32 %v1763_v40, %v759_v58  ;;  %v820_v61 = vadd.f32 %v1763_v40, %v819_v59 }
 0x143   : > { %v1016_v62 = vmax.f32 %v877_v56, 0.0  ;;  %v1040_v63 = vmax.f32 %v937_v57, 0.0 }
 0x144   : > { %v969_v0 = vmax.f32 %v760_v60, 0.0  ;;  %v993_v1 = vmax.f32 %v820_v61, 0.0 }
 0x145   : > { %v1112_v2 = vpack.c.bf16 %v1016_v62, %v1016_v62  ;;  %v1136_v3 = vpack.c.bf16 %v1040_v63, %v1040_v63 }
 0x146   : > { %v1065_v4 = vpack.c.bf16 %v969_v0, %v969_v0  ;;  %v1089_v5 = vpack.c.bf16 %v993_v1, %v993_v1 }
 0x147   : > { %1209 = vst.msk [vmem:[%s1778_s6 + $0x10c] sm:$0xf] %vm1141_vm2, %v1112_v2 }
 0x148   : > { %1233 = vst.msk [vmem:[%s1778_s6 + $0x16c] sm:$0xf] %vm1141_vm2, %v1136_v3  ;;  %v879_v6 = vpop.f32.mrf.mxu2  ;;  %v939_v7 = vpop.f32.mrf.mxu3 }
 0x149   : > { %1162 = vst.msk [vmem:[%s1778_s6 + $0x50] sm:$0xf] %vm1141_vm2, %v1065_v4  ;;  %v880_v8 = vadd.f32 %v1763_v40, %v879_v6  ;;  %v940_v9 = vadd.f32 %v1763_v40, %v939_v7  ;;  %v761_v10 = vpop.f32.mrf.mxu0  ;;  %v821_v11 = vpop.f32.mrf.mxu1 }
 0x14a   : > { %1186 = vst.msk [vmem:[%s1778_s6 + $0xb0] sm:$0xf] %vm1141_vm2, %v1089_v5  ;;  %v762_v12 = vadd.f32 %v1763_v40, %v761_v10  ;;  %v822_v13 = vadd.f32 %v1763_v40, %v821_v11 }
 0x14b   : > { %v1017_v14 = vmax.f32 %v880_v8, 0.0  ;;  %v1041_v15 = vmax.f32 %v940_v9, 0.0 }
 0x14c   : > { %v970_v16 = vmax.f32 %v762_v12, 0.0  ;;  %v994_v17 = vmax.f32 %v822_v13, 0.0 }
 0x14d   : > { %v1113_v18 = vpack.c.bf16 %v1017_v14, %v1017_v14  ;;  %v1137_v19 = vpack.c.bf16 %v1041_v15, %v1041_v15 }
 0x14e   : > { %v1066_v20 = vpack.c.bf16 %v970_v16, %v970_v16  ;;  %v1090_v21 = vpack.c.bf16 %v994_v17, %v994_v17 }
 0x14f   : > { %1210 = vst.msk [vmem:[%s1778_s6 + $0x110] sm:$0xf] %vm1141_vm2, %v1113_v18 }
 0x150   : > { %1234 = vst.msk [vmem:[%s1778_s6 + $0x170] sm:$0xf] %vm1141_vm2, %v1137_v19  ;;  %v881_v22 = vpop.f32.mrf.mxu2  ;;  %v941_v23 = vpop.f32.mrf.mxu3 }
 0x151   : > { %1163 = vst.msk [vmem:[%s1778_s6 + $0x54] sm:$0xf] %vm1141_vm2, %v1066_v20  ;;  %v882_v24 = vadd.f32 %v1763_v40, %v881_v22  ;;  %v942_v25 = vadd.f32 %v1763_v40, %v941_v23  ;;  %v764_v26 = vpop.f32.mrf.mxu0  ;;  %v824_v27 = vpop.f32.mrf.mxu1 }
 0x152   : > { %1187 = vst.msk [vmem:[%s1778_s6 + $0xb4] sm:$0xf] %vm1141_vm2, %v1090_v21  ;;  %v765_v28 = vadd.f32 %v1763_v40, %v764_v26  ;;  %v825_v29 = vadd.f32 %v1763_v40, %v824_v27 }
 0x153   : > { %v1018_v30 = vmax.f32 %v882_v24, 0.0  ;;  %v1042_v31 = vmax.f32 %v942_v25, 0.0 }
 0x154   : > { %v971_v32 = vmax.f32 %v765_v28, 0.0  ;;  %v995_v33 = vmax.f32 %v825_v29, 0.0 }
 0x155   : > { %v1114_v34 = vpack.c.bf16 %v1018_v30, %v1018_v30  ;;  %v1138_v35 = vpack.c.bf16 %v1042_v31, %v1042_v31 }
 0x156   : > { %v1067_v36 = vpack.c.bf16 %v971_v32, %v971_v32  ;;  %v1091_v37 = vpack.c.bf16 %v995_v33, %v995_v33 }
 0x157   : > { %1211 = vst.msk [vmem:[%s1778_s6 + $0x114] sm:$0xf] %vm1141_vm2, %v1114_v34 }
 0x158   : > { %1235 = vst.msk [vmem:[%s1778_s6 + $0x174] sm:$0xf] %vm1141_vm2, %v1138_v35  ;;  %v884_v38 = vpop.f32.mrf.mxu2  ;;  %v944_v39 = vpop.f32.mrf.mxu3 }
 0x159   : > { %1164 = vst.msk [vmem:[%s1778_s6 + $0x58] sm:$0xf] %vm1141_vm2, %v1067_v36  ;;  %v885_v41 = vadd.f32 %v1763_v40, %v884_v38  ;;  %v945_v42 = vadd.f32 %v1763_v40, %v944_v39  ;;  %v766_v43 = vpop.f32.mrf.mxu0  ;;  %v826_v44 = vpop.f32.mrf.mxu1 }
 0x15a   : > { %1188 = vst.msk [vmem:[%s1778_s6 + $0xb8] sm:$0xf] %vm1141_vm2, %v1091_v37  ;;  %v767_v45 = vadd.f32 %v1763_v40, %v766_v43  ;;  %v827_v46 = vadd.f32 %v1763_v40, %v826_v44 }
 0x15b   : > { %v1019_v47 = vmax.f32 %v885_v41, 0.0  ;;  %v1043_v48 = vmax.f32 %v945_v42, 0.0 }
 0x15c   : > { %v972_v49 = vmax.f32 %v767_v45, 0.0  ;;  %v996_v50 = vmax.f32 %v827_v46, 0.0 }
 0x15d   : > { %v1115_v51 = vpack.c.bf16 %v1019_v47, %v1019_v47  ;;  %v1139_v52 = vpack.c.bf16 %v1043_v48, %v1043_v48 }
 0x15e   : > { %v1068_v53 = vpack.c.bf16 %v972_v49, %v972_v49  ;;  %v1092_v54 = vpack.c.bf16 %v996_v50, %v996_v50 }
 0x15f   : > { %1212 = vst.msk [vmem:[%s1778_s6 + $0x118] sm:$0xf] %vm1141_vm2, %v1115_v51 }
 0x160   : > { %1236 = vst.msk [vmem:[%s1778_s6 + $0x178] sm:$0xf] %vm1141_vm2, %v1139_v52  ;;  %v886_v55 = vpop.f32.mrf.mxu2  ;;  %v946_v56 = vpop.f32.mrf.mxu3 }
 0x161   : > { %1165 = vst.msk [vmem:[%s1778_s6 + $0x5c] sm:$0xf] %vm1141_vm2, %v1068_v53  ;;  %v887_v57 = vadd.f32 %v1763_v40, %v886_v55  ;;  %v947_v58 = vadd.f32 %v1763_v40, %v946_v56 }
 0x162   : > { %1189 = vst.msk [vmem:[%s1778_s6 + $0xbc] sm:$0xf] %vm1141_vm2, %v1092_v54 }
 0x163   : > { %v1020_v59 = vmax.f32 %v887_v57, 0.0  ;;  %v1044_v60 = vmax.f32 %v947_v58, 0.0 }
 0x165   : > { %v1116_v61 = vpack.c.bf16 %v1020_v59, %v1020_v59  ;;  %v1140_v62 = vpack.c.bf16 %v1044_v60, %v1044_v60 }
 0x167   : > { %1213 = vst.msk [vmem:[%s1778_s6 + $0x11c] sm:$0xf] %vm1141_vm2, %v1116_v61 }
 0x168   : > { %1237 = vst.msk [vmem:[%s1778_s6 + $0x17c] sm:$0xf] %vm1141_vm2, %v1140_v62 }
 0x169 PF: > { %s13_s12 = sadd.s32 1, %s1641_s12  }
 0x16a   : > { %p10_p4 = scmp.ge.s32.totalorder %s13_s12, 4  }
 0x16c   :  { %12 = sbr.rel (!%p10_p4) target bundleno = 1 (0x1), region = 62 }

// kernel: encoder_forward.6
= control target key start
LH: loop header
LB: loop body
LE: loop exit
PB: predicated region body
PF: predicated region fallthrough
CT: control target
= control target key end

     0   :  { %s883_s12 = smov 0   ;;  %s1073_s0 = inlined_call_operand.vmem [shape: bf16[352,144], index: 0, kind: input, shape index: {}]   ;;  %s1074_s1 = inlined_call_operand.vmem [shape: bf16[144,32], index: 1, kind: input, shape index: {}]   ;;  %s1075_s2 = inlined_call_operand.vmem [shape: f32[1,32], index: 2, kind: input, shape index: {}]   ;;  %s1076_s3 = inlined_call_operand.vmem [shape: bf16[352,32], index: 3, kind: output, shape index: {}]  }
   0x1 LB: > { %s660_s13 = sadd.s32 4294967295, %s861_s12   ;;  %p664_p0 = scmp.ge.s32.totalorder %s861_s12, 1  ;;  %s861_s12 = sphi %s883_s12, %s13_s12  }
   0x2   : > { %p139_p1 = scmp.lt.s32.totalorder %s861_s12, 3 }
   0x4   : > { %p140_p2 = pnand %p664_p0, %p139_p1 }
   0x5   : > { %s164_s18 = smul.u32 (!%p140_p2), 22, %s660_s13 }
   0x6   : > { %143 = sbr.rel (%p140_p2) target bundleno = 272 (0x110), region = 32 }
   0x7   : > { %p165_p3 = scmp.lt.s32.totalorder (!%p140_p2), %s164_s18, 43 }
   0xb   : > { %v835_v0 = vld [vmem:[%s1074_s1 + $0x38] sm:$0xff]  ;;  %v836_v1 = vld [vmem:[%s1074_s1 + $0x40] sm:$0xff]  ;;  %v834_v2 = vld [vmem:[%s1074_s1 + $0x30] sm:$0xff]  ;;  %s1078_s18 = smov (!%p165_p3, %s164_s18), 43  ;;  %vm375_vm0 = vcmask 130048   ;;  %vm581_vm1 = vcmask 257024  }
   0xc   : > { %409 = vmatpush.bf16.msra.mxu0 %v835_v0  ;;  %837 = vmatpush.bf16.msra.mxu2 %v835_v0  ;;  %v833_v3 = vld [vmem:[%s1074_s1 + $0x28] sm:$0xff]  ;;  %s805_s23 = sshll.u32 %s1078_s18, 3  ;;  %v832_v7 = vld [vmem:[%s1074_s1 + $0x20] sm:$0xff]  ;;  %v831_v8 = vld [vmem:[%s1074_s1 + $0x18] sm:$0xff]  ;;  %s667_s13 = sshll.u32 %s1078_s18, 2 }
   0xd   : > { %480 = vmatpush.bf16.msra.mxu1 %v836_v1  ;;  %845 = vmatpush.bf16.msra.mxu3 %v836_v1  ;;  %s909_s26 = scalar_lea.vmem %s1073_s0, %s805_s23  ;;  %v830_v9 = vld [vmem:[%s1074_s1 + $0x10] sm:$0xff]  ;;  %v829_v12 = vld [vmem:[%s1074_s1 + $0x8] sm:$0xff]  ;;  %v828_v16 = vld [vmem:[%s1074_s1] sm:$0xff]  ;;  %s991_s16 = scalar_lea.vmem %s1076_s3, %s667_s13 }
   0xe   : > { %v806_v4 = vld [vmem:[%s909_s26 + $0x4] sm:$0xf]  ;;  %v672_v5 = vld [vmem:[%s909_s26 + $0x8] sm:$0xf0]  ;;  %v808_v10 = vld [vmem:[%s909_s26 + $0x14] sm:$0xf] }
   0xf   : > { %v675_v6 = vor.u32 %v806_v4, %v672_v5  ;;  %v680_v11 = vld [vmem:[%s909_s26 + $0x18] sm:$0xf0]  ;;  %v820_v14 = vld [vmem:[%s909_s26 + $0x74] sm:$0xf]  ;;  %v670_v17 = vld [vmem:[%s909_s26] sm:$0xf] }
  0x10   : > { %410 = vmatpush.bf16.msra.mxu0 %v834_v2  ;;  %838 = vmatpush.bf16.msra.mxu2 %v834_v2  ;;  %v683_v13 = vor.u32 %v808_v10, %v680_v11  ;;  %v728_v15 = vld [vmem:[%s909_s26 + $0x78] sm:$0xf0]  ;;  %v807_v19 = vld [vmem:[%s909_s26 + $0x4] sm:$0xf0]  ;;  %v710_v20 = vld [vmem:[%s909_s26 + $0x50] sm:$0xf] }
  0x11   : > { %792 = vmatmul.msk.bf16.vlgmr.msra.gmra.mxu1 %vm375_vm0, %v675_v6  ;;  %v731_v18 = vor.u32 %v820_v14, %v728_v15  ;;  %v817_v21 = vld [vmem:[%s909_s26 + $0x54] sm:$0xf0]  ;;  %v671_v22 = vor.u32 %v807_v19, %v670_v17  ;;  %v810_v24 = vld [vmem:[%s909_s26 + $0x24] sm:$0xf]  ;;  %v688_v25 = vld [vmem:[%s909_s26 + $0x28] sm:$0xf0] }
  0x12   : > { %v711_v23 = vor.u32 %v817_v21, %v710_v20  ;;  %v691_v26 = vor.u32 %v810_v24, %v688_v25  ;;  %v822_v27 = vld [vmem:[%s909_s26 + $0x84] sm:$0xf]  ;;  %v736_v28 = vld [vmem:[%s909_s26 + $0x88] sm:$0xf0]  ;;  %v678_v29 = vld [vmem:[%s909_s26 + $0x10] sm:$0xf] }
  0x13   : > { %799 = vmatmul.msk.bf16.vlgmr.msra.gmra.mxu3 %vm375_vm0, %v731_v18  ;;  %v739_v30 = vor.u32 %v822_v27, %v736_v28  ;;  %v809_v31 = vld [vmem:[%s909_s26 + $0x14] sm:$0xf0]  ;;  %v718_v32 = vld [vmem:[%s909_s26 + $0x60] sm:$0xf]  ;;  %v819_v33 = vld [vmem:[%s909_s26 + $0x64] sm:$0xf0] }
  0x14   : > { %411 = vmatpush.bf16.msra.mxu0 %v833_v3  ;;  %839 = vmatpush.bf16.msra.mxu2 %v833_v3  ;;  %v679_v34 = vor.u32 %v809_v31, %v678_v29  ;;  %v719_v35 = vor.u32 %v819_v33, %v718_v32  ;;  %v812_v36 = vld [vmem:[%s909_s26 + $0x34] sm:$0xf]  ;;  %v696_v37 = vld [vmem:[%s909_s26 + $0x38] sm:$0xf0]  ;;  %v686_v41 = vld [vmem:[%s909_s26 + $0x20] sm:$0xf] }
  0x15   : > { %v699_v38 = vor.u32 %v812_v36, %v696_v37  ;;  %v824_v39 = vld [vmem:[%s909_s26 + $0x94] sm:$0xf]  ;;  %v744_v40 = vld [vmem:[%s909_s26 + $0x98] sm:$0xf0]  ;;  %v811_v43 = vld [vmem:[%s909_s26 + $0x24] sm:$0xf0] }
  0x16   : > { %v747_v42 = vor.u32 %v824_v39, %v744_v40  ;;  %v726_v44 = vld [vmem:[%s909_s26 + $0x70] sm:$0xf]  ;;  %v821_v45 = vld [vmem:[%s909_s26 + $0x74] sm:$0xf0]  ;;  %v687_v46 = vor.u32 %v811_v43, %v686_v41  ;;  %v814_v48 = vld [vmem:[%s909_s26 + $0x44] sm:$0xf] }
  0x17   : > { %v727_v47 = vor.u32 %v821_v45, %v726_v44  ;;  %v704_v49 = vld [vmem:[%s909_s26 + $0x48] sm:$0xf0]  ;;  %v826_v51 = vld [vmem:[%s909_s26 + $0xa4] sm:$0xf]  ;;  %v694_v53 = vld [vmem:[%s909_s26 + $0x30] sm:$0xf] }
  0x18   : > { %412 = vmatpush.bf16.msra.mxu0 %v832_v7  ;;  %840 = vmatpush.bf16.msra.mxu2 %v832_v7  ;;  %v707_v50 = vor.u32 %v814_v48, %v704_v49  ;;  %v752_v52 = vld [vmem:[%s909_s26 + $0xa8] sm:$0xf0]  ;;  %v813_v55 = vld [vmem:[%s909_s26 + $0x34] sm:$0xf0]  ;;  %v734_v56 = vld [vmem:[%s909_s26 + $0x80] sm:$0xf] }
  0x19   : > { %v755_v54 = vor.u32 %v826_v51, %v752_v52  ;;  %v823_v57 = vld [vmem:[%s909_s26 + $0x84] sm:$0xf0]  ;;  %v695_v58 = vor.u32 %v813_v55, %v694_v53  ;;  %v816_v60 = vld [vmem:[%s909_s26 + $0x54] sm:$0xf]  ;;  %v712_v61 = vld [vmem:[%s909_s26 + $0x58] sm:$0xf0] }
  0x1a   : > { %v735_v59 = vor.u32 %v823_v57, %v734_v56  ;;  %v715_v62 = vor.u32 %v816_v60, %v712_v61  ;;  %v702_v63 = vld [vmem:[%s909_s26 + $0x40] sm:$0xf]  ;;  %v815_v0 = vld [vmem:[%s909_s26 + $0x44] sm:$0xf0]  ;;  %v742_v1 = vld [vmem:[%s909_s26 + $0x90] sm:$0xf] }
  0x1b   : > { %v825_v2 = vld [vmem:[%s909_s26 + $0x94] sm:$0xf0]  ;;  %v703_v3 = vor.u32 %v815_v0, %v702_v63  ;;  %v818_v5 = vld [vmem:[%s909_s26 + $0x64] sm:$0xf]  ;;  %v720_v6 = vld [vmem:[%s909_s26 + $0x68] sm:$0xf0] }
  0x1c   : > { %413 = vmatpush.bf16.msra.mxu0 %v831_v8  ;;  %841 = vmatpush.bf16.msra.mxu2 %v831_v8  ;;  %v743_v4 = vor.u32 %v825_v2, %v742_v1  ;;  %v723_v7 = vor.u32 %v818_v5, %v720_v6  ;;  %v750_v8 = vld [vmem:[%s909_s26 + $0xa0] sm:$0xf] }
  0x1d   : > { %v984_v14 = vld [vmem:[%s1075_s2] ss:$0 sm:$0xff] }
  0x20   : > { %414 = vmatpush.bf16.msra.mxu0 %v830_v9  ;;  %842 = vmatpush.bf16.msra.mxu2 %v830_v9  ;;  %v827_v9 = vld [vmem:[%s909_s26 + $0xa4] sm:$0xf0] }
  0x21   : > { %793 = vmatmul.msk.bf16.gmra.mxu1 %vm375_vm0, %v683_v13  ;;  %v751_v10 = vor.u32 %v827_v9, %v750_v8 }
  0x23   : > { %800 = vmatmul.msk.bf16.gmra.mxu3 %vm375_vm0, %v739_v30 }
  0x24   : > { %415 = vmatpush.bf16.msra.mxu0 %v829_v12  ;;  %843 = vmatpush.bf16.msra.mxu2 %v829_v12 }
  0x28   : > { %416 = vmatpush.bf16.msra.mxu0 %v828_v16  ;;  %844 = vmatpush.bf16.msra.mxu2 %v828_v16 }
  0x2b   : > { %417 = vmatmul.bf16.vlgmr.msra.gmra.mxu0 %v671_v22  ;;  %442 = vmatmul.bf16.vlgmr.msra.gmra.mxu2 %v711_v23 }
  0x31   : > { %794 = vmatmul.msk.bf16.gmra.mxu1 %vm375_vm0, %v691_v26 }
  0x33   : > { %801 = vmatmul.msk.bf16.gmra.mxu3 %vm375_vm0, %v747_v42 }
  0x3b   : > { %422 = vmatmul.bf16.gmra.mxu0 %v679_v34  ;;  %447 = vmatmul.bf16.gmra.mxu2 %v719_v35 }
  0x41   : > { %795 = vmatmul.msk.bf16.gmra.mxu1 %vm375_vm0, %v699_v38 }
  0x43   : > { %802 = vmatmul.msk.bf16.gmra.mxu3 %vm375_vm0, %v755_v54 }
  0x4b   : > { %427 = vmatmul.bf16.gmra.mxu0 %v687_v46  ;;  %452 = vmatmul.bf16.gmra.mxu2 %v727_v47 }
  0x51   : > { %796 = vmatmul.msk.bf16.gmra.mxu1 %vm375_vm0, %v707_v50 }
  0x5b   : > { %432 = vmatmul.bf16.gmra.mxu0 %v695_v58  ;;  %457 = vmatmul.bf16.gmra.mxu2 %v735_v59 }
  0x61   : > { %797 = vmatmul.msk.bf16.gmra.mxu1 %vm375_vm0, %v715_v62 }
  0x6b   : > { %437 = vmatmul.bf16.gmra.mxu0 %v703_v3  ;;  %462 = vmatmul.bf16.gmra.mxu2 %v743_v4 }
  0x71   : > { %798 = vmatmul.msk.bf16.gmra.mxu1 %vm375_vm0, %v723_v7 }
  0x7b   : > { %467 = vmatmul.bf16.gmra.mxu2 %v751_v10 }
  0x8e   : > { %v482_v11 = vpop.f32.mrf.mxu1 }
  0x96   : > { %v484_v12 = vpop.f32.mrf.mxu1  ;;  %v517_v39 = vpop.f32.mrf.mxu3 }
  0x9e   : > { %v487_v13 = vpop.f32.mrf.mxu1  ;;  %v519_v48 = vpop.f32.mrf.mxu3 }
  0xa6   : > { %v489_v17 = vpop.f32.mrf.mxu1  ;;  %v522_v62 = vpop.f32.mrf.mxu3 }
  0xa8   : > { %v418_v15 = vpop.f32.mrf.mxu0 }
  0xa9   : > { %v419_v16 = vadd.f32 %v984_v14, %v418_v15 }
  0xab   : > { %v483_v18 = vadd.f32 %v482_v11, %v419_v16 }
  0xad   : > { %v537_v19 = vmax.f32 %v483_v18, 0.0 }
  0xae   : > { %v993_v20 = vpop.f32.mrf.mxu2  ;;  %v492_v24 = vpop.f32.mrf.mxu1 }
  0xaf   : > { %v559_v21 = vpack.c.bf16 %v537_v19, %v537_v19  ;;  %v444_v15 = vadd.f32 %v984_v14, %v993_v20 }
  0xb0   : > { %v420_v22 = vpop.f32.mrf.mxu0 }
  0xb1   : > { %582 = vst.msk [vmem:[%s991_s16] sm:$0xf] %vm581_vm1, %v559_v21  ;;  %v421_v23 = vadd.f32 %v984_v14, %v420_v22 }
  0xb3   : > { %v485_v25 = vadd.f32 %v484_v12, %v421_v23 }
  0xb5   : > { %v538_v26 = vmax.f32 %v485_v25, 0.0 }
  0xb6   : > { %v998_v27 = vpop.f32.mrf.mxu2  ;;  %v494_v31 = vpop.f32.mrf.mxu1 }
  0xb7   : > { %v560_v28 = vpack.c.bf16 %v538_v26, %v538_v26 }
  0xb8   : > { %v423_v29 = vpop.f32.mrf.mxu0 }
  0xb9   : > { %583 = vst.msk [vmem:[%s991_s16 + $0x4] sm:$0xf] %vm581_vm1, %v560_v28  ;;  %v424_v30 = vadd.f32 %v984_v14, %v423_v29 }
  0xbb   : > { %v488_v32 = vadd.f32 %v487_v13, %v424_v30  ;;  %v524_v13 = vpop.f32.mrf.mxu3 }
  0xbd   : > { %v539_v33 = vmax.f32 %v488_v32, 0.0 }
  0xbe   : > { %v1003_v34 = vpop.f32.mrf.mxu2  ;;  %v497_v38 = vpop.f32.mrf.mxu1 }
  0xbf   : > { %v561_v35 = vpack.c.bf16 %v539_v33, %v539_v33 }
  0xc0   : > { %v425_v36 = vpop.f32.mrf.mxu0 }
  0xc1   : > { %584 = vst.msk [vmem:[%s991_s16 + $0x8] sm:$0xf] %vm581_vm1, %v561_v35  ;;  %v426_v37 = vadd.f32 %v984_v14, %v425_v36 }
  0xc3   : > { %v490_v40 = vadd.f32 %v489_v17, %v426_v37  ;;  %v527_v35 = vpop.f32.mrf.mxu3 }
  0xc5   : > { %v540_v41 = vmax.f32 %v490_v40, 0.0 }
  0xc6   : > { %v1008_v42 = vpop.f32.mrf.mxu2  ;;  %v499_v46 = vpop.f32.mrf.mxu1 }
  0xc7   : > { %v562_v43 = vpack.c.bf16 %v540_v41, %v540_v41 }
  0xc8   : > { %v428_v44 = vpop.f32.mrf.mxu0 }
  0xc9   : > { %585 = vst.msk [vmem:[%s991_s16 + $0xc] sm:$0xf] %vm581_vm1, %v562_v43  ;;  %v429_v45 = vadd.f32 %v984_v14, %v428_v44 }
  0xcb   : > { %v493_v47 = vadd.f32 %v492_v24, %v429_v45 }
  0xcd   : > { %v541_v49 = vmax.f32 %v493_v47, 0.0 }
  0xce   : > { %v453_v50 = vpop.f32.mrf.mxu2  ;;  %v502_v56 = vpop.f32.mrf.mxu1 }
  0xcf   : > { %v563_v51 = vpack.c.bf16 %v541_v49, %v541_v49  ;;  %v454_v52 = vadd.f32 %v984_v14, %v453_v50 }
  0xd0   : > { %v430_v53 = vpop.f32.mrf.mxu0 }
  0xd1   : > { %586 = vst.msk [vmem:[%s991_s16 + $0x10] sm:$0xf] %vm581_vm1, %v563_v51  ;;  %v518_v54 = vadd.f32 %v517_v39, %v454_v52  ;;  %v431_v55 = vadd.f32 %v984_v14, %v430_v53 }
  0xd3   : > { %v551_v57 = vmax.f32 %v518_v54, 0.0  ;;  %v495_v58 = vadd.f32 %v494_v31, %v431_v55  ;;  %v446_v31 = vadd.f32 %v984_v14, %v998_v27  ;;  %v529_v55 = vpop.f32.mrf.mxu3 }
  0xd5   : > { %v573_v59 = vpack.c.bf16 %v551_v57, %v551_v57  ;;  %v542_v60 = vmax.f32 %v495_v58, 0.0 }
  0xd6   : > { %v455_v61 = vpop.f32.mrf.mxu2  ;;  %v504_v4 = vpop.f32.mrf.mxu1 }
  0xd7   : > { %596 = vst.msk [vmem:[%s991_s16 + $0x38] sm:$0xf] %vm581_vm1, %v573_v59  ;;  %v564_v63 = vpack.c.bf16 %v542_v60, %v542_v60  ;;  %v456_v0 = vadd.f32 %v984_v14, %v455_v61 }
  0xd8   : > { %v433_v1 = vpop.f32.mrf.mxu0 }
  0xd9   : > { %587 = vst.msk [vmem:[%s991_s16 + $0x14] sm:$0xf] %vm581_vm1, %v564_v63  ;;  %v520_v2 = vadd.f32 %v519_v48, %v456_v0  ;;  %v434_v3 = vadd.f32 %v984_v14, %v433_v1  ;;  %v449_v48 = vadd.f32 %v984_v14, %v1003_v34 }
  0xdb   : > { %v552_v5 = vmax.f32 %v520_v2, 0.0  ;;  %v498_v6 = vadd.f32 %v497_v38, %v434_v3 }
  0xdd   : > { %v574_v7 = vpack.c.bf16 %v552_v5, %v552_v5  ;;  %v543_v8 = vmax.f32 %v498_v6, 0.0  ;;  %v532_v5 = vpop.f32.mrf.mxu3 }
  0xde   : > { %v458_v9 = vpop.f32.mrf.mxu2  ;;  %v507_v18 = vpop.f32.mrf.mxu1 }
  0xdf   : > { %597 = vst.msk [vmem:[%s991_s16 + $0x3c] sm:$0xf] %vm581_vm1, %v574_v7  ;;  %v565_v10 = vpack.c.bf16 %v543_v8, %v543_v8  ;;  %v459_v11 = vadd.f32 %v984_v14, %v458_v9  ;;  %v508_v22 = vadd.f32 %v507_v18, %v444_v15 }
  0xe0   : > { %v435_v12 = vpop.f32.mrf.mxu0 }
  0xe1   : > { %588 = vst.msk [vmem:[%s991_s16 + $0x18] sm:$0xf] %vm581_vm1, %v565_v10  ;;  %v523_v16 = vadd.f32 %v522_v62, %v459_v11  ;;  %v436_v17 = vadd.f32 %v984_v14, %v435_v12  ;;  %v547_v25 = vmax.f32 %v508_v22, 0.0  ;;  %v451_v62 = vadd.f32 %v984_v14, %v1008_v42 }
  0xe3   : > { %v553_v19 = vmax.f32 %v523_v16, 0.0  ;;  %v500_v21 = vadd.f32 %v499_v46, %v436_v17  ;;  %v569_v29 = vpack.c.bf16 %v547_v25, %v547_v25 }
  0xe5   : > { %v575_v23 = vpack.c.bf16 %v553_v19, %v553_v19  ;;  %v544_v24 = vmax.f32 %v500_v21, 0.0  ;;  %592 = vst.msk [vmem:[%s991_s16 + $0x28] sm:$0xf] %vm581_vm1, %v569_v29 }
  0xe6   : > { %v460_v26 = vpop.f32.mrf.mxu2  ;;  %v509_v36 = vpop.f32.mrf.mxu1 }
  0xe7   : > { %598 = vst.msk [vmem:[%s991_s16 + $0x40] sm:$0xf] %vm581_vm1, %v575_v23  ;;  %v566_v28 = vpack.c.bf16 %v544_v24, %v544_v24  ;;  %v461_v20 = vadd.f32 %v984_v14, %v460_v26  ;;  %v510_v39 = vadd.f32 %v509_v36, %v446_v31 }
  0xe8   : > { %v438_v30 = vpop.f32.mrf.mxu0 }
  0xe9   : > { %589 = vst.msk [vmem:[%s991_s16 + $0x1c] sm:$0xf] %vm581_vm1, %v566_v28  ;;  %v525_v32 = vadd.f32 %v524_v13, %v461_v20  ;;  %v439_v33 = vadd.f32 %v984_v14, %v438_v30  ;;  %v548_v43 = vmax.f32 %v510_v39, 0.0  ;;  %v534_v13 = vpop.f32.mrf.mxu3 }
  0xeb   : > { %v554_v37 = vmax.f32 %v525_v32, 0.0  ;;  %v503_v38 = vadd.f32 %v502_v56, %v439_v33  ;;  %v570_v45 = vpack.c.bf16 %v548_v43, %v548_v43 }
  0xed   : > { %v576_v40 = vpack.c.bf16 %v554_v37, %v554_v37  ;;  %v545_v41 = vmax.f32 %v503_v38, 0.0  ;;  %593 = vst.msk [vmem:[%s991_s16 + $0x2c] sm:$0xf] %vm581_vm1, %v570_v45 }
  0xee   : > { %v463_v44 = vpop.f32.mrf.mxu2  ;;  %v512_v51 = vpop.f32.mrf.mxu1 }
  0xef   : > { %599 = vst.msk [vmem:[%s991_s16 + $0x44] sm:$0xf] %vm581_vm1, %v576_v40  ;;  %v567_v27 = vpack.c.bf16 %v545_v41, %v545_v41  ;;  %v464_v46 = vadd.f32 %v984_v14, %v463_v44  ;;  %v513_v54 = vadd.f32 %v512_v51, %v449_v48 }
  0xf0   : > { %v440_v47 = vpop.f32.mrf.mxu0 }
  0xf1   : > { %590 = vst.msk [vmem:[%s991_s16 + $0x20] sm:$0xf] %vm581_vm1, %v567_v27  ;;  %v528_v49 = vadd.f32 %v527_v35, %v464_v46  ;;  %v441_v50 = vadd.f32 %v984_v14, %v440_v47  ;;  %v549_v58 = vmax.f32 %v513_v54, 0.0 }
  0xf3   : > { %v555_v52 = vmax.f32 %v528_v49, 0.0  ;;  %v505_v53 = vadd.f32 %v504_v4, %v441_v50  ;;  %v571_v60 = vpack.c.bf16 %v549_v58, %v549_v58 }
  0xf5   : > { %v577_v56 = vpack.c.bf16 %v555_v52, %v555_v52  ;;  %v546_v57 = vmax.f32 %v505_v53, 0.0  ;;  %594 = vst.msk [vmem:[%s991_s16 + $0x30] sm:$0xf] %vm581_vm1, %v571_v60 }
  0xf6   : > { %v465_v59 = vpop.f32.mrf.mxu2  ;;  %v514_v0 = vpop.f32.mrf.mxu1 }
  0xf7   : > { %600 = vst.msk [vmem:[%s991_s16 + $0x48] sm:$0xf] %vm581_vm1, %v577_v56  ;;  %v568_v34 = vpack.c.bf16 %v546_v57, %v546_v57  ;;  %v466_v61 = vadd.f32 %v984_v14, %v465_v59  ;;  %v515_v2 = vadd.f32 %v514_v0, %v451_v62 }
  0xf9   : > { %591 = vst.msk [vmem:[%s991_s16 + $0x24] sm:$0xf] %vm581_vm1, %v568_v34  ;;  %v530_v63 = vadd.f32 %v529_v55, %v466_v61  ;;  %v550_v4 = vmax.f32 %v515_v2, 0.0 }
  0xfb   : > { %v556_v1 = vmax.f32 %v530_v63, 0.0  ;;  %v572_v7 = vpack.c.bf16 %v550_v4, %v550_v4 }
  0xfd   : > { %v578_v3 = vpack.c.bf16 %v556_v1, %v556_v1  ;;  %595 = vst.msk [vmem:[%s991_s16 + $0x34] sm:$0xf] %vm581_vm1, %v572_v7 }
  0xfe   : > { %v468_v6 = vpop.f32.mrf.mxu2 }
  0xff   : > { %601 = vst.msk [vmem:[%s991_s16 + $0x4c] sm:$0xf] %vm581_vm1, %v578_v3  ;;  %v469_v8 = vadd.f32 %v984_v14, %v468_v6 }
 0x101   : > { %v533_v42 = vadd.f32 %v532_v5, %v469_v8 }
 0x103   : > { %v557_v9 = vmax.f32 %v533_v42, 0.0 }
 0x105   : > { %v579_v10 = vpack.c.bf16 %v557_v9, %v557_v9 }
 0x106   : > { %v470_v11 = vpop.f32.mrf.mxu2 }
 0x107   : > { %602 = vst.msk [vmem:[%s991_s16 + $0x50] sm:$0xf] %vm581_vm1, %v579_v10  ;;  %v471_v12 = vadd.f32 %v984_v14, %v470_v11 }
 0x109   : > { %v535_v15 = vadd.f32 %v534_v13, %v471_v12 }
 0x10b   : > { %v558_v16 = vmax.f32 %v535_v15, 0.0 }
 0x10d   : > { %v580_v17 = vpack.c.bf16 %v558_v16, %v558_v16 }
 0x10f   : > { %603 = vst.msk [vmem:[%s991_s16 + $0x54] sm:$0xf] %vm581_vm1, %v580_v17 }
 0x110 PF: > { %s13_s12 = sadd.s32 1, %s861_s12  }
 0x111   : > { %p10_p4 = scmp.ge.s32.totalorder %s13_s12, 4  }
 0x113   :  { %12 = sbr.rel (!%p10_p4) target bundleno = 1 (0x1), region = 62 }

// kernel: encoder_forward.7
= control target key start
LH: loop header
LB: loop body
LE: loop exit
PB: predicated region body
PF: predicated region fallthrough
CT: control target
= control target key end

     0   :  { %vm4169_vm0 = vcmask 130048   ;;  %s7917_s1 = inlined_call_operand.vmem [shape: bf16[5632,128], index: 1, kind: input, shape index: {}]   ;;  %s7918_s0 = inlined_call_operand.vmem [shape: bf16[16,5632], index: 0, kind: input, shape index: {}]   ;;  %s7919_s2 = inlined_call_operand.vmem [shape: f32[1,128], index: 2, kind: input, shape index: {}]   ;;  %s7920_s4 = inlined_call_operand.vmem [shape: f32[1,128], index: 4, kind: input, shape index: {}]   ;;  %s7921_s3 = inlined_call_operand.vmem [shape: bf16[128,128], index: 3, kind: input, shape index: {}]   ;;  %s7922_s5 = inlined_call_operand.vmem [shape: bf16[128,128], index: 5, kind: input, shape index: {}]   ;;  %s7923_s6 = inlined_call_operand.vmem [shape: f32[1,128], index: 6, kind: input, shape index: {}]   ;;  %s7924_s7 = inlined_call_operand.vmem [shape: bf16[128,128], index: 7, kind: input, shape index: {}]   ;;  %s7925_s8 = inlined_call_operand.vmem [shape: f32[1,128], index: 8, kind: input, shape index: {}]   ;;  %s7926_s9 = inlined_call_operand.vmem [shape: bf16[128,128], index: 9, kind: input, shape index: {}]   ;;  %s7927_s10 = inlined_call_operand.vmem [shape: f32[1,128], index: 10, kind: input, shape index: {}]   ;;  %s7928_s11 = inlined_call_operand.vmem [shape: bf16[128,16], index: 11, kind: input, shape index: {}]   ;;  %s7929_s12 = inlined_call_operand.vmem [shape: f32[1,16], index: 12, kind: input, shape index: {}]   ;;  %s7930_s13 = inlined_call_operand.vmem [shape: f32[16,16], index: 13, kind: output, shape index: {}]  }
   0x1   :  { %v5971_v0 = vld [vmem:[%s7917_s1 + $0x38] sm:$0xff]  ;;  %v5970_v4 = vld [vmem:[%s7917_s1 + $0x30] sm:$0xff]  ;;  %v5969_v8 = vld [vmem:[%s7917_s1 + $0x28] sm:$0xff] }
   0x2   :  { %v5979_v1 = vld [vmem:[%s7917_s1 + $0x78] sm:$0xff]  ;;  %3128 = vmatpush.bf16.msra.mxu0 %v5971_v0  ;;  %v5978_v5 = vld [vmem:[%s7917_s1 + $0x70] sm:$0xff]  ;;  %v5977_v9 = vld [vmem:[%s7917_s1 + $0x68] sm:$0xff] }
   0x3   :  { %v5987_v2 = vld [vmem:[%s7917_s1 + $0xb8] sm:$0xff]  ;;  %3142 = vmatpush.bf16.msra.mxu1 %v5979_v1  ;;  %v5986_v6 = vld [vmem:[%s7917_s1 + $0xb0] sm:$0xff]  ;;  %v5985_v10 = vld [vmem:[%s7917_s1 + $0xa8] sm:$0xff] }
   0x4   :  { %v5995_v3 = vld [vmem:[%s7917_s1 + $0xf8] sm:$0xff]  ;;  %3156 = vmatpush.bf16.msra.mxu2 %v5987_v2  ;;  %v5994_v7 = vld [vmem:[%s7917_s1 + $0xf0] sm:$0xff]  ;;  %v5993_v11 = vld [vmem:[%s7917_s1 + $0xe8] sm:$0xff] }
   0x5   :  { %3170 = vmatpush.bf16.msra.mxu3 %v5995_v3  ;;  %v5968_v12 = vld [vmem:[%s7917_s1 + $0x20] sm:$0xff]  ;;  %v5967_v16 = vld [vmem:[%s7917_s1 + $0x18] sm:$0xff]  ;;  %v5966_v20 = vld [vmem:[%s7917_s1 + $0x10] sm:$0xff] }
   0x6   :  { %3129 = vmatpush.bf16.msra.mxu0 %v5970_v4  ;;  %v5976_v13 = vld [vmem:[%s7917_s1 + $0x60] sm:$0xff]  ;;  %v5975_v17 = vld [vmem:[%s7917_s1 + $0x58] sm:$0xff]  ;;  %v5974_v21 = vld [vmem:[%s7917_s1 + $0x50] sm:$0xff] }
   0x7   :  { %3143 = vmatpush.bf16.msra.mxu1 %v5978_v5  ;;  %v5984_v14 = vld [vmem:[%s7917_s1 + $0xa0] sm:$0xff]  ;;  %v5983_v18 = vld [vmem:[%s7917_s1 + $0x98] sm:$0xff]  ;;  %v5982_v22 = vld [vmem:[%s7917_s1 + $0x90] sm:$0xff] }
   0x8   :  { %3157 = vmatpush.bf16.msra.mxu2 %v5986_v6  ;;  %v5992_v15 = vld [vmem:[%s7917_s1 + $0xe0] sm:$0xff]  ;;  %v5991_v19 = vld [vmem:[%s7917_s1 + $0xd8] sm:$0xff]  ;;  %v5990_v23 = vld [vmem:[%s7917_s1 + $0xd0] sm:$0xff] }
   0x9   :  { %3171 = vmatpush.bf16.msra.mxu3 %v5994_v7  ;;  %v5965_v24 = vld [vmem:[%s7917_s1 + $0x8] sm:$0xff]  ;;  %v5964_v28 = vld [vmem:[%s7917_s1] sm:$0xff]  ;;  %v6003_v32 = vld [vmem:[%s7917_s1 + $0x138] sm:$0xff] }
   0xa   :  { %3130 = vmatpush.bf16.msra.mxu0 %v5969_v8  ;;  %v5973_v25 = vld [vmem:[%s7917_s1 + $0x48] sm:$0xff]  ;;  %v5972_v29 = vld [vmem:[%s7917_s1 + $0x40] sm:$0xff]  ;;  %v6011_v33 = vld [vmem:[%s7917_s1 + $0x178] sm:$0xff] }
   0xb   :  { %3144 = vmatpush.bf16.msra.mxu1 %v5977_v9  ;;  %v5981_v26 = vld [vmem:[%s7917_s1 + $0x88] sm:$0xff]  ;;  %v5980_v30 = vld [vmem:[%s7917_s1 + $0x80] sm:$0xff]  ;;  %v5942_v35 = vld [vmem:[%s7918_s0 + $0xac] sm:$0xf0] }
   0xc   :  { %3158 = vmatpush.bf16.msra.mxu2 %v5985_v10  ;;  %v5989_v27 = vld [vmem:[%s7917_s1 + $0xc8] sm:$0xff]  ;;  %v5988_v31 = vld [vmem:[%s7917_s1 + $0xc0] sm:$0xff]  ;;  %v5943_v37 = vld [vmem:[%s7918_s0 + $0xb4] sm:$0xf0] }
   0xd   :  { %3172 = vmatpush.bf16.msra.mxu3 %v5993_v11  ;;  %v4178_v34 = vld [vmem:[%s7918_s0] sm:$0xf]  ;;  %v4186_v36 = vld [vmem:[%s7918_s0 + $0x8] sm:$0xf]  ;;  %v5920_v38 = vld [vmem:[%s7918_s0 + $0x4] sm:$0xf] }
   0xe   :  { %3131 = vmatpush.bf16.msra.mxu0 %v5968_v12  ;;  %v4180_v39 = vld [vmem:[%s7918_s0 + $0xb0] sm:$0xf0]  ;;  %v5921_v40 = vld [vmem:[%s7918_s0 + $0xc] sm:$0xf]  ;;  %v4188_v41 = vld [vmem:[%s7918_s0 + $0xb8] sm:$0xf0]  ;;  %v4179_v44 = vor.u32 %v5942_v35, %v4178_v34  ;;  %v4187_v45 = vor.u32 %v5943_v37, %v4186_v36 }
   0xf   :  { %3145 = vmatpush.bf16.msra.mxu1 %v5976_v13  ;;  %v6019_v42 = vld [vmem:[%s7917_s1 + $0x1b8] sm:$0xff]  ;;  %v4183_v46 = vor.u32 %v5920_v38, %v4180_v39  ;;  %v4191_v47 = vor.u32 %v5921_v40, %v4188_v41  ;;  %v6002_v48 = vld [vmem:[%s7917_s1 + $0x130] sm:$0xff]  ;;  %v6001_v52 = vld [vmem:[%s7917_s1 + $0x128] sm:$0xff] }
  0x10   :  { %3159 = vmatpush.bf16.msra.mxu2 %v5984_v14  ;;  %v6027_v43 = vld [vmem:[%s7917_s1 + $0x1f8] sm:$0xff]  ;;  %v6010_v49 = vld [vmem:[%s7917_s1 + $0x170] sm:$0xff]  ;;  %v6009_v53 = vld [vmem:[%s7917_s1 + $0x168] sm:$0xff] }
  0x11   :  { %3173 = vmatpush.bf16.msra.mxu3 %v5992_v15  ;;  %v6018_v50 = vld [vmem:[%s7917_s1 + $0x1b0] sm:$0xff]  ;;  %v6017_v54 = vld [vmem:[%s7917_s1 + $0x1a8] sm:$0xff]  ;;  %v6000_v56 = vld [vmem:[%s7917_s1 + $0x120] sm:$0xff] }
  0x12   :  { %3132 = vmatpush.bf16.msra.mxu0 %v5967_v16  ;;  %v6026_v51 = vld [vmem:[%s7917_s1 + $0x1f0] sm:$0xff]  ;;  %v6025_v55 = vld [vmem:[%s7917_s1 + $0x1e8] sm:$0xff]  ;;  %v6008_v57 = vld [vmem:[%s7917_s1 + $0x160] sm:$0xff] }
  0x13   :  { %3146 = vmatpush.bf16.msra.mxu1 %v5975_v17  ;;  %v6016_v58 = vld [vmem:[%s7917_s1 + $0x1a0] sm:$0xff]  ;;  %v5999_v60 = vld [vmem:[%s7917_s1 + $0x118] sm:$0xff]  ;;  %v5998_v0 = vld [vmem:[%s7917_s1 + $0x110] sm:$0xff] }
  0x14   :  { %3160 = vmatpush.bf16.msra.mxu2 %v5983_v18  ;;  %v6024_v59 = vld [vmem:[%s7917_s1 + $0x1e0] sm:$0xff]  ;;  %v6007_v61 = vld [vmem:[%s7917_s1 + $0x158] sm:$0xff]  ;;  %v6006_v1 = vld [vmem:[%s7917_s1 + $0x150] sm:$0xff] }
  0x15   :  { %3174 = vmatpush.bf16.msra.mxu3 %v5991_v19  ;;  %v6015_v62 = vld [vmem:[%s7917_s1 + $0x198] sm:$0xff]  ;;  %v6014_v2 = vld [vmem:[%s7917_s1 + $0x190] sm:$0xff]  ;;  %v5997_v4 = vld [vmem:[%s7917_s1 + $0x108] sm:$0xff] }
  0x16   :  { %3133 = vmatpush.bf16.msra.mxu0 %v5966_v20  ;;  %v6023_v63 = vld [vmem:[%s7917_s1 + $0x1d8] sm:$0xff]  ;;  %v6022_v3 = vld [vmem:[%s7917_s1 + $0x1d0] sm:$0xff]  ;;  %v6005_v5 = vld [vmem:[%s7917_s1 + $0x148] sm:$0xff] }
  0x17   :  { %3147 = vmatpush.bf16.msra.mxu1 %v5974_v21  ;;  %v6013_v6 = vld [vmem:[%s7917_s1 + $0x188] sm:$0xff]  ;;  %v5996_v8 = vld [vmem:[%s7917_s1 + $0x100] sm:$0xff]  ;;  %v6035_v12 = vld [vmem:[%s7917_s1 + $0x238] sm:$0xff] }
  0x18   :  { %3161 = vmatpush.bf16.msra.mxu2 %v5982_v22  ;;  %v6021_v7 = vld [vmem:[%s7917_s1 + $0x1c8] sm:$0xff]  ;;  %v6004_v9 = vld [vmem:[%s7917_s1 + $0x140] sm:$0xff]  ;;  %v6043_v13 = vld [vmem:[%s7917_s1 + $0x278] sm:$0xff] }
  0x19   :  { %3175 = vmatpush.bf16.msra.mxu3 %v5990_v23  ;;  %v6012_v10 = vld [vmem:[%s7917_s1 + $0x180] sm:$0xff]  ;;  %v4194_v14 = vld [vmem:[%s7918_s0 + $0x10] sm:$0xf]  ;;  %v4202_v16 = vld [vmem:[%s7918_s0 + $0x18] sm:$0xf] }
  0x1a   :  { %3134 = vmatpush.bf16.msra.mxu0 %v5965_v24  ;;  %v6020_v11 = vld [vmem:[%s7917_s1 + $0x1c0] sm:$0xff]  ;;  %v5945_v17 = vld [vmem:[%s7918_s0 + $0xc4] sm:$0xf0]  ;;  %v5922_v18 = vld [vmem:[%s7918_s0 + $0x14] sm:$0xf] }
  0x1b   :  { %3148 = vmatpush.bf16.msra.mxu1 %v5973_v25  ;;  %v5944_v15 = vld [vmem:[%s7918_s0 + $0xbc] sm:$0xf0]  ;;  %v4196_v19 = vld [vmem:[%s7918_s0 + $0xc0] sm:$0xf0]  ;;  %v5923_v20 = vld [vmem:[%s7918_s0 + $0x1c] sm:$0xf]  ;;  %v4203_v25 = vor.u32 %v5945_v17, %v4202_v16 }
  0x1c   :  { %3162 = vmatpush.bf16.msra.mxu2 %v5981_v26  ;;  %v4204_v21 = vld [vmem:[%s7918_s0 + $0xc8] sm:$0xf0]  ;;  %v6051_v22 = vld [vmem:[%s7917_s1 + $0x2b8] sm:$0xff]  ;;  %v4195_v24 = vor.u32 %v5944_v15, %v4194_v14  ;;  %v4199_v26 = vor.u32 %v5922_v18, %v4196_v19  ;;  %v6032_v36 = vld [vmem:[%s7917_s1 + $0x220] sm:$0xff] }
  0x1d   :  { %3176 = vmatpush.bf16.msra.mxu3 %v5989_v27  ;;  %v6059_v23 = vld [vmem:[%s7917_s1 + $0x2f8] sm:$0xff]  ;;  %v4207_v27 = vor.u32 %v5923_v20, %v4204_v21  ;;  %v6049_v34 = vld [vmem:[%s7917_s1 + $0x2a8] sm:$0xff]  ;;  %v6040_v37 = vld [vmem:[%s7917_s1 + $0x260] sm:$0xff] }
  0x1e   :  { %3135 = vmatpush.bf16.msra.mxu0 %v5964_v28  ;;  %v6034_v28 = vld [vmem:[%s7917_s1 + $0x230] sm:$0xff]  ;;  %v6057_v35 = vld [vmem:[%s7917_s1 + $0x2e8] sm:$0xff]  ;;  %v6048_v38 = vld [vmem:[%s7917_s1 + $0x2a0] sm:$0xff] }
  0x1f   :  { %3149 = vmatpush.bf16.msra.mxu1 %v5972_v29  ;;  %v6042_v29 = vld [vmem:[%s7917_s1 + $0x270] sm:$0xff]  ;;  %v6056_v39 = vld [vmem:[%s7917_s1 + $0x2e0] sm:$0xff]  ;;  %v6031_v40 = vld [vmem:[%s7917_s1 + $0x218] sm:$0xff] }
  0x20   :  { %3163 = vmatpush.bf16.msra.mxu2 %v5980_v30  ;;  %v6050_v30 = vld [vmem:[%s7917_s1 + $0x2b0] sm:$0xff]  ;;  %v6039_v41 = vld [vmem:[%s7917_s1 + $0x258] sm:$0xff]  ;;  %v6081_v14 = vld [vmem:[%s7917_s1 + $0x3a8] sm:$0xff] }
  0x21   :  { %3177 = vmatpush.bf16.msra.mxu3 %v5988_v31  ;;  %3136 = vmatmul.bf16.vlgmr.msra.gmra.mxu0 %v4179_v44  ;;  %v6058_v31 = vld [vmem:[%s7917_s1 + $0x2f0] sm:$0xff]  ;;  %v6089_v15 = vld [vmem:[%s7917_s1 + $0x3e8] sm:$0xff]  ;;  %v6064_v16 = vld [vmem:[%s7917_s1 + $0x320] sm:$0xff] }
  0x22   :  { %3184 = vmatpush.bf16.msrb.mxu0 %v6003_v32  ;;  %3150 = vmatmul.bf16.vlgmr.msra.gmra.mxu1 %v4183_v46  ;;  %v6033_v32 = vld [vmem:[%s7917_s1 + $0x228] sm:$0xff]  ;;  %v6030_v44 = vld [vmem:[%s7917_s1 + $0x210] sm:$0xff]  ;;  %v6072_v17 = vld [vmem:[%s7917_s1 + $0x360] sm:$0xff] }
  0x23   :  { %3198 = vmatpush.bf16.msrb.mxu1 %v6011_v33  ;;  %3164 = vmatmul.bf16.vlgmr.msra.gmra.mxu2 %v4187_v45  ;;  %v6041_v33 = vld [vmem:[%s7917_s1 + $0x268] sm:$0xff]  ;;  %v6038_v45 = vld [vmem:[%s7917_s1 + $0x250] sm:$0xff]  ;;  %v6080_v18 = vld [vmem:[%s7917_s1 + $0x3a0] sm:$0xff] }
  0x24   :  { %3212 = vmatpush.bf16.msrb.mxu2 %v6019_v42  ;;  %3178 = vmatmul.bf16.vlgmr.msra.gmra.mxu3 %v4191_v47  ;;  %v6047_v42 = vld [vmem:[%s7917_s1 + $0x298] sm:$0xff]  ;;  %v6046_v46 = vld [vmem:[%s7917_s1 + $0x290] sm:$0xff]  ;;  %v6088_v19 = vld [vmem:[%s7917_s1 + $0x3e0] sm:$0xff] }
  0x25   :  { %3226 = vmatpush.bf16.msrb.mxu3 %v6027_v43  ;;  %v6055_v43 = vld [vmem:[%s7917_s1 + $0x2d8] sm:$0xff]  ;;  %v6054_v47 = vld [vmem:[%s7917_s1 + $0x2d0] sm:$0xff] }
  0x26   :  { %3185 = vmatpush.bf16.msrb.mxu0 %v6002_v48  ;;  %v6029_v48 = vld [vmem:[%s7917_s1 + $0x208] sm:$0xff]  ;;  %v6063_v20 = vld [vmem:[%s7917_s1 + $0x318] sm:$0xff] }
  0x27   :  { %3199 = vmatpush.bf16.msrb.mxu1 %v6010_v49  ;;  %v6037_v49 = vld [vmem:[%s7917_s1 + $0x248] sm:$0xff]  ;;  %v6071_v21 = vld [vmem:[%s7917_s1 + $0x358] sm:$0xff] }
  0x28   :  { %3213 = vmatpush.bf16.msrb.mxu2 %v6018_v50  ;;  %v6045_v50 = vld [vmem:[%s7917_s1 + $0x288] sm:$0xff] }
  0x29   :  { %3227 = vmatpush.bf16.msrb.mxu3 %v6026_v51  ;;  %v6053_v51 = vld [vmem:[%s7917_s1 + $0x2c8] sm:$0xff] }
  0x2a   :  { %3186 = vmatpush.bf16.msrb.mxu0 %v6001_v52  ;;  %v6028_v52 = vld [vmem:[%s7917_s1 + $0x200] sm:$0xff] }
  0x2b   :  { %3200 = vmatpush.bf16.msrb.mxu1 %v6009_v53  ;;  %v6036_v53 = vld [vmem:[%s7917_s1 + $0x240] sm:$0xff] }
  0x2c   :  { %3214 = vmatpush.bf16.msrb.mxu2 %v6017_v54  ;;  %v6044_v54 = vld [vmem:[%s7917_s1 + $0x280] sm:$0xff] }
  0x2d   :  { %3228 = vmatpush.bf16.msrb.mxu3 %v6025_v55  ;;  %v6052_v55 = vld [vmem:[%s7917_s1 + $0x2c0] sm:$0xff] }
  0x2e   :  { %3187 = vmatpush.bf16.msrb.mxu0 %v6000_v56  ;;  %v6067_v56 = vld [vmem:[%s7917_s1 + $0x338] sm:$0xff] }
  0x2f   :  { %3201 = vmatpush.bf16.msrb.mxu1 %v6008_v57  ;;  %v6075_v57 = vld [vmem:[%s7917_s1 + $0x378] sm:$0xff] }
  0x30   :  { %3215 = vmatpush.bf16.msrb.mxu2 %v6016_v58  ;;  %v4210_v58 = vld [vmem:[%s7918_s0 + $0x20] sm:$0xf] }
  0x31   :  { %3229 = vmatpush.bf16.msrb.mxu3 %v6024_v59  ;;  %v5946_v59 = vld [vmem:[%s7918_s0 + $0xcc] sm:$0xf0] }
  0x32   :  { %3188 = vmatpush.bf16.msrb.mxu0 %v5999_v60  ;;  %v4218_v60 = vld [vmem:[%s7918_s0 + $0x28] sm:$0xf] }
  0x33   :  { %3202 = vmatpush.bf16.msrb.mxu1 %v6007_v61  ;;  %v5947_v61 = vld [vmem:[%s7918_s0 + $0xd4] sm:$0xf0] }
  0x34   :  { %3216 = vmatpush.bf16.msrb.mxu2 %v6015_v62  ;;  %v5924_v62 = vld [vmem:[%s7918_s0 + $0x24] sm:$0xf] }
  0x35   :  { %3230 = vmatpush.bf16.msrb.mxu3 %v6023_v63  ;;  %v4212_v63 = vld [vmem:[%s7918_s0 + $0xd0] sm:$0xf0] }
  0x36   :  { %3189 = vmatpush.bf16.msrb.mxu0 %v5998_v0  ;;  %v5925_v0 = vld [vmem:[%s7918_s0 + $0x2c] sm:$0xf] }
  0x37   :  { %3203 = vmatpush.bf16.msrb.mxu1 %v6006_v1  ;;  %v4220_v1 = vld [vmem:[%s7918_s0 + $0xd8] sm:$0xf0] }
  0x38   :  { %3217 = vmatpush.bf16.msrb.mxu2 %v6014_v2  ;;  %v6083_v2 = vld [vmem:[%s7917_s1 + $0x3b8] sm:$0xff] }
  0x39   :  { %3231 = vmatpush.bf16.msrb.mxu3 %v6022_v3  ;;  %v6091_v3 = vld [vmem:[%s7917_s1 + $0x3f8] sm:$0xff] }
  0x3a   :  { %3190 = vmatpush.bf16.msrb.mxu0 %v5997_v4  ;;  %v4211_v4 = vor.u32 %v5946_v59, %v4210_v58  ;;  %v6113_v58 = vld [vmem:[%s7917_s1 + $0x4a8] sm:$0xff] }
  0x3b   :  { %3204 = vmatpush.bf16.msrb.mxu1 %v6005_v5  ;;  %v4219_v5 = vor.u32 %v5947_v61, %v4218_v60  ;;  %v6121_v59 = vld [vmem:[%s7917_s1 + $0x4e8] sm:$0xff]  ;;  %v6096_v60 = vld [vmem:[%s7917_s1 + $0x420] sm:$0xff] }
  0x3c   :  { %3218 = vmatpush.bf16.msrb.mxu2 %v6013_v6  ;;  %v4215_v6 = vor.u32 %v5924_v62, %v4212_v63  ;;  %v6104_v61 = vld [vmem:[%s7917_s1 + $0x460] sm:$0xff] }
  0x3d   :  { %3232 = vmatpush.bf16.msrb.mxu3 %v6021_v7  ;;  %v4223_v7 = vor.u32 %v5925_v0, %v4220_v1  ;;  %v6112_v62 = vld [vmem:[%s7917_s1 + $0x4a0] sm:$0xff]  ;;  %v6095_v0 = vld [vmem:[%s7917_s1 + $0x418] sm:$0xff] }
  0x3e   :  { %3191 = vmatpush.bf16.msrb.mxu0 %v5996_v8  ;;  %v6066_v8 = vld [vmem:[%s7917_s1 + $0x330] sm:$0xff]  ;;  %v6120_v63 = vld [vmem:[%s7917_s1 + $0x4e0] sm:$0xff]  ;;  %v6103_v1 = vld [vmem:[%s7917_s1 + $0x458] sm:$0xff] }
  0x3f   :  { %3205 = vmatpush.bf16.msrb.mxu1 %v6004_v9  ;;  %v6074_v9 = vld [vmem:[%s7917_s1 + $0x370] sm:$0xff] }
  0x40   :  { %3219 = vmatpush.bf16.msrb.mxu2 %v6012_v10  ;;  %v6082_v10 = vld [vmem:[%s7917_s1 + $0x3b0] sm:$0xff] }
  0x41   :  { %3233 = vmatpush.bf16.msrb.mxu3 %v6020_v11  ;;  %3192 = vmatmul.bf16.vlgmr.msrb.gmra.mxu0 %v4195_v24  ;;  %v6090_v11 = vld [vmem:[%s7917_s1 + $0x3f0] sm:$0xff] }
  0x42   :  { %3240 = vmatpush.bf16.msra.mxu0 %v6035_v12  ;;  %3206 = vmatmul.bf16.vlgmr.msrb.gmra.mxu1 %v4199_v26  ;;  %v6065_v12 = vld [vmem:[%s7917_s1 + $0x328] sm:$0xff]  ;;  %v6062_v24 = vld [vmem:[%s7917_s1 + $0x310] sm:$0xff] }
  0x43   :  { %3254 = vmatpush.bf16.msra.mxu1 %v6043_v13  ;;  %3220 = vmatmul.bf16.vlgmr.msrb.gmra.mxu2 %v4203_v25  ;;  %v6073_v13 = vld [vmem:[%s7917_s1 + $0x368] sm:$0xff]  ;;  %v6070_v25 = vld [vmem:[%s7917_s1 + $0x350] sm:$0xff] }
  0x44   :  { %3268 = vmatpush.bf16.msra.mxu2 %v6051_v22  ;;  %3234 = vmatmul.bf16.vlgmr.msrb.gmra.mxu3 %v4207_v27  ;;  %v6079_v22 = vld [vmem:[%s7917_s1 + $0x398] sm:$0xff]  ;;  %v6078_v26 = vld [vmem:[%s7917_s1 + $0x390] sm:$0xff] }
  0x45   :  { %3282 = vmatpush.bf16.msra.mxu3 %v6059_v23  ;;  %v6087_v23 = vld [vmem:[%s7917_s1 + $0x3d8] sm:$0xff]  ;;  %v6086_v27 = vld [vmem:[%s7917_s1 + $0x3d0] sm:$0xff] }
  0x46   :  { %3241 = vmatpush.bf16.msra.mxu0 %v6034_v28  ;;  %v6061_v28 = vld [vmem:[%s7917_s1 + $0x308] sm:$0xff] }
  0x47   :  { %3255 = vmatpush.bf16.msra.mxu1 %v6042_v29  ;;  %v6069_v29 = vld [vmem:[%s7917_s1 + $0x348] sm:$0xff] }
  0x48   :  { %3269 = vmatpush.bf16.msra.mxu2 %v6050_v30  ;;  %v6077_v30 = vld [vmem:[%s7917_s1 + $0x388] sm:$0xff] }
  0x49   :  { %3283 = vmatpush.bf16.msra.mxu3 %v6058_v31  ;;  %v6085_v31 = vld [vmem:[%s7917_s1 + $0x3c8] sm:$0xff] }
  0x4a   :  { %3242 = vmatpush.bf16.msra.mxu0 %v6033_v32  ;;  %v6060_v32 = vld [vmem:[%s7917_s1 + $0x300] sm:$0xff] }
  0x4b   :  { %3256 = vmatpush.bf16.msra.mxu1 %v6041_v33  ;;  %v6068_v33 = vld [vmem:[%s7917_s1 + $0x340] sm:$0xff] }
  0x4c   :  { %3270 = vmatpush.bf16.msra.mxu2 %v6049_v34  ;;  %v6076_v34 = vld [vmem:[%s7917_s1 + $0x380] sm:$0xff] }
  0x4d   :  { %3284 = vmatpush.bf16.msra.mxu3 %v6057_v35  ;;  %v6084_v35 = vld [vmem:[%s7917_s1 + $0x3c0] sm:$0xff] }
  0x4e   :  { %3243 = vmatpush.bf16.msra.mxu0 %v6032_v36  ;;  %v6099_v36 = vld [vmem:[%s7917_s1 + $0x438] sm:$0xff] }
  0x4f   :  { %3257 = vmatpush.bf16.msra.mxu1 %v6040_v37  ;;  %v6107_v37 = vld [vmem:[%s7917_s1 + $0x478] sm:$0xff] }
  0x50   :  { %3271 = vmatpush.bf16.msra.mxu2 %v6048_v38  ;;  %v4226_v38 = vld [vmem:[%s7918_s0 + $0x30] sm:$0xf] }
  0x51   :  { %3285 = vmatpush.bf16.msra.mxu3 %v6056_v39  ;;  %v5948_v39 = vld [vmem:[%s7918_s0 + $0xdc] sm:$0xf0] }
  0x52   :  { %3244 = vmatpush.bf16.msra.mxu0 %v6031_v40  ;;  %v4234_v40 = vld [vmem:[%s7918_s0 + $0x38] sm:$0xf] }
  0x53   :  { %3258 = vmatpush.bf16.msra.mxu1 %v6039_v41  ;;  %v5949_v41 = vld [vmem:[%s7918_s0 + $0xe4] sm:$0xf0] }
  0x54   :  { %3272 = vmatpush.bf16.msra.mxu2 %v6047_v42  ;;  %v5926_v42 = vld [vmem:[%s7918_s0 + $0x34] sm:$0xf] }
  0x55   :  { %3286 = vmatpush.bf16.msra.mxu3 %v6055_v43  ;;  %v4228_v43 = vld [vmem:[%s7918_s0 + $0xe0] sm:$0xf0] }
  0x56   :  { %3245 = vmatpush.bf16.msra.mxu0 %v6030_v44  ;;  %v5927_v44 = vld [vmem:[%s7918_s0 + $0x3c] sm:$0xf] }
  0x57   :  { %3259 = vmatpush.bf16.msra.mxu1 %v6038_v45  ;;  %v4236_v45 = vld [vmem:[%s7918_s0 + $0xe8] sm:$0xf0] }
  0x58   :  { %3273 = vmatpush.bf16.msra.mxu2 %v6046_v46  ;;  %v6115_v46 = vld [vmem:[%s7917_s1 + $0x4b8] sm:$0xff] }
  0x59   :  { %3287 = vmatpush.bf16.msra.mxu3 %v6054_v47  ;;  %v6123_v47 = vld [vmem:[%s7917_s1 + $0x4f8] sm:$0xff] }
  0x5a   :  { %3246 = vmatpush.bf16.msra.mxu0 %v6029_v48  ;;  %v4227_v48 = vor.u32 %v5948_v39, %v4226_v38  ;;  %v6356_v38 = vld [vmem:[%s7919_s2] ss:$0 sm:$0xff]  ;;  %v6145_v39 = vld [vmem:[%s7917_s1 + $0x5a8] sm:$0xff] }
  0x5b   :  { %3260 = vmatpush.bf16.msra.mxu1 %v6037_v49  ;;  %v4235_v49 = vor.u32 %v5949_v41, %v4234_v40  ;;  %v6153_v40 = vld [vmem:[%s7917_s1 + $0x5e8] sm:$0xff] }
  0x5c   :  { %3274 = vmatpush.bf16.msra.mxu2 %v6045_v50  ;;  %v4231_v50 = vor.u32 %v5926_v42, %v4228_v43  ;;  %v6128_v42 = vld [vmem:[%s7917_s1 + $0x520] sm:$0xff] }
  0x5d   :  { %3288 = vmatpush.bf16.msra.mxu3 %v6053_v51  ;;  %v4239_v51 = vor.u32 %v5927_v44, %v4236_v45  ;;  %v6136_v43 = vld [vmem:[%s7917_s1 + $0x560] sm:$0xff] }
  0x5e   :  { %3247 = vmatpush.bf16.msra.mxu0 %v6028_v52  ;;  %v6098_v52 = vld [vmem:[%s7917_s1 + $0x430] sm:$0xff] }
  0x5f   :  { %3261 = vmatpush.bf16.msra.mxu1 %v6036_v53  ;;  %v6106_v53 = vld [vmem:[%s7917_s1 + $0x470] sm:$0xff] }
  0x60   :  { %3275 = vmatpush.bf16.msra.mxu2 %v6044_v54  ;;  %v6114_v54 = vld [vmem:[%s7917_s1 + $0x4b0] sm:$0xff] }
  0x61   :  { %3289 = vmatpush.bf16.msra.mxu3 %v6052_v55  ;;  %3248 = vmatmul.bf16.vlgmr.msra.gmra.mxu0 %v4211_v4  ;;  %v6122_v55 = vld [vmem:[%s7917_s1 + $0x4f0] sm:$0xff] }
  0x62   :  { %3296 = vmatpush.bf16.msrb.mxu0 %v6067_v56  ;;  %3262 = vmatmul.bf16.vlgmr.msra.gmra.mxu1 %v4215_v6  ;;  %v6097_v56 = vld [vmem:[%s7917_s1 + $0x428] sm:$0xff]  ;;  %v6094_v4 = vld [vmem:[%s7917_s1 + $0x410] sm:$0xff] }
  0x63   :  { %3310 = vmatpush.bf16.msrb.mxu1 %v6075_v57  ;;  %3276 = vmatmul.bf16.vlgmr.msra.gmra.mxu2 %v4219_v5  ;;  %v6105_v57 = vld [vmem:[%s7917_s1 + $0x468] sm:$0xff]  ;;  %v6102_v5 = vld [vmem:[%s7917_s1 + $0x450] sm:$0xff] }
  0x64   :  { %3324 = vmatpush.bf16.msrb.mxu2 %v6083_v2  ;;  %3290 = vmatmul.bf16.vlgmr.msra.gmra.mxu3 %v4223_v7  ;;  %v6111_v2 = vld [vmem:[%s7917_s1 + $0x498] sm:$0xff]  ;;  %v6110_v6 = vld [vmem:[%s7917_s1 + $0x490] sm:$0xff] }
  0x65   :  { %3338 = vmatpush.bf16.msrb.mxu3 %v6091_v3  ;;  %v6119_v3 = vld [vmem:[%s7917_s1 + $0x4d8] sm:$0xff]  ;;  %v6118_v7 = vld [vmem:[%s7917_s1 + $0x4d0] sm:$0xff] }
  0x66   :  { %3297 = vmatpush.bf16.msrb.mxu0 %v6066_v8  ;;  %v6093_v8 = vld [vmem:[%s7917_s1 + $0x408] sm:$0xff] }
  0x67   :  { %3311 = vmatpush.bf16.msrb.mxu1 %v6074_v9  ;;  %v6101_v9 = vld [vmem:[%s7917_s1 + $0x448] sm:$0xff] }
  0x68   :  { %3325 = vmatpush.bf16.msrb.mxu2 %v6082_v10  ;;  %v6109_v10 = vld [vmem:[%s7917_s1 + $0x488] sm:$0xff] }
  0x69   :  { %3339 = vmatpush.bf16.msrb.mxu3 %v6090_v11  ;;  %v6117_v11 = vld [vmem:[%s7917_s1 + $0x4c8] sm:$0xff] }
  0x6a   :  { %3298 = vmatpush.bf16.msrb.mxu0 %v6065_v12  ;;  %v6092_v12 = vld [vmem:[%s7917_s1 + $0x400] sm:$0xff] }
  0x6b   :  { %3312 = vmatpush.bf16.msrb.mxu1 %v6073_v13  ;;  %v6100_v13 = vld [vmem:[%s7917_s1 + $0x440] sm:$0xff] }
  0x6c   :  { %3326 = vmatpush.bf16.msrb.mxu2 %v6081_v14  ;;  %v6108_v14 = vld [vmem:[%s7917_s1 + $0x480] sm:$0xff] }
  0x6d   :  { %3340 = vmatpush.bf16.msrb.mxu3 %v6089_v15  ;;  %v6116_v15 = vld [vmem:[%s7917_s1 + $0x4c0] sm:$0xff] }
  0x6e   :  { %3299 = vmatpush.bf16.msrb.mxu0 %v6064_v16  ;;  %v6131_v16 = vld [vmem:[%s7917_s1 + $0x538] sm:$0xff] }
  0x6f   :  { %3313 = vmatpush.bf16.msrb.mxu1 %v6072_v17  ;;  %v6139_v17 = vld [vmem:[%s7917_s1 + $0x578] sm:$0xff] }
  0x70   :  { %3327 = vmatpush.bf16.msrb.mxu2 %v6080_v18  ;;  %v4242_v18 = vld [vmem:[%s7918_s0 + $0x40] sm:$0xf] }
  0x71   :  { %3341 = vmatpush.bf16.msrb.mxu3 %v6088_v19  ;;  %v5950_v19 = vld [vmem:[%s7918_s0 + $0xec] sm:$0xf0] }
  0x72   :  { %3300 = vmatpush.bf16.msrb.mxu0 %v6063_v20  ;;  %v4250_v20 = vld [vmem:[%s7918_s0 + $0x48] sm:$0xf] }
  0x73   :  { %3314 = vmatpush.bf16.msrb.mxu1 %v6071_v21  ;;  %v5951_v21 = vld [vmem:[%s7918_s0 + $0xf4] sm:$0xf0] }
  0x74   :  { %3328 = vmatpush.bf16.msrb.mxu2 %v6079_v22  ;;  %v5928_v22 = vld [vmem:[%s7918_s0 + $0x44] sm:$0xf] }
  0x75   :  { %3342 = vmatpush.bf16.msrb.mxu3 %v6087_v23  ;;  %v4244_v23 = vld [vmem:[%s7918_s0 + $0xf0] sm:$0xf0] }
  0x76   :  { %3301 = vmatpush.bf16.msrb.mxu0 %v6062_v24  ;;  %v5929_v24 = vld [vmem:[%s7918_s0 + $0x4c] sm:$0xf] }
  0x77   :  { %3315 = vmatpush.bf16.msrb.mxu1 %v6070_v25  ;;  %v4252_v25 = vld [vmem:[%s7918_s0 + $0xf8] sm:$0xf0] }
  0x78   :  { %3329 = vmatpush.bf16.msrb.mxu2 %v6078_v26  ;;  %v6147_v26 = vld [vmem:[%s7917_s1 + $0x5b8] sm:$0xff] }
  0x79   :  { %3343 = vmatpush.bf16.msrb.mxu3 %v6086_v27  ;;  %v6155_v27 = vld [vmem:[%s7917_s1 + $0x5f8] sm:$0xff] }
  0x7a   :  { %3302 = vmatpush.bf16.msrb.mxu0 %v6061_v28  ;;  %v4243_v28 = vor.u32 %v5950_v19, %v4242_v18  ;;  %v5953_v18 = vld [vmem:[%s7918_s0 + $0x104] sm:$0xf0]  ;;  %v5930_v19 = vld [vmem:[%s7918_s0 + $0x54] sm:$0xf] }
  0x7b   :  { %3316 = vmatpush.bf16.msrb.mxu1 %v6069_v29  ;;  %v4251_v29 = vor.u32 %v5951_v21, %v4250_v20  ;;  %v4260_v20 = vld [vmem:[%s7918_s0 + $0x100] sm:$0xf0]  ;;  %v5931_v21 = vld [vmem:[%s7918_s0 + $0x5c] sm:$0xf] }
  0x7c   :  { %3330 = vmatpush.bf16.msrb.mxu2 %v6077_v30  ;;  %v4247_v30 = vor.u32 %v5928_v22, %v4244_v23  ;;  %v4268_v22 = vld [vmem:[%s7918_s0 + $0x108] sm:$0xf0]  ;;  %v6179_v23 = vld [vmem:[%s7917_s1 + $0x6b8] sm:$0xff] }
  0x7d   :  { %3344 = vmatpush.bf16.msrb.mxu3 %v6085_v31  ;;  %v4255_v31 = vor.u32 %v5929_v24, %v4252_v25  ;;  %v6187_v24 = vld [vmem:[%s7917_s1 + $0x6f8] sm:$0xff] }
  0x7e   :  { %3303 = vmatpush.bf16.msrb.mxu0 %v6060_v32  ;;  %v6130_v32 = vld [vmem:[%s7917_s1 + $0x530] sm:$0xff] }
  0x7f   :  { %3317 = vmatpush.bf16.msrb.mxu1 %v6068_v33  ;;  %v6138_v33 = vld [vmem:[%s7917_s1 + $0x570] sm:$0xff] }
  0x80   :  { %3331 = vmatpush.bf16.msrb.mxu2 %v6076_v34  ;;  %v6146_v34 = vld [vmem:[%s7917_s1 + $0x5b0] sm:$0xff] }
  0x81   :  { %3345 = vmatpush.bf16.msrb.mxu3 %v6084_v35  ;;  %3304 = vmatmul.bf16.vlgmr.msrb.gmra.mxu0 %v4227_v48  ;;  %v6154_v35 = vld [vmem:[%s7917_s1 + $0x5f0] sm:$0xff] }
  0x82   :  { %3352 = vmatpush.bf16.msra.mxu0 %v6099_v36  ;;  %3318 = vmatmul.bf16.vlgmr.msrb.gmra.mxu1 %v4231_v50  ;;  %v6129_v36 = vld [vmem:[%s7917_s1 + $0x528] sm:$0xff]  ;;  %v6135_v50 = vld [vmem:[%s7917_s1 + $0x558] sm:$0xff] }
  0x83   :  { %3366 = vmatpush.bf16.msra.mxu1 %v6107_v37  ;;  %3332 = vmatmul.bf16.vlgmr.msrb.gmra.mxu2 %v4235_v49  ;;  %v6137_v37 = vld [vmem:[%s7917_s1 + $0x568] sm:$0xff]  ;;  %v6127_v49 = vld [vmem:[%s7917_s1 + $0x518] sm:$0xff] }
  0x84   :  { %3380 = vmatpush.bf16.msra.mxu2 %v6115_v46  ;;  %3346 = vmatmul.bf16.vlgmr.msrb.gmra.mxu3 %v4239_v51  ;;  %v6144_v46 = vld [vmem:[%s7917_s1 + $0x5a0] sm:$0xff]  ;;  %v6143_v51 = vld [vmem:[%s7917_s1 + $0x598] sm:$0xff] }
  0x85   :  { %3394 = vmatpush.bf16.msra.mxu3 %v6123_v47  ;;  %v6152_v47 = vld [vmem:[%s7917_s1 + $0x5e0] sm:$0xff] }
  0x86   :  { %3353 = vmatpush.bf16.msra.mxu0 %v6098_v52  ;;  %v6151_v52 = vld [vmem:[%s7917_s1 + $0x5d8] sm:$0xff] }
  0x87   :  { %3367 = vmatpush.bf16.msra.mxu1 %v6106_v53 }
  0x88   :  { %3381 = vmatpush.bf16.msra.mxu2 %v6114_v54 }
  0x89   :  { %3395 = vmatpush.bf16.msra.mxu3 %v6122_v55 }
  0x8a   :  { %3354 = vmatpush.bf16.msra.mxu0 %v6097_v56 }
  0x8b   :  { %3368 = vmatpush.bf16.msra.mxu1 %v6105_v57  ;;  %v6126_v57 = vld [vmem:[%s7917_s1 + $0x510] sm:$0xff] }
  0x8c   :  { %3382 = vmatpush.bf16.msra.mxu2 %v6113_v58  ;;  %v6134_v58 = vld [vmem:[%s7917_s1 + $0x550] sm:$0xff] }
  0x8d   :  { %3396 = vmatpush.bf16.msra.mxu3 %v6121_v59 }
  0x8e   :  { %3355 = vmatpush.bf16.msra.mxu0 %v6096_v60 }
  0x8f   :  { %3369 = vmatpush.bf16.msra.mxu1 %v6104_v61  ;;  %v6142_v61 = vld [vmem:[%s7917_s1 + $0x590] sm:$0xff] }
  0x90   :  { %3383 = vmatpush.bf16.msra.mxu2 %v6112_v62  ;;  %v6150_v62 = vld [vmem:[%s7917_s1 + $0x5d0] sm:$0xff] }
  0x91   :  { %3397 = vmatpush.bf16.msra.mxu3 %v6120_v63 }
  0x92   :  { %3356 = vmatpush.bf16.msra.mxu0 %v6095_v0 }
  0x93   :  { %3370 = vmatpush.bf16.msra.mxu1 %v6103_v1  ;;  %v6125_v1 = vld [vmem:[%s7917_s1 + $0x508] sm:$0xff] }
  0x94   :  { %3384 = vmatpush.bf16.msra.mxu2 %v6111_v2  ;;  %v6133_v2 = vld [vmem:[%s7917_s1 + $0x548] sm:$0xff] }
  0x95   :  { %3398 = vmatpush.bf16.msra.mxu3 %v6119_v3  ;;  %v6141_v3 = vld [vmem:[%s7917_s1 + $0x588] sm:$0xff] }
  0x96   :  { %3357 = vmatpush.bf16.msra.mxu0 %v6094_v4  ;;  %v6149_v4 = vld [vmem:[%s7917_s1 + $0x5c8] sm:$0xff] }
  0x97   :  { %3371 = vmatpush.bf16.msra.mxu1 %v6102_v5 }
  0x98   :  { %3385 = vmatpush.bf16.msra.mxu2 %v6110_v6  ;;  %v6124_v6 = vld [vmem:[%s7917_s1 + $0x500] sm:$0xff] }
  0x99   :  { %3399 = vmatpush.bf16.msra.mxu3 %v6118_v7 }
  0x9a   :  { %3358 = vmatpush.bf16.msra.mxu0 %v6093_v8  ;;  %v6132_v8 = vld [vmem:[%s7917_s1 + $0x540] sm:$0xff] }
  0x9b   :  { %3372 = vmatpush.bf16.msra.mxu1 %v6101_v9  ;;  %v6140_v9 = vld [vmem:[%s7917_s1 + $0x580] sm:$0xff] }
  0x9c   :  { %3386 = vmatpush.bf16.msra.mxu2 %v6109_v10  ;;  %v6148_v10 = vld [vmem:[%s7917_s1 + $0x5c0] sm:$0xff] }
  0x9d   :  { %3400 = vmatpush.bf16.msra.mxu3 %v6117_v11 }
  0x9e   :  { %3359 = vmatpush.bf16.msra.mxu0 %v6092_v12  ;;  %v3137_v41 = vpop.f32.mrf.mxu0  ;;  %v6163_v12 = vld [vmem:[%s7917_s1 + $0x638] sm:$0xff] }
  0x9f   :  { %3373 = vmatpush.bf16.msra.mxu1 %v6100_v13  ;;  %v3138_v44 = vadd.f32 %v6356_v38, %v3137_v41  ;;  %v3151_v45 = vpop.f32.mrf.mxu1  ;;  %v6171_v13 = vld [vmem:[%s7917_s1 + $0x678] sm:$0xff] }
  0xa0   :  { %3387 = vmatpush.bf16.msra.mxu2 %v6108_v14  ;;  %v4258_v14 = vld [vmem:[%s7918_s0 + $0x50] sm:$0xf] }
  0xa1   :  { %3401 = vmatpush.bf16.msra.mxu3 %v6116_v15  ;;  %3360 = vmatmul.bf16.vlgmr.msra.gmra.mxu0 %v4243_v28  ;;  %v3152_v48 = vadd.f32 %v3151_v45, %v3138_v44  ;;  %v5952_v15 = vld [vmem:[%s7918_s0 + $0xfc] sm:$0xf0]  ;;  %v4271_v28 = vor.u32 %v5931_v21, %v4268_v22  ;;  %v6159_v45 = vld [vmem:[%s7917_s1 + $0x618] sm:$0xff] }
  0xa2   :  { %3408 = vmatpush.bf16.msrb.mxu0 %v6131_v16  ;;  %3374 = vmatmul.bf16.vlgmr.msra.gmra.mxu1 %v4247_v30  ;;  %v4259_v25 = vor.u32 %v5952_v15, %v4258_v14  ;;  %v6170_v30 = vld [vmem:[%s7917_s1 + $0x670] sm:$0xff]  ;;  %v5955_v14 = vld [vmem:[%s7918_s0 + $0x114] sm:$0xf0]  ;;  %v5932_v15 = vld [vmem:[%s7918_s0 + $0x64] sm:$0xf] }
  0xa3   :  { %3422 = vmatpush.bf16.msrb.mxu1 %v6139_v17  ;;  %3388 = vmatmul.bf16.vlgmr.msra.gmra.mxu2 %v4251_v29  ;;  %v4266_v17 = vld [vmem:[%s7918_s0 + $0x58] sm:$0xf]  ;;  %v6162_v29 = vld [vmem:[%s7917_s1 + $0x630] sm:$0xff] }
  0xa4   :  { %3436 = vmatpush.bf16.msrb.mxu2 %v6147_v26  ;;  %3402 = vmatmul.bf16.vlgmr.msra.gmra.mxu3 %v4255_v31  ;;  %v4267_v26 = vor.u32 %v5953_v18, %v4266_v17  ;;  %v6178_v31 = vld [vmem:[%s7917_s1 + $0x6b0] sm:$0xff]  ;;  %v5933_v17 = vld [vmem:[%s7918_s0 + $0x6c] sm:$0xf]  ;;  %v4284_v18 = vld [vmem:[%s7918_s0 + $0x118] sm:$0xf0] }
  0xa5   :  { %3450 = vmatpush.bf16.msrb.mxu3 %v6155_v27  ;;  %v4263_v27 = vor.u32 %v5930_v19, %v4260_v20  ;;  %v6211_v19 = vld [vmem:[%s7917_s1 + $0x7b8] sm:$0xff] }
  0xa6   :  { %3409 = vmatpush.bf16.msrb.mxu0 %v6130_v32  ;;  %v3165_v53 = vpop.f32.mrf.mxu2  ;;  %v3139_v56 = vpop.f32.mrf.mxu0  ;;  %v6186_v32 = vld [vmem:[%s7917_s1 + $0x6f0] sm:$0xff]  ;;  %v6219_v20 = vld [vmem:[%s7917_s1 + $0x7f8] sm:$0xff] }
  0xa7   :  { %3423 = vmatpush.bf16.msrb.mxu1 %v6138_v33  ;;  %v3166_v54 = vadd.f32 %v3165_v53, %v3152_v48  ;;  %v3179_v55 = vpop.f32.mrf.mxu3  ;;  %v3140_v59 = vadd.f32 %v6356_v38, %v3139_v56  ;;  %v3153_v63 = vpop.f32.mrf.mxu1  ;;  %v6161_v33 = vld [vmem:[%s7917_s1 + $0x628] sm:$0xff]  ;;  %v6183_v48 = vld [vmem:[%s7917_s1 + $0x6d8] sm:$0xff]  ;;  %v6166_v56 = vld [vmem:[%s7917_s1 + $0x650] sm:$0xff] }
  0xa8   :  { %3437 = vmatpush.bf16.msrb.mxu2 %v6146_v34  ;;  %v6169_v34 = vld [vmem:[%s7917_s1 + $0x668] sm:$0xff] }
  0xa9   :  { %3451 = vmatpush.bf16.msrb.mxu3 %v6154_v35  ;;  %v7101_v60 = vadd.f32 %v3179_v55, %v3166_v54  ;;  %v3154_v0 = vadd.f32 %v3153_v63, %v3140_v59  ;;  %v6177_v35 = vld [vmem:[%s7917_s1 + $0x6a8] sm:$0xff]  ;;  %v6158_v55 = vld [vmem:[%s7917_s1 + $0x610] sm:$0xff] }
  0xaa   :  { %3410 = vmatpush.bf16.msrb.mxu0 %v6129_v36  ;;  %v6185_v36 = vld [vmem:[%s7917_s1 + $0x6e8] sm:$0xff]  ;;  %v6182_v59 = vld [vmem:[%s7917_s1 + $0x6d0] sm:$0xff] }
  0xab   :  { %3424 = vmatpush.bf16.msrb.mxu1 %v6137_v37  ;;  %v6173_v63 = vld [vmem:[%s7917_s1 + $0x688] sm:$0xff] }
  0xac   :  { %3438 = vmatpush.bf16.msrb.mxu2 %v6145_v39  ;;  %v6160_v39 = vld [vmem:[%s7917_s1 + $0x620] sm:$0xff] }
  0xad   :  { %3452 = vmatpush.bf16.msrb.mxu3 %v6153_v40  ;;  %v6168_v40 = vld [vmem:[%s7917_s1 + $0x660] sm:$0xff] }
  0xae   :  { %3411 = vmatpush.bf16.msrb.mxu0 %v6128_v42  ;;  %v3167_v5 = vpop.f32.mrf.mxu2  ;;  %v6176_v42 = vld [vmem:[%s7917_s1 + $0x6a0] sm:$0xff] }
  0xaf   :  { %3425 = vmatpush.bf16.msrb.mxu1 %v6136_v43  ;;  %v3168_v7 = vadd.f32 %v3167_v5, %v3154_v0  ;;  %v3181_v11 = vpop.f32.mrf.mxu3  ;;  %v6184_v43 = vld [vmem:[%s7917_s1 + $0x6e0] sm:$0xff]  ;;  %v6181_v0 = vld [vmem:[%s7917_s1 + $0x6c8] sm:$0xff] }
  0xb0   :  { %3439 = vmatpush.bf16.msrb.mxu2 %v6144_v46  ;;  %v6167_v46 = vld [vmem:[%s7917_s1 + $0x658] sm:$0xff]  ;;  %v6164_v5 = vld [vmem:[%s7917_s1 + $0x640] sm:$0xff] }
  0xb1   :  { %3453 = vmatpush.bf16.msrb.mxu3 %v6152_v47  ;;  %v7145_v16 = vadd.f32 %v3181_v11, %v3168_v7  ;;  %v6175_v47 = vld [vmem:[%s7917_s1 + $0x698] sm:$0xff]  ;;  %v6180_v7 = vld [vmem:[%s7917_s1 + $0x6c0] sm:$0xff] }
  0xb2   :  { %3412 = vmatpush.bf16.msrb.mxu0 %v6127_v49  ;;  %v4274_v11 = vld [vmem:[%s7918_s0 + $0x60] sm:$0xf] }
  0xb3   :  { %3426 = vmatpush.bf16.msrb.mxu1 %v6135_v50 }
  0xb4   :  { %3440 = vmatpush.bf16.msrb.mxu2 %v6143_v51 }
  0xb5   :  { %3454 = vmatpush.bf16.msrb.mxu3 %v6151_v52 }
  0xb6   :  { %3413 = vmatpush.bf16.msrb.mxu0 %v6126_v57 }
  0xb7   :  { %3427 = vmatpush.bf16.msrb.mxu1 %v6134_v58  ;;  %v6174_v58 = vld [vmem:[%s7917_s1 + $0x690] sm:$0xff] }
  0xb8   :  { %3441 = vmatpush.bf16.msrb.mxu2 %v6142_v61  ;;  %v6157_v61 = vld [vmem:[%s7917_s1 + $0x608] sm:$0xff] }
  0xb9   :  { %3455 = vmatpush.bf16.msrb.mxu3 %v6150_v62  ;;  %v6165_v62 = vld [vmem:[%s7917_s1 + $0x648] sm:$0xff] }
  0xba   :  { %3414 = vmatpush.bf16.msrb.mxu0 %v6125_v1 }
  0xbb   :  { %3428 = vmatpush.bf16.msrb.mxu1 %v6133_v2 }
  0xbc   :  { %3442 = vmatpush.bf16.msrb.mxu2 %v6141_v3 }
  0xbd   :  { %3456 = vmatpush.bf16.msrb.mxu3 %v6149_v4  ;;  %v6156_v4 = vld [vmem:[%s7917_s1 + $0x600] sm:$0xff] }
  0xbe   :  { %3415 = vmatpush.bf16.msrb.mxu0 %v6124_v6  ;;  %v3193_v37 = vpop.f32.mrf.mxu0  ;;  %v6172_v6 = vld [vmem:[%s7917_s1 + $0x680] sm:$0xff] }
  0xbf   :  { %3429 = vmatpush.bf16.msrb.mxu1 %v6132_v8  ;;  %v3194_v38 = vadd.f32 %v3193_v37, %v7101_v60  ;;  %v3207_v41 = vpop.f32.mrf.mxu1 }
  0xc0   :  { %3443 = vmatpush.bf16.msrb.mxu2 %v6140_v9  ;;  %v6195_v9 = vld [vmem:[%s7917_s1 + $0x738] sm:$0xff] }
  0xc1   :  { %3457 = vmatpush.bf16.msrb.mxu3 %v6148_v10  ;;  %3416 = vmatmul.bf16.vlgmr.msrb.gmra.mxu0 %v4259_v25  ;;  %v3208_v44 = vadd.f32 %v3207_v41, %v3194_v38  ;;  %v6203_v10 = vld [vmem:[%s7917_s1 + $0x778] sm:$0xff]  ;;  %v6194_v25 = vld [vmem:[%s7917_s1 + $0x730] sm:$0xff]  ;;  %v6208_v38 = vld [vmem:[%s7917_s1 + $0x7a0] sm:$0xff] }
  0xc2   :  { %3464 = vmatpush.bf16.msra.mxu0 %v6163_v12  ;;  %3430 = vmatmul.bf16.vlgmr.msrb.gmra.mxu1 %v4263_v27  ;;  %v5954_v12 = vld [vmem:[%s7918_s0 + $0x10c] sm:$0xf0]  ;;  %v6191_v41 = vld [vmem:[%s7917_s1 + $0x718] sm:$0xff] }
  0xc3   :  { %3478 = vmatpush.bf16.msra.mxu1 %v6171_v13  ;;  %3444 = vmatmul.bf16.vlgmr.msrb.gmra.mxu2 %v4267_v26  ;;  %v4282_v13 = vld [vmem:[%s7918_s0 + $0x68] sm:$0xf]  ;;  %v4275_v21 = vor.u32 %v5954_v12, %v4274_v11  ;;  %v6202_v26 = vld [vmem:[%s7917_s1 + $0x770] sm:$0xff]  ;;  %v4292_v12 = vld [vmem:[%s7918_s0 + $0x120] sm:$0xf0] }
  0xc4   :  { %3492 = vmatpush.bf16.msra.mxu2 %v6179_v23  ;;  %3458 = vmatmul.bf16.vlgmr.msrb.gmra.mxu3 %v4271_v28  ;;  %v4283_v22 = vor.u32 %v5955_v14, %v4282_v13  ;;  %v6210_v27 = vld [vmem:[%s7917_s1 + $0x7b0] sm:$0xff]  ;;  %v5935_v13 = vld [vmem:[%s7918_s0 + $0x7c] sm:$0xf]  ;;  %v4300_v14 = vld [vmem:[%s7918_s0 + $0x128] sm:$0xf0] }
  0xc5   :  { %3506 = vmatpush.bf16.msra.mxu3 %v6187_v24  ;;  %v4287_v24 = vor.u32 %v5933_v17, %v4284_v18  ;;  %v6218_v28 = vld [vmem:[%s7917_s1 + $0x7f0] sm:$0xff] }
  0xc6   :  { %3465 = vmatpush.bf16.msra.mxu0 %v6162_v29  ;;  %v3221_v49 = vpop.f32.mrf.mxu2  ;;  %v3195_v52 = vpop.f32.mrf.mxu0  ;;  %v6193_v29 = vld [vmem:[%s7917_s1 + $0x728] sm:$0xff]  ;;  %v5934_v11 = vld [vmem:[%s7918_s0 + $0x74] sm:$0xf] }
  0xc7   :  { %3479 = vmatpush.bf16.msra.mxu1 %v6170_v30  ;;  %v3222_v50 = vadd.f32 %v3221_v49, %v3208_v44  ;;  %v3235_v51 = vpop.f32.mrf.mxu3  ;;  %v3196_v53 = vadd.f32 %v3195_v52, %v7145_v16  ;;  %v3209_v57 = vpop.f32.mrf.mxu1  ;;  %v4276_v16 = vld [vmem:[%s7918_s0 + $0x110] sm:$0xf0]  ;;  %v6201_v30 = vld [vmem:[%s7917_s1 + $0x768] sm:$0xff]  ;;  %v6215_v44 = vld [vmem:[%s7917_s1 + $0x7d8] sm:$0xff] }
  0xc8   :  { %3493 = vmatpush.bf16.msra.mxu2 %v6178_v31  ;;  %v4279_v23 = vor.u32 %v5932_v15, %v4276_v16  ;;  %v6209_v31 = vld [vmem:[%s7917_s1 + $0x7a8] sm:$0xff]  ;;  %v6198_v52 = vld [vmem:[%s7917_s1 + $0x750] sm:$0xff]  ;;  %v6243_v15 = vld [vmem:[%s7917_s1 + $0x8b8] sm:$0xff] }
  0xc9   :  { %3507 = vmatpush.bf16.msra.mxu3 %v6186_v32  ;;  %v7221_v54 = vadd.f32 %v3235_v51, %v3222_v50  ;;  %v3210_v60 = vadd.f32 %v3209_v57, %v3196_v53  ;;  %v6217_v32 = vld [vmem:[%s7917_s1 + $0x7e8] sm:$0xff]  ;;  %v6190_v51 = vld [vmem:[%s7917_s1 + $0x710] sm:$0xff]  ;;  %v6251_v16 = vld [vmem:[%s7917_s1 + $0x8f8] sm:$0xff] }
  0xca   :  { %3466 = vmatpush.bf16.msra.mxu0 %v6161_v33  ;;  %v6189_v57 = vld [vmem:[%s7917_s1 + $0x708] sm:$0xff] }
  0xcb   :  { %3480 = vmatpush.bf16.msra.mxu1 %v6169_v34 }
  0xcc   :  { %3494 = vmatpush.bf16.msra.mxu2 %v6177_v35  ;;  %v6192_v35 = vld [vmem:[%s7917_s1 + $0x720] sm:$0xff] }
  0xcd   :  { %3508 = vmatpush.bf16.msra.mxu3 %v6185_v36  ;;  %v6200_v36 = vld [vmem:[%s7917_s1 + $0x760] sm:$0xff] }
  0xce   :  { %3467 = vmatpush.bf16.msra.mxu0 %v6160_v39  ;;  %v3223_v1 = vpop.f32.mrf.mxu2  ;;  %v6216_v39 = vld [vmem:[%s7917_s1 + $0x7e0] sm:$0xff] }
  0xcf   :  { %3481 = vmatpush.bf16.msra.mxu1 %v6168_v40  ;;  %v3224_v2 = vadd.f32 %v3223_v1, %v3210_v60  ;;  %v3237_v3 = vpop.f32.mrf.mxu3  ;;  %v6213_v60 = vld [vmem:[%s7917_s1 + $0x7c8] sm:$0xff]  ;;  %v6196_v1 = vld [vmem:[%s7917_s1 + $0x740] sm:$0xff] }
  0xd0   :  { %3495 = vmatpush.bf16.msra.mxu2 %v6176_v42  ;;  %v6199_v42 = vld [vmem:[%s7917_s1 + $0x758] sm:$0xff] }
  0xd1   :  { %3509 = vmatpush.bf16.msra.mxu3 %v6184_v43  ;;  %v7259_v8 = vadd.f32 %v3237_v3, %v3224_v2  ;;  %v6207_v43 = vld [vmem:[%s7917_s1 + $0x798] sm:$0xff]  ;;  %v6204_v2 = vld [vmem:[%s7917_s1 + $0x780] sm:$0xff] }
  0xd2   :  { %3468 = vmatpush.bf16.msra.mxu0 %v6159_v45  ;;  %v6212_v3 = vld [vmem:[%s7917_s1 + $0x7c0] sm:$0xff] }
  0xd3   :  { %3482 = vmatpush.bf16.msra.mxu1 %v6167_v46 }
  0xd4   :  { %3496 = vmatpush.bf16.msra.mxu2 %v6175_v47 }
  0xd5   :  { %3510 = vmatpush.bf16.msra.mxu3 %v6183_v48 }
  0xd6   :  { %3469 = vmatpush.bf16.msra.mxu0 %v6158_v55  ;;  %v6214_v55 = vld [vmem:[%s7917_s1 + $0x7d0] sm:$0xff] }
  0xd7   :  { %3483 = vmatpush.bf16.msra.mxu1 %v6166_v56 }
  0xd8   :  { %3497 = vmatpush.bf16.msra.mxu2 %v6174_v58  ;;  %v6197_v58 = vld [vmem:[%s7917_s1 + $0x748] sm:$0xff] }
  0xd9   :  { %3511 = vmatpush.bf16.msra.mxu3 %v6182_v59  ;;  %v6205_v59 = vld [vmem:[%s7917_s1 + $0x788] sm:$0xff] }
  0xda   :  { %3470 = vmatpush.bf16.msra.mxu0 %v6157_v61 }
  0xdb   :  { %3484 = vmatpush.bf16.msra.mxu1 %v6165_v62 }
  0xdc   :  { %3498 = vmatpush.bf16.msra.mxu2 %v6173_v63 }
  0xdd   :  { %3512 = vmatpush.bf16.msra.mxu3 %v6181_v0  ;;  %v6188_v0 = vld [vmem:[%s7917_s1 + $0x700] sm:$0xff] }
  0xde   :  { %3471 = vmatpush.bf16.msra.mxu0 %v6156_v4  ;;  %v3249_v33 = vpop.f32.mrf.mxu0 }
  0xdf   :  { %3485 = vmatpush.bf16.msra.mxu1 %v6164_v5  ;;  %v3250_v34 = vadd.f32 %v3249_v33, %v7221_v54  ;;  %v3263_v37 = vpop.f32.mrf.mxu1  ;;  %v6206_v54 = vld [vmem:[%s7917_s1 + $0x790] sm:$0xff]  ;;  %v6227_v5 = vld [vmem:[%s7917_s1 + $0x838] sm:$0xff] }
  0xe0   :  { %3499 = vmatpush.bf16.msra.mxu2 %v6172_v6  ;;  %v6235_v6 = vld [vmem:[%s7917_s1 + $0x878] sm:$0xff] }
  0xe1   :  { %3513 = vmatpush.bf16.msra.mxu3 %v6180_v7  ;;  %3472 = vmatmul.bf16.vlgmr.msra.gmra.mxu0 %v4275_v21  ;;  %v3264_v40 = vadd.f32 %v3263_v37, %v3250_v34  ;;  %v4290_v7 = vld [vmem:[%s7918_s0 + $0x70] sm:$0xf]  ;;  %v6240_v34 = vld [vmem:[%s7917_s1 + $0x8a0] sm:$0xff]  ;;  %v6223_v37 = vld [vmem:[%s7917_s1 + $0x818] sm:$0xff] }
  0xe2   :  { %3520 = vmatpush.bf16.msrb.mxu0 %v6195_v9  ;;  %3486 = vmatmul.bf16.vlgmr.msra.gmra.mxu1 %v4279_v23  ;;  %v4298_v9 = vld [vmem:[%s7918_s0 + $0x78] sm:$0xf]  ;;  %v6226_v21 = vld [vmem:[%s7917_s1 + $0x830] sm:$0xff] }
  0xe3   :  { %3534 = vmatpush.bf16.msrb.mxu1 %v6203_v10  ;;  %3500 = vmatmul.bf16.vlgmr.msra.gmra.mxu2 %v4283_v22  ;;  %v5957_v10 = vld [vmem:[%s7918_s0 + $0x124] sm:$0xf0]  ;;  %v6234_v22 = vld [vmem:[%s7917_s1 + $0x870] sm:$0xff] }
  0xe4   :  { %3548 = vmatpush.bf16.msrb.mxu2 %v6211_v19  ;;  %3514 = vmatmul.bf16.vlgmr.msra.gmra.mxu3 %v4287_v24  ;;  %v4299_v18 = vor.u32 %v5957_v10, %v4298_v9  ;;  %v4295_v19 = vor.u32 %v5934_v11, %v4292_v12  ;;  %v6242_v23 = vld [vmem:[%s7917_s1 + $0x8b0] sm:$0xff] }
  0xe5   :  { %3562 = vmatpush.bf16.msrb.mxu3 %v6219_v20  ;;  %v4303_v20 = vor.u32 %v5935_v13, %v4300_v14  ;;  %v6250_v24 = vld [vmem:[%s7917_s1 + $0x8f0] sm:$0xff]  ;;  %v6257_v14 = vld [vmem:[%s7917_s1 + $0x928] sm:$0xff] }
  0xe6   :  { %3521 = vmatpush.bf16.msrb.mxu0 %v6194_v25  ;;  %v3277_v45 = vpop.f32.mrf.mxu2  ;;  %v3251_v48 = vpop.f32.mrf.mxu0  ;;  %v6225_v25 = vld [vmem:[%s7917_s1 + $0x828] sm:$0xff]  ;;  %v6258_v10 = vld [vmem:[%s7917_s1 + $0x930] sm:$0xff] }
  0xe7   :  { %3535 = vmatpush.bf16.msrb.mxu1 %v6202_v26  ;;  %v3278_v46 = vadd.f32 %v3277_v45, %v3264_v40  ;;  %v3291_v47 = vpop.f32.mrf.mxu3  ;;  %v3252_v49 = vadd.f32 %v3251_v48, %v7259_v8  ;;  %v3265_v53 = vpop.f32.mrf.mxu1  ;;  %v5956_v8 = vld [vmem:[%s7918_s0 + $0x11c] sm:$0xf0]  ;;  %v6233_v26 = vld [vmem:[%s7917_s1 + $0x868] sm:$0xff]  ;;  %v6247_v40 = vld [vmem:[%s7917_s1 + $0x8d8] sm:$0xff] }
  0xe8   :  { %3549 = vmatpush.bf16.msrb.mxu2 %v6210_v27  ;;  %v4291_v17 = vor.u32 %v5956_v8, %v4290_v7  ;;  %v6241_v27 = vld [vmem:[%s7917_s1 + $0x8a8] sm:$0xff]  ;;  %v6222_v45 = vld [vmem:[%s7917_s1 + $0x810] sm:$0xff] }
  0xe9   :  { %3563 = vmatpush.bf16.msrb.mxu3 %v6218_v28  ;;  %v7347_v50 = vadd.f32 %v3291_v47, %v3278_v46  ;;  %v3266_v56 = vadd.f32 %v3265_v53, %v3252_v49  ;;  %v6249_v28 = vld [vmem:[%s7917_s1 + $0x8e8] sm:$0xff]  ;;  %v6230_v46 = vld [vmem:[%s7917_s1 + $0x850] sm:$0xff]  ;;  %v6220_v53 = vld [vmem:[%s7917_s1 + $0x800] sm:$0xff] }
  0xea   :  { %3522 = vmatpush.bf16.msrb.mxu0 %v6193_v29  ;;  %v6238_v47 = vld [vmem:[%s7917_s1 + $0x890] sm:$0xff]  ;;  %v6221_v49 = vld [vmem:[%s7917_s1 + $0x808] sm:$0xff] }
  0xeb   :  { %3536 = vmatpush.bf16.msrb.mxu1 %v6201_v30  ;;  %v6246_v48 = vld [vmem:[%s7917_s1 + $0x8d0] sm:$0xff] }
  0xec   :  { %3550 = vmatpush.bf16.msrb.mxu2 %v6209_v31  ;;  %v6224_v31 = vld [vmem:[%s7917_s1 + $0x820] sm:$0xff]  ;;  %v6266_v11 = vld [vmem:[%s7917_s1 + $0x970] sm:$0xff] }
  0xed   :  { %3564 = vmatpush.bf16.msrb.mxu3 %v6217_v32  ;;  %v6232_v32 = vld [vmem:[%s7917_s1 + $0x860] sm:$0xff]  ;;  %v6274_v12 = vld [vmem:[%s7917_s1 + $0x9b0] sm:$0xff] }
  0xee   :  { %3523 = vmatpush.bf16.msrb.mxu0 %v6192_v35  ;;  %v3279_v61 = vpop.f32.mrf.mxu2  ;;  %v6248_v35 = vld [vmem:[%s7917_s1 + $0x8e0] sm:$0xff]  ;;  %v6282_v13 = vld [vmem:[%s7917_s1 + $0x9f0] sm:$0xff] }
  0xef   :  { %3537 = vmatpush.bf16.msrb.mxu1 %v6200_v36  ;;  %v3280_v62 = vadd.f32 %v3279_v61, %v3266_v56  ;;  %v3293_v63 = vpop.f32.mrf.mxu3  ;;  %v6244_v56 = vld [vmem:[%s7917_s1 + $0x8c0] sm:$0xff]  ;;  %v4314_v61 = vld [vmem:[%s7918_s0 + $0x88] sm:$0xf] }
  0xf0   :  { %3551 = vmatpush.bf16.msrb.mxu2 %v6208_v38  ;;  %v6231_v38 = vld [vmem:[%s7917_s1 + $0x858] sm:$0xff] }
  0xf1   :  { %3565 = vmatpush.bf16.msrb.mxu3 %v6216_v39  ;;  %v7385_v4 = vadd.f32 %v3293_v63, %v3280_v62  ;;  %v6239_v39 = vld [vmem:[%s7917_s1 + $0x898] sm:$0xff]  ;;  %v5936_v63 = vld [vmem:[%s7918_s0 + $0x84] sm:$0xf] }
  0xf2   :  { %3524 = vmatpush.bf16.msrb.mxu0 %v6191_v41  ;;  %v5959_v62 = vld [vmem:[%s7918_s0 + $0x134] sm:$0xf0] }
  0xf3   :  { %3538 = vmatpush.bf16.msrb.mxu1 %v6199_v42  ;;  %v4315_v7 = vor.u32 %v5959_v62, %v4314_v61  ;;  %v6305_v61 = vld [vmem:[%s7917_s1 + $0xaa8] sm:$0xff] }
  0xf4   :  { %3552 = vmatpush.bf16.msrb.mxu2 %v6207_v43  ;;  %v6313_v62 = vld [vmem:[%s7917_s1 + $0xae8] sm:$0xff] }
  0xf5   :  { %3566 = vmatpush.bf16.msrb.mxu3 %v6215_v44 }
  0xf6   :  { %3525 = vmatpush.bf16.msrb.mxu0 %v6190_v51  ;;  %v6237_v51 = vld [vmem:[%s7917_s1 + $0x888] sm:$0xff] }
  0xf7   :  { %3539 = vmatpush.bf16.msrb.mxu1 %v6198_v52  ;;  %v6245_v52 = vld [vmem:[%s7917_s1 + $0x8c8] sm:$0xff] }
  0xf8   :  { %3553 = vmatpush.bf16.msrb.mxu2 %v6206_v54  ;;  %v6228_v54 = vld [vmem:[%s7917_s1 + $0x840] sm:$0xff] }
  0xf9   :  { %3567 = vmatpush.bf16.msrb.mxu3 %v6214_v55  ;;  %v6236_v55 = vld [vmem:[%s7917_s1 + $0x880] sm:$0xff] }
  0xfa   :  { %3526 = vmatpush.bf16.msrb.mxu0 %v6189_v57  ;;  %v6259_v57 = vld [vmem:[%s7917_s1 + $0x938] sm:$0xff] }
  0xfb   :  { %3540 = vmatpush.bf16.msrb.mxu1 %v6197_v58  ;;  %v6267_v58 = vld [vmem:[%s7917_s1 + $0x978] sm:$0xff] }
  0xfc   :  { %3554 = vmatpush.bf16.msrb.mxu2 %v6205_v59  ;;  %v4306_v59 = vld [vmem:[%s7918_s0 + $0x80] sm:$0xf] }
  0xfd   :  { %3568 = vmatpush.bf16.msrb.mxu3 %v6213_v60  ;;  %v5958_v60 = vld [vmem:[%s7918_s0 + $0x12c] sm:$0xf0] }
  0xfe   :  { %3527 = vmatpush.bf16.msrb.mxu0 %v6188_v0  ;;  %v3305_v29 = vpop.f32.mrf.mxu0  ;;  %v4308_v0 = vld [vmem:[%s7918_s0 + $0x130] sm:$0xf0] }
  0xff   :  { %3541 = vmatpush.bf16.msrb.mxu1 %v6196_v1  ;;  %v3306_v30 = vadd.f32 %v3305_v29, %v7347_v50  ;;  %v3319_v33 = vpop.f32.mrf.mxu1  ;;  %v6229_v50 = vld [vmem:[%s7917_s1 + $0x848] sm:$0xff]  ;;  %v4311_v8 = vor.u32 %v5936_v63, %v4308_v0  ;;  %v6278_v29 = vld [vmem:[%s7917_s1 + $0x9d0] sm:$0xff]  ;;  %v6288_v63 = vld [vmem:[%s7917_s1 + $0xa20] sm:$0xff] }
 0x100   :  { %3555 = vmatpush.bf16.msrb.mxu2 %v6204_v2  ;;  %v5937_v1 = vld [vmem:[%s7918_s0 + $0x8c] sm:$0xf]  ;;  %v4316_v2 = vld [vmem:[%s7918_s0 + $0x138] sm:$0xf0]  ;;  %v6296_v0 = vld [vmem:[%s7917_s1 + $0xa60] sm:$0xff] }
 0x101   :  { %3569 = vmatpush.bf16.msrb.mxu3 %v6212_v3  ;;  %3528 = vmatmul.bf16.vlgmr.msrb.gmra.mxu0 %v4291_v17  ;;  %v3320_v36 = vadd.f32 %v3319_v33, %v3306_v30  ;;  %v6275_v3 = vld [vmem:[%s7917_s1 + $0x9b8] sm:$0xff]  ;;  %v4319_v9 = vor.u32 %v5937_v1, %v4316_v2  ;;  %v6281_v17 = vld [vmem:[%s7917_s1 + $0x9e8] sm:$0xff]  ;;  %v6304_v1 = vld [vmem:[%s7917_s1 + $0xaa0] sm:$0xff] }
 0x102   :  { %3576 = vmatpush.bf16.msra.mxu0 %v6227_v5  ;;  %3542 = vmatmul.bf16.vlgmr.msrb.gmra.mxu1 %v4295_v19  ;;  %v6283_v5 = vld [vmem:[%s7917_s1 + $0x9f8] sm:$0xff]  ;;  %v6264_v19 = vld [vmem:[%s7917_s1 + $0x960] sm:$0xff]  ;;  %v6253_v30 = vld [vmem:[%s7917_s1 + $0x908] sm:$0xff] }
 0x103   :  { %3590 = vmatpush.bf16.msra.mxu1 %v6235_v6  ;;  %3556 = vmatmul.bf16.vlgmr.msrb.gmra.mxu2 %v4299_v18  ;;  %v4307_v6 = vor.u32 %v5958_v60, %v4306_v59  ;;  %v6256_v18 = vld [vmem:[%s7917_s1 + $0x920] sm:$0xff]  ;;  %v6277_v33 = vld [vmem:[%s7917_s1 + $0x9c8] sm:$0xff] }
 0x104   :  { %3604 = vmatpush.bf16.msra.mxu2 %v6243_v15  ;;  %3570 = vmatmul.bf16.vlgmr.msrb.gmra.mxu3 %v4303_v20  ;;  %v6265_v15 = vld [vmem:[%s7917_s1 + $0x968] sm:$0xff]  ;;  %v6272_v20 = vld [vmem:[%s7917_s1 + $0x9a0] sm:$0xff] }
 0x105   :  { %3618 = vmatpush.bf16.msra.mxu3 %v6251_v16  ;;  %v6273_v16 = vld [vmem:[%s7917_s1 + $0x9a8] sm:$0xff]  ;;  %v6312_v2 = vld [vmem:[%s7917_s1 + $0xae0] sm:$0xff] }
 0x106   :  { %3577 = vmatpush.bf16.msra.mxu0 %v6226_v21  ;;  %v3333_v41 = vpop.f32.mrf.mxu2  ;;  %v6280_v21 = vld [vmem:[%s7917_s1 + $0x9e0] sm:$0xff]  ;;  %v6289_v59 = vld [vmem:[%s7917_s1 + $0xa28] sm:$0xff] }
 0x107   :  { %3591 = vmatpush.bf16.msra.mxu1 %v6234_v22  ;;  %v3334_v42 = vadd.f32 %v3333_v41, %v3320_v36  ;;  %v3347_v43 = vpop.f32.mrf.mxu3  ;;  %v6255_v22 = vld [vmem:[%s7917_s1 + $0x918] sm:$0xff]  ;;  %v6268_v36 = vld [vmem:[%s7917_s1 + $0x980] sm:$0xff]  ;;  %v6297_v60 = vld [vmem:[%s7917_s1 + $0xa68] sm:$0xff] }
 0x108   :  { %3605 = vmatpush.bf16.msra.mxu2 %v6242_v23  ;;  %v6263_v23 = vld [vmem:[%s7917_s1 + $0x958] sm:$0xff]  ;;  %v5960_v41 = vld [vmem:[%s7918_s0 + $0x13c] sm:$0xf0] }
 0x109   :  { %3619 = vmatpush.bf16.msra.mxu3 %v6250_v24  ;;  %v7472_v44 = vadd.f32 %v3347_v43, %v3334_v42  ;;  %v6271_v24 = vld [vmem:[%s7917_s1 + $0x998] sm:$0xff]  ;;  %v5961_v43 = vld [vmem:[%s7918_s0 + $0x144] sm:$0xf0] }
 0x10a   :  { %3578 = vmatpush.bf16.msra.mxu0 %v6225_v25  ;;  %v6279_v25 = vld [vmem:[%s7917_s1 + $0x9d8] sm:$0xff] }
 0x10b   :  { %3592 = vmatpush.bf16.msra.mxu1 %v6233_v26  ;;  %v6254_v26 = vld [vmem:[%s7917_s1 + $0x910] sm:$0xff]  ;;  %v4330_v42 = vld [vmem:[%s7918_s0 + $0x98] sm:$0xf] }
 0x10c   :  { %3606 = vmatpush.bf16.msra.mxu2 %v6241_v27  ;;  %v6262_v27 = vld [vmem:[%s7917_s1 + $0x950] sm:$0xff] }
 0x10d   :  { %3620 = vmatpush.bf16.msra.mxu3 %v6249_v28  ;;  %v6270_v28 = vld [vmem:[%s7917_s1 + $0x990] sm:$0xff] }
 0x10e   :  { %3579 = vmatpush.bf16.msra.mxu0 %v6224_v31  ;;  %v6261_v31 = vld [vmem:[%s7917_s1 + $0x948] sm:$0xff] }
 0x10f   :  { %3593 = vmatpush.bf16.msra.mxu1 %v6232_v32  ;;  %v6269_v32 = vld [vmem:[%s7917_s1 + $0x988] sm:$0xff] }
 0x110   :  { %3607 = vmatpush.bf16.msra.mxu2 %v6240_v34  ;;  %v6252_v34 = vld [vmem:[%s7917_s1 + $0x900] sm:$0xff] }
 0x111   :  { %3621 = vmatpush.bf16.msra.mxu3 %v6248_v35  ;;  %v6260_v35 = vld [vmem:[%s7917_s1 + $0x940] sm:$0xff] }
 0x112   :  { %3580 = vmatpush.bf16.msra.mxu0 %v6223_v37  ;;  %v6276_v37 = vld [vmem:[%s7917_s1 + $0x9c0] sm:$0xff] }
 0x113   :  { %3594 = vmatpush.bf16.msra.mxu1 %v6231_v38  ;;  %v6291_v38 = vld [vmem:[%s7917_s1 + $0xa38] sm:$0xff] }
 0x114   :  { %3608 = vmatpush.bf16.msra.mxu2 %v6239_v39  ;;  %v6299_v39 = vld [vmem:[%s7917_s1 + $0xa78] sm:$0xff] }
 0x115   :  { %3622 = vmatpush.bf16.msra.mxu3 %v6247_v40  ;;  %v4322_v40 = vld [vmem:[%s7918_s0 + $0x90] sm:$0xf] }
 0x116   :  { %3581 = vmatpush.bf16.msra.mxu0 %v6222_v45  ;;  %v5938_v45 = vld [vmem:[%s7918_s0 + $0x94] sm:$0xf] }
 0x117   :  { %3595 = vmatpush.bf16.msra.mxu1 %v6230_v46  ;;  %v4324_v46 = vld [vmem:[%s7918_s0 + $0x140] sm:$0xf0] }
 0x118   :  { %3609 = vmatpush.bf16.msra.mxu2 %v6238_v47  ;;  %v5939_v47 = vld [vmem:[%s7918_s0 + $0x9c] sm:$0xf] }
 0x119   :  { %3623 = vmatpush.bf16.msra.mxu3 %v6246_v48  ;;  %v4332_v48 = vld [vmem:[%s7918_s0 + $0x148] sm:$0xf0] }
 0x11a   :  { %3582 = vmatpush.bf16.msra.mxu0 %v6221_v49  ;;  %v6307_v49 = vld [vmem:[%s7917_s1 + $0xab8] sm:$0xff] }
 0x11b   :  { %3596 = vmatpush.bf16.msra.mxu1 %v6229_v50  ;;  %v6315_v50 = vld [vmem:[%s7917_s1 + $0xaf8] sm:$0xff] }
 0x11c   :  { %3610 = vmatpush.bf16.msra.mxu2 %v6237_v51  ;;  %v4323_v51 = vor.u32 %v5960_v41, %v4322_v40 }
 0x11d   :  { %3624 = vmatpush.bf16.msra.mxu3 %v6245_v52  ;;  %v4331_v52 = vor.u32 %v5961_v43, %v4330_v42 }
 0x11e   :  { %3583 = vmatpush.bf16.msra.mxu0 %v6220_v53  ;;  %v4327_v53 = vor.u32 %v5938_v45, %v4324_v46 }
 0x11f   :  { %3597 = vmatpush.bf16.msra.mxu1 %v6228_v54  ;;  %v4335_v54 = vor.u32 %v5939_v47, %v4332_v48 }
 0x120   :  { %3611 = vmatpush.bf16.msra.mxu2 %v6236_v55  ;;  %v6290_v55 = vld [vmem:[%s7917_s1 + $0xa30] sm:$0xff] }
 0x121   :  { %3625 = vmatpush.bf16.msra.mxu3 %v6244_v56  ;;  %3584 = vmatmul.bf16.vlgmr.msra.gmra.mxu0 %v4307_v6  ;;  %v6298_v56 = vld [vmem:[%s7917_s1 + $0xa70] sm:$0xff]  ;;  %v6303_v6 = vld [vmem:[%s7917_s1 + $0xa98] sm:$0xff] }
 0x122   :  { %3632 = vmatpush.bf16.msrb.mxu0 %v6259_v57  ;;  %3598 = vmatmul.bf16.vlgmr.msra.gmra.mxu1 %v4311_v8  ;;  %v6306_v57 = vld [vmem:[%s7917_s1 + $0xab0] sm:$0xff] }
 0x123   :  { %3646 = vmatpush.bf16.msrb.mxu1 %v6267_v58  ;;  %3612 = vmatmul.bf16.vlgmr.msra.gmra.mxu2 %v4315_v7  ;;  %v6314_v58 = vld [vmem:[%s7917_s1 + $0xaf0] sm:$0xff]  ;;  %v6311_v7 = vld [vmem:[%s7917_s1 + $0xad8] sm:$0xff] }
 0x124   :  { %3660 = vmatpush.bf16.msrb.mxu2 %v6275_v3  ;;  %3626 = vmatmul.bf16.vlgmr.msra.gmra.mxu3 %v4319_v9  ;;  %v6287_v3 = vld [vmem:[%s7917_s1 + $0xa18] sm:$0xff]  ;;  %v6286_v8 = vld [vmem:[%s7917_s1 + $0xa10] sm:$0xff] }
 0x125   :  { %3674 = vmatpush.bf16.msrb.mxu3 %v6283_v5  ;;  %v6295_v5 = vld [vmem:[%s7917_s1 + $0xa58] sm:$0xff]  ;;  %v6294_v9 = vld [vmem:[%s7917_s1 + $0xa50] sm:$0xff] }
 0x126   :  { %3633 = vmatpush.bf16.msrb.mxu0 %v6258_v10  ;;  %v6302_v10 = vld [vmem:[%s7917_s1 + $0xa90] sm:$0xff] }
 0x127   :  { %3647 = vmatpush.bf16.msrb.mxu1 %v6266_v11  ;;  %v6310_v11 = vld [vmem:[%s7917_s1 + $0xad0] sm:$0xff] }
 0x128   :  { %3661 = vmatpush.bf16.msrb.mxu2 %v6274_v12  ;;  %v6285_v12 = vld [vmem:[%s7917_s1 + $0xa08] sm:$0xff] }
 0x129   :  { %3675 = vmatpush.bf16.msrb.mxu3 %v6282_v13  ;;  %v6293_v13 = vld [vmem:[%s7917_s1 + $0xa48] sm:$0xff] }
 0x12a   :  { %3634 = vmatpush.bf16.msrb.mxu0 %v6257_v14  ;;  %v6301_v14 = vld [vmem:[%s7917_s1 + $0xa88] sm:$0xff] }
 0x12b   :  { %3648 = vmatpush.bf16.msrb.mxu1 %v6265_v15  ;;  %v6309_v15 = vld [vmem:[%s7917_s1 + $0xac8] sm:$0xff] }
 0x12c   :  { %3662 = vmatpush.bf16.msrb.mxu2 %v6273_v16  ;;  %v6284_v16 = vld [vmem:[%s7917_s1 + $0xa00] sm:$0xff] }
 0x12d   :  { %3676 = vmatpush.bf16.msrb.mxu3 %v6281_v17  ;;  %v6292_v17 = vld [vmem:[%s7917_s1 + $0xa40] sm:$0xff] }
 0x12e   :  { %3635 = vmatpush.bf16.msrb.mxu0 %v6256_v18  ;;  %v6300_v18 = vld [vmem:[%s7917_s1 + $0xa80] sm:$0xff] }
 0x12f   :  { %3649 = vmatpush.bf16.msrb.mxu1 %v6264_v19  ;;  %v6308_v19 = vld [vmem:[%s7917_s1 + $0xac0] sm:$0xff] }
 0x130   :  { %3663 = vmatpush.bf16.msrb.mxu2 %v6272_v20  ;;  %v4338_v20 = vld [vmem:[%s7918_s0 + $0xa0] sm:$0xf] }
 0x131   :  { %3677 = vmatpush.bf16.msrb.mxu3 %v6280_v21  ;;  %v5962_v21 = vld [vmem:[%s7918_s0 + $0x14c] sm:$0xf0] }
 0x132   :  { %3636 = vmatpush.bf16.msrb.mxu0 %v6255_v22  ;;  %v5940_v22 = vld [vmem:[%s7918_s0 + $0xa4] sm:$0xf] }
 0x133   :  { %3650 = vmatpush.bf16.msrb.mxu1 %v6263_v23  ;;  %v4340_v23 = vld [vmem:[%s7918_s0 + $0x150] sm:$0xf0] }
 0x134   :  { %3664 = vmatpush.bf16.msrb.mxu2 %v6271_v24  ;;  %v4346_v24 = vld [vmem:[%s7918_s0 + $0xa8] sm:$0xf] }
 0x135   :  { %3678 = vmatpush.bf16.msrb.mxu3 %v6279_v25  ;;  %v5963_v25 = vld [vmem:[%s7918_s0 + $0x154] sm:$0xf0] }
 0x136   :  { %3637 = vmatpush.bf16.msrb.mxu0 %v6254_v26  ;;  %v5941_v26 = vld [vmem:[%s7918_s0 + $0xac] sm:$0xf] }
 0x137   :  { %3651 = vmatpush.bf16.msrb.mxu1 %v6262_v27  ;;  %v4348_v27 = vld [vmem:[%s7918_s0 + $0x158] sm:$0xf0] }
 0x138   :  { %3665 = vmatpush.bf16.msrb.mxu2 %v6270_v28  ;;  %v4339_v28 = vor.u32 %v5962_v21, %v4338_v20  ;;  %v6323_v20 = vld [vmem:[%s7921_s3 + $0x38] sm:$0xff] }
 0x139   :  { %3679 = vmatpush.bf16.msrb.mxu3 %v6278_v29  ;;  %v4343_v29 = vor.u32 %v5940_v22, %v4340_v23  ;;  %v6322_v22 = vld [vmem:[%s7921_s3 + $0x30] sm:$0xff] }
 0x13a   :  { %3638 = vmatpush.bf16.msrb.mxu0 %v6253_v30  ;;  %v4347_v30 = vor.u32 %v5963_v25, %v4346_v24 }
 0x13b   :  { %3652 = vmatpush.bf16.msrb.mxu1 %v6261_v31  ;;  %v4351_v31 = vor.u32 %v5941_v26, %v4348_v27 }
 0x13c   :  { %3666 = vmatpush.bf16.msrb.mxu2 %v6269_v32  ;;  %v3307_v32 = vpop.f32.mrf.mxu0 }
 0x13d   :  { %3680 = vmatpush.bf16.msrb.mxu3 %v6277_v33  ;;  %v3321_v33 = vpop.f32.mrf.mxu1 }
 0x13e   :  { %3639 = vmatpush.bf16.msrb.mxu0 %v6252_v34  ;;  %v3335_v34 = vpop.f32.mrf.mxu2 }
 0x13f   :  { %3653 = vmatpush.bf16.msrb.mxu1 %v6260_v35  ;;  %v3349_v35 = vpop.f32.mrf.mxu3 }
 0x140   :  { %3667 = vmatpush.bf16.msrb.mxu2 %v6268_v36 }
 0x141   :  { %3681 = vmatpush.bf16.msrb.mxu3 %v6276_v37  ;;  %3640 = vmatmul.bf16.vlgmr.msrb.gmra.mxu0 %v4323_v51  ;;  %v3308_v51 = vadd.f32 %v3307_v32, %v7385_v4 }
 0x142   :  { %3688 = vmatpush.bf16.msra.mxu0 %v6291_v38  ;;  %3654 = vmatmul.bf16.vlgmr.msrb.gmra.mxu1 %v4327_v53 }
 0x143   :  { %3702 = vmatpush.bf16.msra.mxu1 %v6299_v39  ;;  %3668 = vmatmul.bf16.vlgmr.msrb.gmra.mxu2 %v4331_v52 }
 0x144   :  { %3716 = vmatpush.bf16.msra.mxu2 %v6307_v49  ;;  %3682 = vmatmul.bf16.vlgmr.msrb.gmra.mxu3 %v4335_v54  ;;  %v3361_v36 = vpop.f32.mrf.mxu0 }
 0x145   :  { %3730 = vmatpush.bf16.msra.mxu3 %v6315_v50  ;;  %v3375_v37 = vpop.f32.mrf.mxu1 }
 0x146   :  { %3689 = vmatpush.bf16.msra.mxu0 %v6290_v55  ;;  %v3389_v38 = vpop.f32.mrf.mxu2  ;;  %v3322_v55 = vadd.f32 %v3321_v33, %v3308_v51  ;;  %v6321_v33 = vld [vmem:[%s7921_s3 + $0x28] sm:$0xff] }
 0x147   :  { %3703 = vmatpush.bf16.msra.mxu1 %v6298_v56  ;;  %v3403_v39 = vpop.f32.mrf.mxu3 }
 0x148   :  { %3717 = vmatpush.bf16.msra.mxu2 %v6306_v57  ;;  %v3336_v57 = vadd.f32 %v3335_v34, %v3322_v55 }
 0x149   :  { %3731 = vmatpush.bf16.msra.mxu3 %v6314_v58  ;;  %v3362_v58 = vadd.f32 %v3361_v36, %v7472_v44 }
 0x14a   :  { %3690 = vmatpush.bf16.msra.mxu0 %v6289_v59 }
 0x14b   :  { %3704 = vmatpush.bf16.msra.mxu1 %v6297_v60 }
 0x14c   :  { %3718 = vmatpush.bf16.msra.mxu2 %v6305_v61  ;;  %v3363_v40 = vpop.f32.mrf.mxu0  ;;  %v3350_v61 = vadd.f32 %v3349_v35, %v3336_v57 }
 0x14d   :  { %3732 = vmatpush.bf16.msra.mxu3 %v6313_v62  ;;  %v3377_v41 = vpop.f32.mrf.mxu1  ;;  %v3376_v62 = vadd.f32 %v3375_v37, %v3362_v58 }
 0x14e   :  { %3691 = vmatpush.bf16.msra.mxu0 %v6288_v63  ;;  %v3391_v42 = vpop.f32.mrf.mxu2  ;;  %v3364_v63 = vadd.f32 %v3363_v40, %v3350_v61  ;;  %v6316_v61 = vld [vmem:[%s7921_s3] sm:$0xff] }
 0x14f   :  { %3705 = vmatpush.bf16.msra.mxu1 %v6296_v0  ;;  %v3405_v43 = vpop.f32.mrf.mxu3 }
 0x150   :  { %3719 = vmatpush.bf16.msra.mxu2 %v6304_v1  ;;  %v3390_v1 = vadd.f32 %v3389_v38, %v3376_v62 }
 0x151   :  { %3733 = vmatpush.bf16.msra.mxu3 %v6312_v2 }
 0x152   :  { %3692 = vmatpush.bf16.msra.mxu0 %v6287_v3  ;;  %v3378_v3 = vadd.f32 %v3377_v41, %v3364_v63 }
 0x153   :  { %3706 = vmatpush.bf16.msra.mxu1 %v6295_v5  ;;  %v3404_v5 = vadd.f32 %v3403_v39, %v3390_v1  ;;  %v6320_v39 = vld [vmem:[%s7921_s3 + $0x20] sm:$0xff] }
 0x154   :  { %3720 = vmatpush.bf16.msra.mxu2 %v6303_v6  ;;  %v3417_v45 = vpop.f32.mrf.mxu0  ;;  %v3392_v6 = vadd.f32 %v3391_v42, %v3378_v3 }
 0x155   :  { %3734 = vmatpush.bf16.msra.mxu3 %v6311_v7  ;;  %v3431_v46 = vpop.f32.mrf.mxu1 }
 0x156   :  { %3693 = vmatpush.bf16.msra.mxu0 %v6286_v8  ;;  %v3445_v47 = vpop.f32.mrf.mxu2  ;;  %v3418_v8 = vadd.f32 %v3417_v45, %v3404_v5  ;;  %v6319_v45 = vld [vmem:[%s7921_s3 + $0x18] sm:$0xff] }
 0x157   :  { %3707 = vmatpush.bf16.msra.mxu1 %v6294_v9  ;;  %v3459_v48 = vpop.f32.mrf.mxu3 }
 0x158   :  { %3721 = vmatpush.bf16.msra.mxu2 %v6302_v10  ;;  %v3406_v10 = vadd.f32 %v3405_v43, %v3392_v6  ;;  %v6331_v6 = vld [vmem:[%s7922_s5 + $0x38] sm:$0xff] }
 0x159   :  { %3735 = vmatpush.bf16.msra.mxu3 %v6310_v11 }
 0x15a   :  { %3694 = vmatpush.bf16.msra.mxu0 %v6285_v12  ;;  %v3432_v12 = vadd.f32 %v3431_v46, %v3418_v8 }
 0x15b   :  { %3708 = vmatpush.bf16.msra.mxu1 %v6293_v13 }
 0x15c   :  { %3722 = vmatpush.bf16.msra.mxu2 %v6301_v14  ;;  %v3419_v49 = vpop.f32.mrf.mxu0  ;;  %v3446_v44 = vadd.f32 %v3445_v47, %v3432_v12  ;;  %v6329_v12 = vld [vmem:[%s7922_s5 + $0x28] sm:$0xff] }
 0x15d   :  { %3736 = vmatpush.bf16.msra.mxu3 %v6309_v15  ;;  %v3433_v50 = vpop.f32.mrf.mxu1  ;;  %v3420_v13 = vadd.f32 %v3419_v49, %v3406_v10  ;;  %v6318_v49 = vld [vmem:[%s7921_s3 + $0x10] sm:$0xff] }
 0x15e   :  { %3695 = vmatpush.bf16.msra.mxu0 %v6284_v16  ;;  %v3447_v52 = vpop.f32.mrf.mxu2 }
 0x15f   :  { %3709 = vmatpush.bf16.msra.mxu1 %v6292_v17  ;;  %v3461_v53 = vpop.f32.mrf.mxu3  ;;  %v3434_v16 = vadd.f32 %v3433_v50, %v3420_v13  ;;  %v3460_v17 = vadd.f32 %v3459_v48, %v3446_v44 }
 0x160   :  { %3723 = vmatpush.bf16.msra.mxu2 %v6300_v18 }
 0x161   :  { %3737 = vmatpush.bf16.msra.mxu3 %v6308_v19  ;;  %3696 = vmatmul.bf16.vlgmr.msra.gmra.mxu0 %v4339_v28  ;;  %v3448_v18 = vadd.f32 %v3447_v52, %v3434_v16 }
 0x162   :  { %3710 = vmatmul.bf16.vlgmr.msra.gmra.mxu1 %v4343_v29  ;;  %3815 = vmatpush.bf16.msrb.mxu0 %v6323_v20 }
 0x163   :  { %3724 = vmatmul.bf16.vlgmr.msra.gmra.mxu2 %v4347_v30  ;;  %v3462_v24 = vadd.f32 %v3461_v53, %v3448_v18  ;;  %3900 = vmatpush.bf16.msrb.mxu1 %v6331_v6 }
 0x164   :  { %3738 = vmatmul.bf16.vlgmr.msra.gmra.mxu3 %v4351_v31  ;;  %v3473_v54 = vpop.f32.mrf.mxu0 }
 0x165   :  { %v3487_v56 = vpop.f32.mrf.mxu1  ;;  %v3474_v21 = vadd.f32 %v3473_v54, %v3460_v17  ;;  %v6328_v17 = vld [vmem:[%s7922_s5 + $0x20] sm:$0xff] }
 0x166   :  { %v3501_v59 = vpop.f32.mrf.mxu2  ;;  %3816 = vmatpush.bf16.msrb.mxu0 %v6322_v22 }
 0x167   :  { %v3515_v60 = vpop.f32.mrf.mxu3  ;;  %v3488_v25 = vadd.f32 %v3487_v56, %v3474_v21  ;;  %v6317_v56 = vld [vmem:[%s7921_s3 + $0x8] sm:$0xff] }
 0x169   :  { %v3502_v29 = vadd.f32 %v3501_v59, %v3488_v25 }
 0x16a   :  { %3817 = vmatpush.bf16.msrb.mxu0 %v6321_v33 }
 0x16b   :  { %v3516_v34 = vadd.f32 %v3515_v60, %v3502_v29 }
 0x16c   :  { %v3475_v0 = vpop.f32.mrf.mxu0 }
 0x16d   :  { %v3489_v2 = vpop.f32.mrf.mxu1  ;;  %v3476_v26 = vadd.f32 %v3475_v0, %v3462_v24 }
 0x16e   :  { %v3503_v4 = vpop.f32.mrf.mxu2  ;;  %3818 = vmatpush.bf16.msrb.mxu0 %v6320_v39  ;;  %v6327_v39 = vld [vmem:[%s7922_s5 + $0x18] sm:$0xff] }
 0x16f   :  { %v3517_v7 = vpop.f32.mrf.mxu3  ;;  %v3490_v31 = vadd.f32 %v3489_v2, %v3476_v26 }
 0x171   :  { %v3504_v35 = vadd.f32 %v3503_v4, %v3490_v31 }
 0x172   :  { %3819 = vmatpush.bf16.msrb.mxu0 %v6319_v45  ;;  %v6338_v45 = vld [vmem:[%s7924_s7 + $0x30] sm:$0xff] }
 0x173   :  { %v3518_v40 = vadd.f32 %v3517_v7, %v3504_v35  ;;  %v6330_v7 = vld [vmem:[%s7922_s5 + $0x30] sm:$0xff] }
 0x174   :  { %3901 = vmatpush.bf16.msrb.mxu1 %v6330_v7 }
 0x176   :  { %3820 = vmatpush.bf16.msrb.mxu0 %v6318_v49  ;;  %v6357_v49 = vld [vmem:[%s7920_s4] ss:$0 sm:$0xff] }
 0x178   :  { %3902 = vmatpush.bf16.msrb.mxu1 %v6329_v12  ;;  %v6355_v12 = vld [vmem:[%s7928_s11 + $0x38] sm:$0xff] }
 0x17a   :  { %3821 = vmatpush.bf16.msrb.mxu0 %v6317_v56  ;;  %v6335_v56 = vld [vmem:[%s7924_s7 + $0x18] sm:$0xff] }
 0x17c   :  { %3903 = vmatpush.bf16.msrb.mxu1 %v6328_v17 }
 0x17e   :  { %v3529_v9 = vpop.f32.mrf.mxu0  ;;  %3822 = vmatpush.bf16.msrb.mxu0 %v6316_v61  ;;  %v6346_v61 = vld [vmem:[%s7926_s9 + $0x30] sm:$0xff] }
 0x17f   :  { %v3543_v11 = vpop.f32.mrf.mxu1  ;;  %v3530_v36 = vadd.f32 %v3529_v9, %v3516_v34 }
 0x180   :  { %3904 = vmatpush.bf16.msrb.mxu1 %v6327_v39 }
 0x181   :  { %v3544_v41 = vadd.f32 %v3543_v11, %v3530_v36 }
 0x182   :  { %4155 = vmatpush.bf16.msra.mxu0 %v6355_v12 }
 0x186   :  { %v3557_v14 = vpop.f32.mrf.mxu2  ;;  %v3531_v19 = vpop.f32.mrf.mxu0 }
 0x187   :  { %v3571_v15 = vpop.f32.mrf.mxu3  ;;  %v3545_v23 = vpop.f32.mrf.mxu1  ;;  %v3532_v42 = vadd.f32 %v3531_v19, %v3518_v40  ;;  %v3558_v46 = vadd.f32 %v3557_v14, %v3544_v41  ;;  %v6326_v40 = vld [vmem:[%s7922_s5 + $0x10] sm:$0xff]  ;;  %v6325_v41 = vld [vmem:[%s7922_s5 + $0x8] sm:$0xff] }
 0x188   :  { %3905 = vmatpush.bf16.msrb.mxu1 %v6326_v40 }
 0x189   :  { %v3546_v48 = vadd.f32 %v3545_v23, %v3532_v42  ;;  %v3572_v50 = vadd.f32 %v3571_v15, %v3558_v46  ;;  %v6324_v42 = vld [vmem:[%s7922_s5] sm:$0xff]  ;;  %v6337_v46 = vld [vmem:[%s7924_s7 + $0x28] sm:$0xff] }
 0x18c   :  { %3906 = vmatpush.bf16.msrb.mxu1 %v6325_v41 }
 0x18e   :  { %v3559_v27 = vpop.f32.mrf.mxu2 }
 0x18f   :  { %v3573_v28 = vpop.f32.mrf.mxu3  ;;  %v3560_v51 = vadd.f32 %v3559_v27, %v3546_v48 }
 0x190   :  { %3907 = vmatpush.bf16.msrb.mxu1 %v6324_v42 }
 0x191   :  { %v3574_v57 = vadd.f32 %v3573_v28, %v3560_v51 }
 0x19e   :  { %v3585_v30 = vpop.f32.mrf.mxu0 }
 0x19f   :  { %v3599_v32 = vpop.f32.mrf.mxu1  ;;  %v3586_v54 = vadd.f32 %v3585_v30, %v3572_v50 }
 0x1a1   :  { %v3600_v59 = vadd.f32 %v3599_v32, %v3586_v54 }
 0x1a6   :  { %v3613_v37 = vpop.f32.mrf.mxu2  ;;  %v3587_v43 = vpop.f32.mrf.mxu0 }
 0x1a7   :  { %v3627_v38 = vpop.f32.mrf.mxu3  ;;  %v3601_v47 = vpop.f32.mrf.mxu1  ;;  %v3588_v60 = vadd.f32 %v3587_v43, %v3574_v57  ;;  %v3614_v62 = vadd.f32 %v3613_v37, %v3600_v59  ;;  %v6339_v43 = vld [vmem:[%s7924_s7 + $0x38] sm:$0xff]  ;;  %v6334_v57 = vld [vmem:[%s7924_s7 + $0x10] sm:$0xff]  ;;  %v6332_v59 = vld [vmem:[%s7924_s7] sm:$0xff] }
 0x1a8   :  { %3985 = vmatpush.bf16.msrb.mxu2 %v6339_v43 }
 0x1a9   :  { %v3602_v1 = vadd.f32 %v3601_v47, %v3588_v60  ;;  %v3628_v2 = vadd.f32 %v3627_v38, %v3614_v62  ;;  %v6336_v47 = vld [vmem:[%s7924_s7 + $0x20] sm:$0xff]  ;;  %v6347_v60 = vld [vmem:[%s7926_s9 + $0x38] sm:$0xff]  ;;  %v6345_v62 = vld [vmem:[%s7926_s9 + $0x28] sm:$0xff] }
 0x1aa   :  { %4070 = vmatpush.bf16.msrb.mxu3 %v6347_v60 }
 0x1ac   :  { %3986 = vmatpush.bf16.msrb.mxu2 %v6338_v45 }
 0x1ae   :  { %v3615_v52 = vpop.f32.mrf.mxu2  ;;  %4071 = vmatpush.bf16.msrb.mxu3 %v6346_v61 }
 0x1af   :  { %v3629_v53 = vpop.f32.mrf.mxu3  ;;  %v3616_v3 = vadd.f32 %v3615_v52, %v3602_v1  ;;  %v6358_v1 = vld [vmem:[%s7923_s6] ss:$0 sm:$0xff] }
 0x1b0   :  { %3987 = vmatpush.bf16.msrb.mxu2 %v6337_v46 }
 0x1b1   :  { %v3630_v9 = vadd.f32 %v3629_v53, %v3616_v3 }
 0x1b2   :  { %4072 = vmatpush.bf16.msrb.mxu3 %v6345_v62 }
 0x1b4   :  { %3988 = vmatpush.bf16.msrb.mxu2 %v6336_v47 }
 0x1b8   :  { %3989 = vmatpush.bf16.msrb.mxu2 %v6335_v56 }
 0x1bc   :  { %3990 = vmatpush.bf16.msrb.mxu2 %v6334_v57 }
 0x1be   :  { %v3641_v55 = vpop.f32.mrf.mxu0 }
 0x1bf   :  { %v3655_v58 = vpop.f32.mrf.mxu1  ;;  %v3642_v4 = vadd.f32 %v3641_v55, %v3628_v2 }
 0x1c1   :  { %v3656_v10 = vadd.f32 %v3655_v58, %v3642_v4  ;;  %v6333_v58 = vld [vmem:[%s7924_s7 + $0x8] sm:$0xff] }
 0x1c2   :  { %3991 = vmatpush.bf16.msrb.mxu2 %v6333_v58 }
 0x1c6   :  { %v3669_v63 = vpop.f32.mrf.mxu2  ;;  %v3643_v5 = vpop.f32.mrf.mxu0  ;;  %3992 = vmatpush.bf16.msrb.mxu2 %v6332_v59 }
 0x1c7   :  { %v3683_v0 = vpop.f32.mrf.mxu3  ;;  %v3657_v8 = vpop.f32.mrf.mxu1  ;;  %v3644_v11 = vadd.f32 %v3643_v5, %v3630_v9  ;;  %v3670_v14 = vadd.f32 %v3669_v63, %v3656_v10  ;;  %v6344_v63 = vld [vmem:[%s7926_s9 + $0x20] sm:$0xff]  ;;  %v6342_v9 = vld [vmem:[%s7926_s9 + $0x10] sm:$0xff]  ;;  %v6341_v10 = vld [vmem:[%s7926_s9 + $0x8] sm:$0xff] }
 0x1c8   :  { %4073 = vmatpush.bf16.msrb.mxu3 %v6344_v63 }
 0x1c9   :  { %v3658_v16 = vadd.f32 %v3657_v8, %v3644_v11  ;;  %v3684_v19 = vadd.f32 %v3683_v0, %v3670_v14  ;;  %v6343_v8 = vld [vmem:[%s7926_s9 + $0x18] sm:$0xff]  ;;  %v6340_v11 = vld [vmem:[%s7926_s9] sm:$0xff] }
 0x1ca   :  { %v6352_v14 = vld [vmem:[%s7928_s11 + $0x20] sm:$0xff] }
 0x1cc   :  { %4074 = vmatpush.bf16.msrb.mxu3 %v6343_v8 }
 0x1ce   :  { %v3671_v13 = vpop.f32.mrf.mxu2 }
 0x1cf   :  { %v3685_v44 = vpop.f32.mrf.mxu3  ;;  %v3672_v20 = vadd.f32 %v3671_v13, %v3658_v16  ;;  %v6354_v13 = vld [vmem:[%s7928_s11 + $0x30] sm:$0xff]  ;;  %v6359_v16 = vld [vmem:[%s7925_s8] ss:$0 sm:$0xff] }
 0x1d0   :  { %4075 = vmatpush.bf16.msrb.mxu3 %v6342_v9  ;;  %4156 = vmatpush.bf16.msra.mxu0 %v6354_v13 }
 0x1d1   :  { %v3686_v24 = vadd.f32 %v3685_v44, %v3672_v20  ;;  %v6353_v44 = vld [vmem:[%s7928_s11 + $0x28] sm:$0xff] }
 0x1d4   :  { %4076 = vmatpush.bf16.msrb.mxu3 %v6341_v10  ;;  %4157 = vmatpush.bf16.msra.mxu0 %v6353_v44 }
 0x1d8   :  { %4077 = vmatpush.bf16.msrb.mxu3 %v6340_v11  ;;  %4158 = vmatpush.bf16.msra.mxu0 %v6352_v14 }
 0x1de   :  { %v3697_v15 = vpop.f32.mrf.mxu0 }
 0x1df   :  { %v3711_v18 = vpop.f32.mrf.mxu1  ;;  %v3698_v21 = vadd.f32 %v3697_v15, %v3684_v19 }
 0x1e1   :  { %v3712_v26 = vadd.f32 %v3711_v18, %v3698_v21 }
 0x1e6   :  { %v3725_v22 = vpop.f32.mrf.mxu2  ;;  %v3699_v25 = vpop.f32.mrf.mxu0 }
 0x1e7   :  { %v3739_v23 = vpop.f32.mrf.mxu3  ;;  %v3700_v27 = vadd.f32 %v3699_v25, %v3686_v24  ;;  %v3726_v28 = vadd.f32 %v3725_v22, %v3712_v26  ;;  %v3713_v29 = vpop.f32.mrf.mxu1  ;;  %v6350_v24 = vld [vmem:[%s7928_s11 + $0x10] sm:$0xff]  ;;  %v6349_v25 = vld [vmem:[%s7928_s11 + $0x8] sm:$0xff]  ;;  %v6348_v26 = vld [vmem:[%s7928_s11] sm:$0xff] }
 0x1e9   :  { %v3714_v30 = vadd.f32 %v3713_v29, %v3700_v27  ;;  %v3740_v32 = vadd.f32 %v3739_v23, %v3726_v28  ;;  %v6351_v23 = vld [vmem:[%s7928_s11 + $0x18] sm:$0xff]  ;;  %v6360_v28 = vld [vmem:[%s7927_s10] ss:$0 sm:$0xff] }
 0x1ea   :  { %4159 = vmatpush.bf16.msra.mxu0 %v6351_v23 }
 0x1eb   :  { %v3744_v36 = vmax.f32 %v3740_v32, 0.0 }
 0x1ee   :  { %v3727_v31 = vpop.f32.mrf.mxu2  ;;  %4160 = vmatpush.bf16.msra.mxu0 %v6350_v24 }
 0x1ef   :  { %v3728_v33 = vadd.f32 %v3727_v31, %v3714_v30  ;;  %v3741_v34 = vpop.f32.mrf.mxu3 }
 0x1f1   :  { %v3742_v35 = vadd.f32 %v3741_v34, %v3728_v33 }
 0x1f2   :  { %4161 = vmatpush.bf16.msra.mxu0 %v6349_v25 }
 0x1f3   :  { %v3745_v37 = vmax.f32 %v3742_v35, 0.0  ;;  %v6361_v35 = vld [vmem:[%s7929_s12] ss:$0 sm:$0xff] }
 0x1f5   :  { %v3746_v38 = vpack.c.bf16 %v3745_v37, %v3744_v36 }
 0x1f6   :  { %4162 = vmatpush.bf16.msra.mxu0 %v6348_v26 }
 0x1f7   :  { %3823 = vmatmul.bf16.vlgmr.msrb.gmra.mxu0 %v3746_v38 }
 0x274   :  { %v3824_v48 = vpop.f32.mrf.mxu0 }
 0x275   :  { %v3825_v50 = vadd.f32 %v6357_v49, %v3824_v48 }
 0x277   :  { %v3829_v53 = vmax.f32 %v3825_v50, 0.0 }
 0x27c   :  { %v3826_v51 = vpop.f32.mrf.mxu0 }
 0x27d   :  { %v3827_v52 = vadd.f32 %v6357_v49, %v3826_v51 }
 0x27f   :  { %v3830_v54 = vmax.f32 %v3827_v52, 0.0 }
 0x281   :  { %v3831_v55 = vpack.c.bf16 %v3830_v54, %v3829_v53 }
 0x283   :  { %3908 = vmatmul.bf16.vlgmr.msrb.gmra.mxu1 %v3831_v55 }
 0x300   :  { %v3909_v0 = vpop.f32.mrf.mxu1 }
 0x301   :  { %v3910_v2 = vadd.f32 %v6358_v1, %v3909_v0 }
 0x303   :  { %v3914_v6 = vmax.f32 %v3910_v2, 0.0 }
 0x308   :  { %v3911_v3 = vpop.f32.mrf.mxu1 }
 0x309   :  { %v3912_v5 = vadd.f32 %v6358_v1, %v3911_v3 }
 0x30b   :  { %v3915_v4 = vmax.f32 %v3912_v5, 0.0 }
 0x30d   :  { %v3916_v7 = vpack.c.bf16 %v3915_v4, %v3914_v6 }
 0x30f   :  { %3993 = vmatmul.bf16.vlgmr.msrb.gmra.mxu2 %v3916_v7 }
 0x392   :  { %v3994_v15 = vpop.f32.mrf.mxu2 }
 0x393   :  { %v3995_v17 = vadd.f32 %v6359_v16, %v3994_v15 }
 0x395   :  { %v3999_v20 = vmax.f32 %v3995_v17, 0.0 }
 0x39a   :  { %v3996_v18 = vpop.f32.mrf.mxu2 }
 0x39b   :  { %v3997_v19 = vadd.f32 %v6359_v16, %v3996_v18 }
 0x39d   :  { %v4000_v21 = vmax.f32 %v3997_v19, 0.0 }
 0x39f   :  { %v4001_v22 = vpack.c.bf16 %v4000_v21, %v3999_v20 }
 0x3a1   :  { %4078 = vmatmul.bf16.vlgmr.msrb.gmra.mxu3 %v4001_v22 }
 0x424   :  { %v4079_v27 = vpop.f32.mrf.mxu3 }
 0x425   :  { %v4080_v29 = vadd.f32 %v6360_v28, %v4079_v27 }
 0x427   :  { %v4084_v32 = vmax.f32 %v4080_v29, 0.0 }
 0x42c   :  { %v4081_v30 = vpop.f32.mrf.mxu3 }
 0x42d   :  { %v4082_v31 = vadd.f32 %v6360_v28, %v4081_v30 }
 0x42f   :  { %v4085_v33 = vmax.f32 %v4082_v31, 0.0 }
 0x431   :  { %v4086_v34 = vpack.c.bf16 %v4085_v33, %v4084_v32 }
 0x433   :  { %4163 = vmatmul.bf16.vlgmr.msra.gmra.mxu0 %v4086_v34 }
 0x4b0   :  { %v4164_v36 = vpop.f32.mrf.mxu0 }
 0x4b1   :  { %v4165_v37 = vadd.f32 %v6361_v35, %v4164_v36 }
 0x4b3   :  { %4170 = vst.msk [vmem:[%s7930_s13] sm:$0xff] %vm4169_vm0, %v4165_v37 }
 0x4b8   :  { %v4166_v38 = vpop.f32.mrf.mxu0 }
 0x4b9   :  { %v4167_v39 = vadd.f32 %v6361_v35, %v4166_v38 }
 0x4bb   :  { %4171 = vst.msk [vmem:[%s7930_s13 + $0x8] sm:$0xff] %vm4169_vm0, %v4167_v39 }

</bundles_post_ra>
